<compile_context>
chip_gen: v5e
topology: v5e:2x2
jax: 0.10.0
libtpu: 0.0.40
codegen_flags: <defaults>
</compile_context>

<pallas_src>
import functools

import jax
import jax.numpy as jnp
from jax.experimental import pallas as pl
from jax.experimental.pallas import tpu as pltpu


# --------------------------------------------------------------------------- #
# Kernel
# --------------------------------------------------------------------------- #
def _cross_attn_kernel(text_ref, vis_ref, ln_ref, wqkv_ref, bqkv_ref,
                       wout_ref, bout_ref, tout_ref, vout_ref, *, heads):
    bblk, nt, d = text_ref.shape
    _, nv, _ = vis_ref.shape
    dk = d // heads
    hw = 3 * dk                      # per-head packed width [q | k | v]
    cdt = wqkv_ref.dtype             # MXU operand dtype (bf16 by default)

    mt, mv = bblk * nt, bblk * nv
    t = text_ref[...].reshape(mt, d)
    v = vis_ref[...].reshape(mv, d)

    def layernorm(x, g, b):
        xf = x.astype(jnp.float32)
        mu = jnp.mean(xf, axis=-1, keepdims=True)
        xc = xf - mu
        var = jnp.mean(xc * xc, axis=-1, keepdims=True)
        y = xc * jax.lax.rsqrt(var + 1e-5) * g + b
        return y.astype(cdt)

    tn = layernorm(t, ln_ref[0:1, :], ln_ref[1:2, :])
    vn = layernorm(v, ln_ref[2:3, :], ln_ref[3:4, :])

    def project(xn, si):
        # Fused Q/K/V projection: one (M, D) @ (D, 3D) matmul; f32 accumulate,
        # single wide cast of the result to the MXU operand dtype.
        y = jnp.dot(xn, wqkv_ref[si], preferred_element_type=jnp.float32)
        y = y + bqkv_ref[si:si + 1, :]
        return y.astype(cdt)                                   # (M, 3d)

    qkv_t = project(tn, 0)          # columns head-major: [q_h | k_h | v_h] ...
    qkv_v = project(vn, 1)

    def to_heads(qkv, n):
        # (bblk*n, 3d) -> (heads*bblk, n, 3dk); one contiguous lane slice per
        # head + a single leading-axis concat (no per-head re-concat of Q/K/V).
        parts = [qkv[:, h * hw:(h + 1) * hw].reshape(1, bblk, n, hw)
                 for h in range(heads)]
        return jnp.concatenate(parts, axis=0).reshape(heads * bblk, n, hw)

    hqkv_t = to_heads(qkv_t, nt)    # (g, nt, 3dk), g = heads*bblk (head-major)
    hqkv_v = to_heads(qkv_v, nv)    # (g, nv, 3dk)

    def qkv_split(hm):
        return hm[:, :, 0:dk], hm[:, :, dk:2 * dk], hm[:, :, 2 * dk:3 * dk]

    tq, tk, tv = qkv_split(hqkv_t)
    vq, vk, vv = qkv_split(hqkv_v)

    def mha(q, k, val):
        # q: (g, nq, dk), k/val: (g, nk, dk); 1/sqrt(dk) already folded into q.
        nq = q.shape[1]
        s = jnp.einsum('gqd,gkd->gqk', q, k,
                       preferred_element_type=jnp.float32)
        s = s - jnp.max(s, axis=-1, keepdims=True)
        p = jnp.exp(s)
        p = p * pl.reciprocal(jnp.sum(p, axis=-1, keepdims=True), approx=True)
        a = jnp.einsum('gqk,gkd->gqd', p.astype(cdt), val,
                       preferred_element_type=jnp.float32)     # (g, nq, dk)
        # Merge heads back into the feature (lane) dim: (g,nq,dk)->(bblk*nq,d).
        a = a.reshape(heads, bblk, nq, dk)
        merged = jnp.concatenate([a[h] for h in range(heads)], axis=-1)
        return merged.reshape(bblk * nq, d).astype(cdt)

    a1 = mha(tq, vk, vv)            # text queries  -> vision K/V
    a2 = mha(vq, tk, tv)            # vision queries -> text K/V

    # Output projections (Dropout(p=0.0) == identity).
    out_t = (jnp.dot(a1, wout_ref[0], preferred_element_type=jnp.float32)
             + bout_ref[0:1, :])
    out_v = (jnp.dot(a2, wout_ref[1], preferred_element_type=jnp.float32)
             + bout_ref[1:2, :])

    tout_ref[...] = out_t.reshape(bblk, nt, d).astype(tout_ref.dtype)
    vout_ref[...] = out_v.reshape(bblk, nv, d).astype(vout_ref.dtype)


# --------------------------------------------------------------------------- #
# Generation-aware heuristics (best effort, safe fallbacks)
# --------------------------------------------------------------------------- #
def _tpu_info():
    try:
        return pltpu.get_tpu_info()
    except Exception:
        return None


def _tensorcores_per_chip():
    info = _tpu_info()
    if info is not None:
        for name in ("num_cores", "core_count", "num_tensorcores",
                     "tensorcores_per_chip"):
            val = getattr(info, name, None)
            try:
                val = int(val)
            except (TypeError, ValueError):
                continue
            if 0 < val <= 8:
                return val
    return 1   # v5e / v6e (single TensorCore) default


def _vmem_limit_bytes():
    cap = 64 * 1024 * 1024                      # conservative default (v7x)
    info = _tpu_info()
    if info is not None:
        try:
            cap = int(getattr(info, "vmem_capacity_bytes", cap))
        except Exception:
            pass
    # Leave headroom below physical VMEM; allow up to 100 MiB on 128 MiB parts.
    return int(max(32 * 1024 * 1024,
                   min(cap - 16 * 1024 * 1024, 100 * 1024 * 1024)))


def _pick_batch_block(B, num_cores):
    # Largest divisor of B (<= 8) such that the parallel grid still has at
    # least one step per TensorCore.  Single-TC chips (v5e/v6e) get grid=1 and
    # the biggest block (amortizes ~0.35us/step and grows the MXU M dim); v7x
    # keeps >= 2 steps so both TensorCores have work.
    target = max(1, min(8, B // max(1, num_cores)))
    while B % target:
        target -= 1
    return target


# --------------------------------------------------------------------------- #
# Parameter packing (done ONCE at parameter-load time, not per forward call)
# --------------------------------------------------------------------------- #
def pack_params(ln, W, b, *, heads, compute_dtype=jnp.bfloat16):
    """Pack CrossAttentionBlock parameters for the Pallas kernel.

    W rows: [query1, key1, value1, query2, key2, value2, out_proj1, out_proj2]
    in (in_features, out_features) layout (== PyTorch weight.T); b matches.
    The attention scale 1/sqrt(dk) is folded into the query weights/biases and
    the fused QKV columns are reordered head-major: [q_h | k_h | v_h] per head.
    """
    D = W.shape[-1]
    assert D % heads == 0
    dk = D // heads
    scale = dk ** (-0.5)

    def pack_w(wq, wk, wv):
        w = jnp.stack([wq.reshape(D, heads, dk) * scale,
                       wk.reshape(D, heads, dk),
                       wv.reshape(D, heads, dk)], axis=2)      # (D, heads, 3, dk)
        return w.reshape(D, 3 * D)

    def pack_b(bq, bk, bv):
        bb = jnp.stack([bq.reshape(heads, dk) * scale,
                        bk.reshape(heads, dk),
                        bv.reshape(heads, dk)], axis=1)        # (heads, 3, dk)
        return bb.reshape(3 * D)

    w_qkv = jnp.stack([pack_w(W[0], W[1], W[2]),
                       pack_w(W[3], W[4], W[5])], axis=0).astype(compute_dtype)
    b_qkv = jnp.stack([pack_b(b[0], b[1], b[2]),
                       pack_b(b[3], b[4], b[5])], axis=0).astype(jnp.float32)
    w_out = jnp.stack([W[6], W[7]], axis=0).astype(compute_dtype)
    b_out = jnp.stack([b[6], b[7]], axis=0).astype(jnp.float32)
    ln_p = ln.astype(jnp.float32)
    return ln_p, w_qkv, b_qkv, w_out, b_out


# --------------------------------------------------------------------------- #
# Forward wrapper
# --------------------------------------------------------------------------- #
def cross_attention_block(text, vision, packed, *, heads):
    """text: (B, Nt, D), vision: (B, Nv, D), packed = pack_params(...)."""
    ln_p, w_qkv, b_qkv, w_out, b_out = packed
    B, Nt, D = text.shape
    _, Nv, _ = vision.shape
    assert D % heads == 0
    # NOTE: for real configs D should be a multiple of 128 so output stores stay
    # lane-dense (sub-128 D forces masked partial stores on every generation).

    bblk = _pick_batch_block(B, _tensorcores_per_chip())
    grid = (B // bblk,)
    kernel = functools.partial(_cross_attn_kernel, heads=heads)
    out_shapes = (jax.ShapeDtypeStruct((B, Nt, D), text.dtype),
                  jax.ShapeDtypeStruct((B, Nv, D), vision.dtype))

    def build(weight_mode):
        def const_spec(shape):
            idx = lambda i: (0,) * len(shape)
            if weight_mode is None:
                return pl.BlockSpec(shape, idx)
            return pl.BlockSpec(shape, idx, pipeline_mode=weight_mode)

        grid_spec = pltpu.PrefetchScalarGridSpec(
            num_scalar_prefetch=0,
            grid=grid,
            in_specs=[
                pl.BlockSpec((bblk, Nt, D), lambda i: (i, 0, 0)),
                pl.BlockSpec((bblk, Nv, D), lambda i: (i, 0, 0)),
                const_spec((4, D)),
                const_spec((2, D, 3 * D)),
                const_spec((2, 3 * D)),
                const_spec((2, D, D)),
                const_spec((2, D)),
            ],
            out_specs=[
                pl.BlockSpec((bblk, Nt, D), lambda i: (i, 0, 0)),
                pl.BlockSpec((bblk, Nv, D), lambda i: (i, 0, 0)),
            ],
        )
        return pl.pallas_call(
            kernel,
            out_shape=out_shapes,
            grid_spec=grid_spec,
            compiler_params=pltpu.CompilerParams(
                dimension_semantics=("parallel",),
                vmem_limit_bytes=_vmem_limit_bytes()),
        )

    args = (text, vision, ln_p, w_qkv, b_qkv, w_out, b_out)
    try:
        # Constant-index weight blocks gain nothing from double buffering;
        # single-buffer them to halve their resident VMEM (key on v7x).
        return build(pl.Buffered(1))(*args)
    except Exception:
        # TODO(synk): fall back if this Pallas version rejects single-buffered
        # (Buffered(1)) constant blocks.
        return build(None)(*args)


# --------------------------------------------------------------------------- #
# Pure-JAX reference (matches the PyTorch forward exactly, in f32)
# --------------------------------------------------------------------------- #
def reference(text, vision, ln, W, b, *, heads):
    B, Nt, D = text.shape
    _, Nv, _ = vision.shape
    dk = D // heads

    def layernorm(x, g, bt):
        mu = x.mean(-1, keepdims=True)
        var = ((x - mu) ** 2).mean(-1, keepdims=True)
        return (x - mu) / jnp.sqrt(var + 1e-5) * g + bt

    tn = layernorm(text, ln[0], ln[1])
    vn = layernorm(vision, ln[2], ln[3])

    def lin(x, i):
        return x @ W[i] + b[i]

    tq, tk, tv = lin(tn, 0), lin(tn, 1), lin(tn, 2)
    vq, vk, vv = lin(vn, 3), lin(vn, 4), lin(vn, 5)

    def split(x):
        b_, n, _ = x.shape
        return x.reshape(b_, n, heads, dk).transpose(0, 2, 1, 3)

    tqh, tkh, tvh = split(tq), split(tk), split(tv)
    vqh, vkh, vvh = split(vq), split(vk), split(vv)

    s1 = jnp.einsum('bhnd,bhmd->bhnm', tqh, vkh) * dk ** -0.5
    a1 = jnp.einsum('bhnm,bhmd->bhnd', jax.nn.softmax(s1, -1), vvh)
    a1 = a1.transpose(0, 2, 1, 3).reshape(B, Nt, D)

    s2 = jnp.einsum('bhnd,bhmd->bhnm', vqh, tkh) * dk ** -0.5
    a2 = jnp.einsum('bhnm,bhmd->bhnd', jax.nn.softmax(s2, -1), tvh)
    a2 = a2.transpose(0, 2, 1, 3).reshape(B, Nv, D)

    return lin(a1, 6), lin(a2, 7)


if __name__ == "__main__":
    # Small but lane-dense demo shapes (D multiple of 128 -> unmasked stores).
    B, Nt, Nv, D, HEADS = 2, 8, 16, 128, 8

    key = jax.random.PRNGKey(0)
    k_w, k_b, k_g, k_bt, k_t, k_v = jax.random.split(key, 6)

    # W rows: [query1, key1, value1, query2, key2, value2, out_proj1, out_proj2]
    # in (in_features, out_features) layout (== PyTorch weight.T).
    W = jax.random.normal(k_w, (8, D, D), jnp.float32) * 0.05
    b = jax.random.normal(k_b, (8, D), jnp.float32) * 0.01
    gamma = 1.0 + 0.1 * jax.random.normal(k_g, (2, D), jnp.float32)
    beta = 0.05 * jax.random.normal(k_bt, (2, D), jnp.float32)
    ln = jnp.stack([gamma[0], beta[0], gamma[1], beta[1]], axis=0)  # (4, D)

    text = jax.random.normal(k_t, (B, Nt, D), jnp.float32)
    vision = jax.random.normal(k_v, (B, Nv, D), jnp.float32)

    # Pack parameters ONCE (parameter-load time), not per forward call.
    packed = pack_params(ln, W, b, heads=HEADS, compute_dtype=jnp.bfloat16)

    text_out, vision_out = cross_attention_block(text, vision, packed,
                                                 heads=HEADS)
    jax.block_until_ready((text_out, vision_out))

    ref_t, ref_v = reference(text, vision, ln, W, b, heads=HEADS)
    # Tolerance covers bf16 MXU operands + approx (EUP) softmax reciprocal vs
    # the exact f32 reference.
    assert jnp.allclose(text_out, ref_t, atol=2e-2, rtol=2e-2), "text_out mismatch"
    assert jnp.allclose(vision_out, ref_v, atol=2e-2, rtol=2e-2), "vision_out mismatch"

    print("KERNEL_OK")
</pallas_src>

<mosaic_0001>
module attributes {stable_mosaic.version = 11 : i64} {
  func.func @_cross_attn_kernel(%arg0: i32, %arg1: memref<2x8x128xf32, #tpu.memory_space<vmem>>, %arg2: memref<2x16x128xf32, #tpu.memory_space<vmem>>, %arg3: memref<4x128xf32, #tpu.memory_space<vmem>>, %arg4: memref<2x128x384xbf16, #tpu.memory_space<vmem>>, %arg5: memref<2x384xf32, #tpu.memory_space<vmem>>, %arg6: memref<2x128x128xbf16, #tpu.memory_space<vmem>>, %arg7: memref<2x128xf32, #tpu.memory_space<vmem>>, %arg8: memref<2x8x128xf32, #tpu.memory_space<vmem>>, %arg9: memref<2x16x128xf32, #tpu.memory_space<vmem>>) attributes {dimension_semantics = [#tpu.dimension_semantics<parallel>], iteration_bounds = array<i64: 1>, scalar_prefetch = 0 : i64, scratch_operands = 0 : i64, tpu.core_type = #tpu.core_type<tc>, window_params = [{transform_indices = @transform_0, window_bounds = array<i64: 2, 8, 128>}, {transform_indices = @transform_1, window_bounds = array<i64: 2, 16, 128>}, {pipeline_mode = #tpu.pipeline_mode<synchronous>, transform_indices = @transform_2, window_bounds = array<i64: 4, 128>}, {pipeline_mode = #tpu.pipeline_mode<synchronous>, transform_indices = @transform_3, window_bounds = array<i64: 2, 128, 384>}, {pipeline_mode = #tpu.pipeline_mode<synchronous>, transform_indices = @transform_4, window_bounds = array<i64: 2, 384>}, {pipeline_mode = #tpu.pipeline_mode<synchronous>, transform_indices = @transform_5, window_bounds = array<i64: 2, 128, 128>}, {pipeline_mode = #tpu.pipeline_mode<synchronous>, transform_indices = @transform_6, window_bounds = array<i64: 2, 128>}, {transform_indices = @transform_7, window_bounds = array<i64: 2, 8, 128>}, {transform_indices = @transform_8, window_bounds = array<i64: 2, 16, 128>}]} {
    %c0 = arith.constant 0 : index
    %c0_0 = arith.constant 0 : index
    %c0_1 = arith.constant 0 : index
    %0 = vector.load %arg1[%c0, %c0_0, %c0_1] : memref<2x8x128xf32, #tpu.memory_space<vmem>>, vector<2x8x128xf32>
    %1 = vector.shape_cast %0 : vector<2x8x128xf32> to vector<16x128xf32>
    %c0_2 = arith.constant 0 : index
    %c0_3 = arith.constant 0 : index
    %c0_4 = arith.constant 0 : index
    %2 = vector.load %arg2[%c0_2, %c0_3, %c0_4] : memref<2x16x128xf32, #tpu.memory_space<vmem>>, vector<2x16x128xf32>
    %3 = vector.shape_cast %2 : vector<2x16x128xf32> to vector<32x128xf32>
    %c0_5 = arith.constant 0 : index
    %c0_6 = arith.constant 0 : index
    %4 = vector.load %arg3[%c0_5, %c0_6] : memref<4x128xf32, #tpu.memory_space<vmem>>, vector<1x128xf32>
    %c1 = arith.constant 1 : index
    %c0_7 = arith.constant 0 : index
    %5 = vector.load %arg3[%c1, %c0_7] : memref<4x128xf32, #tpu.memory_space<vmem>>, vector<1x128xf32>
    %cst = arith.constant dense<0.000000e+00> : vector<16xf32>
    %6 = vector.multi_reduction <add>, %1, %cst [1] : vector<16x128xf32> to vector<16xf32>
    %7 = vector.shape_cast %6 : vector<16xf32> to vector<16x1xf32>
    %cst_8 = arith.constant 1.280000e+02 : f32
    %8 = vector.broadcast %cst_8 : f32 to vector<16x1xf32>
    %9 = arith.divf %7, %8 : vector<16x1xf32>
    %10 = vector.broadcast %9 : vector<16x1xf32> to vector<16x128xf32>
    %11 = arith.subf %1, %10 : vector<16x128xf32>
    %12 = arith.mulf %11, %11 : vector<16x128xf32>
    %cst_9 = arith.constant dense<0.000000e+00> : vector<16xf32>
    %13 = vector.multi_reduction <add>, %12, %cst_9 [1] : vector<16x128xf32> to vector<16xf32>
    %14 = vector.shape_cast %13 : vector<16xf32> to vector<16x1xf32>
    %cst_10 = arith.constant 1.280000e+02 : f32
    %15 = vector.broadcast %cst_10 : f32 to vector<16x1xf32>
    %16 = arith.divf %14, %15 : vector<16x1xf32>
    %cst_11 = arith.constant 9.99999974E-6 : f32
    %17 = vector.broadcast %cst_11 : f32 to vector<16x1xf32>
    %18 = arith.addf %16, %17 : vector<16x1xf32>
    %19 = math.rsqrt %18 : vector<16x1xf32>
    %20 = vector.broadcast %19 : vector<16x1xf32> to vector<16x128xf32>
    %21 = arith.mulf %11, %20 : vector<16x128xf32>
    %22 = vector.broadcast %4 : vector<1x128xf32> to vector<16x128xf32>
    %23 = arith.mulf %21, %22 : vector<16x128xf32>
    %24 = vector.broadcast %5 : vector<1x128xf32> to vector<16x128xf32>
    %25 = arith.addf %23, %24 : vector<16x128xf32>
    %26 = arith.truncf %25 : vector<16x128xf32> to vector<16x128xbf16>
    %c2 = arith.constant 2 : index
    %c0_12 = arith.constant 0 : index
    %27 = vector.load %arg3[%c2, %c0_12] : memref<4x128xf32, #tpu.memory_space<vmem>>, vector<1x128xf32>
    %c3 = arith.constant 3 : index
    %c0_13 = arith.constant 0 : index
    %28 = vector.load %arg3[%c3, %c0_13] : memref<4x128xf32, #tpu.memory_space<vmem>>, vector<1x128xf32>
    %cst_14 = arith.constant dense<0.000000e+00> : vector<32xf32>
    %29 = vector.multi_reduction <add>, %3, %cst_14 [1] : vector<32x128xf32> to vector<32xf32>
    %30 = vector.shape_cast %29 : vector<32xf32> to vector<32x1xf32>
    %cst_15 = arith.constant 1.280000e+02 : f32
    %31 = vector.broadcast %cst_15 : f32 to vector<32x1xf32>
    %32 = arith.divf %30, %31 : vector<32x1xf32>
    %33 = vector.broadcast %32 : vector<32x1xf32> to vector<32x128xf32>
    %34 = arith.subf %3, %33 : vector<32x128xf32>
    %35 = arith.mulf %34, %34 : vector<32x128xf32>
    %cst_16 = arith.constant dense<0.000000e+00> : vector<32xf32>
    %36 = vector.multi_reduction <add>, %35, %cst_16 [1] : vector<32x128xf32> to vector<32xf32>
    %37 = vector.shape_cast %36 : vector<32xf32> to vector<32x1xf32>
    %cst_17 = arith.constant 1.280000e+02 : f32
    %38 = vector.broadcast %cst_17 : f32 to vector<32x1xf32>
    %39 = arith.divf %37, %38 : vector<32x1xf32>
    %cst_18 = arith.constant 9.99999974E-6 : f32
    %40 = vector.broadcast %cst_18 : f32 to vector<32x1xf32>
    %41 = arith.addf %39, %40 : vector<32x1xf32>
    %42 = math.rsqrt %41 : vector<32x1xf32>
    %43 = vector.broadcast %42 : vector<32x1xf32> to vector<32x128xf32>
    %44 = arith.mulf %34, %43 : vector<32x128xf32>
    %45 = vector.broadcast %27 : vector<1x128xf32> to vector<32x128xf32>
    %46 = arith.mulf %44, %45 : vector<32x128xf32>
    %47 = vector.broadcast %28 : vector<1x128xf32> to vector<32x128xf32>
    %48 = arith.addf %46, %47 : vector<32x128xf32>
    %49 = arith.truncf %48 : vector<32x128xf32> to vector<32x128xbf16>
    %c0_19 = arith.constant 0 : index
    %c0_20 = arith.constant 0 : index
    %c0_21 = arith.constant 0 : index
    %50 = vector.load %arg4[%c0_19, %c0_20, %c0_21] : memref<2x128x384xbf16, #tpu.memory_space<vmem>>, vector<1x128x384xbf16>
    %51 = vector.shape_cast %50 : vector<1x128x384xbf16> to vector<128x384xbf16>
    %cst_22 = arith.constant dense<0.000000e+00> : vector<16x384xf32>
    %52 = tpu.matmul %26, %51, %cst_22 {dimension_numbers = #tpu.dot_dimension_numbers<[1], [0], [0], [1], [0, 0, 1, 1], [], []>} : vector<16x128xbf16>, vector<128x384xbf16>, vector<16x384xf32> -> vector<16x384xf32>
    %c0_23 = arith.constant 0 : index
    %c0_24 = arith.constant 0 : index
    %53 = vector.load %arg5[%c0_23, %c0_24] : memref<2x384xf32, #tpu.memory_space<vmem>>, vector<1x384xf32>
    %54 = vector.broadcast %53 : vector<1x384xf32> to vector<16x384xf32>
    %55 = arith.addf %52, %54 : vector<16x384xf32>
    %56 = arith.truncf %55 : vector<16x384xf32> to vector<16x384xbf16>
    %c1_25 = arith.constant 1 : index
    %c0_26 = arith.constant 0 : index
    %c0_27 = arith.constant 0 : index
    %57 = vector.load %arg4[%c1_25, %c0_26, %c0_27] : memref<2x128x384xbf16, #tpu.memory_space<vmem>>, vector<1x128x384xbf16>
    %58 = vector.shape_cast %57 : vector<1x128x384xbf16> to vector<128x384xbf16>
    %cst_28 = arith.constant dense<0.000000e+00> : vector<32x384xf32>
    %59 = tpu.matmul %49, %58, %cst_28 {dimension_numbers = #tpu.dot_dimension_numbers<[1], [0], [0], [1], [0, 0, 1, 1], [], []>} : vector<32x128xbf16>, vector<128x384xbf16>, vector<32x384xf32> -> vector<32x384xf32>
    %c1_29 = arith.constant 1 : index
    %c0_30 = arith.constant 0 : index
    %60 = vector.load %arg5[%c1_29, %c0_30] : memref<2x384xf32, #tpu.memory_space<vmem>>, vector<1x384xf32>
    %61 = vector.broadcast %60 : vector<1x384xf32> to vector<32x384xf32>
    %62 = arith.addf %59, %61 : vector<32x384xf32>
    %63 = arith.truncf %62 : vector<32x384xf32> to vector<32x384xbf16>
    %64 = vector.extract_strided_slice %56 {offsets = [0, 0], sizes = [16, 48], strides = [1, 1]} : vector<16x384xbf16> to vector<16x48xbf16>
    %65 = vector.shape_cast %64 : vector<16x48xbf16> to vector<1x2x8x48xbf16>
    %66 = vector.extract_strided_slice %56 {offsets = [0, 48], sizes = [16, 48], strides = [1, 1]} : vector<16x384xbf16> to vector<16x48xbf16>
    %67 = vector.shape_cast %66 : vector<16x48xbf16> to vector<1x2x8x48xbf16>
    %68 = vector.extract_strided_slice %56 {offsets = [0, 96], sizes = [16, 48], strides = [1, 1]} : vector<16x384xbf16> to vector<16x48xbf16>
    %69 = vector.shape_cast %68 : vector<16x48xbf16> to vector<1x2x8x48xbf16>
    %70 = vector.extract_strided_slice %56 {offsets = [0, 144], sizes = [16, 48], strides = [1, 1]} : vector<16x384xbf16> to vector<16x48xbf16>
    %71 = vector.shape_cast %70 : vector<16x48xbf16> to vector<1x2x8x48xbf16>
    %72 = vector.extract_strided_slice %56 {offsets = [0, 192], sizes = [16, 48], strides = [1, 1]} : vector<16x384xbf16> to vector<16x48xbf16>
    %73 = vector.shape_cast %72 : vector<16x48xbf16> to vector<1x2x8x48xbf16>
    %74 = vector.extract_strided_slice %56 {offsets = [0, 240], sizes = [16, 48], strides = [1, 1]} : vector<16x384xbf16> to vector<16x48xbf16>
    %75 = vector.shape_cast %74 : vector<16x48xbf16> to vector<1x2x8x48xbf16>
    %76 = vector.extract_strided_slice %56 {offsets = [0, 288], sizes = [16, 48], strides = [1, 1]} : vector<16x384xbf16> to vector<16x48xbf16>
    %77 = vector.shape_cast %76 : vector<16x48xbf16> to vector<1x2x8x48xbf16>
    %78 = vector.extract_strided_slice %56 {offsets = [0, 336], sizes = [16, 48], strides = [1, 1]} : vector<16x384xbf16> to vector<16x48xbf16>
    %79 = vector.shape_cast %78 : vector<16x48xbf16> to vector<1x2x8x48xbf16>
    %80 = tpu.concatenate %65, %67, %69, %71, %73, %75, %77, %79 in 0 : vector<1x2x8x48xbf16>, vector<1x2x8x48xbf16>, vector<1x2x8x48xbf16>, vector<1x2x8x48xbf16>, vector<1x2x8x48xbf16>, vector<1x2x8x48xbf16>, vector<1x2x8x48xbf16>, vector<1x2x8x48xbf16> -> vector<8x2x8x48xbf16>
    %81 = vector.shape_cast %80 : vector<8x2x8x48xbf16> to vector<16x8x48xbf16>
    %82 = vector.extract_strided_slice %63 {offsets = [0, 0], sizes = [32, 48], strides = [1, 1]} : vector<32x384xbf16> to vector<32x48xbf16>
    %83 = vector.shape_cast %82 : vector<32x48xbf16> to vector<1x2x16x48xbf16>
    %84 = vector.extract_strided_slice %63 {offsets = [0, 48], sizes = [32, 48], strides = [1, 1]} : vector<32x384xbf16> to vector<32x48xbf16>
    %85 = vector.shape_cast %84 : vector<32x48xbf16> to vector<1x2x16x48xbf16>
    %86 = vector.extract_strided_slice %63 {offsets = [0, 96], sizes = [32, 48], strides = [1, 1]} : vector<32x384xbf16> to vector<32x48xbf16>
    %87 = vector.shape_cast %86 : vector<32x48xbf16> to vector<1x2x16x48xbf16>
    %88 = vector.extract_strided_slice %63 {offsets = [0, 144], sizes = [32, 48], strides = [1, 1]} : vector<32x384xbf16> to vector<32x48xbf16>
    %89 = vector.shape_cast %88 : vector<32x48xbf16> to vector<1x2x16x48xbf16>
    %90 = vector.extract_strided_slice %63 {offsets = [0, 192], sizes = [32, 48], strides = [1, 1]} : vector<32x384xbf16> to vector<32x48xbf16>
    %91 = vector.shape_cast %90 : vector<32x48xbf16> to vector<1x2x16x48xbf16>
    %92 = vector.extract_strided_slice %63 {offsets = [0, 240], sizes = [32, 48], strides = [1, 1]} : vector<32x384xbf16> to vector<32x48xbf16>
    %93 = vector.shape_cast %92 : vector<32x48xbf16> to vector<1x2x16x48xbf16>
    %94 = vector.extract_strided_slice %63 {offsets = [0, 288], sizes = [32, 48], strides = [1, 1]} : vector<32x384xbf16> to vector<32x48xbf16>
    %95 = vector.shape_cast %94 : vector<32x48xbf16> to vector<1x2x16x48xbf16>
    %96 = vector.extract_strided_slice %63 {offsets = [0, 336], sizes = [32, 48], strides = [1, 1]} : vector<32x384xbf16> to vector<32x48xbf16>
    %97 = vector.shape_cast %96 : vector<32x48xbf16> to vector<1x2x16x48xbf16>
    %98 = tpu.concatenate %83, %85, %87, %89, %91, %93, %95, %97 in 0 : vector<1x2x16x48xbf16>, vector<1x2x16x48xbf16>, vector<1x2x16x48xbf16>, vector<1x2x16x48xbf16>, vector<1x2x16x48xbf16>, vector<1x2x16x48xbf16>, vector<1x2x16x48xbf16>, vector<1x2x16x48xbf16> -> vector<8x2x16x48xbf16>
    %99 = vector.shape_cast %98 : vector<8x2x16x48xbf16> to vector<16x16x48xbf16>
    %100 = vector.extract_strided_slice %81 {offsets = [0, 0, 0], sizes = [16, 8, 16], strides = [1, 1, 1]} : vector<16x8x48xbf16> to vector<16x8x16xbf16>
    %101 = vector.extract_strided_slice %81 {offsets = [0, 0, 16], sizes = [16, 8, 16], strides = [1, 1, 1]} : vector<16x8x48xbf16> to vector<16x8x16xbf16>
    %102 = vector.extract_strided_slice %81 {offsets = [0, 0, 32], sizes = [16, 8, 16], strides = [1, 1, 1]} : vector<16x8x48xbf16> to vector<16x8x16xbf16>
    %103 = vector.extract_strided_slice %99 {offsets = [0, 0, 0], sizes = [16, 16, 16], strides = [1, 1, 1]} : vector<16x16x48xbf16> to vector<16x16x16xbf16>
    %104 = vector.extract_strided_slice %99 {offsets = [0, 0, 16], sizes = [16, 16, 16], strides = [1, 1, 1]} : vector<16x16x48xbf16> to vector<16x16x16xbf16>
    %105 = vector.extract_strided_slice %99 {offsets = [0, 0, 32], sizes = [16, 16, 16], strides = [1, 1, 1]} : vector<16x16x48xbf16> to vector<16x16x16xbf16>
    "tpu.trace_start"() <{level = 10 : i32, message = "gqd,gkd->gqk"}> : () -> ()
    %cst_31 = arith.constant dense<0.000000e+00> : vector<16x8x16xf32>
    %106 = tpu.matmul %100, %104, %cst_31 {dimension_numbers = #tpu.dot_dimension_numbers<[2], [2], [1], [1], [0, 0, 0, 1, 1, 1], [0], [0]>} : vector<16x8x16xbf16>, vector<16x16x16xbf16>, vector<16x8x16xf32> -> vector<16x8x16xf32>
    "tpu.trace_stop"() : () -> ()
    %cst_32 = arith.constant dense<0xFF800000> : vector<16x8xf32>
    %107 = vector.multi_reduction <maximumf>, %106, %cst_32 [2] : vector<16x8x16xf32> to vector<16x8xf32>
    %108 = vector.shape_cast %107 : vector<16x8xf32> to vector<16x8x1xf32>
    %109 = vector.broadcast %108 : vector<16x8x1xf32> to vector<16x8x16xf32>
    %110 = arith.subf %106, %109 : vector<16x8x16xf32>
    %111 = math.exp %110 : vector<16x8x16xf32>
    %cst_33 = arith.constant dense<0.000000e+00> : vector<16x8xf32>
    %112 = vector.multi_reduction <add>, %111, %cst_33 [2] : vector<16x8x16xf32> to vector<16x8xf32>
    %113 = vector.shape_cast %112 : vector<16x8xf32> to vector<16x8x1xf32>
    %114 = tpu.reciprocal %113 {approx = true} : vector<16x8x1xf32> -> vector<16x8x1xf32>
    %115 = vector.broadcast %114 : vector<16x8x1xf32> to vector<16x8x16xf32>
    %116 = arith.mulf %111, %115 : vector<16x8x16xf32>
    %117 = arith.truncf %116 : vector<16x8x16xf32> to vector<16x8x16xbf16>
    "tpu.trace_start"() <{level = 10 : i32, message = "gqk,gkd->gqd"}> : () -> ()
    %cst_34 = arith.constant dense<0.000000e+00> : vector<16x8x16xf32>
    %118 = tpu.matmul %117, %105, %cst_34 {dimension_numbers = #tpu.dot_dimension_numbers<[2], [1], [1], [2], [0, 0, 0, 1, 1, 2], [0], [0]>} : vector<16x8x16xbf16>, vector<16x16x16xbf16>, vector<16x8x16xf32> -> vector<16x8x16xf32>
    "tpu.trace_stop"() : () -> ()
    %119 = vector.shape_cast %118 : vector<16x8x16xf32> to vector<8x2x8x16xf32>
    %120 = vector.extract_strided_slice %119 {offsets = [0, 0, 0, 0], sizes = [1, 2, 8, 16], strides = [1, 1, 1, 1]} : vector<8x2x8x16xf32> to vector<1x2x8x16xf32>
    %121 = vector.shape_cast %120 : vector<1x2x8x16xf32> to vector<2x8x16xf32>
    %122 = vector.extract_strided_slice %119 {offsets = [1, 0, 0, 0], sizes = [1, 2, 8, 16], strides = [1, 1, 1, 1]} : vector<8x2x8x16xf32> to vector<1x2x8x16xf32>
    %123 = vector.shape_cast %122 : vector<1x2x8x16xf32> to vector<2x8x16xf32>
    %124 = vector.extract_strided_slice %119 {offsets = [2, 0, 0, 0], sizes = [1, 2, 8, 16], strides = [1, 1, 1, 1]} : vector<8x2x8x16xf32> to vector<1x2x8x16xf32>
    %125 = vector.shape_cast %124 : vector<1x2x8x16xf32> to vector<2x8x16xf32>
    %126 = vector.extract_strided_slice %119 {offsets = [3, 0, 0, 0], sizes = [1, 2, 8, 16], strides = [1, 1, 1, 1]} : vector<8x2x8x16xf32> to vector<1x2x8x16xf32>
    %127 = vector.shape_cast %126 : vector<1x2x8x16xf32> to vector<2x8x16xf32>
    %128 = vector.extract_strided_slice %119 {offsets = [4, 0, 0, 0], sizes = [1, 2, 8, 16], strides = [1, 1, 1, 1]} : vector<8x2x8x16xf32> to vector<1x2x8x16xf32>
    %129 = vector.shape_cast %128 : vector<1x2x8x16xf32> to vector<2x8x16xf32>
    %130 = vector.extract_strided_slice %119 {offsets = [5, 0, 0, 0], sizes = [1, 2, 8, 16], strides = [1, 1, 1, 1]} : vector<8x2x8x16xf32> to vector<1x2x8x16xf32>
    %131 = vector.shape_cast %130 : vector<1x2x8x16xf32> to vector<2x8x16xf32>
    %132 = vector.extract_strided_slice %119 {offsets = [6, 0, 0, 0], sizes = [1, 2, 8, 16], strides = [1, 1, 1, 1]} : vector<8x2x8x16xf32> to vector<1x2x8x16xf32>
    %133 = vector.shape_cast %132 : vector<1x2x8x16xf32> to vector<2x8x16xf32>
    %134 = vector.extract_strided_slice %119 {offsets = [7, 0, 0, 0], sizes = [1, 2, 8, 16], strides = [1, 1, 1, 1]} : vector<8x2x8x16xf32> to vector<1x2x8x16xf32>
    %135 = vector.shape_cast %134 : vector<1x2x8x16xf32> to vector<2x8x16xf32>
    %136 = tpu.concatenate %121, %123, %125, %127, %129, %131, %133, %135 in 2 : vector<2x8x16xf32>, vector<2x8x16xf32>, vector<2x8x16xf32>, vector<2x8x16xf32>, vector<2x8x16xf32>, vector<2x8x16xf32>, vector<2x8x16xf32>, vector<2x8x16xf32> -> vector<2x8x128xf32>
    %137 = vector.shape_cast %136 : vector<2x8x128xf32> to vector<16x128xf32>
    %138 = arith.truncf %137 : vector<16x128xf32> to vector<16x128xbf16>
    "tpu.trace_start"() <{level = 10 : i32, message = "gqd,gkd->gqk"}> : () -> ()
    %cst_35 = arith.constant dense<0.000000e+00> : vector<16x16x8xf32>
    %139 = tpu.matmul %103, %101, %cst_35 {dimension_numbers = #tpu.dot_dimension_numbers<[2], [2], [1], [1], [0, 0, 0, 1, 1, 1], [0], [0]>} : vector<16x16x16xbf16>, vector<16x8x16xbf16>, vector<16x16x8xf32> -> vector<16x16x8xf32>
    "tpu.trace_stop"() : () -> ()
    %cst_36 = arith.constant dense<0xFF800000> : vector<16x16xf32>
    %140 = vector.multi_reduction <maximumf>, %139, %cst_36 [2] : vector<16x16x8xf32> to vector<16x16xf32>
    %141 = vector.shape_cast %140 : vector<16x16xf32> to vector<16x16x1xf32>
    %142 = vector.broadcast %141 : vector<16x16x1xf32> to vector<16x16x8xf32>
    %143 = arith.subf %139, %142 : vector<16x16x8xf32>
    %144 = math.exp %143 : vector<16x16x8xf32>
    %cst_37 = arith.constant dense<0.000000e+00> : vector<16x16xf32>
    %145 = vector.multi_reduction <add>, %144, %cst_37 [2] : vector<16x16x8xf32> to vector<16x16xf32>
    %146 = vector.shape_cast %145 : vector<16x16xf32> to vector<16x16x1xf32>
    %147 = tpu.reciprocal %146 {approx = true} : vector<16x16x1xf32> -> vector<16x16x1xf32>
    %148 = vector.broadcast %147 : vector<16x16x1xf32> to vector<16x16x8xf32>
    %149 = arith.mulf %144, %148 : vector<16x16x8xf32>
    %150 = arith.truncf %149 : vector<16x16x8xf32> to vector<16x16x8xbf16>
    "tpu.trace_start"() <{level = 10 : i32, message = "gqk,gkd->gqd"}> : () -> ()
    %cst_38 = arith.constant dense<0.000000e+00> : vector<16x16x16xf32>
    %151 = tpu.matmul %150, %102, %cst_38 {dimension_numbers = #tpu.dot_dimension_numbers<[2], [1], [1], [2], [0, 0, 0, 1, 1, 2], [0], [0]>} : vector<16x16x8xbf16>, vector<16x8x16xbf16>, vector<16x16x16xf32> -> vector<16x16x16xf32>
    "tpu.trace_stop"() : () -> ()
    %152 = vector.shape_cast %151 : vector<16x16x16xf32> to vector<8x2x16x16xf32>
    %153 = vector.extract_strided_slice %152 {offsets = [0, 0, 0, 0], sizes = [1, 2, 16, 16], strides = [1, 1, 1, 1]} : vector<8x2x16x16xf32> to vector<1x2x16x16xf32>
    %154 = vector.shape_cast %153 : vector<1x2x16x16xf32> to vector<2x16x16xf32>
    %155 = vector.extract_strided_slice %152 {offsets = [1, 0, 0, 0], sizes = [1, 2, 16, 16], strides = [1, 1, 1, 1]} : vector<8x2x16x16xf32> to vector<1x2x16x16xf32>
    %156 = vector.shape_cast %155 : vector<1x2x16x16xf32> to vector<2x16x16xf32>
    %157 = vector.extract_strided_slice %152 {offsets = [2, 0, 0, 0], sizes = [1, 2, 16, 16], strides = [1, 1, 1, 1]} : vector<8x2x16x16xf32> to vector<1x2x16x16xf32>
    %158 = vector.shape_cast %157 : vector<1x2x16x16xf32> to vector<2x16x16xf32>
    %159 = vector.extract_strided_slice %152 {offsets = [3, 0, 0, 0], sizes = [1, 2, 16, 16], strides = [1, 1, 1, 1]} : vector<8x2x16x16xf32> to vector<1x2x16x16xf32>
    %160 = vector.shape_cast %159 : vector<1x2x16x16xf32> to vector<2x16x16xf32>
    %161 = vector.extract_strided_slice %152 {offsets = [4, 0, 0, 0], sizes = [1, 2, 16, 16], strides = [1, 1, 1, 1]} : vector<8x2x16x16xf32> to vector<1x2x16x16xf32>
    %162 = vector.shape_cast %161 : vector<1x2x16x16xf32> to vector<2x16x16xf32>
    %163 = vector.extract_strided_slice %152 {offsets = [5, 0, 0, 0], sizes = [1, 2, 16, 16], strides = [1, 1, 1, 1]} : vector<8x2x16x16xf32> to vector<1x2x16x16xf32>
    %164 = vector.shape_cast %163 : vector<1x2x16x16xf32> to vector<2x16x16xf32>
    %165 = vector.extract_strided_slice %152 {offsets = [6, 0, 0, 0], sizes = [1, 2, 16, 16], strides = [1, 1, 1, 1]} : vector<8x2x16x16xf32> to vector<1x2x16x16xf32>
    %166 = vector.shape_cast %165 : vector<1x2x16x16xf32> to vector<2x16x16xf32>
    %167 = vector.extract_strided_slice %152 {offsets = [7, 0, 0, 0], sizes = [1, 2, 16, 16], strides = [1, 1, 1, 1]} : vector<8x2x16x16xf32> to vector<1x2x16x16xf32>
    %168 = vector.shape_cast %167 : vector<1x2x16x16xf32> to vector<2x16x16xf32>
    %169 = tpu.concatenate %154, %156, %158, %160, %162, %164, %166, %168 in 2 : vector<2x16x16xf32>, vector<2x16x16xf32>, vector<2x16x16xf32>, vector<2x16x16xf32>, vector<2x16x16xf32>, vector<2x16x16xf32>, vector<2x16x16xf32>, vector<2x16x16xf32> -> vector<2x16x128xf32>
    %170 = vector.shape_cast %169 : vector<2x16x128xf32> to vector<32x128xf32>
    %171 = arith.truncf %170 : vector<32x128xf32> to vector<32x128xbf16>
    %c0_39 = arith.constant 0 : index
    %c0_40 = arith.constant 0 : index
    %c0_41 = arith.constant 0 : index
    %172 = vector.load %arg6[%c0_39, %c0_40, %c0_41] : memref<2x128x128xbf16, #tpu.memory_space<vmem>>, vector<1x128x128xbf16>
    %173 = vector.shape_cast %172 : vector<1x128x128xbf16> to vector<128x128xbf16>
    %cst_42 = arith.constant dense<0.000000e+00> : vector<16x128xf32>
    %174 = tpu.matmul %138, %173, %cst_42 {dimension_numbers = #tpu.dot_dimension_numbers<[1], [0], [0], [1], [0, 0, 1, 1], [], []>} : vector<16x128xbf16>, vector<128x128xbf16>, vector<16x128xf32> -> vector<16x128xf32>
    %c0_43 = arith.constant 0 : index
    %c0_44 = arith.constant 0 : index
    %175 = vector.load %arg7[%c0_43, %c0_44] : memref<2x128xf32, #tpu.memory_space<vmem>>, vector<1x128xf32>
    %176 = vector.broadcast %175 : vector<1x128xf32> to vector<16x128xf32>
    %177 = arith.addf %174, %176 : vector<16x128xf32>
    %c1_45 = arith.constant 1 : index
    %c0_46 = arith.constant 0 : index
    %c0_47 = arith.constant 0 : index
    %178 = vector.load %arg6[%c1_45, %c0_46, %c0_47] : memref<2x128x128xbf16, #tpu.memory_space<vmem>>, vector<1x128x128xbf16>
    %179 = vector.shape_cast %178 : vector<1x128x128xbf16> to vector<128x128xbf16>
    %cst_48 = arith.constant dense<0.000000e+00> : vector<32x128xf32>
    %180 = tpu.matmul %171, %179, %cst_48 {dimension_numbers = #tpu.dot_dimension_numbers<[1], [0], [0], [1], [0, 0, 1, 1], [], []>} : vector<32x128xbf16>, vector<128x128xbf16>, vector<32x128xf32> -> vector<32x128xf32>
    %c1_49 = arith.constant 1 : index
    %c0_50 = arith.constant 0 : index
    %181 = vector.load %arg7[%c1_49, %c0_50] : memref<2x128xf32, #tpu.memory_space<vmem>>, vector<1x128xf32>
    %182 = vector.broadcast %181 : vector<1x128xf32> to vector<32x128xf32>
    %183 = arith.addf %180, %182 : vector<32x128xf32>
    %184 = vector.shape_cast %177 : vector<16x128xf32> to vector<2x8x128xf32>
    %c0_51 = arith.constant 0 : index
    %c0_52 = arith.constant 0 : index
    %c0_53 = arith.constant 0 : index
    %185 = vector.load %arg8[%c0_51, %c0_52, %c0_53] : memref<2x8x128xf32, #tpu.memory_space<vmem>>, vector<2x8x128xf32>
    tpu.vector_store %arg8[%c0_51, %c0_52, %c0_53], %184 {strides = array<i32>} : memref<2x8x128xf32, #tpu.memory_space<vmem>>, vector<2x8x128xf32>,
    %186 = vector.shape_cast %183 : vector<32x128xf32> to vector<2x16x128xf32>
    %c0_54 = arith.constant 0 : index
    %c0_55 = arith.constant 0 : index
    %c0_56 = arith.constant 0 : index
    %187 = vector.load %arg9[%c0_54, %c0_55, %c0_56] : memref<2x16x128xf32, #tpu.memory_space<vmem>>, vector<2x16x128xf32>
    tpu.vector_store %arg9[%c0_54, %c0_55, %c0_56], %186 {strides = array<i32>} : memref<2x16x128xf32, #tpu.memory_space<vmem>>, vector<2x16x128xf32>,
    return
  }
  func.func @transform_0(%arg0: i32) -> (i32, i32, i32) {
    %c0_i32 = arith.constant 0 : i32
    %c0_i32_0 = arith.constant 0 : i32
    %c0_i32_1 = arith.constant 0 : i32
    return %arg0, %c0_i32, %c0_i32_0 : i32, i32, i32
  }
  func.func @transform_1(%arg0: i32) -> (i32, i32, i32) {
    %c0_i32 = arith.constant 0 : i32
    %c0_i32_0 = arith.constant 0 : i32
    %c0_i32_1 = arith.constant 0 : i32
    return %arg0, %c0_i32, %c0_i32_0 : i32, i32, i32
  }
  func.func @transform_2(%arg0: i32) -> (i32, i32) {
    %c0_i32 = arith.constant 0 : i32
    %c0_i32_0 = arith.constant 0 : i32
    %c0_i32_1 = arith.constant 0 : i32
    return %c0_i32, %c0_i32_0 : i32, i32
  }
  func.func @transform_3(%arg0: i32) -> (i32, i32, i32) {
    %c0_i32 = arith.constant 0 : i32
    %c0_i32_0 = arith.constant 0 : i32
    %c0_i32_1 = arith.constant 0 : i32
    %c0_i32_2 = arith.constant 0 : i32
    return %c0_i32, %c0_i32_0, %c0_i32_1 : i32, i32, i32
  }
  func.func @transform_4(%arg0: i32) -> (i32, i32) {
    %c0_i32 = arith.constant 0 : i32
    %c0_i32_0 = arith.constant 0 : i32
    %c0_i32_1 = arith.constant 0 : i32
    return %c0_i32, %c0_i32_0 : i32, i32
  }
  func.func @transform_5(%arg0: i32) -> (i32, i32, i32) {
    %c0_i32 = arith.constant 0 : i32
    %c0_i32_0 = arith.constant 0 : i32
    %c0_i32_1 = arith.constant 0 : i32
    %c0_i32_2 = arith.constant 0 : i32
    return %c0_i32, %c0_i32_0, %c0_i32_1 : i32, i32, i32
  }
  func.func @transform_6(%arg0: i32) -> (i32, i32) {
    %c0_i32 = arith.constant 0 : i32
    %c0_i32_0 = arith.constant 0 : i32
    %c0_i32_1 = arith.constant 0 : i32
    return %c0_i32, %c0_i32_0 : i32, i32
  }
  func.func @transform_7(%arg0: i32) -> (i32, i32, i32) {
    %c0_i32 = arith.constant 0 : i32
    %c0_i32_0 = arith.constant 0 : i32
    %c0_i32_1 = arith.constant 0 : i32
    return %arg0, %c0_i32, %c0_i32_0 : i32, i32, i32
  }
  func.func @transform_8(%arg0: i32) -> (i32, i32, i32) {
    %c0_i32 = arith.constant 0 : i32
    %c0_i32_0 = arith.constant 0 : i32
    %c0_i32_1 = arith.constant 0 : i32
    return %arg0, %c0_i32, %c0_i32_0 : i32, i32, i32
  }
}

module attributes {stable_mosaic.version = 11 : i64} {
  func.func @_cross_attn_kernel(%arg0: i32, %arg1: memref<2x8x128xf32, #tpu.memory_space<vmem>>, %arg2: memref<2x16x128xf32, #tpu.memory_space<vmem>>, %arg3: memref<4x128xf32, #tpu.memory_space<vmem>>, %arg4: memref<2x128x384xbf16, #tpu.memory_space<vmem>>, %arg5: memref<2x384xf32, #tpu.memory_space<vmem>>, %arg6: memref<2x128x128xbf16, #tpu.memory_space<vmem>>, %arg7: memref<2x128xf32, #tpu.memory_space<vmem>>, %arg8: memref<2x8x128xf32, #tpu.memory_space<vmem>>, %arg9: memref<2x16x128xf32, #tpu.memory_space<vmem>>) attributes {dimension_semantics = [#tpu.dimension_semantics<parallel>], iteration_bounds = array<i64: 1>, scalar_prefetch = 0 : i64, scratch_operands = 0 : i64, tpu.core_type = #tpu.core_type<tc>, window_params = [{transform_indices = @transform_0, window_bounds = array<i64: 2, 8, 128>}, {transform_indices = @transform_1, window_bounds = array<i64: 2, 16, 128>}, {pipeline_mode = #tpu.pipeline_mode<synchronous>, transform_indices = @transform_2, window_bounds = array<i64: 4, 128>}, {pipeline_mode = #tpu.pipeline_mode<synchronous>, transform_indices = @transform_3, window_bounds = array<i64: 2, 128, 384>}, {pipeline_mode = #tpu.pipeline_mode<synchronous>, transform_indices = @transform_4, window_bounds = array<i64: 2, 384>}, {pipeline_mode = #tpu.pipeline_mode<synchronous>, transform_indices = @transform_5, window_bounds = array<i64: 2, 128, 128>}, {pipeline_mode = #tpu.pipeline_mode<synchronous>, transform_indices = @transform_6, window_bounds = array<i64: 2, 128>}, {transform_indices = @transform_7, window_bounds = array<i64: 2, 8, 128>}, {transform_indices = @transform_8, window_bounds = array<i64: 2, 16, 128>}]} {
    %c0 = arith.constant 0 : index
    %c0_0 = arith.constant 0 : index
    %c0_1 = arith.constant 0 : index
    %0 = vector.load %arg1[%c0, %c0_0, %c0_1] : memref<2x8x128xf32, #tpu.memory_space<vmem>>, vector<2x8x128xf32>
    %1 = vector.shape_cast %0 : vector<2x8x128xf32> to vector<16x128xf32>
    %c0_2 = arith.constant 0 : index
    %c0_3 = arith.constant 0 : index
    %c0_4 = arith.constant 0 : index
    %2 = vector.load %arg2[%c0_2, %c0_3, %c0_4] : memref<2x16x128xf32, #tpu.memory_space<vmem>>, vector<2x16x128xf32>
    %3 = vector.shape_cast %2 : vector<2x16x128xf32> to vector<32x128xf32>
    %c0_5 = arith.constant 0 : index
    %c0_6 = arith.constant 0 : index
    %4 = vector.load %arg3[%c0_5, %c0_6] : memref<4x128xf32, #tpu.memory_space<vmem>>, vector<1x128xf32>
    %c1 = arith.constant 1 : index
    %c0_7 = arith.constant 0 : index
    %5 = vector.load %arg3[%c1, %c0_7] : memref<4x128xf32, #tpu.memory_space<vmem>>, vector<1x128xf32>
    %cst = arith.constant dense<0.000000e+00> : vector<16xf32>
    %6 = vector.multi_reduction <add>, %1, %cst [1] : vector<16x128xf32> to vector<16xf32>
    %7 = vector.shape_cast %6 : vector<16xf32> to vector<16x1xf32>
    %cst_8 = arith.constant 1.280000e+02 : f32
    %8 = vector.broadcast %cst_8 : f32 to vector<16x1xf32>
    %9 = arith.divf %7, %8 : vector<16x1xf32>
    %10 = vector.broadcast %9 : vector<16x1xf32> to vector<16x128xf32>
    %11 = arith.subf %1, %10 : vector<16x128xf32>
    %12 = arith.mulf %11, %11 : vector<16x128xf32>
    %cst_9 = arith.constant dense<0.000000e+00> : vector<16xf32>
    %13 = vector.multi_reduction <add>, %12, %cst_9 [1] : vector<16x128xf32> to vector<16xf32>
    %14 = vector.shape_cast %13 : vector<16xf32> to vector<16x1xf32>
    %cst_10 = arith.constant 1.280000e+02 : f32
    %15 = vector.broadcast %cst_10 : f32 to vector<16x1xf32>
    %16 = arith.divf %14, %15 : vector<16x1xf32>
    %cst_11 = arith.constant 9.99999974E-6 : f32
    %17 = vector.broadcast %cst_11 : f32 to vector<16x1xf32>
    %18 = arith.addf %16, %17 : vector<16x1xf32>
    %19 = math.rsqrt %18 : vector<16x1xf32>
    %20 = vector.broadcast %19 : vector<16x1xf32> to vector<16x128xf32>
    %21 = arith.mulf %11, %20 : vector<16x128xf32>
    %22 = vector.broadcast %4 : vector<1x128xf32> to vector<16x128xf32>
    %23 = arith.mulf %21, %22 : vector<16x128xf32>
    %24 = vector.broadcast %5 : vector<1x128xf32> to vector<16x128xf32>
    %25 = arith.addf %23, %24 : vector<16x128xf32>
    %26 = arith.truncf %25 : vector<16x128xf32> to vector<16x128xbf16>
    %c2 = arith.constant 2 : index
    %c0_12 = arith.constant 0 : index
    %27 = vector.load %arg3[%c2, %c0_12] : memref<4x128xf32, #tpu.memory_space<vmem>>, vector<1x128xf32>
    %c3 = arith.constant 3 : index
    %c0_13 = arith.constant 0 : index
    %28 = vector.load %arg3[%c3, %c0_13] : memref<4x128xf32, #tpu.memory_space<vmem>>, vector<1x128xf32>
    %cst_14 = arith.constant dense<0.000000e+00> : vector<32xf32>
    %29 = vector.multi_reduction <add>, %3, %cst_14 [1] : vector<32x128xf32> to vector<32xf32>
    %30 = vector.shape_cast %29 : vector<32xf32> to vector<32x1xf32>
    %cst_15 = arith.constant 1.280000e+02 : f32
    %31 = vector.broadcast %cst_15 : f32 to vector<32x1xf32>
    %32 = arith.divf %30, %31 : vector<32x1xf32>
    %33 = vector.broadcast %32 : vector<32x1xf32> to vector<32x128xf32>
    %34 = arith.subf %3, %33 : vector<32x128xf32>
    %35 = arith.mulf %34, %34 : vector<32x128xf32>
    %cst_16 = arith.constant dense<0.000000e+00> : vector<32xf32>
    %36 = vector.multi_reduction <add>, %35, %cst_16 [1] : vector<32x128xf32> to vector<32xf32>
    %37 = vector.shape_cast %36 : vector<32xf32> to vector<32x1xf32>
    %cst_17 = arith.constant 1.280000e+02 : f32
    %38 = vector.broadcast %cst_17 : f32 to vector<32x1xf32>
    %39 = arith.divf %37, %38 : vector<32x1xf32>
    %cst_18 = arith.constant 9.99999974E-6 : f32
    %40 = vector.broadcast %cst_18 : f32 to vector<32x1xf32>
    %41 = arith.addf %39, %40 : vector<32x1xf32>
    %42 = math.rsqrt %41 : vector<32x1xf32>
    %43 = vector.broadcast %42 : vector<32x1xf32> to vector<32x128xf32>
    %44 = arith.mulf %34, %43 : vector<32x128xf32>
    %45 = vector.broadcast %27 : vector<1x128xf32> to vector<32x128xf32>
    %46 = arith.mulf %44, %45 : vector<32x128xf32>
    %47 = vector.broadcast %28 : vector<1x128xf32> to vector<32x128xf32>
    %48 = arith.addf %46, %47 : vector<32x128xf32>
    %49 = arith.truncf %48 : vector<32x128xf32> to vector<32x128xbf16>
    %c0_19 = arith.constant 0 : index
    %c0_20 = arith.constant 0 : index
    %c0_21 = arith.constant 0 : index
    %50 = vector.load %arg4[%c0_19, %c0_20, %c0_21] : memref<2x128x384xbf16, #tpu.memory_space<vmem>>, vector<1x128x384xbf16>
    %51 = vector.shape_cast %50 : vector<1x128x384xbf16> to vector<128x384xbf16>
    %cst_22 = arith.constant dense<0.000000e+00> : vector<16x384xf32>
    %52 = tpu.matmul %26, %51, %cst_22 {dimension_numbers = #tpu.dot_dimension_numbers<[1], [0], [0], [1], [0, 0, 1, 1], [], []>} : vector<16x128xbf16>, vector<128x384xbf16>, vector<16x384xf32> -> vector<16x384xf32>
    %c0_23 = arith.constant 0 : index
    %c0_24 = arith.constant 0 : index
    %53 = vector.load %arg5[%c0_23, %c0_24] : memref<2x384xf32, #tpu.memory_space<vmem>>, vector<1x384xf32>
    %54 = vector.broadcast %53 : vector<1x384xf32> to vector<16x384xf32>
    %55 = arith.addf %52, %54 : vector<16x384xf32>
    %56 = arith.truncf %55 : vector<16x384xf32> to vector<16x384xbf16>
    %c1_25 = arith.constant 1 : index
    %c0_26 = arith.constant 0 : index
    %c0_27 = arith.constant 0 : index
    %57 = vector.load %arg4[%c1_25, %c0_26, %c0_27] : memref<2x128x384xbf16, #tpu.memory_space<vmem>>, vector<1x128x384xbf16>
    %58 = vector.shape_cast %57 : vector<1x128x384xbf16> to vector<128x384xbf16>
    %cst_28 = arith.constant dense<0.000000e+00> : vector<32x384xf32>
    %59 = tpu.matmul %49, %58, %cst_28 {dimension_numbers = #tpu.dot_dimension_numbers<[1], [0], [0], [1], [0, 0, 1, 1], [], []>} : vector<32x128xbf16>, vector<128x384xbf16>, vector<32x384xf32> -> vector<32x384xf32>
    %c1_29 = arith.constant 1 : index
    %c0_30 = arith.constant 0 : index
    %60 = vector.load %arg5[%c1_29, %c0_30] : memref<2x384xf32, #tpu.memory_space<vmem>>, vector<1x384xf32>
    %61 = vector.broadcast %60 : vector<1x384xf32> to vector<32x384xf32>
    %62 = arith.addf %59, %61 : vector<32x384xf32>
    %63 = arith.truncf %62 : vector<32x384xf32> to vector<32x384xbf16>
    %64 = vector.extract_strided_slice %56 {offsets = [0, 0], sizes = [16, 48], strides = [1, 1]} : vector<16x384xbf16> to vector<16x48xbf16>
    %65 = vector.shape_cast %64 : vector<16x48xbf16> to vector<1x2x8x48xbf16>
    %66 = vector.extract_strided_slice %56 {offsets = [0, 48], sizes = [16, 48], strides = [1, 1]} : vector<16x384xbf16> to vector<16x48xbf16>
    %67 = vector.shape_cast %66 : vector<16x48xbf16> to vector<1x2x8x48xbf16>
    %68 = vector.extract_strided_slice %56 {offsets = [0, 96], sizes = [16, 48], strides = [1, 1]} : vector<16x384xbf16> to vector<16x48xbf16>
    %69 = vector.shape_cast %68 : vector<16x48xbf16> to vector<1x2x8x48xbf16>
    %70 = vector.extract_strided_slice %56 {offsets = [0, 144], sizes = [16, 48], strides = [1, 1]} : vector<16x384xbf16> to vector<16x48xbf16>
    %71 = vector.shape_cast %70 : vector<16x48xbf16> to vector<1x2x8x48xbf16>
    %72 = vector.extract_strided_slice %56 {offsets = [0, 192], sizes = [16, 48], strides = [1, 1]} : vector<16x384xbf16> to vector<16x48xbf16>
    %73 = vector.shape_cast %72 : vector<16x48xbf16> to vector<1x2x8x48xbf16>
    %74 = vector.extract_strided_slice %56 {offsets = [0, 240], sizes = [16, 48], strides = [1, 1]} : vector<16x384xbf16> to vector<16x48xbf16>
    %75 = vector.shape_cast %74 : vector<16x48xbf16> to vector<1x2x8x48xbf16>
    %76 = vector.extract_strided_slice %56 {offsets = [0, 288], sizes = [16, 48], strides = [1, 1]} : vector<16x384xbf16> to vector<16x48xbf16>
    %77 = vector.shape_cast %76 : vector<16x48xbf16> to vector<1x2x8x48xbf16>
    %78 = vector.extract_strided_slice %56 {offsets = [0, 336], sizes = [16, 48], strides = [1, 1]} : vector<16x384xbf16> to vector<16x48xbf16>
    %79 = vector.shape_cast %78 : vector<16x48xbf16> to vector<1x2x8x48xbf16>
    %80 = tpu.concatenate %65, %67, %69, %71, %73, %75, %77, %79 in 0 : vector<1x2x8x48xbf16>, vector<1x2x8x48xbf16>, vector<1x2x8x48xbf16>, vector<1x2x8x48xbf16>, vector<1x2x8x48xbf16>, vector<1x2x8x48xbf16>, vector<1x2x8x48xbf16>, vector<1x2x8x48xbf16> -> vector<8x2x8x48xbf16>
    %81 = vector.shape_cast %80 : vector<8x2x8x48xbf16> to vector<16x8x48xbf16>
    %82 = vector.extract_strided_slice %63 {offsets = [0, 0], sizes = [32, 48], strides = [1, 1]} : vector<32x384xbf16> to vector<32x48xbf16>
    %83 = vector.shape_cast %82 : vector<32x48xbf16> to vector<1x2x16x48xbf16>
    %84 = vector.extract_strided_slice %63 {offsets = [0, 48], sizes = [32, 48], strides = [1, 1]} : vector<32x384xbf16> to vector<32x48xbf16>
    %85 = vector.shape_cast %84 : vector<32x48xbf16> to vector<1x2x16x48xbf16>
    %86 = vector.extract_strided_slice %63 {offsets = [0, 96], sizes = [32, 48], strides = [1, 1]} : vector<32x384xbf16> to vector<32x48xbf16>
    %87 = vector.shape_cast %86 : vector<32x48xbf16> to vector<1x2x16x48xbf16>
    %88 = vector.extract_strided_slice %63 {offsets = [0, 144], sizes = [32, 48], strides = [1, 1]} : vector<32x384xbf16> to vector<32x48xbf16>
    %89 = vector.shape_cast %88 : vector<32x48xbf16> to vector<1x2x16x48xbf16>
    %90 = vector.extract_strided_slice %63 {offsets = [0, 192], sizes = [32, 48], strides = [1, 1]} : vector<32x384xbf16> to vector<32x48xbf16>
    %91 = vector.shape_cast %90 : vector<32x48xbf16> to vector<1x2x16x48xbf16>
    %92 = vector.extract_strided_slice %63 {offsets = [0, 240], sizes = [32, 48], strides = [1, 1]} : vector<32x384xbf16> to vector<32x48xbf16>
    %93 = vector.shape_cast %92 : vector<32x48xbf16> to vector<1x2x16x48xbf16>
    %94 = vector.extract_strided_slice %63 {offsets = [0, 288], sizes = [32, 48], strides = [1, 1]} : vector<32x384xbf16> to vector<32x48xbf16>
    %95 = vector.shape_cast %94 : vector<32x48xbf16> to vector<1x2x16x48xbf16>
    %96 = vector.extract_strided_slice %63 {offsets = [0, 336], sizes = [32, 48], strides = [1, 1]} : vector<32x384xbf16> to vector<32x48xbf16>
    %97 = vector.shape_cast %96 : vector<32x48xbf16> to vector<1x2x16x48xbf16>
    %98 = tpu.concatenate %83, %85, %87, %89, %91, %93, %95, %97 in 0 : vector<1x2x16x48xbf16>, vector<1x2x16x48xbf16>, vector<1x2x16x48xbf16>, vector<1x2x16x48xbf16>, vector<1x2x16x48xbf16>, vector<1x2x16x48xbf16>, vector<1x2x16x48xbf16>, vector<1x2x16x48xbf16> -> vector<8x2x16x48xbf16>
    %99 = vector.shape_cast %98 : vector<8x2x16x48xbf16> to vector<16x16x48xbf16>
    %100 = vector.extract_strided_slice %81 {offsets = [0, 0, 0], sizes = [16, 8, 16], strides = [1, 1, 1]} : vector<16x8x48xbf16> to vector<16x8x16xbf16>
    %101 = vector.extract_strided_slice %81 {offsets = [0, 0, 16], sizes = [16, 8, 16], strides = [1, 1, 1]} : vector<16x8x48xbf16> to vector<16x8x16xbf16>
    %102 = vector.extract_strided_slice %81 {offsets = [0, 0, 32], sizes = [16, 8, 16], strides = [1, 1, 1]} : vector<16x8x48xbf16> to vector<16x8x16xbf16>
    %103 = vector.extract_strided_slice %99 {offsets = [0, 0, 0], sizes = [16, 16, 16], strides = [1, 1, 1]} : vector<16x16x48xbf16> to vector<16x16x16xbf16>
    %104 = vector.extract_strided_slice %99 {offsets = [0, 0, 16], sizes = [16, 16, 16], strides = [1, 1, 1]} : vector<16x16x48xbf16> to vector<16x16x16xbf16>
    %105 = vector.extract_strided_slice %99 {offsets = [0, 0, 32], sizes = [16, 16, 16], strides = [1, 1, 1]} : vector<16x16x48xbf16> to vector<16x16x16xbf16>
    "tpu.trace_start"() <{level = 10 : i32, message = "gqd,gkd->gqk"}> : () -> ()
    %cst_31 = arith.constant dense<0.000000e+00> : vector<16x8x16xf32>
    %106 = tpu.matmul %100, %104, %cst_31 {dimension_numbers = #tpu.dot_dimension_numbers<[2], [2], [1], [1], [0, 0, 0, 1, 1, 1], [0], [0]>} : vector<16x8x16xbf16>, vector<16x16x16xbf16>, vector<16x8x16xf32> -> vector<16x8x16xf32>
    "tpu.trace_stop"() : () -> ()
    %cst_32 = arith.constant dense<0xFF800000> : vector<16x8xf32>
    %107 = vector.multi_reduction <maximumf>, %106, %cst_32 [2] : vector<16x8x16xf32> to vector<16x8xf32>
    %108 = vector.shape_cast %107 : vector<16x8xf32> to vector<16x8x1xf32>
    %109 = vector.broadcast %108 : vector<16x8x1xf32> to vector<16x8x16xf32>
    %110 = arith.subf %106, %109 : vector<16x8x16xf32>
    %111 = math.exp %110 : vector<16x8x16xf32>
    %cst_33 = arith.constant dense<0.000000e+00> : vector<16x8xf32>
    %112 = vector.multi_reduction <add>, %111, %cst_33 [2] : vector<16x8x16xf32> to vector<16x8xf32>
    %113 = vector.shape_cast %112 : vector<16x8xf32> to vector<16x8x1xf32>
    %114 = tpu.reciprocal %113 {approx = true} : vector<16x8x1xf32> -> vector<16x8x1xf32>
    %115 = vector.broadcast %114 : vector<16x8x1xf32> to vector<16x8x16xf32>
    %116 = arith.mulf %111, %115 : vector<16x8x16xf32>
    %117 = arith.truncf %116 : vector<16x8x16xf32> to vector<16x8x16xbf16>
    "tpu.trace_start"() <{level = 10 : i32, message = "gqk,gkd->gqd"}> : () -> ()
    %cst_34 = arith.constant dense<0.000000e+00> : vector<16x8x16xf32>
    %118 = tpu.matmul %117, %105, %cst_34 {dimension_numbers = #tpu.dot_dimension_numbers<[2], [1], [1], [2], [0, 0, 0, 1, 1, 2], [0], [0]>} : vector<16x8x16xbf16>, vector<16x16x16xbf16>, vector<16x8x16xf32> -> vector<16x8x16xf32>
    "tpu.trace_stop"() : () -> ()
    %119 = vector.shape_cast %118 : vector<16x8x16xf32> to vector<8x2x8x16xf32>
    %120 = vector.extract_strided_slice %119 {offsets = [0, 0, 0, 0], sizes = [1, 2, 8, 16], strides = [1, 1, 1, 1]} : vector<8x2x8x16xf32> to vector<1x2x8x16xf32>
    %121 = vector.shape_cast %120 : vector<1x2x8x16xf32> to vector<2x8x16xf32>
    %122 = vector.extract_strided_slice %119 {offsets = [1, 0, 0, 0], sizes = [1, 2, 8, 16], strides = [1, 1, 1, 1]} : vector<8x2x8x16xf32> to vector<1x2x8x16xf32>
    %123 = vector.shape_cast %122 : vector<1x2x8x16xf32> to vector<2x8x16xf32>
    %124 = vector.extract_strided_slice %119 {offsets = [2, 0, 0, 0], sizes = [1, 2, 8, 16], strides = [1, 1, 1, 1]} : vector<8x2x8x16xf32> to vector<1x2x8x16xf32>
    %125 = vector.shape_cast %124 : vector<1x2x8x16xf32> to vector<2x8x16xf32>
    %126 = vector.extract_strided_slice %119 {offsets = [3, 0, 0, 0], sizes = [1, 2, 8, 16], strides = [1, 1, 1, 1]} : vector<8x2x8x16xf32> to vector<1x2x8x16xf32>
    %127 = vector.shape_cast %126 : vector<1x2x8x16xf32> to vector<2x8x16xf32>
    %128 = vector.extract_strided_slice %119 {offsets = [4, 0, 0, 0], sizes = [1, 2, 8, 16], strides = [1, 1, 1, 1]} : vector<8x2x8x16xf32> to vector<1x2x8x16xf32>
    %129 = vector.shape_cast %128 : vector<1x2x8x16xf32> to vector<2x8x16xf32>
    %130 = vector.extract_strided_slice %119 {offsets = [5, 0, 0, 0], sizes = [1, 2, 8, 16], strides = [1, 1, 1, 1]} : vector<8x2x8x16xf32> to vector<1x2x8x16xf32>
    %131 = vector.shape_cast %130 : vector<1x2x8x16xf32> to vector<2x8x16xf32>
    %132 = vector.extract_strided_slice %119 {offsets = [6, 0, 0, 0], sizes = [1, 2, 8, 16], strides = [1, 1, 1, 1]} : vector<8x2x8x16xf32> to vector<1x2x8x16xf32>
    %133 = vector.shape_cast %132 : vector<1x2x8x16xf32> to vector<2x8x16xf32>
    %134 = vector.extract_strided_slice %119 {offsets = [7, 0, 0, 0], sizes = [1, 2, 8, 16], strides = [1, 1, 1, 1]} : vector<8x2x8x16xf32> to vector<1x2x8x16xf32>
    %135 = vector.shape_cast %134 : vector<1x2x8x16xf32> to vector<2x8x16xf32>
    %136 = tpu.concatenate %121, %123, %125, %127, %129, %131, %133, %135 in 2 : vector<2x8x16xf32>, vector<2x8x16xf32>, vector<2x8x16xf32>, vector<2x8x16xf32>, vector<2x8x16xf32>, vector<2x8x16xf32>, vector<2x8x16xf32>, vector<2x8x16xf32> -> vector<2x8x128xf32>
    %137 = vector.shape_cast %136 : vector<2x8x128xf32> to vector<16x128xf32>
    %138 = arith.truncf %137 : vector<16x128xf32> to vector<16x128xbf16>
    "tpu.trace_start"() <{level = 10 : i32, message = "gqd,gkd->gqk"}> : () -> ()
    %cst_35 = arith.constant dense<0.000000e+00> : vector<16x16x8xf32>
    %139 = tpu.matmul %103, %101, %cst_35 {dimension_numbers = #tpu.dot_dimension_numbers<[2], [2], [1], [1], [0, 0, 0, 1, 1, 1], [0], [0]>} : vector<16x16x16xbf16>, vector<16x8x16xbf16>, vector<16x16x8xf32> -> vector<16x16x8xf32>
    "tpu.trace_stop"() : () -> ()
    %cst_36 = arith.constant dense<0xFF800000> : vector<16x16xf32>
    %140 = vector.multi_reduction <maximumf>, %139, %cst_36 [2] : vector<16x16x8xf32> to vector<16x16xf32>
    %141 = vector.shape_cast %140 : vector<16x16xf32> to vector<16x16x1xf32>
    %142 = vector.broadcast %141 : vector<16x16x1xf32> to vector<16x16x8xf32>
    %143 = arith.subf %139, %142 : vector<16x16x8xf32>
    %144 = math.exp %143 : vector<16x16x8xf32>
    %cst_37 = arith.constant dense<0.000000e+00> : vector<16x16xf32>
    %145 = vector.multi_reduction <add>, %144, %cst_37 [2] : vector<16x16x8xf32> to vector<16x16xf32>
    %146 = vector.shape_cast %145 : vector<16x16xf32> to vector<16x16x1xf32>
    %147 = tpu.reciprocal %146 {approx = true} : vector<16x16x1xf32> -> vector<16x16x1xf32>
    %148 = vector.broadcast %147 : vector<16x16x1xf32> to vector<16x16x8xf32>
    %149 = arith.mulf %144, %148 : vector<16x16x8xf32>
    %150 = arith.truncf %149 : vector<16x16x8xf32> to vector<16x16x8xbf16>
    "tpu.trace_start"() <{level = 10 : i32, message = "gqk,gkd->gqd"}> : () -> ()
    %cst_38 = arith.constant dense<0.000000e+00> : vector<16x16x16xf32>
    %151 = tpu.matmul %150, %102, %cst_38 {dimension_numbers = #tpu.dot_dimension_numbers<[2], [1], [1], [2], [0, 0, 0, 1, 1, 2], [0], [0]>} : vector<16x16x8xbf16>, vector<16x8x16xbf16>, vector<16x16x16xf32> -> vector<16x16x16xf32>
    "tpu.trace_stop"() : () -> ()
    %152 = vector.shape_cast %151 : vector<16x16x16xf32> to vector<8x2x16x16xf32>
    %153 = vector.extract_strided_slice %152 {offsets = [0, 0, 0, 0], sizes = [1, 2, 16, 16], strides = [1, 1, 1, 1]} : vector<8x2x16x16xf32> to vector<1x2x16x16xf32>
    %154 = vector.shape_cast %153 : vector<1x2x16x16xf32> to vector<2x16x16xf32>
    %155 = vector.extract_strided_slice %152 {offsets = [1, 0, 0, 0], sizes = [1, 2, 16, 16], strides = [1, 1, 1, 1]} : vector<8x2x16x16xf32> to vector<1x2x16x16xf32>
    %156 = vector.shape_cast %155 : vector<1x2x16x16xf32> to vector<2x16x16xf32>
    %157 = vector.extract_strided_slice %152 {offsets = [2, 0, 0, 0], sizes = [1, 2, 16, 16], strides = [1, 1, 1, 1]} : vector<8x2x16x16xf32> to vector<1x2x16x16xf32>
    %158 = vector.shape_cast %157 : vector<1x2x16x16xf32> to vector<2x16x16xf32>
    %159 = vector.extract_strided_slice %152 {offsets = [3, 0, 0, 0], sizes = [1, 2, 16, 16], strides = [1, 1, 1, 1]} : vector<8x2x16x16xf32> to vector<1x2x16x16xf32>
    %160 = vector.shape_cast %159 : vector<1x2x16x16xf32> to vector<2x16x16xf32>
    %161 = vector.extract_strided_slice %152 {offsets = [4, 0, 0, 0], sizes = [1, 2, 16, 16], strides = [1, 1, 1, 1]} : vector<8x2x16x16xf32> to vector<1x2x16x16xf32>
    %162 = vector.shape_cast %161 : vector<1x2x16x16xf32> to vector<2x16x16xf32>
    %163 = vector.extract_strided_slice %152 {offsets = [5, 0, 0, 0], sizes = [1, 2, 16, 16], strides = [1, 1, 1, 1]} : vector<8x2x16x16xf32> to vector<1x2x16x16xf32>
    %164 = vector.shape_cast %163 : vector<1x2x16x16xf32> to vector<2x16x16xf32>
    %165 = vector.extract_strided_slice %152 {offsets = [6, 0, 0, 0], sizes = [1, 2, 16, 16], strides = [1, 1, 1, 1]} : vector<8x2x16x16xf32> to vector<1x2x16x16xf32>
    %166 = vector.shape_cast %165 : vector<1x2x16x16xf32> to vector<2x16x16xf32>
    %167 = vector.extract_strided_slice %152 {offsets = [7, 0, 0, 0], sizes = [1, 2, 16, 16], strides = [1, 1, 1, 1]} : vector<8x2x16x16xf32> to vector<1x2x16x16xf32>
    %168 = vector.shape_cast %167 : vector<1x2x16x16xf32> to vector<2x16x16xf32>
    %169 = tpu.concatenate %154, %156, %158, %160, %162, %164, %166, %168 in 2 : vector<2x16x16xf32>, vector<2x16x16xf32>, vector<2x16x16xf32>, vector<2x16x16xf32>, vector<2x16x16xf32>, vector<2x16x16xf32>, vector<2x16x16xf32>, vector<2x16x16xf32> -> vector<2x16x128xf32>
    %170 = vector.shape_cast %169 : vector<2x16x128xf32> to vector<32x128xf32>
    %171 = arith.truncf %170 : vector<32x128xf32> to vector<32x128xbf16>
    %c0_39 = arith.constant 0 : index
    %c0_40 = arith.constant 0 : index
    %c0_41 = arith.constant 0 : index
    %172 = vector.load %arg6[%c0_39, %c0_40, %c0_41] : memref<2x128x128xbf16, #tpu.memory_space<vmem>>, vector<1x128x128xbf16>
    %173 = vector.shape_cast %172 : vector<1x128x128xbf16> to vector<128x128xbf16>
    %cst_42 = arith.constant dense<0.000000e+00> : vector<16x128xf32>
    %174 = tpu.matmul %138, %173, %cst_42 {dimension_numbers = #tpu.dot_dimension_numbers<[1], [0], [0], [1], [0, 0, 1, 1], [], []>} : vector<16x128xbf16>, vector<128x128xbf16>, vector<16x128xf32> -> vector<16x128xf32>
    %c0_43 = arith.constant 0 : index
    %c0_44 = arith.constant 0 : index
    %175 = vector.load %arg7[%c0_43, %c0_44] : memref<2x128xf32, #tpu.memory_space<vmem>>, vector<1x128xf32>
    %176 = vector.broadcast %175 : vector<1x128xf32> to vector<16x128xf32>
    %177 = arith.addf %174, %176 : vector<16x128xf32>
    %c1_45 = arith.constant 1 : index
    %c0_46 = arith.constant 0 : index
    %c0_47 = arith.constant 0 : index
    %178 = vector.load %arg6[%c1_45, %c0_46, %c0_47] : memref<2x128x128xbf16, #tpu.memory_space<vmem>>, vector<1x128x128xbf16>
    %179 = vector.shape_cast %178 : vector<1x128x128xbf16> to vector<128x128xbf16>
    %cst_48 = arith.constant dense<0.000000e+00> : vector<32x128xf32>
    %180 = tpu.matmul %171, %179, %cst_48 {dimension_numbers = #tpu.dot_dimension_numbers<[1], [0], [0], [1], [0, 0, 1, 1], [], []>} : vector<32x128xbf16>, vector<128x128xbf16>, vector<32x128xf32> -> vector<32x128xf32>
    %c1_49 = arith.constant 1 : index
    %c0_50 = arith.constant 0 : index
    %181 = vector.load %arg7[%c1_49, %c0_50] : memref<2x128xf32, #tpu.memory_space<vmem>>, vector<1x128xf32>
    %182 = vector.broadcast %181 : vector<1x128xf32> to vector<32x128xf32>
    %183 = arith.addf %180, %182 : vector<32x128xf32>
    %184 = vector.shape_cast %177 : vector<16x128xf32> to vector<2x8x128xf32>
    %c0_51 = arith.constant 0 : index
    %c0_52 = arith.constant 0 : index
    %c0_53 = arith.constant 0 : index
    %185 = vector.load %arg8[%c0_51, %c0_52, %c0_53] : memref<2x8x128xf32, #tpu.memory_space<vmem>>, vector<2x8x128xf32>
    tpu.vector_store %arg8[%c0_51, %c0_52, %c0_53], %184 {strides = array<i32>} : memref<2x8x128xf32, #tpu.memory_space<vmem>>, vector<2x8x128xf32>,
    %186 = vector.shape_cast %183 : vector<32x128xf32> to vector<2x16x128xf32>
    %c0_54 = arith.constant 0 : index
    %c0_55 = arith.constant 0 : index
    %c0_56 = arith.constant 0 : index
    %187 = vector.load %arg9[%c0_54, %c0_55, %c0_56] : memref<2x16x128xf32, #tpu.memory_space<vmem>>, vector<2x16x128xf32>
    tpu.vector_store %arg9[%c0_54, %c0_55, %c0_56], %186 {strides = array<i32>} : memref<2x16x128xf32, #tpu.memory_space<vmem>>, vector<2x16x128xf32>,
    return
  }
  func.func @transform_0(%arg0: i32) -> (i32, i32, i32) {
    %c0_i32 = arith.constant 0 : i32
    %c0_i32_0 = arith.constant 0 : i32
    %c0_i32_1 = arith.constant 0 : i32
    return %arg0, %c0_i32, %c0_i32_0 : i32, i32, i32
  }
  func.func @transform_1(%arg0: i32) -> (i32, i32, i32) {
    %c0_i32 = arith.constant 0 : i32
    %c0_i32_0 = arith.constant 0 : i32
    %c0_i32_1 = arith.constant 0 : i32
    return %arg0, %c0_i32, %c0_i32_0 : i32, i32, i32
  }
  func.func @transform_2(%arg0: i32) -> (i32, i32) {
    %c0_i32 = arith.constant 0 : i32
    %c0_i32_0 = arith.constant 0 : i32
    %c0_i32_1 = arith.constant 0 : i32
    return %c0_i32, %c0_i32_0 : i32, i32
  }
  func.func @transform_3(%arg0: i32) -> (i32, i32, i32) {
    %c0_i32 = arith.constant 0 : i32
    %c0_i32_0 = arith.constant 0 : i32
    %c0_i32_1 = arith.constant 0 : i32
    %c0_i32_2 = arith.constant 0 : i32
    return %c0_i32, %c0_i32_0, %c0_i32_1 : i32, i32, i32
  }
  func.func @transform_4(%arg0: i32) -> (i32, i32) {
    %c0_i32 = arith.constant 0 : i32
    %c0_i32_0 = arith.constant 0 : i32
    %c0_i32_1 = arith.constant 0 : i32
    return %c0_i32, %c0_i32_0 : i32, i32
  }
  func.func @transform_5(%arg0: i32) -> (i32, i32, i32) {
    %c0_i32 = arith.constant 0 : i32
    %c0_i32_0 = arith.constant 0 : i32
    %c0_i32_1 = arith.constant 0 : i32
    %c0_i32_2 = arith.constant 0 : i32
    return %c0_i32, %c0_i32_0, %c0_i32_1 : i32, i32, i32
  }
  func.func @transform_6(%arg0: i32) -> (i32, i32) {
    %c0_i32 = arith.constant 0 : i32
    %c0_i32_0 = arith.constant 0 : i32
    %c0_i32_1 = arith.constant 0 : i32
    return %c0_i32, %c0_i32_0 : i32, i32
  }
  func.func @transform_7(%arg0: i32) -> (i32, i32, i32) {
    %c0_i32 = arith.constant 0 : i32
    %c0_i32_0 = arith.constant 0 : i32
    %c0_i32_1 = arith.constant 0 : i32
    return %arg0, %c0_i32, %c0_i32_0 : i32, i32, i32
  }
  func.func @transform_8(%arg0: i32) -> (i32, i32, i32) {
    %c0_i32 = arith.constant 0 : i32
    %c0_i32_0 = arith.constant 0 : i32
    %c0_i32_1 = arith.constant 0 : i32
    return %arg0, %c0_i32, %c0_i32_0 : i32, i32, i32
  }
}

</mosaic_0001>

<bundles_post_ra>
// kernel: tpu_custom_call.1
= control target key start
LH: loop header
LB: loop body
LE: loop exit
PB: predicated region body
PF: predicated region fallthrough
CT: control target
= control target key end

     0   :  { %14 = vsyncpa [#allocation3], 0  ;;  %s5683_s0 = inlined_call_operand.hbm [shape: f32[2,8,128], index: 0, kind: input, shape index: {}]   ;;  %s5684_s1 = inlined_call_operand.hbm [shape: f32[2,16,128], index: 1, kind: input, shape index: {}]   ;;  %s5685_s2 = inlined_call_operand.hbm [shape: f32[4,128], index: 2, kind: input, shape index: {}]   ;;  %s5686_s3 = inlined_call_operand.hbm [shape: bf16[2,128,384], index: 3, kind: input, shape index: {}]   ;;  %s5687_s4 = inlined_call_operand.hbm [shape: f32[2,384], index: 4, kind: input, shape index: {}]   ;;  %s5688_s5 = inlined_call_operand.hbm [shape: bf16[2,128,128], index: 5, kind: input, shape index: {}]   ;;  %s5689_s6 = inlined_call_operand.vmem [shape: f32[2,128], index: 6, kind: input, shape index: {}]   ;;  %s5690_s7 = inlined_call_operand.hbm [shape: f32[2,8,128], index: 7, kind: output, shape index: {0}]   ;;  %s5691_s8 = inlined_call_operand.hbm [shape: f32[2,16,128], index: 8, kind: output, shape index: {1}]  }
   0x1   :  { %15 = vsyncpa [#allocation6], 0 }
   0x2   :  { %16 = vsyncpa [#allocation9], 0 }
   0x3   :  { %17 = vsyncpa [#allocation12], 0 }
   0x4   :  { %18 = vsyncpa [#allocation4], 0 }
   0x5   :  { %19 = vsyncpa [#allocation15], 0  ;;  %s37_s29 = sshll.u32 %s5684_s1, 4  ;;  %s4312_s30 = smov [#allocation5]   ;;  %s38_s29 = int_to_ptr.hbm [resolvable:$true] %s37_s29 }
   0x6   :  { %s39_s9 = sshll.u32 %s4312_s30, 4  ;;  %s61_s12 = sshll.u32 %s5686_s3, 4  ;;  %s40_s9 = int_to_ptr.vmem [resolvable:$true] %s39_s9  ;;  %s62_s12 = int_to_ptr.hbm [resolvable:$true] %s61_s12 }
   0x7   :  { %s4313_s13 = smov 128   ;;  %s4314_s14 = smov 8  }
   0x8   :  { %45 = dma.hbm_to_vmem [thread:$0]  %s38_s29, 512, %s40_s9, [#allocation6], %s4313_s13, %s4313_s13, %s4314_s14  }
   0x9   :  { %s4315_s15 = smov [#allocation8]   ;;  %s4316_s17 = smov 192  }
   0xa   :  { %s63_s16 = sshll.u32 %s4315_s15, 4  ;;  %s4317_s1 = smov 12   ;;  %s64_s16 = int_to_ptr.vmem [resolvable:$true] %s63_s16 }
   0xb   :  { %69 = dma.hbm_to_vmem [thread:$0]  %s62_s12, 6144, %s64_s16, [#allocation9], %s4316_s17, %s4316_s17, %s4317_s1  }
   0xc   :  { %s24_s20 = sshll.u32 %s5683_s0, 4  ;;  %s4318_s21 = smov [#allocation2]   ;;  %s25_s20 = int_to_ptr.hbm [resolvable:$true] %s24_s20 }
   0xd   :  { %s26_s3 = sshll.u32 %s4318_s21, 4  ;;  %s51_s24 = sshll.u32 %s5685_s2, 4  ;;  %s27_s3 = int_to_ptr.vmem [resolvable:$true] %s26_s3  ;;  %s52_s24 = int_to_ptr.hbm [resolvable:$true] %s51_s24 }
   0xe   :  { %32 = dma.hbm_to_vmem [thread:$0]  %s25_s20, 256, %s27_s3, [#allocation3], %s4313_s13, %s4313_s13, %s4314_s14  }
   0xf   :  { %s4319_s25 = smov [#allocation7]   ;;  %s75_s29 = sshll.u32 %s5687_s4, 4  ;;  %s76_s29 = int_to_ptr.hbm [resolvable:$true] %s75_s29 }
  0x10   :  { %s53_s26 = sshll.u32 %s4319_s25, 4  ;;  %s85_s9 = sshll.u32 %s5688_s5, 4  ;;  %s54_s26 = int_to_ptr.vmem [resolvable:$true] %s53_s26  ;;  %s86_s9 = int_to_ptr.hbm [resolvable:$true] %s85_s9 }
  0x11   :  { %56 = dma.hbm_to_vmem [thread:$0]  %s52_s24, 64, %s54_s26, [#allocation6]  }
  0x12   :  { %s4320_s10 = smov [#allocation10]   ;;  %s4321_s11 = smov [#allocation11]  }
  0x13   :  { %s77_s2 = sshll.u32 %s4320_s10, 4  ;;  %s87_s12 = sshll.u32 %s4321_s11, 4  ;;  %s78_s2 = int_to_ptr.vmem [resolvable:$true] %s77_s2  ;;  %s88_s12 = int_to_ptr.vmem [resolvable:$true] %s87_s12 }
  0x14   :  { %80 = dma.hbm_to_vmem [thread:$0]  %s76_s29, 96, %s78_s2, [#allocation9]  }
  0x15   :  { %s4322_s15 = smov 64   ;;  %s4323_s16 = smov 4  }
  0x16   :  { %93 = dma.hbm_to_vmem [thread:$0]  %s86_s9, 2048, %s88_s12, [#allocation12], %s4322_s15, %s4322_s15, %s4323_s16  }
  0x17   :  { %4300 = dma.done.wait [#allocation3], 256  }
  0x18   :  { %4301 = vsyncadd [#allocation3], 4294967040 }
  0x19   :  { %4302 = dma.done.wait [#allocation6], 576  }
  0x1a   :  { %4303 = vsyncadd [#allocation6], 4294966720 }
  0x1b   :  { %4304 = dma.done.wait [#allocation9], 6240  }
  0x1c   :  { %4305 = vsyncadd [#allocation9], 4294961056 }
  0x1d   :  { %4306 = dma.done.wait [#allocation12], 2048  }
  0x1e   :  { %4307 = vsyncadd [#allocation12], 4294965248  ;;  %v125_v0 = vld [vmem:[#allocation5 + $0x10] sm:$0xff]  ;;  %v123_v1 = vld [vmem:[#allocation5] sm:$0xff]  ;;  %v4324_v6 = vmov 128.0   ;;  %s4325_s4 = smov 80  }
  0x1f   :  { %v121_v2 = vld [vmem:[#allocation2] sm:$0xff]  ;;  %189 = vadd.xlane.f32.xlu1 %v125_v0  ;;  %185 = vadd.xlane.f32.xlu0 %v123_v1  ;;  %v126_v3 = vld [vmem:[#allocation5 + $0x18] sm:$0xff]  ;;  %v124_v4 = vld [vmem:[#allocation5 + $0x8] sm:$0xff]  ;;  %3902 = vrcp.f32 %v4324_v6  ;;  %s4326_s5 = smov 32   ;;  %s4327_s17 = smov 112  }
  0x20   :  { %129 = vadd.xlane.f32.xlu2 %v121_v2  ;;  %v122_v5 = vld [vmem:[#allocation2 + $0x8] sm:$0xff]  ;;  %v3472_v11 = vld [vmem:[#allocation8 + $0xa8] sm:$0xf]  ;;  %v3460_v13 = vld [vmem:[#allocation8 + $0x90] sm:$0xf]  ;;  %s4328_s1 = smov 16  }
  0x21   :  { %v3728_v12 = vld [vmem:[#allocation8 + $0xb0] sm:$0xf0]  ;;  %v3725_v15 = vld [vmem:[#allocation8 + $0x98] sm:$0xf0]  ;;  %v3448_v18 = vld [vmem:[#allocation8 + $0x78] sm:$0xf] }
  0x22   :  { %v3473_v14 = vor.u32 %v3728_v12, %v3472_v11  ;;  %v3461_v17 = vor.u32 %v3725_v15, %v3460_v13  ;;  %v3722_v19 = vld [vmem:[#allocation8 + $0x80] sm:$0xf0]  ;;  %v3436_v46 = vld [vmem:[#allocation8 + $0x60] sm:$0xf]  ;;  %v3719_v47 = vld [vmem:[#allocation8 + $0x68] sm:$0xf0] }
  0x23   :  { %v3449_v21 = vor.u32 %v3722_v19, %v3448_v18  ;;  %v3437_v48 = vor.u32 %v3719_v47, %v3436_v46  ;;  %v3424_v49 = vld [vmem:[#allocation8 + $0x48] sm:$0xf]  ;;  %v3716_v50 = vld [vmem:[#allocation8 + $0x50] sm:$0xf0]  ;;  %v3751_v54 = vld [vmem:[#allocation8 + $0x16c] sm:$0xf] }
  0x24   :  { %445 = vmatpush.bf16.msra.mxu1 %v3473_v14  ;;  %v3425_v51 = vor.u32 %v3716_v50, %v3424_v49  ;;  %v3568_v52 = vld [vmem:[#allocation8 + $0x168] sm:$0xf]  ;;  %v3752_v53 = vld [vmem:[#allocation8 + $0x170] sm:$0xf0]  ;;  %v3570_v56 = vld [vmem:[#allocation8 + $0x174] sm:$0xf0] }
  0x25   :  { %v3903_v7 = vpop.eup %3902  ;;  %v3569_v55 = vor.u32 %v3752_v53, %v3568_v52  ;;  %v3573_v57 = vor.u32 %v3751_v54, %v3570_v56  ;;  %v3412_v58 = vld [vmem:[#allocation8 + $0x30] sm:$0xf]  ;;  %v3713_v59 = vld [vmem:[#allocation8 + $0x38] sm:$0xf0]  ;;  %v3748_v63 = vld [vmem:[#allocation8 + $0x154] sm:$0xf] }
  0x26   :  { %v134_v8 = vmul.f32 128.0, %v3903_v7  ;;  %vm138_vm0 = vweird.f32 %v3903_v7  ;;  %v3413_v60 = vor.u32 %v3713_v59, %v3412_v58  ;;  %v3556_v61 = vld [vmem:[#allocation8 + $0x150] sm:$0xf]  ;;  %v3749_v62 = vld [vmem:[#allocation8 + $0x158] sm:$0xf0]  ;;  %s4329_s18 = smov 96  }
  0x27   :  { %191 = vadd.xlane.f32.xlu1 %v126_v3  ;;  %187 = vadd.xlane.f32.xlu0 %v124_v4  ;;  %v3480_v6 = vld [vmem:[#allocation8 + $0xb0] sm:$0xf]  ;;  %v3745_v11 = vld [vmem:[#allocation8 + $0x13c] sm:$0xf]  ;;  %v3546_v12 = vld [vmem:[#allocation8 + $0x144] sm:$0xf0] }
  0x28   :  { %131 = vadd.xlane.f32.xlu2 %v122_v5  ;;  %v135_v9 = vsub.f32 1.0, %v134_v8  ;;  %446 = vmatpush.bf16.msra.mxu1 %v3461_v17  ;;  %v3544_v8 = vld [vmem:[#allocation8 + $0x138] sm:$0xf]  ;;  %v3549_v14 = vor.u32 %v3745_v11, %v3546_v12  ;;  %v3388_v15 = vld [vmem:[#allocation8] sm:$0xf]  ;;  %s4330_s19 = smov 48  }
  0x29   :  { %661 = vmatpush.bf16.msra.mxu3 %v3569_v55  ;;  %680 = vmatpush.bf16.msra.mxu0 %v3573_v57  ;;  %v3727_v18 = vld [vmem:[#allocation8 + $0xac] sm:$0xf]  ;;  %v3474_v19 = vld [vmem:[#allocation8 + $0xb4] sm:$0xf0]  ;;  %v3721_v49 = vld [vmem:[#allocation8 + $0x7c] sm:$0xf] }
  0x2a   :  { %v136_v10 = vmul.f32 %v3903_v7, %v135_v9  ;;  %v3522_v46 = vld [vmem:[#allocation8 + $0x114] sm:$0xf0]  ;;  %v3450_v50 = vld [vmem:[#allocation8 + $0x84] sm:$0xf0]  ;;  %v3720_v53 = vld [vmem:[#allocation8 + $0x70] sm:$0xf0] }
  0x2b   :  { %v3444_v52 = vld [vmem:[#allocation8 + $0x68] sm:$0xf]  ;;  %v3508_v54 = vld [vmem:[#allocation8 + $0xf0] sm:$0xf]  ;;  %v3737_v56 = vld [vmem:[#allocation8 + $0xf8] sm:$0xf0] }
  0x2c   :  { %v137_v16 = vadd.f32 %v3903_v7, %v136_v10  ;;  %447 = vmatpush.bf16.msra.mxu1 %v3449_v21  ;;  %v3746_v10 = vld [vmem:[#allocation8 + $0x140] sm:$0xf0]  ;;  %v3477_v21 = vor.u32 %v3727_v18, %v3474_v19  ;;  %v3445_v55 = vor.u32 %v3720_v53, %v3444_v52  ;;  %v3736_v57 = vld [vmem:[#allocation8 + $0xf4] sm:$0xf]  ;;  %v3510_v58 = vld [vmem:[#allocation8 + $0xfc] sm:$0xf0]  ;;  %v3509_v59 = vor.u32 %v3737_v56, %v3508_v54 }
  0x2d   :  { %v3545_v13 = vor.u32 %v3746_v10, %v3544_v8  ;;  %v3498_v8 = vld [vmem:[#allocation8 + $0xe4] sm:$0xf0]  ;;  %v3714_v18 = vld [vmem:[#allocation8 + $0x40] sm:$0xf0]  ;;  %v3484_v19 = vld [vmem:[#allocation8 + $0xc0] sm:$0xf] }
  0x2e   :  { %v4404_v20 = vsel %vm138_vm0, %v3903_v7, %v137_v16  ;;  %v3729_v7 = vld [vmem:[#allocation8 + $0xb8] sm:$0xf0]  ;;  %v3707_v16 = vld [vmem:[#allocation8 + $0x8] sm:$0xf0]  ;;  %s4331_s3 = smov [#allocation13]   ;;  %s3352_s25 = sshll.u32 %s5690_s7, 4  ;;  %s3353_s25 = int_to_ptr.hbm [resolvable:$true] %s3352_s25 }
  0x2f   :  { %v3481_v9 = vor.u32 %v3729_v7, %v3480_v6  ;;  %v3389_v17 = vor.u32 %v3707_v16, %v3388_v15  ;;  %v3734_v6 = vld [vmem:[#allocation8 + $0xe0] sm:$0xf0]  ;;  %v3733_v7 = vld [vmem:[#allocation8 + $0xdc] sm:$0xf]  ;;  %s3350_s22 = sshll.u32 %s4331_s3, 4  ;;  %s4332_s7 = smov [#allocation14]   ;;  %s3351_s22 = int_to_ptr.vmem [resolvable:$true] %s3350_s22 }
  0x30   :  { %448 = vmatpush.bf16.msra.mxu1 %v3437_v48  ;;  %v3501_v11 = vor.u32 %v3733_v7, %v3498_v8  ;;  %s3363_s28 = sshll.u32 %s4332_s7, 4  ;;  %s3364_s28 = int_to_ptr.vmem [resolvable:$true] %s3363_s28 }
  0x31   :  { %473 = vmatpush.bf16.msra.mxu2 %v3481_v9 }
  0x34   :  { %449 = vmatpush.bf16.msra.mxu1 %v3425_v51  ;;  %v3453_v51 = vor.u32 %v3721_v49, %v3450_v50 }
  0x38   :  { %450 = vmatpush.bf16.msra.mxu1 %v3413_v60  ;;  %v3513_v60 = vor.u32 %v3736_v57, %v3510_v58  ;;  %v3706_v58 = vld [vmem:[#allocation8 + $0x4] sm:$0xf] }
  0x92   :  { %v190_v22 = vpop.xlane.xlu1 %189  ;;  %v186_v23 = vpop.xlane.xlu0 %185 }
  0x93   :  { %v195_v24 = vmul.f32 %v190_v22, %v4404_v20  ;;  %v193_v25 = vmul.f32 %v186_v23, %v4404_v20  ;;  %v130_v26 = vpop.xlane.xlu2 %129  ;;  %v3468_v22 = vld [vmem:[#allocation8 + $0x98] sm:$0xf]  ;;  %v3726_v23 = vld [vmem:[#allocation8 + $0xa0] sm:$0xf0] }
  0x94   :  { %v140_v37 = vmul.f32 %v4404_v20, %v130_v26  ;;  %v3743_v26 = vld [vmem:[#allocation8 + $0x128] sm:$0xf0] }
  0x95   :  { %v4408_v27 = vsub.f32 %v123_v1, %v193_v25  ;;  %v4410_v28 = vsub.f32 %v125_v0, %v195_v24  ;;  %v3557_v0 = vor.u32 %v3749_v62, %v3556_v61  ;;  %v3558_v1 = vld [vmem:[#allocation8 + $0x15c] sm:$0xf0]  ;;  %v3469_v25 = vor.u32 %v3726_v23, %v3468_v22  ;;  %v3718_v61 = vld [vmem:[#allocation8 + $0x64] sm:$0xf]  ;;  %v3438_v62 = vld [vmem:[#allocation8 + $0x6c] sm:$0xf0] }
  0x96   :  { %v4432_v44 = vsub.f32 %v121_v2, %v140_v37  ;;  %v3561_v2 = vor.u32 %v3748_v63, %v3558_v1  ;;  %v3532_v24 = vld [vmem:[#allocation8 + $0x120] sm:$0xf]  ;;  %v3723_v37 = vld [vmem:[#allocation8 + $0x88] sm:$0xf0]  ;;  %v3441_v63 = vor.u32 %v3718_v61, %v3438_v62  ;;  %v3717_v1 = vld [vmem:[#allocation8 + $0x58] sm:$0xf0] }
  0x97   :  { %v201_v29 = vmul.f32 %v4408_v27, %v4408_v27  ;;  %v203_v30 = vmul.f32 %v4410_v28, %v4410_v28  ;;  %662 = vmatpush.bf16.msra.mxu3 %v3557_v0  ;;  %474 = vmatpush.bf16.msra.mxu2 %v3469_v25  ;;  %v3432_v0 = vld [vmem:[#allocation8 + $0x50] sm:$0xf]  ;;  %v3730_v23 = vld [vmem:[#allocation8 + $0xc4] sm:$0xf] }
  0x98   :  { %v144_v45 = vmul.f32 %v4432_v44, %v4432_v44  ;;  %681 = vmatpush.bf16.msra.mxu0 %v3561_v2  ;;  %v3496_v2 = vld [vmem:[#allocation8 + $0xd8] sm:$0xf] }
  0x99   :  { %205 = vadd.xlane.f32.xlu0 %v201_v29  ;;  %209 = vadd.xlane.f32.xlu2 %v203_v30  ;;  %v3742_v29 = vld [vmem:[#allocation8 + $0x124] sm:$0xf]  ;;  %v3534_v30 = vld [vmem:[#allocation8 + $0x12c] sm:$0xf0]  ;;  %v3497_v10 = vor.u32 %v3734_v6, %v3496_v2 }
  0x9a   :  { %v192_v31 = vpop.xlane.xlu1 %191  ;;  %v188_v32 = vpop.xlane.xlu0 %187 }
  0x9b   :  { %v196_v33 = vmul.f32 %v192_v31, %v4404_v20  ;;  %v194_v34 = vmul.f32 %v188_v32, %v4404_v20  ;;  %v132_v35 = vpop.xlane.xlu2 %131  ;;  %663 = vmatpush.bf16.msra.mxu3 %v3545_v13  ;;  %v3533_v31 = vor.u32 %v3743_v26, %v3532_v24  ;;  %v3537_v32 = vor.u32 %v3742_v29, %v3534_v30  ;;  %v3715_v13 = vld [vmem:[#allocation8 + $0x4c] sm:$0xf]  ;;  %v3486_v24 = vld [vmem:[#allocation8 + $0xcc] sm:$0xf0]  ;;  %v3712_v30 = vld [vmem:[#allocation8 + $0x34] sm:$0xf] }
  0x9c   :  { %v141_v36 = vmul.f32 %v4404_v20, %v132_v35  ;;  %682 = vmatpush.bf16.msra.mxu0 %v3549_v14  ;;  %v3426_v14 = vld [vmem:[#allocation8 + $0x54] sm:$0xf0]  ;;  %v3489_v29 = vor.u32 %v3730_v23, %v3486_v24  ;;  %v3896_v23 = vld [vmem:[#allocation7 + $0x2] ss:$0 sm:$0xff] }
  0x9d   :  { %v4420_v38 = vsub.f32 %v126_v3, %v196_v33  ;;  %v4422_v39 = vsub.f32 %v124_v4, %v194_v34  ;;  %v3400_v3 = vld [vmem:[#allocation8 + $0x18] sm:$0xf]  ;;  %v3710_v4 = vld [vmem:[#allocation8 + $0x20] sm:$0xf0]  ;;  %v3724_v33 = vld [vmem:[#allocation8 + $0x94] sm:$0xf]  ;;  %v3429_v16 = vor.u32 %v3715_v13, %v3426_v14 }
  0x9e   :  { %v4424_v40 = vsub.f32 %v122_v5, %v141_v36  ;;  %v3401_v5 = vor.u32 %v3710_v4, %v3400_v3  ;;  %v3462_v34 = vld [vmem:[#allocation8 + $0x9c] sm:$0xf0] }
  0x9f   :  { %v204_v41 = vmul.f32 %v4420_v38, %v4420_v38  ;;  %v202_v42 = vmul.f32 %v4422_v39, %v4422_v39  ;;  %664 = vmatpush.bf16.msra.mxu3 %v3533_v31  ;;  %v3465_v35 = vor.u32 %v3724_v33, %v3462_v34  ;;  %v3456_v36 = vld [vmem:[#allocation8 + $0x80] sm:$0xf]  ;;  %v3711_v34 = vld [vmem:[#allocation8 + $0x28] sm:$0xf0] }
  0xa0   :  { %v145_v43 = vmul.f32 %v4424_v40, %v4424_v40  ;;  %451 = vmatpush.bf16.msra.mxu1 %v3401_v5  ;;  %683 = vmatpush.bf16.msra.mxu0 %v3537_v32  ;;  %v3433_v5 = vor.u32 %v3717_v1, %v3432_v0  ;;  %v3414_v31 = vld [vmem:[#allocation8 + $0x3c] sm:$0xf0] }
  0xa1   :  { %211 = vadd.xlane.f32.xlu0 %v204_v41  ;;  %207 = vadd.xlane.f32.xlu1 %v202_v42  ;;  %v3520_v41 = vld [vmem:[#allocation8 + $0x108] sm:$0xf]  ;;  %v3457_v42 = vor.u32 %v3723_v37, %v3456_v36  ;;  %v3417_v32 = vor.u32 %v3712_v30, %v3414_v31  ;;  %v3408_v33 = vld [vmem:[#allocation8 + $0x20] sm:$0xf] }
  0xa2   :  { %148 = vadd.xlane.f32.xlu2 %v145_v43  ;;  %v3740_v43 = vld [vmem:[#allocation8 + $0x110] sm:$0xf0]  ;;  %v525_v30 = vld [vmem:[#allocation10 + $0x1] ss:$2 sm:$0x7] }
  0xa3   :  { %v3521_v47 = vor.u32 %v3740_v43, %v3520_v41  ;;  %475 = vmatpush.bf16.msra.mxu2 %v3457_v42  ;;  %v3409_v41 = vor.u32 %v3711_v34, %v3408_v33  ;;  %v3402_v42 = vld [vmem:[#allocation8 + $0x24] sm:$0xf0] }
  0xa4   :  { %452 = vmatpush.bf16.msra.mxu1 %v3389_v17  ;;  %v3420_v17 = vld [vmem:[#allocation8 + $0x38] sm:$0xf]  ;;  %v3396_v43 = vld [vmem:[#allocation8 + $0x8] sm:$0xf] }
  0xa5   :  { %665 = vmatpush.bf16.msra.mxu3 %v3521_v47  ;;  %v3421_v22 = vor.u32 %v3714_v18, %v3420_v17 }
  0xa7   :  { %476 = vmatpush.bf16.msra.mxu2 %v3445_v55 }
  0xa8   :  { %459 = vmatpush.bf16.msrb.mxu1 %v3477_v21  ;;  %v3731_v21 = vld [vmem:[#allocation8 + $0xc8] sm:$0xf0] }
  0xa9   :  { %146 = vadd.xlane.f32.xlu1 %v144_v45  ;;  %v3739_v45 = vld [vmem:[#allocation8 + $0x10c] sm:$0xf]  ;;  %666 = vmatpush.bf16.msra.mxu3 %v3509_v59  ;;  %v3485_v26 = vor.u32 %v3731_v21, %v3484_v19  ;;  %v3390_v59 = vld [vmem:[#allocation8 + $0xc] sm:$0xf0] }
  0xaa   :  { %v3525_v48 = vor.u32 %v3739_v45, %v3522_v46  ;;  %v3708_v45 = vld [vmem:[#allocation8 + $0x10] sm:$0xf0] }
  0xab   :  { %477 = vmatpush.bf16.msra.mxu2 %v3433_v5  ;;  %v3397_v54 = vor.u32 %v3708_v45, %v3396_v43 }
  0xac   :  { %460 = vmatpush.bf16.msrb.mxu1 %v3465_v35  ;;  %684 = vmatpush.bf16.msra.mxu0 %v3525_v48  ;;  %v3709_v35 = vld [vmem:[#allocation8 + $0x1c] sm:$0xf] }
  0xad   :  { %667 = vmatpush.bf16.msra.mxu3 %v3497_v10  ;;  %v3405_v49 = vor.u32 %v3709_v35, %v3402_v42 }
  0xaf   :  { %478 = vmatpush.bf16.msra.mxu2 %v3421_v22 }
  0xb0   :  { %461 = vmatpush.bf16.msrb.mxu1 %v3453_v51  ;;  %685 = vmatpush.bf16.msra.mxu0 %v3513_v60  ;;  %v3393_v60 = vor.u32 %v3706_v58, %v3390_v59 }
  0xb1   :  { %668 = vmatpush.bf16.msra.mxu3 %v3485_v26 }
  0xb3   :  { %479 = vmatpush.bf16.msra.mxu2 %v3409_v41 }
  0xb4   :  { %462 = vmatpush.bf16.msrb.mxu1 %v3441_v63  ;;  %686 = vmatpush.bf16.msra.mxu0 %v3501_v11 }
  0xb7   :  { %480 = vmatpush.bf16.msra.mxu2 %v3397_v54 }
  0xb8   :  { %463 = vmatpush.bf16.msrb.mxu1 %v3429_v16  ;;  %687 = vmatpush.bf16.msra.mxu0 %v3489_v29 }
  0xbc   :  { %464 = vmatpush.bf16.msrb.mxu1 %v3417_v32 }
  0xc0   :  { %465 = vmatpush.bf16.msrb.mxu1 %v3405_v49 }
  0xc4   :  { %466 = vmatpush.bf16.msrb.mxu1 %v3393_v60  ;;  %v3576_v60 = vld [vmem:[#allocation8 + $0x170] sm:$0xf] }
 0x10c   :  { %v206_v3 = vpop.xlane.xlu0 %205  ;;  %v210_v4 = vpop.xlane.xlu2 %209 }
 0x10d   :  { %v213_v9 = vmul.f32 %v206_v3, %v4404_v20  ;;  %v215_v12 = vmul.f32 %v210_v4, %v4404_v20 }
 0x10f   :  { %v4438_v15 = vadd.f32 1e-05, %v213_v9  ;;  %v4441_v25 = vadd.f32 1e-05, %v215_v12 }
 0x111   :  { %3904 = vrsqrt.f32 %v4438_v15  ;;  %vm227_vm2 = vweird.f32 %v4438_v15  ;;  %vm247_vm14 = vweird.f32 %v4441_v25 }
 0x112   :  { %3906 = vrsqrt.f32 %v4441_v25 }
 0x114   :  { %v208_v36 = vpop.xlane.xlu1 %207  ;;  %v212_v37 = vpop.xlane.xlu0 %211 }
 0x115   :  { %v214_v46 = vmul.f32 %v208_v36, %v4404_v20  ;;  %v216_v47 = vmul.f32 %v212_v37, %v4404_v20  ;;  %v149_v48 = vpop.xlane.xlu2 %148  ;;  %v3897_v37 = vld [vmem:[#allocation7 + $0x3] ss:$0 sm:$0xff] }
 0x116   :  { %v151_v50 = vmul.f32 %v149_v48, %v4404_v20 }
 0x117   :  { %v3905_v51 = vpop.eup %3904  ;;  %v218_v52 = vadd.f32 1e-05, %v214_v46  ;;  %v4447_v53 = vadd.f32 1e-05, %v216_v47 }
 0x118   :  { %v222_v55 = vmul.f32 %v3905_v51, %v4438_v15  ;;  %v153_v56 = vadd.f32 1e-05, %v151_v50  ;;  %v4451_v61 = vpop.eup %3906  ;;  %vm228_vm1 = vweird.f32 %v3905_v51  ;;  %v3898_v50 = vld [vmem:[#allocation7] ss:$0 sm:$0xff] }
 0x119   :  { %3908 = vrsqrt.f32 %v218_v52  ;;  %v242_v3 = vmul.f32 %v4451_v61, %v4441_v25  ;;  %vm229_vm3 = vmor %vm227_vm2, %vm228_vm1  ;;  %vm237_vm7 = vweird.f32 %v218_v52  ;;  %vm257_vm9 = vweird.f32 %v4447_v53 }
 0x11a   :  { %v223_v57 = vmul.f32 %v3905_v51, %v222_v55  ;;  %3910 = vrsqrt.f32 %v4447_v53  ;;  %vm170_vm5 = vweird.f32 %v153_v56  ;;  %vm248_vm15 = vweird.f32 %v4451_v61 }
 0x11b   :  { %3912 = vrsqrt.f32 %v153_v56  ;;  %v243_v11 = vmul.f32 %v4451_v61, %v242_v3  ;;  %vm4485_vm2 = vmor %vm247_vm14, %vm248_vm15 }
 0x11c   :  { %v224_v62 = vmul.f32 0.5, %v223_v57  ;;  %v147_v63 = vpop.xlane.xlu1 %146 }
 0x11d   :  { %v150_v0 = vmul.f32 %v147_v63, %v4404_v20  ;;  %v244_v22 = vmul.f32 0.5, %v243_v11 }
 0x11e   :  { %v225_v1 = vsub.f32 1.5, %v224_v62  ;;  %v3753_v62 = vld [vmem:[#allocation8 + $0x178] sm:$0xf0] }
 0x11f   :  { %v3909_v2 = vpop.eup %3908  ;;  %v152_v4 = vadd.f32 1e-05, %v150_v0  ;;  %v245_v35 = vsub.f32 1.5, %v244_v22  ;;  %v3577_v3 = vor.u32 %v3753_v62, %v3576_v60  ;;  %v3504_v22 = vld [vmem:[#allocation8 + $0xe0] sm:$0xf] }
 0x120   :  { %v4456_v5 = vpop.eup %3910  ;;  %v226_v6 = vmul.f32 %v3905_v51, %v225_v1  ;;  %v232_v7 = vmul.f32 %v3909_v2, %v218_v52  ;;  %vm238_vm4 = vweird.f32 %v3909_v2 }
 0x121   :  { %v3913_v8 = vpop.eup %3912  ;;  %v252_v9 = vmul.f32 %v4456_v5, %v4447_v53  ;;  %3914 = vrsqrt.f32 %v152_v4  ;;  %vm239_vm8 = vmor %vm237_vm7, %vm238_vm4  ;;  %vm258_vm11 = vweird.f32 %v4456_v5  ;;  %vm160_vm12 = vweird.f32 %v152_v4 }
 0x122   :  { %v233_v20 = vmul.f32 %v3909_v2, %v232_v7  ;;  %v165_v10 = vmul.f32 %v3913_v8, %v153_v56  ;;  %v230_v13 = vsel %vm229_vm3, %v3905_v51, %v226_v6  ;;  %vm171_vm6 = vweird.f32 %v3913_v8  ;;  %vm4479_vm0 = vmor %vm257_vm9, %vm258_vm11  ;;  %v3750_v6 = vld [vmem:[#allocation8 + $0x160] sm:$0xf0] }
 0x123   :  { %v253_v12 = vmul.f32 %v4456_v5, %v252_v9  ;;  %v261_v15 = vmul.f32 %v230_v13, %v4408_v27  ;;  %vm4466_vm10 = vmor %vm170_vm5, %vm171_vm6  ;;  %v246_v51 = vmul.f32 %v4451_v61, %v245_v35  ;;  %v3552_v9 = vld [vmem:[#allocation8 + $0x140] sm:$0xf]  ;;  %v3744_v13 = vld [vmem:[#allocation8 + $0x130] sm:$0xf0]  ;;  %vm752_vm3 = vcmask 130048  }
 0x124   :  { %v234_v14 = vmul.f32 0.5, %v233_v20  ;;  %v166_v16 = vmul.f32 %v3913_v8, %v165_v10  ;;  %v3747_v20 = vld [vmem:[#allocation8 + $0x148] sm:$0xf0]  ;;  %vm765_vm4 = vcmask 261120   ;;  %vm2609_vm5 = vcmask 1043456  }
 0x125   :  { %v254_v18 = vmul.f32 0.5, %v253_v12  ;;  %v266_v36 = vmul.f32 %v3896_v23, %v261_v15  ;;  %v250_v58 = vsel %vm4485_vm2, %v4451_v61, %v246_v51  ;;  %v3540_v12 = vld [vmem:[#allocation8 + $0x128] sm:$0xf]  ;;  %v3735_v15 = vld [vmem:[#allocation8 + $0xe8] sm:$0xf0]  ;;  %vm2214_vm6 = vcmask 64512  }
 0x126   :  { %v235_v17 = vsub.f32 1.5, %v234_v14  ;;  %v167_v19 = vmul.f32 0.5, %v166_v16  ;;  %v3528_v14 = vld [vmem:[#allocation8 + $0x110] sm:$0xf]  ;;  %v3741_v16 = vld [vmem:[#allocation8 + $0x118] sm:$0xf0] }
 0x127   :  { %v3915_v21 = vpop.eup %3914  ;;  %v255_v32 = vsub.f32 1.5, %v254_v18  ;;  %v271_v47 = vadd.f32 %v3897_v37, %v266_v36  ;;  %v3516_v18 = vld [vmem:[#allocation8 + $0xf8] sm:$0xf]  ;;  %vm1814_vm7 = vcmask 392192   ;;  %vm1820_vm9 = vcmask 654336  }
 0x128   :  { %v236_v24 = vmul.f32 %v3909_v2, %v235_v17  ;;  %v168_v26 = vsub.f32 1.5, %v167_v19  ;;  %v155_v29 = vmul.f32 %v3915_v21, %v152_v4  ;;  %vm161_vm13 = vweird.f32 %v3915_v21  ;;  %v3738_v19 = vld [vmem:[#allocation8 + $0x100] sm:$0xf0] }
 0x129   :  { %v256_v45 = vmul.f32 %v4456_v5, %v255_v32  ;;  %vm162_vm1 = vmor %vm160_vm12, %vm161_vm13  ;;  %v3529_v17 = vor.u32 %v3741_v16, %v3528_v14  ;;  %v528_v32 = vperm.slane %v525_v30, 1  ;;  %vm1826_vm11 = vcmask 916480  }
 0x12a   :  { %v240_v31 = vsel %vm239_vm8, %v3909_v2, %v236_v24  ;;  %v169_v33 = vmul.f32 %v3913_v8, %v168_v26  ;;  %v156_v34 = vmul.f32 %v3915_v21, %v155_v29  ;;  %v263_v2 = vmul.f32 %v250_v58, %v4410_v28  ;;  %v3492_v24 = vld [vmem:[#allocation8 + $0xc8] sm:$0xf]  ;;  %v3732_v26 = vld [vmem:[#allocation8 + $0xd0] sm:$0xf0] }
 0x12b   :  { %v262_v27 = vmul.f32 %v240_v31, %v4422_v39  ;;  %v260_v53 = vsel %vm4479_vm0, %v4456_v5, %v256_v45  ;;  %v3564_v5 = vld [vmem:[#allocation8 + $0x158] sm:$0xf]  ;;  %v3541_v28 = vor.u32 %v3744_v13, %v3540_v12  ;;  %v3493_v29 = vor.u32 %v3732_v26, %v3492_v24 }
 0x12c   :  { %v173_v41 = vsel %vm4466_vm10, %v3913_v8, %v169_v33  ;;  %v157_v42 = vmul.f32 0.5, %v156_v34  ;;  %v264_v63 = vmul.f32 %v260_v53, %v4420_v38  ;;  %v268_v7 = vmul.f32 %v3896_v23, %v263_v2 }
 0x12d   :  { %v267_v43 = vmul.f32 %v3896_v23, %v262_v27  ;;  %v175_v49 = vmul.f32 %v173_v41, %v4424_v40  ;;  %v3899_v40 = vld [vmem:[#allocation7 + $0x1] ss:$0 sm:$0xff]  ;;  %v3565_v8 = vor.u32 %v3750_v6, %v3564_v5  ;;  %v3553_v38 = vor.u32 %v3747_v20, %v3552_v9 }
 0x12e   :  { %v158_v39 = vsub.f32 1.5, %v157_v42  ;;  %v273_v10 = vadd.f32 %v3897_v37, %v268_v7  ;;  %v527_v33 = vperm.slane %v525_v30, 0  ;;  %vm1817_vm8 = vcmask 523264  }
 0x12f   :  { %v272_v48 = vadd.f32 %v3897_v37, %v267_v43  ;;  %v178_v57 = vmul.f32 %v3898_v50, %v175_v49  ;;  %vm1823_vm10 = vcmask 785408  }
 0x130   :  { %v159_v25 = vmul.f32 %v3915_v21, %v158_v39 }
 0x131   :  { %v275_v54 = vpack.c.bf16 %v272_v48, %v271_v47  ;;  %v181_v1 = vadd.f32 %v3899_v40, %v178_v57  ;;  %v4501_v47 = vld [vmem:[#allocation10] ss:$2 sm:$0x7] }
 0x132   :  { %v163_v55 = vsel %vm162_vm1, %v3915_v21, %v159_v25  ;;  %v3517_v21 = vor.u32 %v3738_v19, %v3516_v18  ;;  %v311_v48 = vperm.slane %v4501_v47, 0  ;;  %v312_v49 = vperm.slane %v4501_v47, 1 }
 0x133   :  { %669 = vmatmul.bf16.vlgmr.msra.gmra.mxu3 %v275_v54  ;;  %688 = vmatmul.bf16.vlgmr.msra.gmra.mxu0 %v275_v54  ;;  %v174_v56 = vmul.f32 %v163_v55, %v4432_v44  ;;  %v269_v44 = vmul.f32 %v3896_v23, %v264_v63  ;;  %v3505_v23 = vor.u32 %v3735_v15, %v3504_v22 }
 0x135   :  { %v177_v59 = vmul.f32 %v3898_v50, %v174_v56  ;;  %v274_v61 = vadd.f32 %v3897_v37, %v269_v44  ;;  %v529_v44 = vperm.slane %v525_v30, 2 }
 0x137   :  { %v180_v0 = vadd.f32 %v3899_v40, %v177_v59  ;;  %v276_v11 = vpack.c.bf16 %v274_v61, %v273_v10 }
 0x139   :  { %v182_v4 = vpack.c.bf16 %v181_v1, %v180_v0 }
 0x13b   :  { %453 = vmatmul.bf16.vlgmr.msra.gmra.mxu1 %v182_v4  ;;  %481 = vmatmul.bf16.vlgmr.msra.gmra.mxu2 %v182_v4 }
 0x13c   :  { %699 = vmatpush.bf16.msra.mxu1 %v3577_v3 }
 0x140   :  { %700 = vmatpush.bf16.msra.mxu1 %v3565_v8 }
 0x143   :  { %674 = vmatmul.bf16.gmra.mxu3 %v276_v11  ;;  %693 = vmatmul.bf16.gmra.mxu0 %v276_v11 }
 0x144   :  { %701 = vmatpush.bf16.msra.mxu1 %v3553_v38 }
 0x148   :  { %702 = vmatpush.bf16.msra.mxu1 %v3541_v28 }
 0x14b   :  { %467 = vmatmul.bf16.vlgmr.msrb.gmra.mxu1 %v182_v4 }
 0x14c   :  { %703 = vmatpush.bf16.msra.mxu1 %v3529_v17 }
 0x150   :  { %704 = vmatpush.bf16.msra.mxu1 %v3517_v21 }
 0x154   :  { %705 = vmatpush.bf16.msra.mxu1 %v3505_v23 }
 0x158   :  { %706 = vmatpush.bf16.msra.mxu1 %v3493_v29 }
 0x15b   :  { %707 = vmatmul.bf16.vlgmr.msra.gmra.mxu1 %v275_v54 }
 0x16b   :  { %712 = vmatmul.bf16.gmra.mxu1 %v276_v11 }
 0x1b0   :  { %v689_v31 = vpop.f32.mrf.mxu0 }
 0x1b1   :  { %v690_v35 = vadd.f32 %v689_v31, %v528_v32 }
 0x1b6   :  { %v670_v34 = vpop.f32.mrf.mxu3 }
 0x1b7   :  { %v671_v27 = vadd.f32 %v670_v34, %v527_v33 }
 0x1b8   :  { %v454_v36 = vpop.f32.mrf.mxu1  ;;  %v691_v41 = vpop.f32.mrf.mxu0 }
 0x1b9   :  { %v718_v37 = vpack.c.bf16 %v690_v35, %v671_v27  ;;  %v692_v43 = vadd.f32 %v691_v41, %v528_v32  ;;  %v455_v51 = vadd.f32 %v454_v36, %v311_v48 }
 0x1bb   :  { %832 = vrot.lane.b32.xlu0 %v718_v37, %s4325_s4  ;;  %840 = vrot.lane.b32.xlu1 %v718_v37, %s4326_s5  ;;  %v872_v58 = vunpack.c.l.b16 %v718_v37 }
 0x1bc   :  { %780 = vrot.lane.b32.xlu2 %v718_v37, %s4327_s17 }
 0x1be   :  { %v672_v42 = vpop.f32.mrf.mxu3 }
 0x1bf   :  { %v673_v45 = vadd.f32 %v672_v42, %v527_v33 }
 0x1c0   :  { %v456_v46 = vpop.f32.mrf.mxu1  ;;  %v694_v53 = vpop.f32.mrf.mxu0 }
 0x1c1   :  { %v720_v39 = vpack.c.bf16 %v692_v43, %v673_v45  ;;  %v695_v56 = vadd.f32 %v694_v53, %v528_v32  ;;  %v457_v5 = vadd.f32 %v456_v46, %v311_v48 }
 0x1c3   :  { %842 = vrot.lane.b32.xlu0 %v720_v39, %s4326_s5  ;;  %808 = vrot.lane.b32.xlu1 %v718_v37, %s4328_s1  ;;  %v873_v57 = vunpack.c.l.b16 %v720_v39 }
 0x1c4   :  { %792 = vrot.lane.b32.xlu2 %v718_v37, %s4322_s15 }
 0x1c5   :  { %v4516_v59 = vpack.c.b16 %v873_v57, %v872_v58 }
 0x1c6   :  { %v675_v52 = vpop.f32.mrf.mxu3 }
 0x1c7   :  { %v676_v55 = vadd.f32 %v675_v52, %v527_v33 }
 0x1c8   :  { %v468_v50 = vpop.f32.mrf.mxu1  ;;  %v696_v63 = vpop.f32.mrf.mxu0 }
 0x1c9   :  { %v469_v25 = vadd.f32 %v468_v50, %v312_v49  ;;  %v722_v40 = vpack.c.bf16 %v695_v56, %v676_v55  ;;  %v697_v1 = vadd.f32 %v696_v63, %v528_v32  ;;  %v482_v56 = vpop.f32.mrf.mxu2 }
 0x1cb   :  { %v4508_v54 = vpack.c.bf16 %v469_v25, %v455_v51  ;;  %812 = vrot.lane.b32.xlu0 %v720_v39, %s4328_s1  ;;  %834 = vrot.lane.b32.xlu1 %v720_v39, %s4325_s4  ;;  %v897_v20 = vunpack.c.l.b16 %v722_v40 }
 0x1cd   :  { %755 = vrot.lane.b32.xlu2 %v4508_v54, %s4325_s4 }
 0x1ce   :  { %v677_v60 = vpop.f32.mrf.mxu3 }
 0x1cf   :  { %v678_v0 = vadd.f32 %v677_v60, %v527_v33 }
 0x1d0   :  { %v470_v62 = vpop.f32.mrf.mxu1 }
 0x1d1   :  { %v724_v2 = vpack.c.bf16 %v697_v1, %v678_v0  ;;  %v471_v4 = vadd.f32 %v470_v62, %v312_v49 }
 0x1d3   :  { %782 = vrot.lane.b32.xlu1 %v720_v39, %s4327_s17  ;;  %784 = vrot.lane.b32.xlu0 %v722_v40, %s4327_s17  ;;  %v4527_v6 = vpack.c.bf16 %v471_v4, %v457_v5  ;;  %v898_v9 = vunpack.c.l.b16 %v724_v2  ;;  %v484_v4 = vpop.f32.mrf.mxu2 }
 0x1d5   :  { %875 = vrot.lane.b32.xlu2 %v4516_v59, %s4327_s17  ;;  %v4536_v38 = vpack.c.b16 %v898_v9, %v897_v20 }
 0x1d8   :  { %v708_v3 = vpop.f32.mrf.mxu1 }
 0x1d9   :  { %v709_v7 = vadd.f32 %v708_v3, %v529_v44 }
 0x1db   :  { %794 = vrot.lane.b32.xlu1 %v720_v39, %s4322_s15  ;;  %844 = vrot.lane.b32.xlu0 %v722_v40, %s4326_s5  ;;  %v719_v61 = vpack.c.bf16 %v709_v7, %v709_v7 }
 0x1dd   :  { %836 = vrot.lane.b32.xlu2 %v722_v40, %s4325_s4 }
 0x1e0   :  { %v710_v8 = vpop.f32.mrf.mxu1 }
 0x1e1   :  { %v711_v11 = vadd.f32 %v710_v8, %v529_v44 }
 0x1e3   :  { %838 = vrot.lane.b32.xlu0 %v724_v2, %s4325_s4  ;;  %759 = vrot.lane.b32.xlu1 %v4508_v54, %s4326_s5  ;;  %v4542_v13 = vpack.c.bf16 %v711_v11, %v711_v11 }
 0x1e5   :  { %816 = vrot.lane.b32.xlu2 %v722_v40, %s4328_s1 }
 0x1e8   :  { %v713_v10 = vpop.f32.mrf.mxu1 }
 0x1e9   :  { %v714_v12 = vadd.f32 %v713_v10, %v529_v44 }
 0x1eb   :  { %796 = vrot.lane.b32.xlu0 %v722_v40, %s4322_s15  ;;  %757 = vrot.lane.b32.xlu1 %v4527_v6, %s4325_s4  ;;  %v723_v28 = vpack.c.bf16 %v714_v12, %v714_v12 }
 0x1ed   :  { %786 = vrot.lane.b32.xlu2 %v724_v2, %s4327_s17 }
 0x1f0   :  { %v715_v14 = vpop.f32.mrf.mxu1 }
 0x1f1   :  { %v716_v16 = vadd.f32 %v715_v14, %v529_v44  ;;  %v313_v44 = vperm.slane %v4501_v47, 2 }
 0x1f3   :  { %856 = vrot.lane.b32.xlu0 %v719_v61, %s4329_s18  ;;  %820 = vrot.lane.b32.xlu1 %v724_v2, %s4328_s1  ;;  %v4549_v17 = vpack.c.bf16 %v716_v16, %v716_v16  ;;  %v485_v8 = vadd.f32 %v484_v4, %v313_v44 }
 0x1f5   :  { %846 = vrot.lane.b32.xlu2 %v724_v2, %s4326_s5  ;;  %v490_v20 = vpack.c.bf16 %v485_v8, %v485_v8 }
 0x1fb   :  { %900 = vrot.lane.b32.xlu0 %v4536_v38, %s4327_s17  ;;  %810 = vrot.lane.b32.xlu1 %v719_v61, %s4328_s1 }
 0x1fd   :  { %798 = vrot.lane.b32.xlu2 %v724_v2, %s4322_s15 }
 0x203   :  { %814 = vrot.lane.b32.xlu0 %v4542_v13, %s4328_s1  ;;  %868 = vrot.lane.b32.xlu1 %v723_v28, %s4330_s19 }
 0x205   :  { %858 = vrot.lane.b32.xlu2 %v4542_v13, %s4329_s18 }
 0x20b   :  { %822 = vrot.lane.b32.xlu1 %v4549_v17, %s4328_s1 }
 0x20d   :  { %818 = vrot.lane.b32.xlu2 %v723_v28, %s4328_s1 }
 0x216   :  { %v781_v18 = vpop.permute.xlu2 %780 }
 0x217   :  { %v788_v46 = vrot.slane %v781_v18, 4 }
 0x219   :  { %v1017_v51 = vunpack.c.l.b16 %v788_v46 }
 0x21e   :  { %v793_v19 = vpop.permute.xlu2 %792 }
 0x21f   :  { %v800_v58 = vrot.slane %v793_v19, 4 }
 0x221   :  { %v1065_v2 = vunpack.c.l.b16 %v800_v58 }
 0x227   :  { %v4554_v21 = vpop.permute.xlu2 %755 }
 0x22d   :  { %v833_v22 = vpop.permute.xlu0 %832  ;;  %v841_v15 = vpop.permute.xlu1 %840 }
 0x22e   :  { %v848_v26 = vrot.slane %v841_v15, 4  ;;  %v921_v42 = vunpack.c.l.b16 %v833_v22 }
 0x22f   :  { %v876_v23 = vpop.permute.xlu2 %875 }
 0x230   :  { %v882_v24 = vsel %vm752_vm3, %v876_v23, 0  ;;  %v852_v31 = vsel %vm765_vm4, %v841_v15, %v848_v26 }
 0x231   :  { %891 = vmatpush.bf16.xpose.msrb.mxu2 %v882_v24  ;;  %v969_v34 = vunpack.c.l.b16 %v852_v31 }
 0x235   :  { %v843_v29 = vpop.permute.xlu0 %842  ;;  %v4557_v30 = vpop.permute.xlu1 %808 }
 0x236   :  { %v849_v32 = vrot.slane %v843_v29, 4 }
 0x237   :  { %v837_v27 = vpop.permute.xlu2 %836 }
 0x238   :  { %v853_v33 = vsel %vm765_vm4, %v843_v29, %v849_v32  ;;  %3578 = vmatmul.msk.bf16.vlgmr.msrb.gmra.mxu2 %vm752_vm3, %v4508_v54  ;;  %v945_v63 = vunpack.c.l.b16 %v837_v27  ;;  %v824_v29 = vrot.slane %v4557_v30, 4 }
 0x239   :  { %v970_v35 = vunpack.c.l.b16 %v853_v33 }
 0x23b   :  { %v4563_v36 = vpack.c.b16 %v970_v35, %v969_v34 }
 0x23d   :  { %v4565_v37 = vpop.permute.xlu0 %812  ;;  %v835_v41 = vpop.permute.xlu1 %834  ;;  %972 = vrot.lane.b32.xlu0 %v4563_v36, %s4327_s17 }
 0x23e   :  { %v922_v43 = vunpack.c.l.b16 %v835_v41  ;;  %v483_v41 = vadd.f32 %v482_v56, %v313_v44 }
 0x23f   :  { %v4573_v39 = vpop.permute.xlu2 %816 }
 0x240   :  { %v4569_v45 = vpack.c.b16 %v922_v43, %v921_v42  ;;  %v4640_v46 = vpack.c.bf16 %v483_v41, %v483_v41 }
 0x242   :  { %924 = vrot.lane.b32.xlu1 %v4569_v45, %s4327_s17 }
 0x245   :  { %v783_v48 = vpop.permute.xlu1 %782  ;;  %v785_v49 = vpop.permute.xlu0 %784 }
 0x246   :  { %v789_v50 = vrot.slane %v783_v48, 4  ;;  %v790_v11 = vrot.slane %v785_v49, 4 }
 0x247   :  { %v787_v57 = vpop.permute.xlu2 %786 }
 0x248   :  { %v1018_v25 = vunpack.c.l.b16 %v789_v50  ;;  %v791_v10 = vrot.slane %v787_v57, 4  ;;  %v1041_v14 = vunpack.c.l.b16 %v790_v11  ;;  %v826_v11 = vrot.slane %v4573_v39, 4 }
 0x24a   :  { %864 = vrot.lane.b32.xlu1 %v719_v61, %s4330_s19  ;;  %v4576_v52 = vpack.c.b16 %v1018_v25, %v1017_v51  ;;  %v1042_v12 = vunpack.c.l.b16 %v791_v10 }
 0x24c   :  { %1020 = vrot.lane.b32.xlu2 %v4576_v52, %s4327_s17  ;;  %v4607_v18 = vpack.c.b16 %v1042_v12, %v1041_v14 }
 0x24d   :  { %v795_v53 = vpop.permute.xlu1 %794  ;;  %v4580_v55 = vpop.permute.xlu0 %844 }
 0x24e   :  { %v801_v40 = vrot.slane %v795_v53, 4  ;;  %v850_v42 = vrot.slane %v4580_v55, 4 }
 0x24f   :  { %v847_v5 = vpop.permute.xlu2 %846 }
 0x250   :  { %v1066_v0 = vunpack.c.l.b16 %v801_v40 }
 0x252   :  { %860 = vrot.lane.b32.xlu1 %v723_v28, %s4329_s18  ;;  %v4594_v7 = vpack.c.b16 %v1066_v0, %v1065_v2 }
 0x254   :  { %728 = vrot.lane.b32.xlu2 %v4508_v54, %s4327_s17 }
 0x255   :  { %v839_v60 = vpop.permute.xlu0 %838  ;;  %v4585_v62 = vpop.permute.xlu1 %759 }
 0x256   :  { %v946_v1 = vunpack.c.l.b16 %v839_v60 }
 0x257   :  { %v799_v47 = vpop.permute.xlu2 %798 }
 0x258   :  { %v4587_v3 = vpack.c.b16 %v946_v1, %v945_v63  ;;  %v803_v25 = vrot.slane %v799_v47, 4 }
 0x25a   :  { %746 = vrot.lane.b32.xlu1 %v4527_v6, %s4328_s1  ;;  %948 = vrot.lane.b32.xlu0 %v4587_v3, %s4327_s17 }
 0x25c   :  { %1068 = vrot.lane.b32.xlu2 %v4594_v7, %s4327_s17 }
 0x25d   :  { %v797_v61 = vpop.permute.xlu0 %796  ;;  %v4598_v9 = vpop.permute.xlu1 %757 }
 0x25e   :  { %v802_v51 = vrot.slane %v797_v61, 4 }
 0x25f   :  { %v859_v19 = vpop.permute.xlu2 %858 }
 0x260   :  { %v1162_v24 = vunpack.c.l.b16 %v859_v19  ;;  %v1089_v53 = vunpack.c.l.b16 %v802_v51 }
 0x262   :  { %748 = vrot.lane.b32.xlu1 %v490_v20, %s4328_s1  ;;  %870 = vrot.lane.b32.xlu0 %v4549_v17, %s4330_s19 }
 0x264   :  { %730 = vrot.lane.b32.xlu2 %v4527_v6, %s4327_s17 }
 0x265   :  { %v857_v28 = vpop.permute.xlu0 %856  ;;  %v4605_v16 = vpop.permute.xlu1 %820 }
 0x266   :  { %v1161_v15 = vunpack.c.l.b16 %v857_v28  ;;  %v827_v10 = vrot.slane %v4605_v16, 4 }
 0x267   :  { %v819_v57 = vpop.permute.xlu2 %818 }
 0x268   :  { %v4617_v31 = vpack.c.b16 %v1162_v24, %v1161_v15  ;;  %v830_v12 = vsel %vm752_vm3, %v826_v11, %v819_v57 }
 0x26a   :  { %866 = vrot.lane.b32.xlu0 %v4542_v13, %s4330_s19  ;;  %1044 = vrot.lane.b32.xlu1 %v4607_v18, %s4327_s17  ;;  %v825_v13 = vrot.slane %v4565_v37, 4  ;;  %v851_v37 = vrot.slane %v847_v5, 4 }
 0x26c   :  { %742 = vrot.lane.b32.xlu2 %v4508_v54, %s4328_s1  ;;  %v855_v43 = vsel %vm765_vm4, %v847_v5, %v851_v37 }
 0x26d   :  { %v901_v22 = vpop.permute.xlu0 %900  ;;  %v811_v26 = vpop.permute.xlu1 %810  ;;  %v994_v48 = vunpack.c.l.b16 %v855_v43 }
 0x26e   :  { %v906_v23 = vsel %vm752_vm3, %v901_v22, 0  ;;  %v828_v32 = vsel %vm752_vm3, %v824_v29, %v811_v26  ;;  %v1137_v22 = vunpack.c.l.b16 %v830_v12 }
 0x26f   :  { %915 = vmatpush.bf16.xpose.msra.mxu2 %v906_v23  ;;  %v1113_v30 = vunpack.c.l.b16 %v828_v32  ;;  %v763_v23 = vrot.slane %v4585_v62, 4 }
 0x271   :  { %v4692_v39 = vsel %vm765_vm4, %v4585_v62, %v763_v23 }
 0x272   :  { %734 = vrot.lane.b32.xlu0 %v4508_v54, %s4322_s15  ;;  %736 = vrot.lane.b32.xlu1 %v4527_v6, %s4322_s15 }
 0x274   :  { %1164 = vrot.lane.b32.xlu2 %v4617_v31, %s4327_s17 }
 0x275   :  { %v815_v33 = vpop.permute.xlu0 %814  ;;  %v869_v40 = vpop.permute.xlu1 %868 }
 0x276   :  { %v829_v34 = vsel %vm752_vm3, %v825_v13, %v815_v33  ;;  %3579 = vmatmul.msk.bf16.vlgmr.msra.gmra.mxu2 %vm752_vm3, %v4527_v6 }
 0x277   :  { %v1114_v35 = vunpack.c.l.b16 %v829_v34 }
 0x279   :  { %v4630_v27 = vpack.c.b16 %v1114_v35, %v1113_v30  ;;  %v1233_v30 = vunpack.c.l.b16 %v869_v40 }
 0x27a   :  { %862 = vrot.lane.b32.xlu0 %v4549_v17, %s4329_s18  ;;  %1487 = vrot.lane.b32.xlu1 %v4569_v45, %s4329_s18  ;;  %v854_v17 = vsel %vm765_vm4, %v4580_v55, %v850_v42  ;;  %v1090_v55 = vunpack.c.l.b16 %v803_v25 }
 0x27b   :  { %v993_v49 = vunpack.c.l.b16 %v854_v17 }
 0x27c   :  { %1116 = vrot.lane.b32.xlu2 %v4630_v27, %s4327_s17  ;;  %v4658_v56 = vpack.c.b16 %v1090_v55, %v1089_v53 }
 0x27d   :  { %v4650_v50 = vpack.c.b16 %v994_v48, %v993_v49  ;;  %v823_v60 = vpop.permute.xlu1 %822 }
 0x27e   :  { %v831_v47 = vsel %vm752_vm3, %v827_v10, %v823_v60 }
 0x27f   :  { %v1138_v14 = vunpack.c.l.b16 %v831_v47 }
 0x281   :  { %v4686_v24 = vpack.c.b16 %v1138_v14, %v1137_v22 }
 0x282   :  { %761 = vrot.lane.b32.xlu0 %v4527_v6, %s4326_s5  ;;  %1563 = vrot.lane.b32.xlu1 %v4576_v52, %s4329_s18 }
 0x284   :  { %744 = vrot.lane.b32.xlu2 %v4640_v46, %s4328_s1 }
 0x28a   :  { %996 = vrot.lane.b32.xlu0 %v4650_v50, %s4327_s17  ;;  %1677 = vrot.lane.b32.xlu1 %v4617_v31, %s4329_s18 }
 0x292   :  { %768 = vrot.lane.b32.xlu0 %v4640_v46, %s4329_s18 }
 0x29a   :  { %1092 = vrot.lane.b32.xlu0 %v4658_v56, %s4327_s17 }
 0x2a2   :  { %774 = vrot.lane.b32.xlu0 %v490_v20, %s4330_s19 }
 0x2a6   :  { %v1021_v58 = vpop.permute.xlu2 %1020 }
 0x2a7   :  { %v1026_v13 = vsel %vm752_vm3, %v1021_v58, 0 }
 0x2aa   :  { %770 = vrot.lane.b32.xlu0 %v490_v20, %s4329_s18 }
 0x2ae   :  { %v4664_v63 = vpop.permute.xlu2 %728 }
 0x2af   :  { %v973_v0 = vpop.permute.xlu0 %972  ;;  %v732_v40 = vrot.slane %v4664_v63, 4 }
 0x2b0   :  { %v978_v4 = vsel %vm752_vm3, %v973_v0, 0 }
 0x2b2   :  { %1506 = vrot.lane.b32.xlu0 %v4587_v3, %s4329_s18 }
 0x2b4   :  { %v925_v1 = vpop.permute.xlu1 %924 }
 0x2b5   :  { %v930_v2 = vsel %vm752_vm3, %v925_v1, 0 }
 0x2b6   :  { %939 = vmatpush.bf16.xpose.msrb.mxu3 %v930_v2  ;;  %v1069_v5 = vpop.permute.xlu2 %1068 }
 0x2b7   :  { %v1074_v61 = vsel %vm752_vm3, %v1069_v5, 0 }
 0x2ba   :  { %1601 = vrot.lane.b32.xlu0 %v4594_v7, %s4329_s18 }
 0x2bb   :  { %v4672_v44 = vpop.f32.mrf.mxu2 }
 0x2bc   :  { %v865_v8 = vpop.permute.xlu1 %864 }
 0x2bd   :  { %3580 = vmatmul.msk.bf16.vlgmr.msrb.gmra.mxu3 %vm752_vm3, %v4554_v21  ;;  %v1209_v48 = vunpack.c.l.b16 %v865_v8 }
 0x2be   :  { %987 = vmatpush.bf16.xpose.msra.mxu3 %v978_v4  ;;  %v4677_v20 = vpop.permute.xlu2 %730 }
 0x2bf   :  { %v5694_v5 = vrot.slane %v4677_v20, 4 }
 0x2c2   :  { %1544 = vrot.lane.b32.xlu0 %v4650_v50, %s4329_s18 }
 0x2c3   :  { %v895_v28 = vpop.f32.mrf.mxu2 }
 0x2c4   :  { %v861_v19 = vpop.permute.xlu1 %860 }
 0x2c5   :  { %v1185_v1 = vunpack.c.l.b16 %v861_v19 }
 0x2c6   :  { %1083 = vmatpush.bf16.xpose.msrb.mxu3 %v1074_v61  ;;  %v743_v15 = vpop.permute.xlu2 %742 }
 0x2c7   :  { %v750_v49 = vrot.slane %v743_v15, 4 }
 0x2ca   :  { %1658 = vrot.lane.b32.xlu0 %v4686_v24, %s4329_s18 }
 0x2cc   :  { %v4694_v16 = vpop.permute.xlu1 %746  ;;  %v949_v26 = vpop.permute.xlu0 %948 }
 0x2cd   :  { %v954_v29 = vsel %vm752_vm3, %v949_v26, 0  ;;  %3582 = vmatmul.msk.bf16.vlgmr.msra.gmra.mxu3 %vm752_vm3, %v4692_v39  ;;  %v1257_v26 = vsel %vm752_vm3, %v4672_v44, -inf }
 0x2ce   :  { %963 = vmatpush.bf16.xpose.msrb.mxu2 %v954_v29  ;;  %v1165_v32 = vpop.permute.xlu2 %1164 }
 0x2cf   :  { %v1170_v33 = vsel %vm752_vm3, %v1165_v32, 0 }
 0x2d0   :  { %1179 = vmatpush.bf16.xpose.msra.mxu3 %v1170_v33 }
 0x2d4   :  { %v4701_v34 = vpop.permute.xlu1 %748  ;;  %v871_v62 = vpop.permute.xlu0 %870 }
 0x2d5   :  { %v1234_v35 = vunpack.c.l.b16 %v871_v62  ;;  %3581 = vmatmul.msk.bf16.vlgmr.msrb.gmra.mxu2 %vm752_vm3, %v4598_v9 }
 0x2d6   :  { %1035 = vmatpush.bf16.xpose.msra.mxu2 %v1026_v13  ;;  %v1117_v37 = vpop.permute.xlu2 %1116 }
 0x2d7   :  { %v4705_v41 = vpack.c.b16 %v1234_v35, %v1233_v30  ;;  %v1122_v42 = vsel %vm752_vm3, %v1117_v37, 0 }
 0x2d8   :  { %1131 = vmatpush.bf16.xpose.msrb.mxu1 %v1122_v42 }
 0x2d9   :  { %1236 = vrot.lane.b32.xlu1 %v4705_v41, %s4327_s17 }
 0x2dc   :  { %v867_v43 = vpop.permute.xlu0 %866  ;;  %v1045_v17 = vpop.permute.xlu1 %1044 }
 0x2dd   :  { %v1210_v51 = vunpack.c.l.b16 %v867_v43  ;;  %v1050_v25 = vsel %vm752_vm3, %v1045_v17, 0 }
 0x2de   :  { %1059 = vmatpush.bf16.xpose.msrb.mxu2 %v1050_v25  ;;  %v745_v53 = vpop.permute.xlu2 %744 }
 0x2df   :  { %v4711_v55 = vpack.c.b16 %v1210_v51, %v1209_v48  ;;  %v4714_v57 = vsel %vm752_vm3, %v750_v49, %v745_v53 }
 0x2e0   :  { %3588 = vmatmul.msk.bf16.vlgmr.msrb.gmra.mxu1 %vm752_vm3, %v4714_v57 }
 0x2e1   :  { %1212 = vrot.lane.b32.xlu2 %v4711_v55, %s4327_s17 }
 0x2e4   :  { %v4721_v58 = vpop.permute.xlu0 %734  ;;  %v4763_v22 = vpop.permute.xlu1 %736 }
 0x2e5   :  { %v5692_v60 = vrot.slane %v4721_v58, 4  ;;  %3584 = vmatmul.msk.bf16.vlgmr.msra.gmra.mxu2 %vm752_vm3, %v732_v40  ;;  %v5693_v15 = vrot.slane %v4763_v22, 4 }
 0x2e7   :  { %3586 = vmatmul.msk.bf16.vlgmr.msrb.gmra.mxu3 %vm752_vm3, %v5692_v60 }
 0x2e9   :  { %772 = vrot.lane.b32.xlu2 %v4640_v46, %s4330_s19 }
 0x2ec   :  { %v863_v0 = vpop.permute.xlu0 %862  ;;  %v1488_v29 = vpop.permute.xlu1 %1487 }
 0x2ed   :  { %v1186_v2 = vunpack.c.l.b16 %v863_v0 }
 0x2ef   :  { %v4732_v4 = vpack.c.b16 %v1186_v2, %v1185_v1 }
 0x2f1   :  { %1188 = vrot.lane.b32.xlu1 %v4732_v4, %s4327_s17  ;;  %1449 = vrot.lane.b32.xlu2 %v4516_v59, %s4329_s18 }
 0x2f4   :  { %v762_v8 = vpop.permute.xlu0 %761  ;;  %v1564_v37 = vpop.permute.xlu1 %1563 }
 0x2f5   :  { %3585 = vmatmul.msk.bf16.vlgmr.msrb.gmra.mxu2 %vm752_vm3, %v5694_v5  ;;  %v764_v11 = vrot.slane %v762_v8, 4 }
 0x2f7   :  { %v4754_v28 = vsel %vm765_vm4, %v762_v8, %v764_v11 }
 0x2f9   :  { %v4742_v61 = vpop.f32.mrf.mxu2  ;;  %1525 = vrot.lane.b32.xlu2 %v4563_v36, %s4329_s18  ;;  %1140 = vrot.lane.b32.xlu1 %v4686_v24, %s4327_s17 }
 0x2fa   :  { %v1260_v23 = vsel %vm752_vm3, %v4742_v61, -inf }
 0x2fc   :  { %v997_v46 = vpop.permute.xlu0 %996  ;;  %v4790_v49 = vpop.permute.xlu1 %1677 }
 0x2fd   :  { %v1002_v10 = vsel %vm752_vm3, %v997_v46, 0 }
 0x2fe   :  { %1011 = vmatpush.bf16.xpose.msrb.mxu0 %v1002_v10 }
 0x301   :  { %v919_v47 = vpop.f32.mrf.mxu2  ;;  %1468 = vrot.lane.b32.xlu2 %v4536_v38, %s4329_s18 }
 0x304   :  { %v4751_v12 = vpop.permute.xlu0 %768 }
 0x305   :  { %3583 = vmatmul.msk.bf16.vlgmr.msrb.gmra.mxu0 %vm752_vm3, %v4754_v28  ;;  %3590 = vmatmul.msk.bf16.vlgmr.msra.gmra.mxu3 %vm752_vm3, %v4751_v12 }
 0x309   :  { %1582 = vrot.lane.b32.xlu2 %v4607_v18, %s4329_s18 }
 0x30c   :  { %v1093_v14 = vpop.permute.xlu0 %1092 }
 0x30d   :  { %v1098_v19 = vsel %vm752_vm3, %v1093_v14, 0 }
 0x30e   :  { %1107 = vmatpush.bf16.xpose.msra.mxu0 %v1098_v19 }
 0x311   :  { %1639 = vrot.lane.b32.xlu2 %v4630_v27, %s4329_s18 }
 0x314   :  { %v4780_v30 = vpop.permute.xlu0 %774 }
 0x315   :  { %3587 = vmatmul.msk.bf16.vlgmr.msra.gmra.mxu0 %vm752_vm3, %v5693_v15 }
 0x31c   :  { %v4786_v17 = vpop.permute.xlu0 %770 }
 0x323   :  { %1261 = vmax.xlane.f32.xlu1 %v1260_v23 }
 0x324   :  { %v1507_v25 = vpop.permute.xlu0 %1506 }
 0x32c   :  { %v4796_v46 = vpop.permute.xlu0 %1601 }
 0x33a   :  { %1258 = vmax.xlane.f32.xlu2 %v1257_v26 }
 0x33b   :  { %v1213_v13 = vpop.permute.xlu2 %1212 }
 0x33c   :  { %v1218_v32 = vsel %vm752_vm3, %v1213_v13, 0 }
 0x33d   :  { %1227 = vmatpush.bf16.xpose.msra.mxu1 %v1218_v32 }
 0x340   :  { %v4776_v33 = vpop.f32.mrf.mxu3 }
 0x341   :  { %v1263_v62 = vsel %vm752_vm3, %v4776_v33, -inf }
 0x342   :  { %1264 = vmax.xlane.f32.xlu1 %v1263_v62 }
 0x343   :  { %v4782_v35 = vpop.permute.xlu2 %772 }
 0x344   :  { %3592 = vmatmul.msk.bf16.vlgmr.msra.gmra.mxu1 %vm752_vm3, %v4782_v35 }
 0x345   :  { %1500 = vmatpush.bf16.msrb.mxu1 %v1488_v29  ;;  %v1545_v29 = vpop.permute.xlu0 %1544 }
 0x348   :  { %v943_v42 = vpop.f32.mrf.mxu3 }
 0x349   :  { %1576 = vmatpush.bf16.msra.mxu1 %v1564_v37  ;;  %v751_v37 = vrot.slane %v4694_v16, 4 }
 0x34b   :  { %v1450_v43 = vpop.permute.xlu2 %1449  ;;  %v1237_v1 = vpop.permute.xlu1 %1236 }
 0x34c   :  { %1462 = vmatpush.bf16.msrb.mxu3 %v1450_v43  ;;  %v1242_v32 = vsel %vm752_vm3, %v1237_v1, 0  ;;  %v4810_v43 = vsel %vm752_vm3, %v751_v37, %v4701_v34 }
 0x350   :  { %v4788_v48 = vpop.f32.mrf.mxu3 }
 0x353   :  { %v1526_v51 = vpop.permute.xlu2 %1525 }
 0x354   :  { %1538 = vmatpush.bf16.msra.mxu3 %v1526_v51 }
 0x358   :  { %v4792_v53 = vpop.f32.mrf.mxu2  ;;  %v991_v0 = vpop.f32.mrf.mxu3 }
 0x35b   :  { %v1469_v47 = vpop.permute.xlu2 %1468 }
 0x35d   :  { %v4794_v2 = vpop.f32.mrf.mxu1 }
 0x360   :  { %v967_v8 = vpop.f32.mrf.mxu2 }
 0x363   :  { %v1189_v10 = vpop.permute.xlu1 %1188 }
 0x364   :  { %v1194_v11 = vsel %vm752_vm3, %v1189_v10, 0  ;;  %v1583_v10 = vpop.permute.xlu2 %1582 }
 0x365   :  { %v1135_v14 = vpop.f32.mrf.mxu1  ;;  %1203 = vmatpush.bf16.xpose.msrb.mxu0 %v1194_v11 }
 0x368   :  { %v4799_v19 = vpop.f32.mrf.mxu2 }
 0x36a   :  { %v4801_v23 = vpop.f32.mrf.mxu3 }
 0x36b   :  { %v1141_v26 = vpop.permute.xlu1 %1140 }
 0x36c   :  { %v1146_v13 = vsel %vm752_vm3, %v1141_v26, 0  ;;  %3591 = vmatmul.msk.bf16.vlgmr.msrb.gmra.mxu0 %vm752_vm3, %v4786_v17  ;;  %v1275_v26 = vsel %vm752_vm3, %v4799_v19, -inf }
 0x36d   :  { %1481 = vmatpush.bf16.msra.mxu0 %v1469_v47  ;;  %1155 = vmatpush.bf16.xpose.msra.mxu2 %v1146_v13 }
 0x370   :  { %v1039_v62 = vpop.f32.mrf.mxu2 }
 0x371   :  { %1557 = vmatpush.bf16.msrb.mxu0 %v1545_v29  ;;  %v4833_v62 = vpop.permute.xlu2 %1639 }
 0x372   :  { %v1087_v42 = vpop.f32.mrf.mxu3 }
 0x374   :  { %3589 = vmatmul.msk.bf16.vlgmr.msra.gmra.mxu2 %vm752_vm3, %v4810_v43 }
 0x375   :  { %1251 = vmatpush.bf16.xpose.msrb.mxu2 %v1242_v32 }
 0x378   :  { %v4814_v51 = vpop.f32.mrf.mxu2 }
 0x379   :  { %v1278_v13 = vsel %vm752_vm3, %v4814_v51, -inf }
 0x37d   :  { %1519 = vmatpush.bf16.msra.mxu2 %v1507_v25  ;;  %v1269_v25 = vsel %vm752_vm3, %v4788_v48, -inf }
 0x380   :  { %v1063_v0 = vpop.f32.mrf.mxu2 }
 0x382   :  { %v4816_v8 = vpop.f32.mrf.mxu0 }
 0x383   :  { %v1272_v1 = vsel %vm752_vm3, %v4816_v8, -inf }
 0x384   :  { %1273 = vmax.xlane.f32.xlu0 %v1272_v1  ;;  %3593 = vmatmul.msk.bf16.vlgmr.msrb.gmra.mxu2 %vm752_vm3, %v4780_v30 }
 0x385   :  { %1595 = vmatpush.bf16.msrb.mxu2 %v1583_v10 }
 0x388   :  { %v4822_v16 = vpop.f32.mrf.mxu3 }
 0x389   :  { %v1293_v32 = vsel %vm752_vm3, %v4822_v16, -inf }
 0x38a   :  { %v1015_v34 = vpop.f32.mrf.mxu0 }
 0x38c   :  { %1270 = vmax.xlane.f32.xlu0 %v1269_v25 }
 0x390   :  { %v1183_v11 = vpop.f32.mrf.mxu3 }
 0x392   :  { %v1109_v47 = vpop.f32.mrf.mxu0 }
 0x393   :  { %v1284_v14 = vsel %vm752_vm3, %v1109_v47, -inf }
 0x394   :  { %1285 = vmax.xlane.f32.xlu1 %v1284_v14  ;;  %1276 = vmax.xlane.f32.xlu0 %v1275_v26  ;;  %v1266_v14 = vsel %vm752_vm3, %v4792_v53, -inf }
 0x396   :  { %v1262_v34 = vpop.xlane.xlu1 %1261 }
 0x397   :  { %v1306_v25 = vsub.f32 %v4742_v61, %v1262_v34 }
 0x399   :  { %v1323_v26 = vmul.f32 1.442695, %v1306_v25  ;;  %v4860_v25 = vpop.permute.xlu0 %1658 }
 0x39a   :  { %v1111_v29 = vpop.f32.mrf.mxu0 }
 0x39c   :  { %1279 = vmax.xlane.f32.xlu1 %v1278_v13  ;;  %v1287_v13 = vsel %vm752_vm3, %v4794_v2, -inf }
 0x3a4   :  { %1294 = vmax.xlane.f32.xlu1 %v1293_v32 }
 0x3ad   :  { %v1259_v37 = vpop.xlane.xlu2 %1258 }
 0x3ae   :  { %v1305_v42 = vsub.f32 %v4672_v44, %v1259_v37  ;;  %v1281_v37 = vsel %vm752_vm3, %v4801_v23, -inf }
 0x3b0   :  { %v1321_v0 = vmul.f32 1.442695, %v1305_v42 }
 0x3b2   :  { %3916 = vpow2.f32 %v1321_v0 }
 0x3b3   :  { %3918 = vpow2.f32 %v1323_v26 }
 0x3b8   :  { %v4836_v1 = vpop.eup %3916 }
 0x3b9   :  { %v1353_v10 = vsel %vm752_vm3, %v4836_v1, 0.0  ;;  %v4849_v32 = vpop.eup %3918 }
 0x3ba   :  { %1354 = vadd.xlane.f32.xlu2 %v1353_v10  ;;  %v1356_v61 = vsel %vm752_vm3, %v4849_v32, 0.0  ;;  %v1265_v10 = vpop.xlane.xlu1 %1264 }
 0x3bb   :  { %v1307_v34 = vsub.f32 %v4776_v33, %v1265_v10 }
 0x3c1   :  { %v4841_v11 = vpop.f32.mrf.mxu1 }
 0x3c2   :  { %1267 = vmax.xlane.f32.xlu2 %v1266_v14  ;;  %v1299_v44 = vsel %vm752_vm3, %v4841_v11, -inf }
 0x3c3   :  { %1300 = vmax.xlane.f32.xlu0 %v1299_v44  ;;  %v1325_v44 = vmul.f32 1.442695, %v1307_v34 }
 0x3c5   :  { %3920 = vpow2.f32 %v1325_v44 }
 0x3c9   :  { %v1231_v29 = vpop.f32.mrf.mxu1 }
 0x3ca   :  { %1288 = vmax.xlane.f32.xlu2 %v1287_v13 }
 0x3d2   :  { %1357 = vadd.xlane.f32.xlu2 %v1356_v61  ;;  %v4866_v61 = vpop.eup %3920 }
 0x3d3   :  { %v1359_v33 = vsel %vm752_vm3, %v4866_v61, 0.0 }
 0x3da   :  { %1282 = vmax.xlane.f32.xlu2 %v1281_v37 }
 0x3e9   :  { %v4855_v42 = vpop.f32.mrf.mxu0 }
 0x3ea   :  { %v1296_v0 = vsel %vm752_vm3, %v4855_v42, -inf }
 0x3eb   :  { %1297 = vmax.xlane.f32.xlu0 %v1296_v0 }
 0x3f1   :  { %v1207_v14 = vpop.f32.mrf.mxu0 }
 0x3f7   :  { %v4862_v26 = vpop.f32.mrf.mxu2  ;;  %v1274_v13 = vpop.xlane.xlu0 %1273 }
 0x3f8   :  { %v1290_v29 = vsel %vm752_vm3, %v4862_v26, -inf  ;;  %v1310_v0 = vsub.f32 %v4816_v8, %v1274_v13 }
 0x3f9   :  { %1291 = vmax.xlane.f32.xlu0 %v1290_v29 }
 0x3fa   :  { %v1331_v14 = vmul.f32 1.442695, %v1310_v0 }
 0x3fc   :  { %3922 = vpow2.f32 %v1331_v14 }
 0x3ff   :  { %v1159_v37 = vpop.f32.mrf.mxu2  ;;  %v1271_v10 = vpop.xlane.xlu0 %1270 }
 0x400   :  { %v1309_v44 = vsub.f32 %v4788_v48, %v1271_v10 }
 0x401   :  { %1360 = vadd.xlane.f32.xlu0 %v1359_v33 }
 0x402   :  { %v1329_v37 = vmul.f32 1.442695, %v1309_v44  ;;  %v4876_v13 = vpop.eup %3922 }
 0x407   :  { %v1286_v34 = vpop.xlane.xlu1 %1285  ;;  %v4872_v15 = vpop.f32.mrf.mxu2 }
 0x408   :  { %v1314_v60 = vsub.f32 %v1109_v47, %v1286_v34  ;;  %v1302_v29 = vsel %vm752_vm3, %v4872_v15, -inf  ;;  %v1277_v8 = vpop.xlane.xlu0 %1276  ;;  %v1368_v47 = vsel %vm752_vm3, %v4876_v13, 0.0 }
 0x409   :  { %1303 = vmax.xlane.f32.xlu1 %v1302_v29  ;;  %v1311_v0 = vsub.f32 %v4799_v19, %v1277_v8 }
 0x40a   :  { %v1339_v5 = vmul.f32 1.442695, %v1314_v60 }
 0x40c   :  { %3924 = vpow2.f32 %v1339_v5  ;;  %v1333_v5 = vmul.f32 1.442695, %v1311_v0  ;;  %v1830_v0 = vunpack.c.l.b16 %v4508_v54 }
 0x40d   :  { %3926 = vpow2.f32 %v1329_v37 }
 0x40f   :  { %v1280_v33 = vpop.xlane.xlu1 %1279  ;;  %v1255_v48 = vpop.f32.mrf.mxu2 }
 0x410   :  { %v1312_v14 = vsub.f32 %v4814_v51, %v1280_v33 }
 0x411   :  { %1369 = vadd.xlane.f32.xlu1 %v1368_v47 }
 0x412   :  { %v4882_v10 = vpop.eup %3924  ;;  %v1335_v34 = vmul.f32 1.442695, %v1312_v14  ;;  %v4899_v14 = vpack.c.b16 %v1830_v0, %v1830_v0 }
 0x413   :  { %v1380_v60 = vsel %vm752_vm3, %v4882_v10, 0.0  ;;  %v4886_v44 = vpop.eup %3926 }
 0x414   :  { %3928 = vpow2.f32 %v1335_v34  ;;  %1381 = vadd.xlane.f32.xlu2 %v1380_v60  ;;  %v1365_v19 = vsel %vm752_vm3, %v4886_v44, 0.0 }
 0x415   :  { %3930 = vpow2.f32 %v1333_v5 }
 0x419   :  { %1366 = vadd.xlane.f32.xlu1 %v1365_v19 }
 0x41a   :  { %v4890_v51 = vpop.eup %3928 }
 0x41b   :  { %v1374_v29 = vsel %vm752_vm3, %v4890_v51, 0.0  ;;  %v4894_v37 = vpop.eup %3930 }
 0x41c   :  { %1375 = vadd.xlane.f32.xlu2 %v1374_v29  ;;  %v1371_v8 = vsel %vm752_vm3, %v4894_v37, 0.0  ;;  %v1926_v29 = vunpack.c.l.b16 %v4692_v39 }
 0x41e   :  { %v4913_v0 = vpack.c.b16 %v1926_v29, %v1926_v29 }
 0x421   :  { %1372 = vadd.xlane.f32.xlu1 %v1371_v8 }
 0x42d   :  { %v1355_v33 = vpop.xlane.xlu2 %1354 }
 0x42e   :  { %3932 = vrcp.f32 %v1355_v33 }
 0x434   :  { %v3933_v48 = vpop.eup %3932  ;;  %1832 = vrot.lane.b32.xlu2 %v4899_v14, %s4327_s17 }
 0x435   :  { %v1417_v47 = vmul.f32 %v3933_v48, %v4836_v1  ;;  %v1268_v34 = vpop.xlane.xlu2 %1267 }
 0x436   :  { %v1308_v60 = vsub.f32 %v4792_v53, %v1268_v34 }
 0x437   :  { %v1433_v5 = vpack.c.bf16 %v1417_v47, %v1417_v47 }
 0x438   :  { %v1327_v19 = vmul.f32 1.442695, %v1308_v60 }
 0x439   :  { %3594 = vmatmul.msk.bf16.vlgmr.msrb.gmra.mxu3 %vm752_vm3, %v1433_v5 }
 0x43a   :  { %3934 = vpow2.f32 %v1327_v19  ;;  %1614 = vmatpush.bf16.msrb.mxu3 %v4796_v46  ;;  %1715 = vrot.lane.b32.xlu1 %v4711_v55, %s4329_s18  ;;  %v1902_v46 = vunpack.c.l.b16 %v4598_v9  ;;  %v1974_v9 = vunpack.c.l.b16 %v732_v40  ;;  %v1301_v19 = vpop.xlane.xlu0 %1300  ;;  %v5709_v40 = vrot.slane %v4677_v20, 4 }
 0x43b   :  { %v2070_v20 = vunpack.c.l.b16 %v4714_v57 }
 0x43c   :  { %v4922_v47 = vpack.c.b16 %v1902_v46, %v1902_v46  ;;  %v1319_v46 = vsub.f32 %v4841_v11, %v1301_v19 }
 0x43d   :  { %v1289_v54 = vpop.xlane.xlu2 %1288 }
 0x43e   :  { %v1315_v8 = vsub.f32 %v4794_v2, %v1289_v54  ;;  %v1295_v2 = vpop.xlane.xlu1 %1294  ;;  %v1349_v63 = vmul.f32 1.442695, %v1319_v46 }
 0x43f   :  { %v1317_v60 = vsub.f32 %v4822_v16, %v1295_v2  ;;  %v4935_v16 = vpack.c.b16 %v1974_v9, %v1974_v9 }
 0x440   :  { %v4911_v33 = vpop.eup %3934  ;;  %v1341_v1 = vmul.f32 1.442695, %v1315_v8 }
 0x441   :  { %v1362_v53 = vsel %vm752_vm3, %v4911_v33, 0.0 }
 0x442   :  { %3936 = vpow2.f32 %v1341_v1  ;;  %1363 = vadd.xlane.f32.xlu0 %v1362_v53  ;;  %1928 = vrot.lane.b32.xlu1 %v4913_v0, %s4327_s17  ;;  %v1345_v1 = vmul.f32 1.442695, %v1317_v60 }
 0x445   :  { %v1358_v48 = vpop.xlane.xlu2 %1357 }
 0x446   :  { %3938 = vrcp.f32 %v1358_v48 }
 0x448   :  { %v4920_v39 = vpop.eup %3936 }
 0x449   :  { %v1383_v34 = vsel %vm752_vm3, %v4920_v39, 0.0 }
 0x44a   :  { %1384 = vadd.xlane.f32.xlu0 %v1383_v34  ;;  %1904 = vrot.lane.b32.xlu1 %v4922_v47, %s4327_s17 }
 0x44c   :  { %v3939_v5 = vpop.eup %3938 }
 0x44d   :  { %v1418_v54 = vmul.f32 %v3939_v5, %v4849_v32  ;;  %v1283_v29 = vpop.xlane.xlu2 %1282  ;;  %v1998_v32 = vunpack.c.l.b16 %v5709_v40 }
 0x44e   :  { %v1313_v8 = vsub.f32 %v4801_v23, %v1283_v29 }
 0x44f   :  { %v1434_v53 = vpack.c.bf16 %v1418_v54, %v1418_v54  ;;  %v4945_v11 = vpack.c.b16 %v1998_v32, %v1998_v32  ;;  %v4957_v54 = vpack.c.b16 %v2070_v20, %v2070_v20  ;;  %v2118_v32 = vunpack.c.l.b16 %v4751_v12 }
 0x450   :  { %v1337_v48 = vmul.f32 1.442695, %v1313_v8  ;;  %v1878_v20 = vunpack.c.l.b16 %v4554_v21 }
 0x451   :  { %3595 = vmatmul.msk.bf16.vlgmr.msra.gmra.mxu0 %vm752_vm3, %v1434_v53 }
 0x452   :  { %3940 = vpow2.f32 %v1337_v48  ;;  %1976 = vrot.lane.b32.xlu1 %v4935_v16, %s4327_s17  ;;  %v4989_v12 = vpack.c.b16 %v1878_v20, %v1878_v20 }
 0x453   :  { %3942 = vpow2.f32 %v1345_v1  ;;  %v5710_v1 = vrot.slane %v4763_v22, 4 }
 0x454   :  { %3944 = vpow2.f32 %v1349_v63 }
 0x455   :  { %v2046_v57 = vunpack.c.l.b16 %v5710_v1  ;;  %v1854_v1 = vunpack.c.l.b16 %v4527_v6 }
 0x457   :  { %v4967_v46 = vpack.c.b16 %v2046_v57, %v2046_v57 }
 0x458   :  { %v4941_v2 = vpop.eup %3940 }
 0x459   :  { %v4943_v23 = vpop.eup %3942  ;;  %v1377_v34 = vsel %vm752_vm3, %v4941_v2, 0.0 }
 0x45a   :  { %1378 = vadd.xlane.f32.xlu0 %v1377_v34  ;;  %2000 = vrot.lane.b32.xlu1 %v4945_v11, %s4327_s17  ;;  %v1389_v60 = vsel %vm752_vm3, %v4943_v23, 0.0  ;;  %v4954_v5 = vpop.eup %3944 }
 0x45b   :  { %v1395_v8 = vsel %vm752_vm3, %v4954_v5, 0.0 }
 0x45d   :  { %1390 = vadd.xlane.f32.xlu2 %v1389_v60 }
 0x45e   :  { %v1298_v9 = vpop.xlane.xlu0 %1297 }
 0x45f   :  { %v1318_v19 = vsub.f32 %v4855_v42, %v1298_v9  ;;  %v4984_v9 = vpack.c.b16 %v2118_v32, %v2118_v32 }
 0x461   :  { %v1347_v29 = vmul.f32 1.442695, %v1318_v19 }
 0x462   :  { %1396 = vadd.xlane.f32.xlu0 %v1395_v8  ;;  %2072 = vrot.lane.b32.xlu1 %v4957_v54, %s4327_s17 }
 0x463   :  { %3946 = vpow2.f32 %v1347_v29 }
 0x469   :  { %v4965_v53 = vpop.eup %3946 }
 0x46a   :  { %v1392_v42 = vsel %vm752_vm3, %v4965_v53, 0.0  ;;  %2048 = vrot.lane.b32.xlu1 %v4967_v46, %s4327_s17 }
 0x46b   :  { %1393 = vadd.xlane.f32.xlu2 %v1392_v42 }
 0x46c   :  { %v1292_v48 = vpop.xlane.xlu0 %1291 }
 0x46d   :  { %v1316_v19 = vsub.f32 %v4862_v26, %v1292_v48  ;;  %v5711_v48 = vrot.slane %v4721_v58, 4 }
 0x46f   :  { %v1343_v29 = vmul.f32 1.442695, %v1316_v19  ;;  %v2094_v19 = vunpack.c.l.b16 %v4810_v43  ;;  %v2142_v43 = vunpack.c.l.b16 %v4786_v17 }
 0x474   :  { %v1361_v63 = vpop.xlane.xlu0 %1360 }
 0x475   :  { %3948 = vrcp.f32 %v1361_v63  ;;  %v2022_v63 = vunpack.c.l.b16 %v5711_v48 }
 0x476   :  { %1620 = vrot.lane.b32.xlu0 %v4658_v56, %s4329_s18 }
 0x47b   :  { %v3949_v40 = vpop.eup %3948 }
 0x47c   :  { %v1419_v22 = vmul.f32 %v3949_v40, %v4866_v61  ;;  %v4977_v34 = vpop.xlane.xlu1 %1303 }
 0x47e   :  { %v1435_v60 = vpack.c.bf16 %v1419_v22, %v1419_v22  ;;  %1734 = vrot.lane.b32.xlu0 %v4705_v41, %s4329_s18 }
 0x480   :  { %3596 = vmatmul.msk.bf16.vlgmr.msrb.gmra.mxu1 %vm752_vm3, %v1435_v60  ;;  %v1950_v60 = vunpack.c.l.b16 %v4754_v28  ;;  %v2166_v28 = vunpack.c.l.b16 %v4782_v35 }
 0x481   :  { %1652 = vmatpush.bf16.msrb.mxu1 %v4833_v62 }
 0x482   :  { %v5022_v20 = vpack.c.b16 %v1950_v60, %v1950_v60 }
 0x483   :  { %2120 = vrot.lane.b32.xlu2 %v4984_v9, %s4327_s17 }
 0x484   :  { %v1370_v61 = vpop.xlane.xlu1 %1369 }
 0x485   :  { %3950 = vrcp.f32 %v1370_v61  ;;  %v5030_v61 = vpack.c.b16 %v2094_v19, %v2094_v19 }
 0x486   :  { %1880 = vrot.lane.b32.xlu0 %v4989_v12, %s4327_s17  ;;  %3952 = vpow2.f32 %v1343_v29 }
 0x48b   :  { %2713 = vrot.lane.b32.xlu2 %v4913_v0, %s4329_s18  ;;  %v3951_v21 = vpop.eup %3950 }
 0x48c   :  { %v1422_v62 = vmul.f32 %v3951_v21, %v4876_v13  ;;  %v1367_v8 = vpop.xlane.xlu1 %1366  ;;  %v4999_v57 = vpop.eup %3952  ;;  %v5006_v13 = vpack.c.b16 %v1854_v1, %v1854_v1 }
 0x48d   :  { %3954 = vrcp.f32 %v1367_v8  ;;  %v1386_v0 = vsel %vm752_vm3, %v4999_v57, 0.0  ;;  %v1382_v21 = vpop.xlane.xlu2 %1381 }
 0x48e   :  { %1696 = vrot.lane.b32.xlu0 %v4732_v4, %s4329_s18  ;;  %v1438_v26 = vpack.c.bf16 %v1422_v62, %v1422_v62 }
 0x490   :  { %3599 = vmatmul.msk.bf16.vlgmr.msrb.gmra.mxu0 %vm752_vm3, %v1438_v26  ;;  %v5044_v26 = vpack.c.b16 %v2142_v43, %v2142_v43 }
 0x493   :  { %2767 = vrot.lane.b32.xlu2 %v4935_v16, %s4329_s18  ;;  %v3955_v42 = vpop.eup %3954  ;;  %v2023_v16 = vpack.c.b16 %v2022_v63, %v2022_v63  ;;  %v1320_v63 = vsub.f32 %v4872_v15, %v4977_v34 }
 0x494   :  { %v1421_v40 = vmul.f32 %v3955_v42, %v4886_v44  ;;  %v1373_v22 = vpop.xlane.xlu1 %1372  ;;  %1387 = vadd.xlane.f32.xlu1 %v1386_v0 }
 0x495   :  { %3956 = vrcp.f32 %v1373_v22  ;;  %v1376_v35 = vpop.xlane.xlu2 %1375 }
 0x496   :  { %1856 = vrot.lane.b32.xlu0 %v5006_v13, %s4327_s17  ;;  %v1437_v6 = vpack.c.bf16 %v1421_v40, %v1421_v40 }
 0x498   :  { %3598 = vmatmul.msk.bf16.vlgmr.msra.gmra.mxu3 %vm752_vm3, %v1437_v6  ;;  %v1351_v6 = vmul.f32 1.442695, %v1320_v63 }
 0x499   :  { %1690 = vmatpush.bf16.msra.mxu3 %v4790_v49  ;;  %v2190_v49 = vunpack.c.l.b16 %v4780_v30 }
 0x49b   :  { %2821 = vrot.lane.b32.xlu2 %v2023_v16, %s4329_s18  ;;  %v3957_v32 = vpop.eup %3956 }
 0x49c   :  { %v1423_v58 = vmul.f32 %v3957_v32, %v4894_v37  ;;  %v5028_v37 = vpack.c.b16 %v2190_v49, %v2190_v49 }
 0x49d   :  { %v1833_v15 = vpop.permute.xlu2 %1832 }
 0x49e   :  { %2024 = vrot.lane.b32.xlu0 %v2023_v16, %s4327_s17  ;;  %v1439_v44 = vpack.c.bf16 %v1423_v58, %v1423_v58 }
 0x4a0   :  { %3600 = vmatmul.msk.bf16.vlgmr.msra.gmra.mxu1 %vm752_vm3, %v1439_v44 }
 0x4a3   :  { %2875 = vrot.lane.b32.xlu2 %v4957_v54, %s4329_s18  ;;  %v5037_v54 = vpack.c.b16 %v2166_v28, %v2166_v28 }
 0x4a6   :  { %1952 = vrot.lane.b32.xlu0 %v5022_v20, %s4327_s17 }
 0x4ac   :  { %v1716_v29 = vpop.permute.xlu1 %1715 }
 0x4ad   :  { %2192 = vrot.lane.b32.xlu1 %v5028_v37, %s4327_s17  ;;  %1728 = vmatpush.bf16.msra.mxu1 %v1716_v29 }
 0x4ae   :  { %2096 = vrot.lane.b32.xlu0 %v5030_v61, %s4327_s17 }
 0x4b5   :  { %v1364_v30 = vpop.xlane.xlu0 %1363 }
 0x4b6   :  { %3958 = vrcp.f32 %v1364_v30  ;;  %2168 = vrot.lane.b32.xlu0 %v5037_v54, %s4327_s17 }
 0x4bc   :  { %v3959_v62 = vpop.eup %3958  ;;  %v5042_v8 = vpop.f32.mrf.mxu3 }
 0x4bd   :  { %5712 = vst [vmem:[#allocation22_spill] sm:$0xff] %v5042_v8  ;;  %v1420_v1 = vmul.f32 %v3959_v62, %v4911_v33  ;;  %v1385_v42 = vpop.xlane.xlu0 %1384 }
 0x4be   :  { %3960 = vrcp.f32 %v1385_v42  ;;  %2144 = vrot.lane.b32.xlu0 %v5044_v26, %s4327_s17 }
 0x4bf   :  { %v1436_v0 = vpack.c.bf16 %v1420_v1, %v1420_v1  ;;  %3962 = vrcp.f32 %v1376_v35 }
 0x4c0   :  { %3964 = vpow2.f32 %v1351_v6 }
 0x4c1   :  { %3597 = vmatmul.msk.bf16.vlgmr.msra.gmra.mxu2 %vm752_vm3, %v1436_v0 }
 0x4c2   :  { %1671 = vmatpush.bf16.msra.mxu2 %v4860_v25  ;;  %v1929_v25 = vpop.permute.xlu1 %1928 }
 0x4c4   :  { %v3961_v17 = vpop.eup %3960  ;;  %v1466_v48 = vpop.f32.mrf.mxu3 }
 0x4c5   :  { %v1427_v40 = vmul.f32 %v3961_v17, %v4920_v39  ;;  %v3963_v22 = vpop.eup %3962 }
 0x4c6   :  { %2604 = vrot.lane.b32.xlu0 %v4899_v14, %s4329_s18  ;;  %v1424_v16 = vmul.f32 %v3963_v22, %v4890_v51  ;;  %v5063_v14 = vpop.eup %3964 }
 0x4c7   :  { %v1443_v33 = vpack.c.bf16 %v1427_v40, %v1427_v40  ;;  %v1398_v29 = vsel %vm752_vm3, %v5063_v14, 0.0 }
 0x4c8   :  { %v1440_v44 = vpack.c.bf16 %v1424_v16, %v1424_v16 }
 0x4c9   :  { %3604 = vmatmul.msk.bf16.vlgmr.msrb.gmra.mxu1 %vm752_vm3, %v1443_v33 }
 0x4ca   :  { %v5070_v28 = vpop.permute.xlu1 %1904 }
 0x4cd   :  { %v1379_v32 = vpop.xlane.xlu0 %1378 }
 0x4ce   :  { %3966 = vrcp.f32 %v1379_v32  ;;  %v5058_v58 = vpop.f32.mrf.mxu0  ;;  %2686 = vrot.lane.b32.xlu0 %v4922_v47, %s4329_s18  ;;  %v1838_v47 = vsel %vm752_vm3, %v1833_v15, 0 }
 0x4cf   :  { %5713 = vst [vmem:[#allocation23_spill] sm:$0xff] %v5058_v58 }
 0x4d0   :  { %v1391_v19 = vpop.xlane.xlu2 %1390 }
 0x4d1   :  { %3601 = vmatmul.msk.bf16.vlgmr.msrb.gmra.mxu2 %vm752_vm3, %v1440_v44 }
 0x4d2   :  { %v1977_v62 = vpop.permute.xlu1 %1976 }
 0x4d3   :  { %v1982_v40 = vsel %vm752_vm3, %v1977_v62, 0 }
 0x4d4   :  { %v3967_v39 = vpop.eup %3966 }
 0x4d5   :  { %v1425_v34 = vmul.f32 %v3967_v39, %v4941_v2  ;;  %v1397_v60 = vpop.xlane.xlu0 %1396 }
 0x4d6   :  { %3968 = vrcp.f32 %v1397_v60  ;;  %v1485_v51 = vpop.f32.mrf.mxu0  ;;  %2794 = vrot.lane.b32.xlu0 %v4945_v11, %s4329_s18 }
 0x4d7   :  { %v1441_v49 = vpack.c.bf16 %v1425_v34, %v1425_v34  ;;  %1399 = vadd.xlane.f32.xlu1 %v1398_v29  ;;  %3970 = vrcp.f32 %v1391_v19 }
 0x4d8   :  { %3972 = vrcp.f32 %v1382_v21 }
 0x4d9   :  { %3602 = vmatmul.msk.bf16.vlgmr.msrb.gmra.mxu3 %vm752_vm3, %v1441_v49 }
 0x4da   :  { %1847 = vmatpush.bf16.xpose.msrb.mxu3 %v1838_v47  ;;  %v5084_v17 = vpop.permute.xlu1 %2000 }
 0x4dc   :  { %v3969_v2 = vpop.eup %3968 }
 0x4dd   :  { %v1431_v30 = vmul.f32 %v3969_v2, %v4954_v5  ;;  %v3971_v11 = vpop.eup %3970  ;;  %v1934_v5 = vsel %vm752_vm3, %v1929_v25, 0 }
 0x4de   :  { %2929 = vrot.lane.b32.xlu0 %v4984_v9, %s4329_s18  ;;  %v3973_v1 = vpop.eup %3972  ;;  %v1429_v42 = vmul.f32 %v3971_v11, %v4943_v23 }
 0x4df   :  { %v1447_v43 = vpack.c.bf16 %v1431_v30, %v1431_v30  ;;  %v1426_v35 = vmul.f32 %v3973_v1, %v4882_v10  ;;  %v1394_v10 = vpop.xlane.xlu2 %1393 }
 0x4e0   :  { %v1445_v0 = vpack.c.bf16 %v1429_v42, %v1429_v42  ;;  %3974 = vrcp.f32 %v1394_v10 }
 0x4e1   :  { %3608 = vmatmul.msk.bf16.vlgmr.msra.gmra.mxu1 %vm752_vm3, %v1447_v43  ;;  %v1442_v9 = vpack.c.bf16 %v1426_v35, %v1426_v35 }
 0x4e2   :  { %v2073_v23 = vpop.permute.xlu1 %2072 }
 0x4e6   :  { %2902 = vrot.lane.b32.xlu0 %v5030_v61, %s4329_s18  ;;  %v3975_v33 = vpop.eup %3974 }
 0x4e7   :  { %v2121_v39 = vpop.permute.xlu2 %2120 }
 0x4e8   :  { %v1621_v21 = vpop.permute.xlu0 %1620  ;;  %v2126_v51 = vsel %vm752_vm3, %v2121_v39, 0 }
 0x4e9   :  { %1633 = vmatpush.bf16.msra.mxu0 %v1621_v21  ;;  %3606 = vmatmul.msk.bf16.vlgmr.msra.gmra.mxu3 %vm752_vm3, %v1445_v0 }
 0x4ea   :  { %1943 = vmatpush.bf16.xpose.msra.mxu3 %v1934_v5  ;;  %v2049_v6 = vpop.permute.xlu1 %2048 }
 0x4ec   :  { %3603 = vmatmul.msk.bf16.vlgmr.msra.gmra.mxu0 %vm752_vm3, %v1442_v9 }
 0x4f0   :  { %v1735_v48 = vpop.permute.xlu0 %1734  ;;  %2659 = vrot.lane.b32.xlu1 %v4989_v12, %s4329_s18  ;;  %v1430_v12 = vmul.f32 %v3975_v33, %v4965_v53 }
 0x4f1   :  { %1747 = vmatpush.bf16.msrb.mxu2 %v1735_v48 }
 0x4f2   :  { %v1446_v32 = vpack.c.bf16 %v1430_v12, %v1430_v12 }
 0x4f8   :  { %v1881_v61 = vpop.permute.xlu0 %1880  ;;  %2632 = vrot.lane.b32.xlu1 %v5006_v13, %s4329_s18  ;;  %v2078_v13 = vsel %vm752_vm3, %v2073_v23, 0 }
 0x4f9   :  { %v1886_v63 = vsel %vm752_vm3, %v1881_v61, 0  ;;  %3610 = vmatmul.msk.bf16.vlgmr.msrb.gmra.mxu3 %vm752_vm3, %v4516_v59 }
 0x4fa   :  { %1895 = vmatpush.bf16.xpose.msrb.mxu1 %v1886_v63 }
 0x4fd   :  { %v5095_v22 = vpop.f32.mrf.mxu1 }
 0x500   :  { %v1697_v16 = vpop.permute.xlu0 %1696  ;;  %2740 = vrot.lane.b32.xlu1 %v5022_v20, %s4329_s18 }
 0x501   :  { %1709 = vmatpush.bf16.msrb.mxu0 %v1697_v16  ;;  %3612 = vmatmul.msk.bf16.vlgmr.msrb.gmra.mxu1 %vm752_vm3, %v4569_v45 }
 0x502   :  { %1991 = vmatpush.bf16.xpose.msra.mxu1 %v1982_v40 }
 0x504   :  { %3607 = vmatmul.msk.bf16.vlgmr.msrb.gmra.mxu0 %vm752_vm3, %v1446_v32 }
 0x505   :  { %v1504_v59 = vpop.f32.mrf.mxu1 }
 0x507   :  { %v1388_v25 = vpop.xlane.xlu1 %1387 }
 0x508   :  { %v1857_v44 = vpop.permute.xlu0 %1856  ;;  %3976 = vrcp.f32 %v1388_v25 }
 0x509   :  { %v1862_v53 = vsel %vm752_vm3, %v1857_v44, 0  ;;  %3614 = vmatmul.msk.bf16.vlgmr.msra.gmra.mxu3 %vm752_vm3, %v4563_v36  ;;  %v1910_v36 = vsel %vm752_vm3, %v5070_v28, 0 }
 0x50a   :  { %2087 = vmatpush.bf16.xpose.msrb.mxu1 %v2078_v13  ;;  %1871 = vmatpush.bf16.xpose.msra.mxu0 %v1862_v53 }
 0x50d   :  { %v5107_v20 = vpop.f32.mrf.mxu0 }
 0x50e   :  { %v3977_v15 = vpop.eup %3976 }
 0x50f   :  { %v1428_v34 = vmul.f32 %v3977_v15, %v4999_v57 }
 0x510   :  { %v2025_v45 = vpop.permute.xlu0 %2024 }
 0x511   :  { %v2030_v60 = vsel %vm752_vm3, %v2025_v45, 0  ;;  %v1444_v49 = vpack.c.bf16 %v1428_v34, %v1428_v34  ;;  %3616 = vmatmul.msk.bf16.vlgmr.msra.gmra.mxu1 %vm752_vm3, %v4576_v52  ;;  %v2054_v52 = vsel %vm752_vm3, %v2049_v6, 0 }
 0x512   :  { %2039 = vmatpush.bf16.xpose.msrb.mxu3 %v2030_v60 }
 0x513   :  { %3605 = vmatmul.msk.bf16.vlgmr.msra.gmra.mxu2 %vm752_vm3, %v1444_v49 }
 0x514   :  { %3611 = vmatmul.msk.bf16.vlgmr.msra.gmra.mxu0 %vm752_vm3, %v4536_v38  ;;  %1919 = vmatpush.bf16.xpose.msra.mxu2 %v1910_v36 }
 0x515   :  { %v1561_v57 = vpop.f32.mrf.mxu0 }
 0x518   :  { %v1953_v19 = vpop.permute.xlu0 %1952 }
 0x519   :  { %v1958_v29 = vsel %vm752_vm3, %v1953_v19, 0  ;;  %3618 = vmatmul.msk.bf16.vlgmr.msrb.gmra.mxu3 %vm752_vm3, %v4594_v7 }
 0x51a   :  { %2135 = vmatpush.bf16.xpose.msra.mxu3 %v2126_v51  ;;  %1967 = vmatpush.bf16.xpose.msrb.mxu0 %v1958_v29 }
 0x51b   :  { %v5123_v47 = vpop.f32.mrf.mxu3 }
 0x51d   :  { %v5127_v2 = vpop.f32.mrf.mxu1 }
 0x51f   :  { %v2193_v35 = vpop.permute.xlu1 %2192 }
 0x520   :  { %v2097_v38 = vpop.permute.xlu0 %2096 }
 0x521   :  { %3620 = vmatmul.msk.bf16.vlgmr.msrb.gmra.mxu1 %vm752_vm3, %v4630_v27  ;;  %v2714_v27 = vpop.permute.xlu2 %2713 }
 0x522   :  { %2063 = vmatpush.bf16.xpose.msra.mxu0 %v2054_v52 }
 0x523   :  { %v1542_v30 = vpop.f32.mrf.mxu3 }
 0x524   :  { %3615 = vmatmul.msk.bf16.vlgmr.msrb.gmra.mxu0 %vm752_vm3, %v4650_v50 }
 0x525   :  { %v1580_v7 = vpop.f32.mrf.mxu1 }
 0x528   :  { %v2169_v43 = vpop.permute.xlu0 %2168 }
 0x529   :  { %3622 = vmatmul.msk.bf16.vlgmr.msra.gmra.mxu3 %vm752_vm3, %v4617_v31  ;;  %v2174_v11 = vsel %vm752_vm3, %v2169_v43, 0  ;;  %v2719_v31 = vsel %vm2609_vm5, %v2714_v27, 0  ;;  %v2768_v6 = vpop.permute.xlu2 %2767 }
 0x52a   :  { %2183 = vmatpush.bf16.xpose.msra.mxu1 %v2174_v11  ;;  %v2773_v32 = vsel %vm2609_vm5, %v2768_v6, 0 }
 0x530   :  { %v2145_v62 = vpop.permute.xlu0 %2144 }
 0x531   :  { %v2150_v1 = vsel %vm752_vm3, %v2145_v62, 0  ;;  %3624 = vmatmul.msk.bf16.vlgmr.msra.gmra.mxu1 %vm752_vm3, %v4711_v55 }
 0x532   :  { %2159 = vmatpush.bf16.xpose.msrb.mxu0 %v2150_v1 }
 0x534   :  { %3619 = vmatmul.msk.bf16.vlgmr.msra.gmra.mxu0 %vm752_vm3, %v4658_v56 }
 0x538   :  { %v2605_v50 = vpop.permute.xlu0 %2604 }
 0x539   :  { %v2611_v42 = vsel %vm2609_vm5, %v2605_v50, 0 }
 0x53a   :  { %2620 = vmatpush.bf16.msrb.mxu3 %v2611_v42 }
 0x53e   :  { %2728 = vmatpush.bf16.msra.mxu3 %v2719_v31 }
 0x540   :  { %v2687_v29 = vpop.permute.xlu0 %2686 }
 0x541   :  { %v2692_v52 = vsel %vm2609_vm5, %v2687_v29, 0 }
 0x544   :  { %v5143_v0 = vpop.f32.mrf.mxu2  ;;  %3623 = vmatmul.msk.bf16.vlgmr.msrb.gmra.mxu0 %vm752_vm3, %v4732_v4  ;;  %v2006_v4 = vsel %vm752_vm3, %v5084_v17, 0  ;;  %v2102_v17 = vsel %vm752_vm3, %v2097_v38, 0 }
 0x546   :  { %v5149_v21 = vpop.f32.mrf.mxu1 }
 0x548   :  { %v2795_v7 = vpop.permute.xlu0 %2794 }
 0x549   :  { %v2800_v43 = vsel %vm2609_vm5, %v2795_v7, 0 }
 0x54a   :  { %v1400_v56 = vpop.xlane.xlu1 %1399 }
 0x54b   :  { %3978 = vrcp.f32 %v1400_v56 }
 0x54c   :  { %v1523_v5 = vpop.f32.mrf.mxu2 }
 0x54e   :  { %v1656_v9 = vpop.f32.mrf.mxu1 }
 0x551   :  { %v3979_v48 = vpop.eup %3978 }
 0x552   :  { %v1432_v10 = vmul.f32 %v3979_v48, %v5063_v14 }
 0x554   :  { %v5152_v23 = vpop.f32.mrf.mxu2  ;;  %v1448_v61 = vpack.c.bf16 %v1432_v10, %v1432_v10 }
 0x556   :  { %3609 = vmatmul.msk.bf16.vlgmr.msrb.gmra.mxu2 %vm752_vm3, %v1448_v61 }
 0x557   :  { %2015 = vmatpush.bf16.xpose.msrb.mxu2 %v2006_v4 }
 0x55c   :  { %v1599_v40 = vpop.f32.mrf.mxu2  ;;  %v5159_v33 = vpop.f32.mrf.mxu3 }
 0x55e   :  { %v5161_v12 = vpop.f32.mrf.mxu1 }
 0x55f   :  { %5714 = vst [vmem:[#allocation24_spill] sm:$0xff] %v5161_v12 }
 0x562   :  { %v2660_v16 = vpop.permute.xlu1 %2659 }
 0x563   :  { %v2665_v14 = vsel %vm2609_vm5, %v2660_v16, 0 }
 0x564   :  { %v1618_v13 = vpop.f32.mrf.mxu3  ;;  %2674 = vmatpush.bf16.msrb.mxu1 %v2665_v14 }
 0x566   :  { %v1732_v59 = vpop.f32.mrf.mxu1  ;;  %3613 = vmatmul.msk.bf16.vlgmr.msra.gmra.mxu2 %vm752_vm3, %v4587_v3  ;;  %v2198_v3 = vsel %vm752_vm3, %v2193_v35, 0 }
 0x567   :  { %2111 = vmatpush.bf16.xpose.msra.mxu2 %v2102_v17 }
 0x568   :  { %2782 = vmatpush.bf16.msra.mxu1 %v2773_v32 }
 0x569   :  { %v5168_v25 = vpop.f32.mrf.mxu0 }
 0x56a   :  { %v2633_v53 = vpop.permute.xlu1 %2632 }
 0x56b   :  { %v2638_v15 = vsel %vm2609_vm5, %v2633_v53, 0 }
 0x56c   :  { %v5173_v39 = vpop.f32.mrf.mxu3  ;;  %2647 = vmatpush.bf16.msra.mxu0 %v2638_v15 }
 0x56d   :  { %5715 = vst [vmem:[#allocation25_spill] sm:$0xff] %v5173_v39 }
 0x571   :  { %v1637_v34 = vpop.f32.mrf.mxu0 }
 0x572   :  { %v2741_v45 = vpop.permute.xlu1 %2740 }
 0x573   :  { %v2746_v60 = vsel %vm2609_vm5, %v2741_v45, 0 }
 0x574   :  { %v1694_v51 = vpop.f32.mrf.mxu3  ;;  %2755 = vmatpush.bf16.msrb.mxu0 %v2746_v60 }
 0x576   :  { %3617 = vmatmul.msk.bf16.vlgmr.msrb.gmra.mxu2 %vm752_vm3, %v4607_v18 }
 0x577   :  { %2207 = vmatpush.bf16.xpose.msrb.mxu2 %v2198_v3 }
 0x57c   :  { %v5179_v49 = vpop.f32.mrf.mxu3 }
 0x57d   :  { %v2215_v36 = vsel %vm2214_vm6, %v5179_v49, -inf }
 0x57e   :  { %2216 = vmax.xlane.f32.xlu1 %v2215_v36  ;;  %v5195_v11 = vpop.f32.mrf.mxu1 }
 0x57f   :  { %v2227_v1 = vsel %vm2214_vm6, %v5195_v11, -inf }
 0x581   :  { %v5183_v57 = vpop.f32.mrf.mxu0 }
 0x582   :  { %5716 = vst [vmem:[#allocation26_spill] sm:$0xff] %v5183_v57 }
 0x584   :  { %v5207_v50 = vpop.f32.mrf.mxu3 }
 0x585   :  { %v2218_v35 = vsel %vm2214_vm6, %v5207_v50, -inf }
 0x586   :  { %3621 = vmatmul.msk.bf16.vlgmr.msra.gmra.mxu2 %vm752_vm3, %v4686_v24  ;;  %v5215_v56 = vpop.f32.mrf.mxu1 }
 0x587   :  { %2701 = vmatpush.bf16.msra.mxu2 %v2692_v52  ;;  %v2230_v48 = vsel %vm2214_vm6, %v5215_v56, -inf }
 0x589   :  { %v1713_v18 = vpop.f32.mrf.mxu0 }
 0x58c   :  { %v5217_v5 = vpop.f32.mrf.mxu3 }
 0x58d   :  { %v2239_v10 = vsel %vm2214_vm6, %v5217_v5, -inf }
 0x58e   :  { %v5227_v4 = vpop.f32.mrf.mxu1 }
 0x58f   :  { %v2251_v6 = vsel %vm2214_vm6, %v5227_v4, -inf }
 0x591   :  { %v5190_v38 = vpop.f32.mrf.mxu0 }
 0x592   :  { %v2221_v30 = vsel %vm2214_vm6, %v5190_v38, -inf }
 0x593   :  { %2222 = vmax.xlane.f32.xlu0 %v2221_v30 }
 0x594   :  { %v5235_v14 = vpop.f32.mrf.mxu3 }
 0x595   :  { %v2242_v59 = vsel %vm2214_vm6, %v5235_v14, -inf }
 0x596   :  { %v5197_v62 = vpop.f32.mrf.mxu2  ;;  %3625 = vmatmul.msk.bf16.vlgmr.msrb.gmra.mxu2 %vm752_vm3, %v4705_v41  ;;  %v5243_v17 = vpop.f32.mrf.mxu1 }
 0x597   :  { %2809 = vmatpush.bf16.msrb.mxu2 %v2800_v43  ;;  %v2254_v53 = vsel %vm2214_vm6, %v5243_v17, -inf }
 0x599   :  { %v5201_v24 = vpop.f32.mrf.mxu0 }
 0x59a   :  { %v2224_v27 = vsel %vm2214_vm6, %v5201_v24, -inf }
 0x59b   :  { %2228 = vmax.xlane.f32.xlu0 %v2227_v1  ;;  %2225 = vmax.xlane.f32.xlu2 %v2224_v27  ;;  %v5273_v27 = vpop.permute.xlu0 %2929 }
 0x59c   :  { %v5259_v29 = vpop.f32.mrf.mxu3 }
 0x59d   :  { %v2263_v30 = vsel %vm2214_vm6, %v5259_v29, -inf }
 0x59e   :  { %v1675_v42 = vpop.f32.mrf.mxu2  ;;  %v5255_v3 = vpop.f32.mrf.mxu1 }
 0x5a1   :  { %v5209_v31 = vpop.f32.mrf.mxu0 }
 0x5a2   :  { %v2245_v41 = vsel %vm2214_vm6, %v5209_v31, -inf }
 0x5a3   :  { %2219 = vmax.xlane.f32.xlu2 %v2218_v35  ;;  %2246 = vmax.xlane.f32.xlu1 %v2245_v41  ;;  %v2275_v35 = vsel %vm2214_vm6, %v5255_v3, -inf }
 0x5a4   :  { %v5269_v43 = vpop.f32.mrf.mxu3 }
 0x5a5   :  { %v2266_v42 = vsel %vm2214_vm6, %v5269_v43, -inf }
 0x5a6   :  { %v5267_v7 = vpop.f32.mrf.mxu1 }
 0x5a9   :  { %v5219_v9 = vpop.f32.mrf.mxu0 }
 0x5aa   :  { %v2248_v61 = vsel %vm2214_vm6, %v5219_v9, -inf }
 0x5ab   :  { %2231 = vmax.xlane.f32.xlu2 %v2230_v48  ;;  %2240 = vmax.xlane.f32.xlu1 %v2239_v10  ;;  %v5281_v48 = vpop.permute.xlu2 %2821 }
 0x5ac   :  { %2249 = vmax.xlane.f32.xlu0 %v2248_v61 }
 0x5ae   :  { %v5283_v10 = vpop.f32.mrf.mxu1 }
 0x5b1   :  { %v5229_v40 = vpop.f32.mrf.mxu0 }
 0x5b2   :  { %v2269_v16 = vsel %vm2214_vm6, %v5229_v40, -inf }
 0x5b3   :  { %2252 = vmax.xlane.f32.xlu1 %v2251_v6  ;;  %v5287_v6 = vpop.f32.mrf.mxu3 }
 0x5b4   :  { %2270 = vmax.xlane.f32.xlu0 %v2269_v16 }
 0x5b9   :  { %v5237_v13 = vpop.f32.mrf.mxu0 }
 0x5ba   :  { %v2272_v32 = vsel %vm2214_vm6, %v5237_v13, -inf }
 0x5bb   :  { %2273 = vmax.xlane.f32.xlu2 %v2272_v32  ;;  %v2278_v32 = vsel %vm2214_vm6, %v5267_v7, -inf }
 0x5bc   :  { %2243 = vmax.xlane.f32.xlu0 %v2242_v59 }
 0x5c1   :  { %v5247_v15 = vpop.f32.mrf.mxu0 }
 0x5c2   :  { %v2293_v34 = vsel %vm2214_vm6, %v5247_v15, -inf }
 0x5c4   :  { %2255 = vmax.xlane.f32.xlu0 %v2254_v53  ;;  %v2287_v53 = vsel %vm2214_vm6, %v5287_v6, -inf }
 0x5c9   :  { %v5285_v61 = vpop.f32.mrf.mxu0 }
 0x5ca   :  { %v2296_v59 = vsel %vm2214_vm6, %v5285_v61, -inf }
 0x5cc   :  { %2294 = vmax.xlane.f32.xlu0 %v2293_v34  ;;  %v5297_v34 = vpop.permute.xlu0 %2902 }
 0x5d9   :  { %v5251_v45 = vpop.f32.mrf.mxu2 }
 0x5da   :  { %5717 = vst [vmem:[#allocation27_spill] sm:$0xff] %v5251_v45 }
 0x5e1   :  { %v1751_v60 = vpop.f32.mrf.mxu2 }
 0x5e2   :  { %v5299_v60 = vpop.permute.xlu2 %2875 }
 0x5e9   :  { %v5253_v51 = vpop.f32.mrf.mxu2 }
 0x5ea   :  { %v2233_v36 = vsel %vm2214_vm6, %v5253_v51, -inf }
 0x5eb   :  { %2234 = vmax.xlane.f32.xlu2 %v2233_v36  ;;  %v5301_v36 = vpop.f32.mrf.mxu1 }
 0x5f1   :  { %v5261_v52 = vpop.f32.mrf.mxu2 }
 0x5f2   :  { %v2236_v18 = vsel %vm2214_vm6, %v5261_v52, -inf }
 0x5f3   :  { %2237 = vmax.xlane.f32.xlu1 %v2236_v18  ;;  %2264 = vmax.xlane.f32.xlu2 %v2263_v30  ;;  %v2299_v30 = vsel %vm2214_vm6, %v5283_v10, -inf }
 0x5f9   :  { %v5271_v1 = vpop.f32.mrf.mxu2 }
 0x5fa   :  { %v2257_v41 = vsel %vm2214_vm6, %v5271_v1, -inf }
 0x5fb   :  { %2267 = vmax.xlane.f32.xlu1 %v2266_v42  ;;  %2276 = vmax.xlane.f32.xlu2 %v2275_v35  ;;  %v2302_v35 = vsel %vm2214_vm6, %v5301_v36, -inf }
 0x5fc   :  { %2258 = vmax.xlane.f32.xlu0 %v2257_v41 }
 0x601   :  { %v5289_v16 = vpop.f32.mrf.mxu2 }
 0x602   :  { %v2260_v42 = vsel %vm2214_vm6, %v5289_v16, -inf }
 0x603   :  { %2279 = vmax.xlane.f32.xlu1 %v2278_v32  ;;  %2297 = vmax.xlane.f32.xlu2 %v2296_v59  ;;  %v2217_v32 = vpop.xlane.xlu1 %2216 }
 0x604   :  { %2288 = vmax.xlane.f32.xlu0 %v2287_v53  ;;  %v5311_v53 = vpop.f32.mrf.mxu3 }
 0x606   :  { %v2223_v41 = vpop.xlane.xlu0 %2222 }
 0x607   :  { %v2313_v19 = vsub.f32 %v5190_v38, %v2223_v41 }
 0x609   :  { %v5303_v18 = vpop.f32.mrf.mxu2 }
 0x60a   :  { %v2281_v28 = vsel %vm2214_vm6, %v5303_v18, -inf }
 0x60b   :  { %2300 = vmax.xlane.f32.xlu1 %v2299_v30  ;;  %2261 = vmax.xlane.f32.xlu2 %v2260_v42  ;;  %v2290_v42 = vsel %vm2214_vm6, %v5311_v53, -inf }
 0x60c   :  { %2303 = vmax.xlane.f32.xlu0 %v2302_v35  ;;  %v2347_v35 = vmul.f32 1.442695, %v2313_v19 }
 0x60e   :  { %v2226_v59 = vpop.xlane.xlu2 %2225  ;;  %v2229_v8 = vpop.xlane.xlu0 %2228  ;;  %3980 = vpow2.f32 %v2347_v35 }
 0x60f   :  { %v2314_v58 = vsub.f32 %v5201_v24, %v2226_v59  ;;  %v2311_v24 = vsub.f32 %v5179_v49, %v2217_v32 }
 0x611   :  { %v5314_v63 = vpop.f32.mrf.mxu2  ;;  %v2343_v49 = vmul.f32 1.442695, %v2311_v24 }
 0x612   :  { %v2284_v30 = vsel %vm2214_vm6, %v5314_v63, -inf }
 0x613   :  { %2282 = vmax.xlane.f32.xlu1 %v2281_v28  ;;  %2291 = vmax.xlane.f32.xlu2 %v2290_v42 }
 0x614   :  { %2285 = vmax.xlane.f32.xlu0 %v2284_v30  ;;  %v2349_v30 = vmul.f32 1.442695, %v2314_v58  ;;  %v5329_v45 = vpop.eup %3980 }
 0x616   :  { %v2247_v44 = vpop.xlane.xlu1 %2246  ;;  %v2220_v55 = vpop.xlane.xlu2 %2219 }
 0x617   :  { %v2321_v38 = vsub.f32 %v5209_v31, %v2247_v44  ;;  %v2312_v57 = vsub.f32 %v5207_v50, %v2220_v55  ;;  %v2413_v50 = vsel %vm2214_vm6, %v5329_v45, 0.0 }
 0x619   :  { %v2363_v41 = vmul.f32 1.442695, %v2321_v38  ;;  %v5324_v39 = vpop.f32.mrf.mxu2  ;;  %v2345_v19 = vmul.f32 1.442695, %v2312_v57 }
 0x61a   :  { %v2305_v28 = vsel %vm2214_vm6, %v5324_v39, -inf }
 0x61b   :  { %3982 = vpow2.f32 %v2363_v41  ;;  %2306 = vmax.xlane.f32.xlu2 %v2305_v28 }
 0x61c   :  { %3984 = vpow2.f32 %v2349_v30 }
 0x61d   :  { %3986 = vpow2.f32 %v2345_v19  ;;  %v2315_v19 = vsub.f32 %v5195_v11, %v2229_v8 }
 0x61e   :  { %v2232_v31 = vpop.xlane.xlu2 %2231  ;;  %v2241_v24 = vpop.xlane.xlu1 %2240 }
 0x61f   :  { %v2250_v42 = vpop.xlane.xlu0 %2249  ;;  %v2316_v58 = vsub.f32 %v5215_v56, %v2232_v31 }
 0x620   :  { %v2322_v44 = vsub.f32 %v5219_v9, %v2250_v42 }
 0x621   :  { %v5332_v35 = vpop.eup %3982  ;;  %v5335_v38 = vpop.f32.mrf.mxu2  ;;  %v2353_v9 = vmul.f32 1.442695, %v2316_v58 }
 0x622   :  { %v2365_v59 = vmul.f32 1.442695, %v2322_v44  ;;  %v2437_v55 = vsel %vm2214_vm6, %v5332_v35, 0.0  ;;  %v2308_v57 = vsel %vm2214_vm6, %v5335_v38, -inf  ;;  %v5344_v41 = vpop.eup %3984 }
 0x623   :  { %2438 = vadd.xlane.f32.xlu0 %v2437_v55  ;;  %2309 = vmax.xlane.f32.xlu1 %v2308_v57  ;;  %v5347_v30 = vpop.eup %3986  ;;  %v2416_v31 = vsel %vm2214_vm6, %v5344_v41, 0.0 }
 0x624   :  { %3988 = vpow2.f32 %v2365_v59  ;;  %2414 = vadd.xlane.f32.xlu2 %v2413_v50  ;;  %v2351_v59 = vmul.f32 1.442695, %v2315_v19 }
 0x625   :  { %3990 = vpow2.f32 %v2343_v49  ;;  %v2319_v49 = vsub.f32 %v5217_v5, %v2241_v24 }
 0x626   :  { %3992 = vpow2.f32 %v2353_v9 }
 0x627   :  { %v2271_v32 = vpop.xlane.xlu0 %2270 }
 0x628   :  { %v2329_v28 = vsub.f32 %v5229_v40, %v2271_v32  ;;  %v2410_v40 = vsel %vm2214_vm6, %v5347_v30, 0.0 }
 0x62a   :  { %v5349_v56 = vpop.eup %3988  ;;  %v2379_v42 = vmul.f32 1.442695, %v2329_v28 }
 0x62b   :  { %v2440_v44 = vsel %vm2214_vm6, %v5349_v56, 0.0  ;;  %2411 = vadd.xlane.f32.xlu1 %v2410_v40  ;;  %v5358_v58 = vpop.eup %3990 }
 0x62c   :  { %3994 = vpow2.f32 %v2379_v42  ;;  %2441 = vadd.xlane.f32.xlu0 %v2440_v44  ;;  %2417 = vadd.xlane.f32.xlu2 %v2416_v31  ;;  %v5361_v57 = vpop.eup %3992  ;;  %v2407_v19 = vsel %vm2214_vm6, %v5358_v58, 0.0  ;;  %v2359_v42 = vmul.f32 1.442695, %v2319_v49  ;;  %v2253_v44 = vpop.xlane.xlu1 %2252 }
 0x62d   :  { %3996 = vpow2.f32 %v2351_v59  ;;  %v2323_v24 = vsub.f32 %v5227_v4, %v2253_v44 }
 0x62e   :  { %v2274_v11 = vpop.xlane.xlu2 %2273 }
 0x62f   :  { %v2244_v55 = vpop.xlane.xlu0 %2243  ;;  %v2330_v32 = vsub.f32 %v5237_v13, %v2274_v11  ;;  %v2367_v11 = vmul.f32 1.442695, %v2323_v24 }
 0x630   :  { %v2320_v8 = vsub.f32 %v5235_v14, %v2244_v55  ;;  %v2422_v14 = vsel %vm2214_vm6, %v5361_v57, 0.0 }
 0x631   :  { %v2381_v31 = vmul.f32 1.442695, %v2330_v32 }
 0x632   :  { %v5363_v50 = vpop.eup %3994  ;;  %v2361_v9 = vmul.f32 1.442695, %v2320_v8 }
 0x633   :  { %v2461_v28 = vsel %vm2214_vm6, %v5363_v50, 0.0  ;;  %2423 = vadd.xlane.f32.xlu1 %v2422_v14  ;;  %v5373_v5 = vpop.eup %3996 }
 0x634   :  { %3998 = vpow2.f32 %v2361_v9  ;;  %2462 = vadd.xlane.f32.xlu0 %v2461_v28  ;;  %2408 = vadd.xlane.f32.xlu2 %v2407_v19  ;;  %v2419_v55 = vsel %vm2214_vm6, %v5373_v5, 0.0 }
 0x635   :  { %4000 = vpow2.f32 %v2359_v42 }
 0x636   :  { %4002 = vpow2.f32 %v2381_v31 }
 0x637   :  { %v2256_v40 = vpop.xlane.xlu0 %2255  ;;  %4004 = vpow2.f32 %v2367_v11 }
 0x638   :  { %v2324_v59 = vsub.f32 %v5243_v17, %v2256_v40 }
 0x63a   :  { %v5375_v13 = vpop.eup %3998  ;;  %v2369_v49 = vmul.f32 1.442695, %v2324_v59 }
 0x63b   :  { %v2434_v8 = vsel %vm2214_vm6, %v5375_v13, 0.0  ;;  %v5383_v9 = vpop.eup %4000 }
 0x63c   :  { %2420 = vadd.xlane.f32.xlu2 %v2419_v55  ;;  %2435 = vadd.xlane.f32.xlu1 %v2434_v8  ;;  %v5385_v32 = vpop.eup %4002  ;;  %4006 = vpow2.f32 %v2369_v49  ;;  %v2431_v4 = vsel %vm2214_vm6, %v5383_v9, 0.0 }
 0x63d   :  { %v2464_v17 = vsel %vm2214_vm6, %v5385_v32, 0.0  ;;  %v5391_v28 = vpop.eup %4004 }
 0x63e   :  { %v2443_v14 = vsel %vm2214_vm6, %v5391_v28, 0.0 }
 0x63f   :  { %v5400_v55 = vpop.xlane.xlu0 %2294 }
 0x642   :  { %v5393_v19 = vpop.eup %4006 }
 0x643   :  { %v2446_v42 = vsel %vm2214_vm6, %v5393_v19, 0.0 }
 0x644   :  { %2432 = vadd.xlane.f32.xlu2 %v2431_v4  ;;  %2465 = vadd.xlane.f32.xlu1 %v2464_v17 }
 0x64c   :  { %2444 = vadd.xlane.f32.xlu2 %v2443_v14  ;;  %2447 = vadd.xlane.f32.xlu1 %v2446_v42 }
 0x65e   :  { %v2235_v44 = vpop.xlane.xlu2 %2234 }
 0x65f   :  { %v2317_v31 = vsub.f32 %v5253_v51, %v2235_v44 }
 0x661   :  { %v2355_v40 = vmul.f32 1.442695, %v2317_v31 }
 0x663   :  { %4008 = vpow2.f32 %v2355_v40 }
 0x666   :  { %v2238_v24 = vpop.xlane.xlu1 %2237  ;;  %v2265_v59 = vpop.xlane.xlu2 %2264 }
 0x667   :  { %v2318_v8 = vsub.f32 %v5261_v52, %v2238_v24  ;;  %v2327_v11 = vsub.f32 %v5259_v29, %v2265_v59 }
 0x669   :  { %v5404_v49 = vpop.eup %4008  ;;  %v2357_v4 = vmul.f32 1.442695, %v2318_v8  ;;  %v2375_v17 = vmul.f32 1.442695, %v2327_v11 }
 0x66a   :  { %v2425_v14 = vsel %vm2214_vm6, %v5404_v49, 0.0 }
 0x66b   :  { %4010 = vpow2.f32 %v2357_v4  ;;  %2426 = vadd.xlane.f32.xlu2 %v2425_v14 }
 0x66c   :  { %4012 = vpow2.f32 %v2375_v17 }
 0x66e   :  { %v2268_v51 = vpop.xlane.xlu1 %2267  ;;  %v2277_v42 = vpop.xlane.xlu2 %2276 }
 0x66f   :  { %v2328_v44 = vsub.f32 %v5269_v43, %v2268_v51  ;;  %v2259_v31 = vpop.xlane.xlu0 %2258  ;;  %v2331_v40 = vsub.f32 %v5255_v3, %v2277_v42 }
 0x670   :  { %v2325_v8 = vsub.f32 %v5271_v1, %v2259_v31 }
 0x671   :  { %v5410_v52 = vpop.eup %4010  ;;  %v2377_v29 = vmul.f32 1.442695, %v2328_v44  ;;  %v2383_v24 = vmul.f32 1.442695, %v2331_v40 }
 0x672   :  { %v5412_v59 = vpop.eup %4012  ;;  %v2428_v11 = vsel %vm2214_vm6, %v5410_v52, 0.0  ;;  %v2371_v43 = vmul.f32 1.442695, %v2325_v8 }
 0x673   :  { %4014 = vpow2.f32 %v2377_v29  ;;  %2429 = vadd.xlane.f32.xlu1 %v2428_v11  ;;  %v2455_v4 = vsel %vm2214_vm6, %v5412_v59, 0.0 }
 0x674   :  { %2456 = vadd.xlane.f32.xlu2 %v2455_v4  ;;  %4016 = vpow2.f32 %v2383_v24 }
 0x675   :  { %4018 = vpow2.f32 %v2371_v43 }
 0x676   :  { %v2280_v3 = vpop.xlane.xlu1 %2279  ;;  %v5419_v17 = vpop.xlane.xlu2 %2297 }
 0x677   :  { %v2332_v14 = vsub.f32 %v5267_v7, %v2280_v3  ;;  %v2289_v51 = vpop.xlane.xlu0 %2288 }
 0x678   :  { %v2335_v42 = vsub.f32 %v5287_v6, %v2289_v51 }
 0x679   :  { %v5423_v1 = vpop.eup %4014  ;;  %v2385_v44 = vmul.f32 1.442695, %v2332_v14 }
 0x67a   :  { %v2391_v31 = vmul.f32 1.442695, %v2335_v42  ;;  %v2458_v40 = vsel %vm2214_vm6, %v5423_v1, 0.0  ;;  %v5427_v29 = vpop.eup %4016 }
 0x67b   :  { %4020 = vpow2.f32 %v2385_v44  ;;  %2459 = vadd.xlane.f32.xlu0 %v2458_v40  ;;  %v2467_v24 = vsel %vm2214_vm6, %v5427_v29, 0.0  ;;  %v5432_v4 = vpop.eup %4018 }
 0x67c   :  { %4022 = vpow2.f32 %v2391_v31  ;;  %2468 = vadd.xlane.f32.xlu1 %v2467_v24 }
 0x67e   :  { %v2301_v7 = vpop.xlane.xlu1 %2300  ;;  %v2262_v8 = vpop.xlane.xlu2 %2261 }
 0x67f   :  { %v2304_v6 = vpop.xlane.xlu0 %2303  ;;  %v2326_v11 = vsub.f32 %v5289_v16, %v2262_v8  ;;  %v2449_v16 = vsel %vm2214_vm6, %v5432_v4, 0.0  ;;  %v2339_v12 = vsub.f32 %v5283_v10, %v2301_v7 }
 0x680   :  { %v2340_v43 = vsub.f32 %v5301_v36, %v2304_v6 }
 0x681   :  { %v5435_v3 = vpop.eup %4020  ;;  %v2373_v14 = vmul.f32 1.442695, %v2326_v11 }
 0x682   :  { %v5437_v51 = vpop.eup %4022  ;;  %v2401_v42 = vmul.f32 1.442695, %v2340_v43  ;;  %v2470_v44 = vsel %vm2214_vm6, %v5435_v3, 0.0 }
 0x683   :  { %2471 = vadd.xlane.f32.xlu0 %v2470_v44  ;;  %v2479_v31 = vsel %vm2214_vm6, %v5437_v51, 0.0 }
 0x684   :  { %4024 = vpow2.f32 %v2401_v42  ;;  %2480 = vadd.xlane.f32.xlu2 %v2479_v31  ;;  %2450 = vadd.xlane.f32.xlu1 %v2449_v16 }
 0x685   :  { %4026 = vpow2.f32 %v2373_v14 }
 0x686   :  { %v2283_v36 = vpop.xlane.xlu1 %2282  ;;  %v2292_v40 = vpop.xlane.xlu2 %2291 }
 0x687   :  { %v2333_v24 = vsub.f32 %v5303_v18, %v2283_v36  ;;  %v2336_v8 = vsub.f32 %v5311_v53, %v2292_v40  ;;  %v2286_v6 = vpop.xlane.xlu0 %2285  ;;  %v2399_v53 = vmul.f32 1.442695, %v2339_v12 }
 0x688   :  { %v2334_v31 = vsub.f32 %v5314_v63, %v2286_v6 }
 0x689   :  { %v2387_v11 = vmul.f32 1.442695, %v2333_v24  ;;  %v2393_v43 = vmul.f32 1.442695, %v2336_v8 }
 0x68a   :  { %v5447_v44 = vpop.eup %4024  ;;  %v2389_v36 = vmul.f32 1.442695, %v2334_v31 }
 0x68b   :  { %5718 = vst [vmem:[#allocation28_spill] sm:$0xff] %v5447_v44  ;;  %v5450_v42 = vpop.eup %4026  ;;  %4028 = vpow2.f32 %v2387_v11  ;;  %v2494_v14 = vsel %vm2214_vm6, %v5447_v44, 0.0 }
 0x68c   :  { %2495 = vadd.xlane.f32.xlu2 %v2494_v14  ;;  %v2452_v18 = vsel %vm2214_vm6, %v5450_v42, 0.0  ;;  %4030 = vpow2.f32 %v2393_v43 }
 0x68d   :  { %2453 = vadd.xlane.f32.xlu1 %v2452_v18  ;;  %4032 = vpow2.f32 %v2399_v53 }
 0x68e   :  { %v2307_v16 = vpop.xlane.xlu2 %2306  ;;  %4034 = vpow2.f32 %v2389_v36 }
 0x68f   :  { %v2341_v10 = vsub.f32 %v5324_v39, %v2307_v16 }
 0x691   :  { %v5457_v40 = vpop.eup %4028  ;;  %v2403_v8 = vmul.f32 1.442695, %v2341_v10 }
 0x692   :  { %5719 = vst [vmem:[#allocation29_spill] sm:$0xff] %v5457_v40  ;;  %v2473_v63 = vsel %vm2214_vm6, %v5457_v40, 0.0  ;;  %v5462_v7 = vpop.eup %4030 }
 0x693   :  { %5720 = vst [vmem:[#allocation30_spill] sm:$0xff] %v5462_v7  ;;  %v2482_v24 = vsel %vm2214_vm6, %v5462_v7, 0.0  ;;  %v5468_v11 = vpop.eup %4032  ;;  %4036 = vpow2.f32 %v2403_v8 }
 0x694   :  { %2483 = vadd.xlane.f32.xlu0 %v2482_v24  ;;  %5721 = vst [vmem:[#allocation31_spill] sm:$0xff] %v5468_v11  ;;  %v5470_v43 = vpop.eup %4034  ;;  %v2491_v14 = vsel %vm2214_vm6, %v5468_v11, 0.0 }
 0x695   :  { %2474 = vadd.xlane.f32.xlu1 %v2473_v63  ;;  %5722 = vst [vmem:[#allocation32_spill] sm:$0xff] %v5470_v43  ;;  %v2476_v31 = vsel %vm2214_vm6, %v5470_v43, 0.0 }
 0x696   :  { %v5466_v12 = vpop.xlane.xlu1 %2309  ;;  %v2439_v39 = vpop.xlane.xlu0 %2438 }
 0x697   :  { %v2415_v6 = vpop.xlane.xlu2 %2414 }
 0x698   :  { %4038 = vrcp.f32 %v2415_v6 }
 0x699   :  { %v5476_v16 = vpop.eup %4036 }
 0x69a   :  { %5723 = vst [vmem:[#allocation33_spill] sm:$0xff] %v5476_v16  ;;  %v2497_v24 = vsel %vm2214_vm6, %v5476_v16, 0.0 }
 0x69c   :  { %2492 = vadd.xlane.f32.xlu0 %v2491_v14 }
 0x69d   :  { %2477 = vadd.xlane.f32.xlu1 %v2476_v31 }
 0x69e   :  { %v2412_v53 = vpop.xlane.xlu1 %2411  ;;  %v4039_v36 = vpop.eup %4038 }
 0x69f   :  { %v2418_v18 = vpop.xlane.xlu2 %2417  ;;  %v2537_v10 = vmul.f32 %v4039_v36, %v5329_v45  ;;  %v2442_v63 = vpop.xlane.xlu0 %2441 }
 0x6a0   :  { %4040 = vrcp.f32 %v2418_v18 }
 0x6a1   :  { %4042 = vrcp.f32 %v2412_v53  ;;  %v2569_v14 = vpack.c.bf16 %v2537_v10, %v2537_v10 }
 0x6a2   :  { %4044 = vrcp.f32 %v2442_v63 }
 0x6a3   :  { %v2629_v45 = vunpack.c.l.b16 %v2569_v14 }
 0x6a4   :  { %2848 = vrot.lane.b32.xlu2 %v4967_v46, %s4329_s18  ;;  %2498 = vadd.xlane.f32.xlu0 %v2497_v24 }
 0x6a6   :  { %v4041_v6 = vpop.eup %4040  ;;  %v2424_v31 = vpop.xlane.xlu1 %2423 }
 0x6a7   :  { %v2409_v8 = vpop.xlane.xlu2 %2408  ;;  %v2538_v44 = vmul.f32 %v4041_v6, %v5344_v41  ;;  %4046 = vrcp.f32 %v2424_v31  ;;  %v4043_v18 = vpop.eup %4042 }
 0x6a8   :  { %4048 = vrcp.f32 %v2409_v8  ;;  %v2536_v36 = vmul.f32 %v4043_v18, %v5347_v30  ;;  %v4045_v11 = vpop.eup %4044 }
 0x6a9   :  { %v2570_v53 = vpack.c.bf16 %v2538_v44, %v2538_v44  ;;  %4050 = vrcp.f32 %v2439_v39  ;;  %v2546_v44 = vmul.f32 %v4045_v11, %v5349_v56  ;;  %v2827_v56 = vsel %vm2609_vm5, %v5281_v48, 0 }
 0x6aa   :  { %v2568_v63 = vpack.c.bf16 %v2536_v36, %v2536_v36  ;;  %v2881_v48 = vsel %vm2609_vm5, %v5299_v60, 0 }
 0x6ab   :  { %v2630_v46 = vunpack.c.l.b16 %v2570_v53  ;;  %v2578_v18 = vpack.c.bf16 %v2546_v44, %v2546_v44 }
 0x6ac   :  { %v2602_v6 = vunpack.c.l.b16 %v2568_v63 }
 0x6ad   :  { %v4047_v43 = vpop.eup %4046  ;;  %v2631_v16 = vpack.c.b16 %v2630_v46, %v2629_v45 }
 0x6ae   :  { %v4049_v40 = vpop.eup %4048  ;;  %v2540_v39 = vmul.f32 %v4047_v43, %v5361_v57 }
 0x6af   :  { %v2421_v24 = vpop.xlane.xlu2 %2420  ;;  %v2436_v7 = vpop.xlane.xlu1 %2435  ;;  %v2535_v10 = vmul.f32 %v4049_v40, %v5358_v58  ;;  %3627 = vmatmul.msk.bf16.vlgmr.msra.gmra.mxu0 %vm2214_vm6, %v2631_v16  ;;  %v2337_v16 = vsub.f32 %v5247_v15, %v5400_v55 }
 0x6b0   :  { %4052 = vrcp.f32 %v2421_v24  ;;  %v4051_v41 = vpop.eup %4050  ;;  %v2572_v53 = vpack.c.bf16 %v2540_v39, %v2540_v39 }
 0x6b1   :  { %4054 = vrcp.f32 %v2436_v7  ;;  %v2567_v30 = vpack.c.bf16 %v2535_v10, %v2535_v10  ;;  %v2545_v8 = vmul.f32 %v4051_v41, %v5332_v35  ;;  %v2395_v39 = vmul.f32 1.442695, %v2337_v16 }
 0x6b2   :  { %v2657_v11 = vunpack.c.l.b16 %v2572_v53 }
 0x6b3   :  { %v2601_v31 = vunpack.c.l.b16 %v2567_v30  ;;  %v2577_v35 = vpack.c.bf16 %v2545_v8, %v2545_v8 }
 0x6b5   :  { %v2603_v45 = vpack.c.b16 %v2602_v6, %v2601_v31  ;;  %v2737_v46 = vunpack.c.l.b16 %v2577_v35 }
 0x6b6   :  { %v4053_v14 = vpop.eup %4052  ;;  %2983 = vrot.lane.b32.xlu1 %v5037_v54, %s4329_s18 }
 0x6b7   :  { %v2539_v36 = vmul.f32 %v4053_v14, %v5373_v5  ;;  %v2433_v58 = vpop.xlane.xlu2 %2432  ;;  %v4055_v40 = vpop.eup %4054  ;;  %3626 = vmatmul.msk.bf16.vlgmr.msrb.gmra.mxu3 %vm2214_vm6, %v2603_v45  ;;  %v2738_v5 = vunpack.c.l.b16 %v2578_v18  ;;  %v2935_v14 = vsel %vm2609_vm5, %v5273_v27, 0  ;;  %v2342_v27 = vsub.f32 %v5335_v38, %v5466_v12 }
 0x6b8   :  { %v5493_v7 = vpop.xlane.xlu1 %2465  ;;  %4056 = vrcp.f32 %v2433_v58  ;;  %2836 = vmatpush.bf16.msrb.mxu3 %v2827_v56  ;;  %3010 = vrot.lane.b32.xlu0 %v5028_v37, %s4329_s18  ;;  %v2544_v54 = vmul.f32 %v4055_v40, %v5375_v13  ;;  %v5725_v40 = vpack.i.bf16 %v5168_v25, %v5159_v33  ;;  %v5726_v33 = vpack.i.bf16 %v5107_v20, %v5123_v47  ;;  %v2463_v25 = vpop.xlane.xlu0 %2462 }
 0x6b9   :  { %v2571_v57 = vpack.c.bf16 %v2539_v36, %v2539_v36  ;;  %v2739_v10 = vpack.c.b16 %v2738_v5, %v2737_v46  ;;  %v2405_v56 = vmul.f32 1.442695, %v2342_v27 }
 0x6ba   :  { %v2576_v41 = vpack.c.bf16 %v2544_v54, %v2544_v54 }
 0x6bb   :  { %v2656_v43 = vunpack.c.l.b16 %v2571_v57 }
 0x6bc   :  { %v2711_v15 = vunpack.c.l.b16 %v2576_v41 }
 0x6bd   :  { %v2658_v24 = vpack.c.b16 %v2657_v11, %v2656_v43  ;;  %v3811_v43 = vpack.i.bf16 %v5197_v62, %v5149_v21  ;;  %v2908_v21 = vsel %vm2609_vm5, %v5297_v34, 0 }
 0x6be   :  { %v4057_v63 = vpop.eup %4056 }
 0x6bf   :  { %v2543_v44 = vmul.f32 %v4057_v63, %v5383_v9  ;;  %3628 = vmatmul.msk.bf16.vlgmr.msrb.gmra.mxu1 %vm2214_vm6, %v2658_v24  ;;  %v2445_v37 = vpop.xlane.xlu2 %2444  ;;  %3631 = vmatmul.msk.bf16.vlgmr.msrb.gmra.mxu0 %vm2214_vm6, %v2739_v10 }
 0x6c0   :  { %v2448_v30 = vpop.xlane.xlu1 %2447  ;;  %2890 = vmatpush.bf16.msrb.mxu1 %v2881_v48  ;;  %4058 = vrcp.f32 %v2445_v37  ;;  %2956 = vrot.lane.b32.xlu0 %v5044_v26, %s4329_s18  ;;  %v5724_v26 = vpack.i.bf16 %v5143_v0, %v5095_v22  ;;  %v2338_v22 = vsub.f32 %v5285_v61, %v5419_v17 }
 0x6c1   :  { %v2575_v13 = vpack.c.bf16 %v2543_v44, %v2543_v44  ;;  %4060 = vrcp.f32 %v2448_v30 }
 0x6c2   :  { %4062 = vpow2.f32 %v2395_v39  ;;  %v2397_v0 = vmul.f32 1.442695, %v2338_v22 }
 0x6c3   :  { %v2710_v60 = vunpack.c.l.b16 %v2575_v13  ;;  %4064 = vpow2.f32 %v2405_v56 }
 0x6c4   :  { %4066 = vpow2.f32 %v2397_v0 }
 0x6c5   :  { %v2712_v55 = vpack.c.b16 %v2711_v15, %v2710_v60 }
 0x6c6   :  { %v4059_v8 = vpop.eup %4058 }
 0x6c7   :  { %v4061_v9 = vpop.eup %4060  ;;  %v2547_v6 = vmul.f32 %v4059_v8, %v5391_v28  ;;  %3630 = vmatmul.msk.bf16.vlgmr.msra.gmra.mxu3 %vm2214_vm6, %v2712_v55 }
 0x6c8   :  { %v2548_v31 = vmul.f32 %v4061_v9, %v5393_v19  ;;  %v5515_v53 = vpop.eup %4062  ;;  %2944 = vmatpush.bf16.msra.mxu3 %v2935_v14  ;;  %3792 = vrot.lane.b32.xlu0 %v5724_v26, %s4328_s1 }
 0x6c9   :  { %v2579_v18 = vpack.c.bf16 %v2547_v6, %v2547_v6  ;;  %v2485_v28 = vsel %vm2214_vm6, %v5515_v53, 0.0  ;;  %v5532_v35 = vpop.eup %4064 }
 0x6ca   :  { %v2580_v45 = vpack.c.bf16 %v2548_v31, %v2548_v31  ;;  %v2500_v38 = vsel %vm2214_vm6, %v5532_v35, 0.0  ;;  %v5536_v12 = vpop.eup %4066 }
 0x6cb   :  { %v2764_v36 = vunpack.c.l.b16 %v2579_v18  ;;  %v2488_v5 = vsel %vm2214_vm6, %v5536_v12, 0.0 }
 0x6cc   :  { %v2765_v58 = vunpack.c.l.b16 %v2580_v45 }
 0x6cd   :  { %2486 = vadd.xlane.f32.xlu2 %v2485_v28 }
 0x6ce   :  { %v2766_v19 = vpack.c.b16 %v2765_v58, %v2764_v36 }
 0x6d0   :  { %3632 = vmatmul.msk.bf16.vlgmr.msra.gmra.mxu1 %vm2214_vm6, %v2766_v19  ;;  %3807 = vrot.lane.b32.xlu0 %v5725_v40, %s4322_s15 }
 0x6de   :  { %v2427_v57 = vpop.xlane.xlu2 %2426 }
 0x6df   :  { %4068 = vrcp.f32 %v2427_v57 }
 0x6e0   :  { %2501 = vadd.xlane.f32.xlu1 %v2500_v38 }
 0x6e5   :  { %3797 = vrot.lane.b32.xlu2 %v5726_v33, %s4326_s5  ;;  %v4069_v17 = vpop.eup %4068 }
 0x6e6   :  { %v2430_v61 = vpop.xlane.xlu1 %2429  ;;  %v2541_v54 = vmul.f32 %v4069_v17, %v5404_v49 }
 0x6e7   :  { %4070 = vrcp.f32 %v2430_v61  ;;  %v2457_v11 = vpop.xlane.xlu2 %2456 }
 0x6e8   :  { %2489 = vadd.xlane.f32.xlu1 %v2488_v5  ;;  %4072 = vrcp.f32 %v2457_v11  ;;  %v2573_v20 = vpack.c.bf16 %v2541_v54, %v2541_v54 }
 0x6ea   :  { %v2683_v10 = vunpack.c.l.b16 %v2573_v20 }
 0x6ed   :  { %v4071_v16 = vpop.eup %4070  ;;  %3812 = vrot.lane.b32.xlu2 %v3811_v43, %s4325_s4 }
 0x6ee   :  { %v2542_v47 = vmul.f32 %v4071_v16, %v5410_v52  ;;  %v2460_v46 = vpop.xlane.xlu0 %2459  ;;  %v4073_v24 = vpop.eup %4072 }
 0x6ef   :  { %4074 = vrcp.f32 %v2460_v46  ;;  %v2469_v48 = vpop.xlane.xlu1 %2468  ;;  %v2551_v44 = vmul.f32 %v4073_v24, %v5412_v59 }
 0x6f0   :  { %v2574_v63 = vpack.c.bf16 %v2542_v47, %v2542_v47  ;;  %4076 = vrcp.f32 %v2469_v48  ;;  %v5728_v47 = vld [vmem:[#allocation30_spill] sm:$0xff]  ;;  %v5729_v48 = vld [vmem:[#allocation29_spill] sm:$0xff] }
 0x6f1   :  { %4078 = vrcp.f32 %v5493_v7  ;;  %v2583_v62 = vpack.c.bf16 %v2551_v44, %v2551_v44 }
 0x6f2   :  { %v2684_v41 = vunpack.c.l.b16 %v2574_v63  ;;  %4080 = vrcp.f32 %v2463_v25 }
 0x6f3   :  { %v2818_v60 = vunpack.c.l.b16 %v2583_v62 }
 0x6f4   :  { %v2685_v49 = vpack.c.b16 %v2684_v41, %v2683_v10 }
 0x6f5   :  { %v4075_v37 = vpop.eup %4074 }
 0x6f6   :  { %v2552_v52 = vmul.f32 %v4075_v37, %v5423_v1  ;;  %v2472_v39 = vpop.xlane.xlu0 %2471  ;;  %3629 = vmatmul.msk.bf16.vlgmr.msra.gmra.mxu2 %vm2214_vm6, %v2685_v49  ;;  %v4077_v30 = vpop.eup %4076 }
 0x6f7   :  { %4082 = vrcp.f32 %v2472_v39  ;;  %2917 = vmatpush.bf16.msra.mxu2 %v2908_v21  ;;  %v2481_v13 = vpop.xlane.xlu2 %2480  ;;  %v2451_v59 = vpop.xlane.xlu1 %2450  ;;  %v2555_v7 = vmul.f32 %v4077_v30, %v5427_v29  ;;  %v5727_v29 = vpack.i.bf16 %v5152_v23, %v5127_v2  ;;  %v5730_v21 = vld [vmem:[#allocation32_spill] sm:$0xff] }
 0x6f8   :  { %v2584_v15 = vpack.c.bf16 %v2552_v52, %v2552_v52  ;;  %v4079_v8 = vpop.eup %4078  ;;  %4084 = vrcp.f32 %v2451_v59 }
 0x6f9   :  { %v4081_v34 = vpop.eup %4080  ;;  %v2554_v1 = vmul.f32 %v4079_v8, %v5385_v32  ;;  %v2587_v31 = vpack.c.bf16 %v2555_v7, %v2555_v7  ;;  %v5732_v7 = vld [vmem:[#allocation28_spill] sm:$0xff] }
 0x6fa   :  { %v2819_v55 = vunpack.c.l.b16 %v2584_v15  ;;  %v2553_v45 = vmul.f32 %v4081_v34, %v5363_v50 }
 0x6fb   :  { %v2586_v28 = vpack.c.bf16 %v2554_v1, %v2554_v1  ;;  %v2872_v19 = vunpack.c.l.b16 %v2587_v31 }
 0x6fc   :  { %v2820_v9 = vpack.c.b16 %v2819_v55, %v2818_v60  ;;  %v2585_v27 = vpack.c.bf16 %v2553_v45, %v2553_v45  ;;  %v5731_v60 = vld [vmem:[#allocation31_spill] sm:$0xff] }
 0x6fd   :  { %v4083_v6 = vpop.eup %4082  ;;  %v2846_v56 = vunpack.c.l.b16 %v2586_v28 }
 0x6fe   :  { %v2556_v14 = vmul.f32 %v4083_v6, %v5435_v3  ;;  %3634 = vmatmul.msk.bf16.vlgmr.msrb.gmra.mxu3 %vm2214_vm6, %v2820_v9  ;;  %v4085_v58 = vpop.eup %4084  ;;  %v2845_v0 = vunpack.c.l.b16 %v2585_v27 }
 0x6ff   :  { %v2496_v18 = vpop.xlane.xlu2 %2495  ;;  %v2549_v3 = vmul.f32 %v4085_v58, %v5432_v4 }
 0x700   :  { %v2588_v26 = vpack.c.bf16 %v2556_v14, %v2556_v14  ;;  %v2454_v36 = vpop.xlane.xlu1 %2453  ;;  %v2847_v61 = vpack.c.b16 %v2846_v56, %v2845_v0 }
 0x701   :  { %4086 = vrcp.f32 %v2454_v36  ;;  %3802 = vrot.lane.b32.xlu1 %v5727_v29, %s4330_s19  ;;  %v2581_v57 = vpack.c.bf16 %v2549_v3, %v2549_v3 }
 0x702   :  { %v2873_v32 = vunpack.c.l.b16 %v2588_v26  ;;  %4088 = vrcp.f32 %v2481_v13 }
 0x703   :  { %v2791_v4 = vunpack.c.l.b16 %v2581_v57 }
 0x704   :  { %v2874_v40 = vpack.c.b16 %v2873_v32, %v2872_v19 }
 0x706   :  { %3636 = vmatmul.msk.bf16.vlgmr.msrb.gmra.mxu1 %vm2214_vm6, %v2874_v40 }
 0x707   :  { %v4087_v50 = vpop.eup %4086  ;;  %v2849_v22 = vpop.permute.xlu2 %2848 }
 0x708   :  { %v2550_v38 = vmul.f32 %v4087_v50, %v5450_v42  ;;  %v2475_v33 = vpop.xlane.xlu1 %2474  ;;  %v2484_v2 = vpop.xlane.xlu0 %2483  ;;  %v2854_v23 = vsel %vm2609_vm5, %v2849_v22, 0 }
 0x709   :  { %2863 = vmatpush.bf16.msra.mxu0 %v2854_v23  ;;  %v4089_v25 = vpop.eup %4088  ;;  %4090 = vrcp.f32 %v2484_v2  ;;  %v5733_v23 = vld [vmem:[#allocation33_spill] sm:$0xff] }
 0x70a   :  { %v2582_v17 = vpack.c.bf16 %v2550_v38, %v2550_v38  ;;  %4092 = vrcp.f32 %v2475_v33  ;;  %v2559_v11 = vmul.f32 %v4089_v25, %v5437_v51 }
 0x70c   :  { %v2792_v5 = vunpack.c.l.b16 %v2582_v17  ;;  %3635 = vmatmul.msk.bf16.vlgmr.msra.gmra.mxu0 %vm2214_vm6, %v2847_v61  ;;  %v2591_v20 = vpack.c.bf16 %v2559_v11, %v2559_v11 }
 0x70e   :  { %v2793_v54 = vpack.c.b16 %v2792_v5, %v2791_v4  ;;  %v2926_v41 = vunpack.c.l.b16 %v2591_v20 }
 0x70f   :  { %v4091_v43 = vpop.eup %4090 }
 0x710   :  { %v2478_v16 = vpop.xlane.xlu1 %2477  ;;  %3633 = vmatmul.msk.bf16.vlgmr.msrb.gmra.mxu2 %vm2214_vm6, %v2793_v54  ;;  %v4093_v42 = vpop.eup %4092  ;;  %v2560_v46 = vmul.f32 %v4091_v43, %v5728_v47  ;;  %v5734_v54 = vld [vmem:[#allocation24_spill] sm:$0xff]  ;;  %v5735_v43 = vld [vmem:[#allocation27_spill] sm:$0xff] }
 0x711   :  { %4094 = vrcp.f32 %v2478_v16  ;;  %v2493_v63 = vpop.xlane.xlu0 %2492  ;;  %v2557_v10 = vmul.f32 %v4093_v42, %v5729_v48  ;;  %v3841_v16 = vpack.i.bf16 %v5735_v43, %v5734_v54  ;;  %v3766_v54 = vld [vmem:[#allocation11 + $0x60] sm:$0xff] }
 0x712   :  { %v2592_v24 = vpack.c.bf16 %v2560_v46, %v2560_v46  ;;  %4096 = vrcp.f32 %v2493_v63 }
 0x713   :  { %4098 = vrcp.f32 %v2496_v18  ;;  %v2589_v51 = vpack.c.bf16 %v2557_v10, %v2557_v10 }
 0x714   :  { %v2927_v44 = vunpack.c.l.b16 %v2592_v24 }
 0x715   :  { %v2899_v30 = vunpack.c.l.b16 %v2589_v51 }
 0x716   :  { %v2928_v37 = vpack.c.b16 %v2927_v44, %v2926_v41 }
 0x717   :  { %v4095_v49 = vpop.eup %4094 }
 0x718   :  { %v2558_v62 = vmul.f32 %v4095_v49, %v5730_v21  ;;  %3638 = vmatmul.msk.bf16.vlgmr.msra.gmra.mxu3 %vm2214_vm6, %v2928_v37  ;;  %v4097_v39 = vpop.eup %4096 }
 0x719   :  { %v4099_v15 = vpop.eup %4098  ;;  %v2563_v55 = vmul.f32 %v4097_v39, %v5731_v60  ;;  %v2499_v9 = vpop.xlane.xlu0 %2498 }
 0x71a   :  { %v2590_v52 = vpack.c.bf16 %v2558_v62, %v2558_v62  ;;  %v2564_v8 = vmul.f32 %v4099_v15, %v5732_v7  ;;  %4100 = vrcp.f32 %v2499_v9  ;;  %v5737_v7 = vld [vmem:[#allocation25_spill] sm:$0xff] }
 0x71b   :  { %v2595_v34 = vpack.c.bf16 %v2563_v55, %v2563_v55  ;;  %v5736_v55 = vld [vmem:[#allocation26_spill] sm:$0xff] }
 0x71c   :  { %v2900_v13 = vunpack.c.l.b16 %v2590_v52  ;;  %v2596_v6 = vpack.c.bf16 %v2564_v8, %v2564_v8  ;;  %v5738_v8 = vpack.i.bf16 %v5736_v55, %v5737_v7 }
 0x71d   :  { %v2980_v1 = vunpack.c.l.b16 %v2595_v34 }
 0x71e   :  { %v2901_v59 = vpack.c.b16 %v2900_v13, %v2899_v30  ;;  %v2981_v14 = vunpack.c.l.b16 %v2596_v6 }
 0x720   :  { %3637 = vmatmul.msk.bf16.vlgmr.msra.gmra.mxu2 %vm2214_vm6, %v2901_v59  ;;  %v2982_v45 = vpack.c.b16 %v2981_v14, %v2980_v1  ;;  %v4101_v57 = vpop.eup %4100 }
 0x721   :  { %v2565_v25 = vmul.f32 %v4101_v57, %v5733_v23  ;;  %v3757_v57 = vld [vmem:[#allocation11 + $0x18] sm:$0xff]  ;;  %v3768_v23 = vld [vmem:[#allocation11 + $0x70] sm:$0xff] }
 0x723   :  { %v2597_v17 = vpack.c.bf16 %v2565_v25, %v2565_v25  ;;  %v3755_v25 = vld [vmem:[#allocation11 + $0x8] sm:$0xff] }
 0x725   :  { %v3007_v20 = vunpack.c.l.b16 %v2597_v17  ;;  %v3767_v17 = vld [vmem:[#allocation11 + $0x68] sm:$0xff] }
 0x728   :  { %v2984_v31 = vpop.permute.xlu1 %2983 }
 0x729   :  { %v2989_v18 = vsel %vm2609_vm5, %v2984_v31, 0 }
 0x72a   :  { %2998 = vmatpush.bf16.msra.mxu1 %v2989_v18  ;;  %v3011_v26 = vpop.permute.xlu0 %3010 }
 0x72b   :  { %v3016_v36 = vsel %vm2609_vm5, %v3011_v26, 0 }
 0x72c   :  { %3025 = vmatpush.bf16.msrb.mxu2 %v3016_v36  ;;  %v5598_v37 = vpop.f32.mrf.mxu0 }
 0x72d   :  { %3640 = vmatmul.msk.bf16.vlgmr.msra.gmra.mxu1 %vm2214_vm6, %v2982_v45 }
 0x732   :  { %v2957_v58 = vpop.permute.xlu0 %2956 }
 0x733   :  { %v2962_v29 = vsel %vm2609_vm5, %v2957_v58, 0 }
 0x734   :  { %2971 = vmatpush.bf16.msrb.mxu0 %v2962_v29  ;;  %v5600_v52 = vpop.f32.mrf.mxu0 }
 0x73a   :  { %v5582_v28 = vpop.f32.mrf.mxu3 }
 0x73c   :  { %v2676_v19 = vpop.f32.mrf.mxu1  ;;  %v2757_v59 = vpop.f32.mrf.mxu0 }
 0x740   :  { %v2487_v50 = vpop.xlane.xlu2 %2486 }
 0x742   :  { %v5584_v32 = vpop.f32.mrf.mxu3 }
 0x744   :  { %v2678_v27 = vpop.f32.mrf.mxu1  ;;  %v2759_v34 = vpop.f32.mrf.mxu0 }
 0x745   :  { %v3816_v40 = vpack.i.bf16 %v2678_v27, %v2676_v19  ;;  %v3846_v9 = vpack.i.bf16 %v2759_v34, %v2757_v59 }
 0x747   :  { %3817 = vrot.lane.b32.xlu0 %v3816_v40, %s4328_s1 }
 0x74a   :  { %v2730_v3 = vpop.f32.mrf.mxu3 }
 0x74d   :  { %v2784_v56 = vpop.f32.mrf.mxu1 }
 0x752   :  { %v2732_v0 = vpop.f32.mrf.mxu3 }
 0x753   :  { %v2502_v22 = vpop.xlane.xlu1 %2501  ;;  %v3821_v38 = vpack.i.bf16 %v2732_v0, %v2730_v3  ;;  %v3758_v0 = vld [vmem:[#allocation11 + $0x20] sm:$0xff] }
 0x754   :  { %4102 = vrcp.f32 %v2502_v22  ;;  %v3759_v22 = vld [vmem:[#allocation11 + $0x28] sm:$0xff] }
 0x755   :  { %v2786_v33 = vpop.f32.mrf.mxu1  ;;  %4104 = vrcp.f32 %v2487_v50  ;;  %3822 = vrot.lane.b32.xlu2 %v3821_v38, %s4326_s5  ;;  %v3760_v50 = vld [vmem:[#allocation11 + $0x30] sm:$0xff]  ;;  %v3769_v38 = vld [vmem:[#allocation11 + $0x78] sm:$0xff] }
 0x756   :  { %v3826_v2 = vpack.i.bf16 %v2786_v33, %v2784_v56  ;;  %v3761_v56 = vld [vmem:[#allocation11 + $0x38] sm:$0xff]  ;;  %v3793_v33 = vpop.permute.xlu0 %3792  ;;  %3321 = vmatpush.bf16.msra.mxu0 %v3769_v38 }
 0x757   :  { %3240 = vmatpush.bf16.msrb.mxu3 %v3761_v56 }
 0x758   :  { %3827 = vrot.lane.b32.xlu0 %v3826_v2, %s4330_s19  ;;  %v3756_v2 = vld [vmem:[#allocation11 + $0x10] sm:$0xff] }
 0x75a   :  { %v4103_v61 = vpop.eup %4102  ;;  %3322 = vmatpush.bf16.msra.mxu0 %v3768_v23 }
 0x75b   :  { %v2566_v4 = vmul.f32 %v4103_v61, %v5532_v35  ;;  %v2490_v5 = vpop.xlane.xlu1 %2489  ;;  %v4105_v11 = vpop.eup %4104  ;;  %3241 = vmatpush.bf16.msrb.mxu3 %v3760_v50 }
 0x75c   :  { %4106 = vrcp.f32 %v2490_v5  ;;  %v2561_v47 = vmul.f32 %v4105_v11, %v5515_v53  ;;  %v3754_v11 = vld [vmem:[#allocation11] sm:$0xff] }
 0x75d   :  { %v2598_v42 = vpack.c.bf16 %v2566_v4, %v2566_v4 }
 0x75e   :  { %v2593_v48 = vpack.c.bf16 %v2561_v47, %v2561_v47  ;;  %3323 = vmatpush.bf16.msra.mxu0 %v3767_v17  ;;  %v3808_v5 = vpop.permute.xlu0 %3807 }
 0x75f   :  { %v3008_v46 = vunpack.c.l.b16 %v2598_v42  ;;  %3242 = vmatpush.bf16.msrb.mxu3 %v3759_v22  ;;  %v3765_v42 = vld [vmem:[#allocation11 + $0x58] sm:$0xff]  ;;  %v3810_v34 = vunpack.i.h.bf16 %v3808_v5 }
 0x760   :  { %3842 = vrot.lane.b32.xlu0 %v3841_v16, %s4327_s17  ;;  %v2953_v41 = vunpack.c.l.b16 %v2593_v48 }
 0x761   :  { %v3009_v24 = vpack.c.b16 %v3008_v46, %v3007_v20  ;;  %v3764_v46 = vld [vmem:[#allocation11 + $0x50] sm:$0xff] }
 0x762   :  { %v4107_v63 = vpop.eup %4106  ;;  %3324 = vmatpush.bf16.msra.mxu0 %v3766_v54 }
 0x763   :  { %v2562_v10 = vmul.f32 %v4107_v63, %v5536_v12  ;;  %3641 = vmatmul.msk.bf16.vlgmr.msrb.gmra.mxu2 %vm2214_vm6, %v3009_v24  ;;  %3243 = vmatpush.bf16.msrb.mxu3 %v3758_v0  ;;  %v3798_v63 = vpop.permute.xlu2 %3797 }
 0x765   :  { %v2594_v35 = vpack.c.bf16 %v2562_v10, %v2562_v10  ;;  %v3763_v10 = vld [vmem:[#allocation11 + $0x48] sm:$0xff] }
 0x766   :  { %3325 = vmatpush.bf16.msra.mxu0 %v3765_v42 }
 0x767   :  { %v2954_v44 = vunpack.c.l.b16 %v2594_v35  ;;  %3244 = vmatpush.bf16.msrb.mxu3 %v3757_v57 }
 0x769   :  { %v2955_v49 = vpack.c.b16 %v2954_v44, %v2953_v41  ;;  %v3762_v41 = vld [vmem:[#allocation11 + $0x40] sm:$0xff]  ;;  %v3795_v44 = vunpack.i.h.bf16 %v3793_v33 }
 0x76a   :  { %3326 = vmatpush.bf16.msra.mxu0 %v3764_v46 }
 0x76b   :  { %3639 = vmatmul.msk.bf16.vlgmr.msrb.gmra.mxu0 %vm2214_vm6, %v2955_v49  ;;  %3245 = vmatpush.bf16.msrb.mxu3 %v3756_v2  ;;  %v3794_v49 = vunpack.i.l.bf16 %v3793_v33  ;;  %v3813_v59 = vpop.permute.xlu2 %3812 }
 0x76e   :  { %3327 = vmatpush.bf16.msra.mxu0 %v3763_v10 }
 0x76f   :  { %3246 = vmatpush.bf16.msrb.mxu3 %v3755_v25 }
 0x772   :  { %3328 = vmatpush.bf16.msra.mxu0 %v3762_v41 }
 0x773   :  { %3247 = vmatpush.bf16.msrb.mxu3 %v3754_v11  ;;  %v3803_v48 = vpop.permute.xlu1 %3802 }
 0x779   :  { %v2703_v51 = vpop.f32.mrf.mxu2 }
 0x781   :  { %v2705_v53 = vpop.f32.mrf.mxu2  ;;  %v2838_v21 = vpop.f32.mrf.mxu3 }
 0x782   :  { %v3851_v62 = vpack.i.bf16 %v2705_v53, %v2703_v51  ;;  %v3800_v51 = vunpack.i.h.bf16 %v3798_v63  ;;  %v3799_v53 = vunpack.i.l.bf16 %v3798_v63 }
 0x783   :  { %v2892_v39 = vpop.f32.mrf.mxu1 }
 0x784   :  { %3852 = vrot.lane.b32.xlu2 %v3851_v62, %s4328_s1  ;;  %v3804_v62 = vunpack.i.l.bf16 %v3803_v48 }
 0x789   :  { %v2840_v12 = vpop.f32.mrf.mxu3  ;;  %v2865_v29 = vpop.f32.mrf.mxu0 }
 0x78a   :  { %v3831_v30 = vpack.i.bf16 %v2840_v12, %v2838_v21  ;;  %v3805_v21 = vunpack.i.h.bf16 %v3803_v48  ;;  %v5739_v12 = vld [vmem:[#allocation23_spill] sm:$0xff] }
 0x78b   :  { %v2894_v13 = vpop.f32.mrf.mxu1 }
 0x78c   :  { %v3856_v15 = vpack.i.bf16 %v2894_v13, %v2892_v39  ;;  %3832 = vrot.lane.b32.xlu1 %v3831_v30, %s4322_s15  ;;  %v1810_v30 = vsel %vm752_vm3, %v5739_v12, %v3795_v44  ;;  %v5740_v13 = vld [vmem:[#allocation22_spill] sm:$0xff] }
 0x78e   :  { %3857 = vrot.lane.b32.xlu0 %v3856_v15, %s4325_s4  ;;  %v1809_v15 = vsel %vm752_vm3, %v5740_v13, %v3794_v49 }
 0x78f   :  { %v1812_v55 = vsel %vm765_vm4, %v1809_v15, %v3799_v53 }
 0x790   :  { %v1815_v7 = vsel %vm1814_vm7, %v1812_v55, %v3804_v62 }
 0x791   :  { %v2867_v40 = vpop.f32.mrf.mxu0 }
 0x792   :  { %v3876_v3 = vpack.i.bf16 %v2867_v40, %v2865_v29 }
 0x793   :  { %v2811_v60 = vpop.f32.mrf.mxu2 }
 0x794   :  { %3837 = vrot.lane.b32.xlu1 %v5738_v8, %s4329_s18 }
 0x79b   :  { %v2813_v6 = vpop.f32.mrf.mxu2  ;;  %v2946_v1 = vpop.f32.mrf.mxu3 }
 0x79c   :  { %3847 = vrot.lane.b32.xlu1 %v3846_v9, %s4326_s5  ;;  %v3866_v58 = vpack.i.bf16 %v2813_v6, %v2811_v60  ;;  %v1813_v60 = vsel %vm765_vm4, %v1810_v30, %v3800_v51  ;;  %v3809_v9 = vunpack.i.l.bf16 %v3808_v5 }
 0x79d   :  { %v1816_v8 = vsel %vm1814_vm7, %v1813_v60, %v3805_v21 }
 0x79e   :  { %v1818_v6 = vsel %vm1817_vm8, %v1815_v7, %v3809_v9 }
 0x7a3   :  { %v2919_v31 = vpop.f32.mrf.mxu2  ;;  %v2948_v14 = vpop.f32.mrf.mxu3 }
 0x7a4   :  { %v3861_v18 = vpack.i.bf16 %v2948_v14, %v2946_v1  ;;  %v1819_v1 = vsel %vm1817_vm8, %v1816_v8, %v3810_v34  ;;  %v3815_v14 = vunpack.i.h.bf16 %v3813_v59 }
 0x7a6   :  { %3862 = vrot.lane.b32.xlu0 %v3861_v18, %s4329_s18  ;;  %v3814_v18 = vunpack.i.l.bf16 %v3813_v59  ;;  %v1822_v40 = vsel %vm1820_vm9, %v1819_v1, %v3815_v14 }
 0x7aa   :  { %v3000_v45 = vpop.f32.mrf.mxu1 }
 0x7ab   :  { %v2921_v26 = vpop.f32.mrf.mxu2 }
 0x7ac   :  { %v3881_v36 = vpack.i.bf16 %v2921_v26, %v2919_v31 }
 0x7ae   :  { %3882 = vrot.lane.b32.xlu1 %v3881_v36, %s4325_s4  ;;  %3867 = vrot.lane.b32.xlu0 %v3866_v58, %s4330_s19 }
 0x7af   :  { %v3823_v58 = vpop.permute.xlu2 %3822 }
 0x7b0   :  { %v3824_v5 = vunpack.i.l.bf16 %v3823_v58 }
 0x7b2   :  { %v3002_v19 = vpop.f32.mrf.mxu1 }
 0x7b3   :  { %v3871_v27 = vpack.i.bf16 %v3002_v19, %v3000_v45 }
 0x7b5   :  { %3872 = vrot.lane.b32.xlu2 %v3871_v27, %s4327_s17  ;;  %v1821_v27 = vsel %vm1820_vm9, %v1818_v6, %v3814_v18 }
 0x7b9   :  { %v3818_v24 = vpop.permute.xlu0 %3817 }
 0x7ba   :  { %v3820_v57 = vunpack.i.h.bf16 %v3818_v24  ;;  %v3819_v38 = vunpack.i.l.bf16 %v3818_v24 }
 0x7bc   :  { %v3145_v23 = vsel %vm752_vm3, %v5584_v32, %v3820_v57  ;;  %v3144_v25 = vsel %vm752_vm3, %v5582_v28, %v3819_v38 }
 0x7bd   :  { %3877 = vrot.lane.b32.xlu2 %v3876_v3, %s4322_s15 }
 0x7ca   :  { %v3828_v35 = vpop.permute.xlu0 %3827 }
 0x7cb   :  { %v3829_v17 = vunpack.i.l.bf16 %v3828_v35 }
 0x7d2   :  { %v3843_v31 = vpop.permute.xlu0 %3842 }
 0x7d3   :  { %v3845_v29 = vunpack.i.h.bf16 %v3843_v31  ;;  %v3844_v19 = vunpack.i.l.bf16 %v3843_v31 }
 0x7de   :  { %v3853_v33 = vpop.permute.xlu2 %3852 }
 0x7df   :  { %v3855_v13 = vunpack.i.h.bf16 %v3853_v33  ;;  %v3854_v15 = vunpack.i.l.bf16 %v3853_v33 }
 0x7e1   :  { %v3147_v34 = vsel %vm752_vm3, %v5600_v52, %v3855_v13  ;;  %v3146_v9 = vsel %vm752_vm3, %v5598_v37, %v3854_v15 }
 0x7e6   :  { %v3027_v61 = vpop.f32.mrf.mxu2 }
 0x7e8   :  { %v2973_v4 = vpop.f32.mrf.mxu0 }
 0x7ee   :  { %v3029_v43 = vpop.f32.mrf.mxu2 }
 0x7ef   :  { %v3891_v16 = vpack.i.bf16 %v3029_v43, %v3027_v61  ;;  %v3830_v61 = vunpack.i.h.bf16 %v3828_v35  ;;  %v3148_v43 = vsel %vm765_vm4, %v3144_v25, %v3824_v5  ;;  %v3901_v5 = vld [vmem:[%s5689_s6 + $0x1] ss:$0 sm:$0xff] }
 0x7f0   :  { %v2975_v20 = vpop.f32.mrf.mxu0  ;;  %v3152_v42 = vsel %vm1814_vm7, %v3148_v43, %v3829_v17 }
 0x7f1   :  { %v3886_v47 = vpack.i.bf16 %v2975_v20, %v2973_v4  ;;  %3892 = vrot.lane.b32.xlu2 %v3891_v16, %s4327_s17  ;;  %v3825_v4 = vunpack.i.h.bf16 %v3823_v58 }
 0x7f3   :  { %3887 = vrot.lane.b32.xlu0 %v3886_v47, %s4329_s18  ;;  %v3149_v16 = vsel %vm765_vm4, %v3145_v23, %v3825_v4  ;;  %v3900_v23 = vld [vmem:[%s5689_s6] ss:$0 sm:$0xff]  ;;  %s3365_s6 = sshll.u32 %s5691_s8, 4  ;;  %s3366_s6 = int_to_ptr.hbm [resolvable:$true] %s3365_s6 }
 0x7f4   :  { %v3153_v20 = vsel %vm1814_vm7, %v3149_v16, %v3830_v61 }
 0x7fe   :  { %v3833_v39 = vpop.permute.xlu1 %3832 }
 0x7ff   :  { %v3835_v11 = vunpack.i.h.bf16 %v3833_v39  ;;  %v3834_v54 = vunpack.i.l.bf16 %v3833_v39 }
 0x800   :  { %v3858_v2 = vpop.permute.xlu0 %3857 }
 0x801   :  { %v3860_v47 = vunpack.i.h.bf16 %v3858_v2  ;;  %v3859_v46 = vunpack.i.l.bf16 %v3858_v2  ;;  %v3156_v32 = vsel %vm1817_vm8, %v3152_v42, %v3834_v54  ;;  %v3157_v28 = vsel %vm1817_vm8, %v3153_v20, %v3835_v11 }
 0x803   :  { %v3160_v35 = vsel %vm1820_vm9, %v3156_v32, %v3859_v46  ;;  %v3161_v41 = vsel %vm1820_vm9, %v3157_v28, %v3860_v47 }
 0x806   :  { %v3838_v45 = vpop.permute.xlu1 %3837 }
 0x807   :  { %v3840_v26 = vunpack.i.h.bf16 %v3838_v45  ;;  %v3839_v36 = vunpack.i.l.bf16 %v3838_v45 }
 0x809   :  { %v1824_v3 = vsel %vm1823_vm10, %v1821_v27, %v3839_v36  ;;  %v1825_v56 = vsel %vm1823_vm10, %v1822_v40, %v3840_v26 }
 0x80a   :  { %v1827_v50 = vsel %vm1826_vm11, %v1824_v3, %v3844_v19  ;;  %v1828_v22 = vsel %vm1826_vm11, %v1825_v56, %v3845_v29 }
 0x80b   :  { %v1829_v0 = vpack.c.bf16 %v1828_v22, %v1827_v50 }
 0x80d   :  { %3248 = vmatmul.bf16.vlgmr.msrb.gmra.mxu3 %v1829_v0 }
 0x80e   :  { %v3848_v12 = vpop.permute.xlu1 %3847 }
 0x80f   :  { %v3873_v24 = vpop.permute.xlu2 %3872  ;;  %v3850_v59 = vunpack.i.h.bf16 %v3848_v12  ;;  %v3849_v60 = vunpack.i.l.bf16 %v3848_v12 }
 0x810   :  { %v3875_v44 = vunpack.i.h.bf16 %v3873_v24  ;;  %v3874_v49 = vunpack.i.l.bf16 %v3873_v24 }
 0x811   :  { %v3150_v6 = vsel %vm765_vm4, %v3146_v9, %v3849_v60  ;;  %v3151_v1 = vsel %vm765_vm4, %v3147_v34, %v3850_v59 }
 0x817   :  { %v3878_v55 = vpop.permute.xlu2 %3877 }
 0x818   :  { %v3863_v63 = vpop.permute.xlu0 %3862  ;;  %v3880_v18 = vunpack.i.h.bf16 %v3878_v55  ;;  %v3879_v45 = vunpack.i.l.bf16 %v3878_v55 }
 0x819   :  { %v3865_v48 = vunpack.i.h.bf16 %v3863_v63  ;;  %v3864_v10 = vunpack.i.l.bf16 %v3863_v63 }
 0x81b   :  { %v3164_v51 = vsel %vm1823_vm10, %v3160_v35, %v3864_v10  ;;  %v3165_v53 = vsel %vm1823_vm10, %v3161_v41, %v3865_v48 }
 0x81c   :  { %v3168_v21 = vsel %vm1826_vm11, %v3164_v51, %v3874_v49  ;;  %v3169_v62 = vsel %vm1826_vm11, %v3165_v53, %v3875_v44 }
 0x81d   :  { %v3172_v39 = vpack.c.bf16 %v3169_v62, %v3168_v21 }
 0x81f   :  { %3329 = vmatmul.bf16.vlgmr.msra.gmra.mxu0 %v3172_v39 }
 0x820   :  { %v3868_v30 = vpop.permute.xlu0 %3867  ;;  %v3883_v26 = vpop.permute.xlu1 %3882 }
 0x821   :  { %v3870_v7 = vunpack.i.h.bf16 %v3868_v30  ;;  %v3869_v8 = vunpack.i.l.bf16 %v3868_v30  ;;  %v3885_v52 = vunpack.i.h.bf16 %v3883_v26  ;;  %v3884_v19 = vunpack.i.l.bf16 %v3883_v26 }
 0x823   :  { %v3154_v31 = vsel %vm1814_vm7, %v3150_v6, %v3869_v8  ;;  %v3155_v14 = vsel %vm1814_vm7, %v3151_v1, %v3870_v7 }
 0x824   :  { %v3158_v36 = vsel %vm1817_vm8, %v3154_v31, %v3879_v45  ;;  %v3159_v58 = vsel %vm1817_vm8, %v3155_v14, %v3880_v18 }
 0x825   :  { %v3162_v50 = vsel %vm1820_vm9, %v3158_v36, %v3884_v19  ;;  %v3163_v22 = vsel %vm1820_vm9, %v3159_v58, %v3885_v52 }
 0x84b   :  { %v3893_v29 = vpop.permute.xlu2 %3892 }
 0x84c   :  { %v3895_v3 = vunpack.i.h.bf16 %v3893_v29  ;;  %v3894_v56 = vunpack.i.l.bf16 %v3893_v29 }
 0x865   :  { %v3888_v27 = vpop.permute.xlu0 %3887 }
 0x866   :  { %v3890_v37 = vunpack.i.h.bf16 %v3888_v27  ;;  %v3889_v40 = vunpack.i.l.bf16 %v3888_v27 }
 0x868   :  { %v3166_v0 = vsel %vm1823_vm10, %v3162_v50, %v3889_v40  ;;  %v3167_v57 = vsel %vm1823_vm10, %v3163_v22, %v3890_v37 }
 0x869   :  { %v3170_v38 = vsel %vm1826_vm11, %v3166_v0, %v3894_v56  ;;  %v3171_v33 = vsel %vm1826_vm11, %v3167_v57, %v3895_v3 }
 0x86a   :  { %v3173_v2 = vpack.c.bf16 %v3171_v33, %v3170_v38 }
 0x86c   :  { %3334 = vmatmul.bf16.gmra.mxu0 %v3173_v2 }
 0x890   :  { %v3249_v25 = vpop.f32.mrf.mxu3 }
 0x891   :  { %v3250_v61 = vadd.f32 %v3900_v23, %v3249_v25 }
 0x893   :  { %3340 = vst [vmem:[#allocation13] sm:$0xff] %v3250_v61 }
 0x898   :  { %v3251_v17 = vpop.f32.mrf.mxu3 }
 0x899   :  { %v3252_v4 = vadd.f32 %v3900_v23, %v3251_v17 }
 0x89b   :  { %3341 = vst [vmem:[#allocation13 + $0x8] sm:$0xff] %v3252_v4 }
 0x89c   :  { %3358 = dma.vmem_to_hbm [thread:$0]  %s3351_s22, 256, %s3353_s25, [#allocation4], %s4313_s13, %s4313_s13, %s4314_s14   ;;  %v3330_v11 = vpop.f32.mrf.mxu0 }
 0x89d   :  { %v3331_v54 = vadd.f32 %v3901_v5, %v3330_v11 }
 0x89f   :  { %3342 = vst [vmem:[#allocation14] sm:$0xff] %v3331_v54 }
 0x8a4   :  { %v3332_v43 = vpop.f32.mrf.mxu0 }
 0x8a5   :  { %v3333_v16 = vadd.f32 %v3901_v5, %v3332_v43 }
 0x8a7   :  { %3343 = vst [vmem:[#allocation14 + $0x8] sm:$0xff] %v3333_v16 }
 0x8e9   :  { %v3335_v42 = vpop.f32.mrf.mxu0 }
 0x8ea   :  { %v3336_v20 = vadd.f32 %v3901_v5, %v3335_v42 }
 0x8ec   :  { %3344 = vst [vmem:[#allocation14 + $0x10] sm:$0xff] %v3336_v20 }
 0x8f1   :  { %v3337_v47 = vpop.f32.mrf.mxu0 }
 0x8f2   :  { %v3338_v46 = vadd.f32 %v3901_v5, %v3337_v47 }
 0x8f4   :  { %3345 = vst [vmem:[#allocation14 + $0x18] sm:$0xff] %v3338_v46 }
 0x8f5   :  { %3371 = dma.vmem_to_hbm [thread:$0]  %s3364_s28, 512, %s3366_s6, [#allocation15], %s4313_s13, %s4313_s13, %s4314_s14  }
 0x8f6   :  { %4308 = dma.done.wait [#allocation4], 256  }
 0x8f7   :  { %4309 = vsyncadd [#allocation4], 4294967040 }
 0x8f8   :  { %4310 = dma.done.wait [#allocation15], 512  }
 0x8f9   :  { %4311 = vsyncadd [#allocation15], 4294966784 }
 0x8fa   :  { %3380 = vsyncpa [#allocation3], 1 }
 0x8fb   :  { %3381 = vsyncpa [#allocation6], 1 }
 0x8fc   :  { %3382 = vsyncpa [#allocation9], 1 }
 0x8fd   :  { %3383 = vsyncpa [#allocation12], 1 }
 0x8fe   :  { %3384 = vsyncpa [#allocation4], 1 }
 0x8ff   :  { %3385 = vsyncpa [#allocation15], 1 }

// kernel: tpu_custom_call.1
= control target key start
LH: loop header
LB: loop body
LE: loop exit
PB: predicated region body
PF: predicated region fallthrough
CT: control target
= control target key end

     0   :  { %14 = vsyncpa [#allocation3], 0  ;;  %s5683_s0 = inlined_call_operand.hbm [shape: f32[2,8,128], index: 0, kind: input, shape index: {}]   ;;  %s5684_s1 = inlined_call_operand.hbm [shape: f32[2,16,128], index: 1, kind: input, shape index: {}]   ;;  %s5685_s2 = inlined_call_operand.hbm [shape: f32[4,128], index: 2, kind: input, shape index: {}]   ;;  %s5686_s3 = inlined_call_operand.hbm [shape: bf16[2,128,384], index: 3, kind: input, shape index: {}]   ;;  %s5687_s4 = inlined_call_operand.hbm [shape: f32[2,384], index: 4, kind: input, shape index: {}]   ;;  %s5688_s5 = inlined_call_operand.hbm [shape: bf16[2,128,128], index: 5, kind: input, shape index: {}]   ;;  %s5689_s6 = inlined_call_operand.vmem [shape: f32[2,128], index: 6, kind: input, shape index: {}]   ;;  %s5690_s7 = inlined_call_operand.hbm [shape: f32[2,8,128], index: 7, kind: output, shape index: {0}]   ;;  %s5691_s8 = inlined_call_operand.hbm [shape: f32[2,16,128], index: 8, kind: output, shape index: {1}]  }
   0x1   :  { %15 = vsyncpa [#allocation6], 0 }
   0x2   :  { %16 = vsyncpa [#allocation9], 0 }
   0x3   :  { %17 = vsyncpa [#allocation12], 0 }
   0x4   :  { %18 = vsyncpa [#allocation4], 0 }
   0x5   :  { %19 = vsyncpa [#allocation15], 0  ;;  %s37_s29 = sshll.u32 %s5684_s1, 4  ;;  %s4312_s30 = smov [#allocation5]   ;;  %s38_s29 = int_to_ptr.hbm [resolvable:$true] %s37_s29 }
   0x6   :  { %s39_s9 = sshll.u32 %s4312_s30, 4  ;;  %s61_s12 = sshll.u32 %s5686_s3, 4  ;;  %s40_s9 = int_to_ptr.vmem [resolvable:$true] %s39_s9  ;;  %s62_s12 = int_to_ptr.hbm [resolvable:$true] %s61_s12 }
   0x7   :  { %s4313_s13 = smov 128   ;;  %s4314_s14 = smov 8  }
   0x8   :  { %45 = dma.hbm_to_vmem [thread:$0]  %s38_s29, 512, %s40_s9, [#allocation6], %s4313_s13, %s4313_s13, %s4314_s14  }
   0x9   :  { %s4315_s15 = smov [#allocation8]   ;;  %s4316_s17 = smov 192  }
   0xa   :  { %s63_s16 = sshll.u32 %s4315_s15, 4  ;;  %s4317_s1 = smov 12   ;;  %s64_s16 = int_to_ptr.vmem [resolvable:$true] %s63_s16 }
   0xb   :  { %69 = dma.hbm_to_vmem [thread:$0]  %s62_s12, 6144, %s64_s16, [#allocation9], %s4316_s17, %s4316_s17, %s4317_s1  }
   0xc   :  { %s24_s20 = sshll.u32 %s5683_s0, 4  ;;  %s4318_s21 = smov [#allocation2]   ;;  %s25_s20 = int_to_ptr.hbm [resolvable:$true] %s24_s20 }
   0xd   :  { %s26_s3 = sshll.u32 %s4318_s21, 4  ;;  %s51_s24 = sshll.u32 %s5685_s2, 4  ;;  %s27_s3 = int_to_ptr.vmem [resolvable:$true] %s26_s3  ;;  %s52_s24 = int_to_ptr.hbm [resolvable:$true] %s51_s24 }
   0xe   :  { %32 = dma.hbm_to_vmem [thread:$0]  %s25_s20, 256, %s27_s3, [#allocation3], %s4313_s13, %s4313_s13, %s4314_s14  }
   0xf   :  { %s4319_s25 = smov [#allocation7]   ;;  %s75_s29 = sshll.u32 %s5687_s4, 4  ;;  %s76_s29 = int_to_ptr.hbm [resolvable:$true] %s75_s29 }
  0x10   :  { %s53_s26 = sshll.u32 %s4319_s25, 4  ;;  %s85_s9 = sshll.u32 %s5688_s5, 4  ;;  %s54_s26 = int_to_ptr.vmem [resolvable:$true] %s53_s26  ;;  %s86_s9 = int_to_ptr.hbm [resolvable:$true] %s85_s9 }
  0x11   :  { %56 = dma.hbm_to_vmem [thread:$0]  %s52_s24, 64, %s54_s26, [#allocation6]  }
  0x12   :  { %s4320_s10 = smov [#allocation10]   ;;  %s4321_s11 = smov [#allocation11]  }
  0x13   :  { %s77_s2 = sshll.u32 %s4320_s10, 4  ;;  %s87_s12 = sshll.u32 %s4321_s11, 4  ;;  %s78_s2 = int_to_ptr.vmem [resolvable:$true] %s77_s2  ;;  %s88_s12 = int_to_ptr.vmem [resolvable:$true] %s87_s12 }
  0x14   :  { %80 = dma.hbm_to_vmem [thread:$0]  %s76_s29, 96, %s78_s2, [#allocation9]  }
  0x15   :  { %s4322_s15 = smov 64   ;;  %s4323_s16 = smov 4  }
  0x16   :  { %93 = dma.hbm_to_vmem [thread:$0]  %s86_s9, 2048, %s88_s12, [#allocation12], %s4322_s15, %s4322_s15, %s4323_s16  }
  0x17   :  { %4300 = dma.done.wait [#allocation3], 256  }
  0x18   :  { %4301 = vsyncadd [#allocation3], 4294967040 }
  0x19   :  { %4302 = dma.done.wait [#allocation6], 576  }
  0x1a   :  { %4303 = vsyncadd [#allocation6], 4294966720 }
  0x1b   :  { %4304 = dma.done.wait [#allocation9], 6240  }
  0x1c   :  { %4305 = vsyncadd [#allocation9], 4294961056 }
  0x1d   :  { %4306 = dma.done.wait [#allocation12], 2048  }
  0x1e   :  { %4307 = vsyncadd [#allocation12], 4294965248  ;;  %v125_v0 = vld [vmem:[#allocation5 + $0x10] sm:$0xff]  ;;  %v123_v1 = vld [vmem:[#allocation5] sm:$0xff]  ;;  %v4324_v6 = vmov 128.0   ;;  %s4325_s4 = smov 80  }
  0x1f   :  { %v121_v2 = vld [vmem:[#allocation2] sm:$0xff]  ;;  %189 = vadd.xlane.f32.xlu1 %v125_v0  ;;  %185 = vadd.xlane.f32.xlu0 %v123_v1  ;;  %v126_v3 = vld [vmem:[#allocation5 + $0x18] sm:$0xff]  ;;  %v124_v4 = vld [vmem:[#allocation5 + $0x8] sm:$0xff]  ;;  %3902 = vrcp.f32 %v4324_v6  ;;  %s4326_s5 = smov 32   ;;  %s4327_s17 = smov 112  }
  0x20   :  { %129 = vadd.xlane.f32.xlu2 %v121_v2  ;;  %v122_v5 = vld [vmem:[#allocation2 + $0x8] sm:$0xff]  ;;  %v3472_v11 = vld [vmem:[#allocation8 + $0xa8] sm:$0xf]  ;;  %v3460_v13 = vld [vmem:[#allocation8 + $0x90] sm:$0xf]  ;;  %s4328_s1 = smov 16  }
  0x21   :  { %v3728_v12 = vld [vmem:[#allocation8 + $0xb0] sm:$0xf0]  ;;  %v3725_v15 = vld [vmem:[#allocation8 + $0x98] sm:$0xf0]  ;;  %v3448_v18 = vld [vmem:[#allocation8 + $0x78] sm:$0xf] }
  0x22   :  { %v3473_v14 = vor.u32 %v3728_v12, %v3472_v11  ;;  %v3461_v17 = vor.u32 %v3725_v15, %v3460_v13  ;;  %v3722_v19 = vld [vmem:[#allocation8 + $0x80] sm:$0xf0]  ;;  %v3436_v46 = vld [vmem:[#allocation8 + $0x60] sm:$0xf]  ;;  %v3719_v47 = vld [vmem:[#allocation8 + $0x68] sm:$0xf0] }
  0x23   :  { %v3449_v21 = vor.u32 %v3722_v19, %v3448_v18  ;;  %v3437_v48 = vor.u32 %v3719_v47, %v3436_v46  ;;  %v3424_v49 = vld [vmem:[#allocation8 + $0x48] sm:$0xf]  ;;  %v3716_v50 = vld [vmem:[#allocation8 + $0x50] sm:$0xf0]  ;;  %v3751_v54 = vld [vmem:[#allocation8 + $0x16c] sm:$0xf] }
  0x24   :  { %445 = vmatpush.bf16.msra.mxu1 %v3473_v14  ;;  %v3425_v51 = vor.u32 %v3716_v50, %v3424_v49  ;;  %v3568_v52 = vld [vmem:[#allocation8 + $0x168] sm:$0xf]  ;;  %v3752_v53 = vld [vmem:[#allocation8 + $0x170] sm:$0xf0]  ;;  %v3570_v56 = vld [vmem:[#allocation8 + $0x174] sm:$0xf0] }
  0x25   :  { %v3903_v7 = vpop.eup %3902  ;;  %v3569_v55 = vor.u32 %v3752_v53, %v3568_v52  ;;  %v3573_v57 = vor.u32 %v3751_v54, %v3570_v56  ;;  %v3412_v58 = vld [vmem:[#allocation8 + $0x30] sm:$0xf]  ;;  %v3713_v59 = vld [vmem:[#allocation8 + $0x38] sm:$0xf0]  ;;  %v3748_v63 = vld [vmem:[#allocation8 + $0x154] sm:$0xf] }
  0x26   :  { %v134_v8 = vmul.f32 128.0, %v3903_v7  ;;  %vm138_vm0 = vweird.f32 %v3903_v7  ;;  %v3413_v60 = vor.u32 %v3713_v59, %v3412_v58  ;;  %v3556_v61 = vld [vmem:[#allocation8 + $0x150] sm:$0xf]  ;;  %v3749_v62 = vld [vmem:[#allocation8 + $0x158] sm:$0xf0]  ;;  %s4329_s18 = smov 96  }
  0x27   :  { %191 = vadd.xlane.f32.xlu1 %v126_v3  ;;  %187 = vadd.xlane.f32.xlu0 %v124_v4  ;;  %v3480_v6 = vld [vmem:[#allocation8 + $0xb0] sm:$0xf]  ;;  %v3745_v11 = vld [vmem:[#allocation8 + $0x13c] sm:$0xf]  ;;  %v3546_v12 = vld [vmem:[#allocation8 + $0x144] sm:$0xf0] }
  0x28   :  { %131 = vadd.xlane.f32.xlu2 %v122_v5  ;;  %v135_v9 = vsub.f32 1.0, %v134_v8  ;;  %446 = vmatpush.bf16.msra.mxu1 %v3461_v17  ;;  %v3544_v8 = vld [vmem:[#allocation8 + $0x138] sm:$0xf]  ;;  %v3549_v14 = vor.u32 %v3745_v11, %v3546_v12  ;;  %v3388_v15 = vld [vmem:[#allocation8] sm:$0xf]  ;;  %s4330_s19 = smov 48  }
  0x29   :  { %661 = vmatpush.bf16.msra.mxu3 %v3569_v55  ;;  %680 = vmatpush.bf16.msra.mxu0 %v3573_v57  ;;  %v3727_v18 = vld [vmem:[#allocation8 + $0xac] sm:$0xf]  ;;  %v3474_v19 = vld [vmem:[#allocation8 + $0xb4] sm:$0xf0]  ;;  %v3721_v49 = vld [vmem:[#allocation8 + $0x7c] sm:$0xf] }
  0x2a   :  { %v136_v10 = vmul.f32 %v3903_v7, %v135_v9  ;;  %v3522_v46 = vld [vmem:[#allocation8 + $0x114] sm:$0xf0]  ;;  %v3450_v50 = vld [vmem:[#allocation8 + $0x84] sm:$0xf0]  ;;  %v3720_v53 = vld [vmem:[#allocation8 + $0x70] sm:$0xf0] }
  0x2b   :  { %v3444_v52 = vld [vmem:[#allocation8 + $0x68] sm:$0xf]  ;;  %v3508_v54 = vld [vmem:[#allocation8 + $0xf0] sm:$0xf]  ;;  %v3737_v56 = vld [vmem:[#allocation8 + $0xf8] sm:$0xf0] }
  0x2c   :  { %v137_v16 = vadd.f32 %v3903_v7, %v136_v10  ;;  %447 = vmatpush.bf16.msra.mxu1 %v3449_v21  ;;  %v3746_v10 = vld [vmem:[#allocation8 + $0x140] sm:$0xf0]  ;;  %v3477_v21 = vor.u32 %v3727_v18, %v3474_v19  ;;  %v3445_v55 = vor.u32 %v3720_v53, %v3444_v52  ;;  %v3736_v57 = vld [vmem:[#allocation8 + $0xf4] sm:$0xf]  ;;  %v3510_v58 = vld [vmem:[#allocation8 + $0xfc] sm:$0xf0]  ;;  %v3509_v59 = vor.u32 %v3737_v56, %v3508_v54 }
  0x2d   :  { %v3545_v13 = vor.u32 %v3746_v10, %v3544_v8  ;;  %v3498_v8 = vld [vmem:[#allocation8 + $0xe4] sm:$0xf0]  ;;  %v3714_v18 = vld [vmem:[#allocation8 + $0x40] sm:$0xf0]  ;;  %v3484_v19 = vld [vmem:[#allocation8 + $0xc0] sm:$0xf] }
  0x2e   :  { %v4404_v20 = vsel %vm138_vm0, %v3903_v7, %v137_v16  ;;  %v3729_v7 = vld [vmem:[#allocation8 + $0xb8] sm:$0xf0]  ;;  %v3707_v16 = vld [vmem:[#allocation8 + $0x8] sm:$0xf0]  ;;  %s4331_s3 = smov [#allocation13]   ;;  %s3352_s25 = sshll.u32 %s5690_s7, 4  ;;  %s3353_s25 = int_to_ptr.hbm [resolvable:$true] %s3352_s25 }
  0x2f   :  { %v3481_v9 = vor.u32 %v3729_v7, %v3480_v6  ;;  %v3389_v17 = vor.u32 %v3707_v16, %v3388_v15  ;;  %v3734_v6 = vld [vmem:[#allocation8 + $0xe0] sm:$0xf0]  ;;  %v3733_v7 = vld [vmem:[#allocation8 + $0xdc] sm:$0xf]  ;;  %s3350_s22 = sshll.u32 %s4331_s3, 4  ;;  %s4332_s7 = smov [#allocation14]   ;;  %s3351_s22 = int_to_ptr.vmem [resolvable:$true] %s3350_s22 }
  0x30   :  { %448 = vmatpush.bf16.msra.mxu1 %v3437_v48  ;;  %v3501_v11 = vor.u32 %v3733_v7, %v3498_v8  ;;  %s3363_s28 = sshll.u32 %s4332_s7, 4  ;;  %s3364_s28 = int_to_ptr.vmem [resolvable:$true] %s3363_s28 }
  0x31   :  { %473 = vmatpush.bf16.msra.mxu2 %v3481_v9 }
  0x34   :  { %449 = vmatpush.bf16.msra.mxu1 %v3425_v51  ;;  %v3453_v51 = vor.u32 %v3721_v49, %v3450_v50 }
  0x38   :  { %450 = vmatpush.bf16.msra.mxu1 %v3413_v60  ;;  %v3513_v60 = vor.u32 %v3736_v57, %v3510_v58  ;;  %v3706_v58 = vld [vmem:[#allocation8 + $0x4] sm:$0xf] }
  0x92   :  { %v190_v22 = vpop.xlane.xlu1 %189  ;;  %v186_v23 = vpop.xlane.xlu0 %185 }
  0x93   :  { %v195_v24 = vmul.f32 %v190_v22, %v4404_v20  ;;  %v193_v25 = vmul.f32 %v186_v23, %v4404_v20  ;;  %v130_v26 = vpop.xlane.xlu2 %129  ;;  %v3468_v22 = vld [vmem:[#allocation8 + $0x98] sm:$0xf]  ;;  %v3726_v23 = vld [vmem:[#allocation8 + $0xa0] sm:$0xf0] }
  0x94   :  { %v140_v37 = vmul.f32 %v4404_v20, %v130_v26  ;;  %v3743_v26 = vld [vmem:[#allocation8 + $0x128] sm:$0xf0] }
  0x95   :  { %v4408_v27 = vsub.f32 %v123_v1, %v193_v25  ;;  %v4410_v28 = vsub.f32 %v125_v0, %v195_v24  ;;  %v3557_v0 = vor.u32 %v3749_v62, %v3556_v61  ;;  %v3558_v1 = vld [vmem:[#allocation8 + $0x15c] sm:$0xf0]  ;;  %v3469_v25 = vor.u32 %v3726_v23, %v3468_v22  ;;  %v3718_v61 = vld [vmem:[#allocation8 + $0x64] sm:$0xf]  ;;  %v3438_v62 = vld [vmem:[#allocation8 + $0x6c] sm:$0xf0] }
  0x96   :  { %v4432_v44 = vsub.f32 %v121_v2, %v140_v37  ;;  %v3561_v2 = vor.u32 %v3748_v63, %v3558_v1  ;;  %v3532_v24 = vld [vmem:[#allocation8 + $0x120] sm:$0xf]  ;;  %v3723_v37 = vld [vmem:[#allocation8 + $0x88] sm:$0xf0]  ;;  %v3441_v63 = vor.u32 %v3718_v61, %v3438_v62  ;;  %v3717_v1 = vld [vmem:[#allocation8 + $0x58] sm:$0xf0] }
  0x97   :  { %v201_v29 = vmul.f32 %v4408_v27, %v4408_v27  ;;  %v203_v30 = vmul.f32 %v4410_v28, %v4410_v28  ;;  %662 = vmatpush.bf16.msra.mxu3 %v3557_v0  ;;  %474 = vmatpush.bf16.msra.mxu2 %v3469_v25  ;;  %v3432_v0 = vld [vmem:[#allocation8 + $0x50] sm:$0xf]  ;;  %v3730_v23 = vld [vmem:[#allocation8 + $0xc4] sm:$0xf] }
  0x98   :  { %v144_v45 = vmul.f32 %v4432_v44, %v4432_v44  ;;  %681 = vmatpush.bf16.msra.mxu0 %v3561_v2  ;;  %v3496_v2 = vld [vmem:[#allocation8 + $0xd8] sm:$0xf] }
  0x99   :  { %205 = vadd.xlane.f32.xlu0 %v201_v29  ;;  %209 = vadd.xlane.f32.xlu2 %v203_v30  ;;  %v3742_v29 = vld [vmem:[#allocation8 + $0x124] sm:$0xf]  ;;  %v3534_v30 = vld [vmem:[#allocation8 + $0x12c] sm:$0xf0]  ;;  %v3497_v10 = vor.u32 %v3734_v6, %v3496_v2 }
  0x9a   :  { %v192_v31 = vpop.xlane.xlu1 %191  ;;  %v188_v32 = vpop.xlane.xlu0 %187 }
  0x9b   :  { %v196_v33 = vmul.f32 %v192_v31, %v4404_v20  ;;  %v194_v34 = vmul.f32 %v188_v32, %v4404_v20  ;;  %v132_v35 = vpop.xlane.xlu2 %131  ;;  %663 = vmatpush.bf16.msra.mxu3 %v3545_v13  ;;  %v3533_v31 = vor.u32 %v3743_v26, %v3532_v24  ;;  %v3537_v32 = vor.u32 %v3742_v29, %v3534_v30  ;;  %v3715_v13 = vld [vmem:[#allocation8 + $0x4c] sm:$0xf]  ;;  %v3486_v24 = vld [vmem:[#allocation8 + $0xcc] sm:$0xf0]  ;;  %v3712_v30 = vld [vmem:[#allocation8 + $0x34] sm:$0xf] }
  0x9c   :  { %v141_v36 = vmul.f32 %v4404_v20, %v132_v35  ;;  %682 = vmatpush.bf16.msra.mxu0 %v3549_v14  ;;  %v3426_v14 = vld [vmem:[#allocation8 + $0x54] sm:$0xf0]  ;;  %v3489_v29 = vor.u32 %v3730_v23, %v3486_v24  ;;  %v3896_v23 = vld [vmem:[#allocation7 + $0x2] ss:$0 sm:$0xff] }
  0x9d   :  { %v4420_v38 = vsub.f32 %v126_v3, %v196_v33  ;;  %v4422_v39 = vsub.f32 %v124_v4, %v194_v34  ;;  %v3400_v3 = vld [vmem:[#allocation8 + $0x18] sm:$0xf]  ;;  %v3710_v4 = vld [vmem:[#allocation8 + $0x20] sm:$0xf0]  ;;  %v3724_v33 = vld [vmem:[#allocation8 + $0x94] sm:$0xf]  ;;  %v3429_v16 = vor.u32 %v3715_v13, %v3426_v14 }
  0x9e   :  { %v4424_v40 = vsub.f32 %v122_v5, %v141_v36  ;;  %v3401_v5 = vor.u32 %v3710_v4, %v3400_v3  ;;  %v3462_v34 = vld [vmem:[#allocation8 + $0x9c] sm:$0xf0] }
  0x9f   :  { %v204_v41 = vmul.f32 %v4420_v38, %v4420_v38  ;;  %v202_v42 = vmul.f32 %v4422_v39, %v4422_v39  ;;  %664 = vmatpush.bf16.msra.mxu3 %v3533_v31  ;;  %v3465_v35 = vor.u32 %v3724_v33, %v3462_v34  ;;  %v3456_v36 = vld [vmem:[#allocation8 + $0x80] sm:$0xf]  ;;  %v3711_v34 = vld [vmem:[#allocation8 + $0x28] sm:$0xf0] }
  0xa0   :  { %v145_v43 = vmul.f32 %v4424_v40, %v4424_v40  ;;  %451 = vmatpush.bf16.msra.mxu1 %v3401_v5  ;;  %683 = vmatpush.bf16.msra.mxu0 %v3537_v32  ;;  %v3433_v5 = vor.u32 %v3717_v1, %v3432_v0  ;;  %v3414_v31 = vld [vmem:[#allocation8 + $0x3c] sm:$0xf0] }
  0xa1   :  { %211 = vadd.xlane.f32.xlu0 %v204_v41  ;;  %207 = vadd.xlane.f32.xlu1 %v202_v42  ;;  %v3520_v41 = vld [vmem:[#allocation8 + $0x108] sm:$0xf]  ;;  %v3457_v42 = vor.u32 %v3723_v37, %v3456_v36  ;;  %v3417_v32 = vor.u32 %v3712_v30, %v3414_v31  ;;  %v3408_v33 = vld [vmem:[#allocation8 + $0x20] sm:$0xf] }
  0xa2   :  { %148 = vadd.xlane.f32.xlu2 %v145_v43  ;;  %v3740_v43 = vld [vmem:[#allocation8 + $0x110] sm:$0xf0]  ;;  %v525_v30 = vld [vmem:[#allocation10 + $0x1] ss:$2 sm:$0x7] }
  0xa3   :  { %v3521_v47 = vor.u32 %v3740_v43, %v3520_v41  ;;  %475 = vmatpush.bf16.msra.mxu2 %v3457_v42  ;;  %v3409_v41 = vor.u32 %v3711_v34, %v3408_v33  ;;  %v3402_v42 = vld [vmem:[#allocation8 + $0x24] sm:$0xf0] }
  0xa4   :  { %452 = vmatpush.bf16.msra.mxu1 %v3389_v17  ;;  %v3420_v17 = vld [vmem:[#allocation8 + $0x38] sm:$0xf]  ;;  %v3396_v43 = vld [vmem:[#allocation8 + $0x8] sm:$0xf] }
  0xa5   :  { %665 = vmatpush.bf16.msra.mxu3 %v3521_v47  ;;  %v3421_v22 = vor.u32 %v3714_v18, %v3420_v17 }
  0xa7   :  { %476 = vmatpush.bf16.msra.mxu2 %v3445_v55 }
  0xa8   :  { %459 = vmatpush.bf16.msrb.mxu1 %v3477_v21  ;;  %v3731_v21 = vld [vmem:[#allocation8 + $0xc8] sm:$0xf0] }
  0xa9   :  { %146 = vadd.xlane.f32.xlu1 %v144_v45  ;;  %v3739_v45 = vld [vmem:[#allocation8 + $0x10c] sm:$0xf]  ;;  %666 = vmatpush.bf16.msra.mxu3 %v3509_v59  ;;  %v3485_v26 = vor.u32 %v3731_v21, %v3484_v19  ;;  %v3390_v59 = vld [vmem:[#allocation8 + $0xc] sm:$0xf0] }
  0xaa   :  { %v3525_v48 = vor.u32 %v3739_v45, %v3522_v46  ;;  %v3708_v45 = vld [vmem:[#allocation8 + $0x10] sm:$0xf0] }
  0xab   :  { %477 = vmatpush.bf16.msra.mxu2 %v3433_v5  ;;  %v3397_v54 = vor.u32 %v3708_v45, %v3396_v43 }
  0xac   :  { %460 = vmatpush.bf16.msrb.mxu1 %v3465_v35  ;;  %684 = vmatpush.bf16.msra.mxu0 %v3525_v48  ;;  %v3709_v35 = vld [vmem:[#allocation8 + $0x1c] sm:$0xf] }
  0xad   :  { %667 = vmatpush.bf16.msra.mxu3 %v3497_v10  ;;  %v3405_v49 = vor.u32 %v3709_v35, %v3402_v42 }
  0xaf   :  { %478 = vmatpush.bf16.msra.mxu2 %v3421_v22 }
  0xb0   :  { %461 = vmatpush.bf16.msrb.mxu1 %v3453_v51  ;;  %685 = vmatpush.bf16.msra.mxu0 %v3513_v60  ;;  %v3393_v60 = vor.u32 %v3706_v58, %v3390_v59 }
  0xb1   :  { %668 = vmatpush.bf16.msra.mxu3 %v3485_v26 }
  0xb3   :  { %479 = vmatpush.bf16.msra.mxu2 %v3409_v41 }
  0xb4   :  { %462 = vmatpush.bf16.msrb.mxu1 %v3441_v63  ;;  %686 = vmatpush.bf16.msra.mxu0 %v3501_v11 }
  0xb7   :  { %480 = vmatpush.bf16.msra.mxu2 %v3397_v54 }
  0xb8   :  { %463 = vmatpush.bf16.msrb.mxu1 %v3429_v16  ;;  %687 = vmatpush.bf16.msra.mxu0 %v3489_v29 }
  0xbc   :  { %464 = vmatpush.bf16.msrb.mxu1 %v3417_v32 }
  0xc0   :  { %465 = vmatpush.bf16.msrb.mxu1 %v3405_v49 }
  0xc4   :  { %466 = vmatpush.bf16.msrb.mxu1 %v3393_v60  ;;  %v3576_v60 = vld [vmem:[#allocation8 + $0x170] sm:$0xf] }
 0x10c   :  { %v206_v3 = vpop.xlane.xlu0 %205  ;;  %v210_v4 = vpop.xlane.xlu2 %209 }
 0x10d   :  { %v213_v9 = vmul.f32 %v206_v3, %v4404_v20  ;;  %v215_v12 = vmul.f32 %v210_v4, %v4404_v20 }
 0x10f   :  { %v4438_v15 = vadd.f32 1e-05, %v213_v9  ;;  %v4441_v25 = vadd.f32 1e-05, %v215_v12 }
 0x111   :  { %3904 = vrsqrt.f32 %v4438_v15  ;;  %vm227_vm2 = vweird.f32 %v4438_v15  ;;  %vm247_vm14 = vweird.f32 %v4441_v25 }
 0x112   :  { %3906 = vrsqrt.f32 %v4441_v25 }
 0x114   :  { %v208_v36 = vpop.xlane.xlu1 %207  ;;  %v212_v37 = vpop.xlane.xlu0 %211 }
 0x115   :  { %v214_v46 = vmul.f32 %v208_v36, %v4404_v20  ;;  %v216_v47 = vmul.f32 %v212_v37, %v4404_v20  ;;  %v149_v48 = vpop.xlane.xlu2 %148  ;;  %v3897_v37 = vld [vmem:[#allocation7 + $0x3] ss:$0 sm:$0xff] }
 0x116   :  { %v151_v50 = vmul.f32 %v149_v48, %v4404_v20 }
 0x117   :  { %v3905_v51 = vpop.eup %3904  ;;  %v218_v52 = vadd.f32 1e-05, %v214_v46  ;;  %v4447_v53 = vadd.f32 1e-05, %v216_v47 }
 0x118   :  { %v222_v55 = vmul.f32 %v3905_v51, %v4438_v15  ;;  %v153_v56 = vadd.f32 1e-05, %v151_v50  ;;  %v4451_v61 = vpop.eup %3906  ;;  %vm228_vm1 = vweird.f32 %v3905_v51  ;;  %v3898_v50 = vld [vmem:[#allocation7] ss:$0 sm:$0xff] }
 0x119   :  { %3908 = vrsqrt.f32 %v218_v52  ;;  %v242_v3 = vmul.f32 %v4451_v61, %v4441_v25  ;;  %vm229_vm3 = vmor %vm227_vm2, %vm228_vm1  ;;  %vm237_vm7 = vweird.f32 %v218_v52  ;;  %vm257_vm9 = vweird.f32 %v4447_v53 }
 0x11a   :  { %v223_v57 = vmul.f32 %v3905_v51, %v222_v55  ;;  %3910 = vrsqrt.f32 %v4447_v53  ;;  %vm170_vm5 = vweird.f32 %v153_v56  ;;  %vm248_vm15 = vweird.f32 %v4451_v61 }
 0x11b   :  { %3912 = vrsqrt.f32 %v153_v56  ;;  %v243_v11 = vmul.f32 %v4451_v61, %v242_v3  ;;  %vm4485_vm2 = vmor %vm247_vm14, %vm248_vm15 }
 0x11c   :  { %v224_v62 = vmul.f32 0.5, %v223_v57  ;;  %v147_v63 = vpop.xlane.xlu1 %146 }
 0x11d   :  { %v150_v0 = vmul.f32 %v147_v63, %v4404_v20  ;;  %v244_v22 = vmul.f32 0.5, %v243_v11 }
 0x11e   :  { %v225_v1 = vsub.f32 1.5, %v224_v62  ;;  %v3753_v62 = vld [vmem:[#allocation8 + $0x178] sm:$0xf0] }
 0x11f   :  { %v3909_v2 = vpop.eup %3908  ;;  %v152_v4 = vadd.f32 1e-05, %v150_v0  ;;  %v245_v35 = vsub.f32 1.5, %v244_v22  ;;  %v3577_v3 = vor.u32 %v3753_v62, %v3576_v60  ;;  %v3504_v22 = vld [vmem:[#allocation8 + $0xe0] sm:$0xf] }
 0x120   :  { %v4456_v5 = vpop.eup %3910  ;;  %v226_v6 = vmul.f32 %v3905_v51, %v225_v1  ;;  %v232_v7 = vmul.f32 %v3909_v2, %v218_v52  ;;  %vm238_vm4 = vweird.f32 %v3909_v2 }
 0x121   :  { %v3913_v8 = vpop.eup %3912  ;;  %v252_v9 = vmul.f32 %v4456_v5, %v4447_v53  ;;  %3914 = vrsqrt.f32 %v152_v4  ;;  %vm239_vm8 = vmor %vm237_vm7, %vm238_vm4  ;;  %vm258_vm11 = vweird.f32 %v4456_v5  ;;  %vm160_vm12 = vweird.f32 %v152_v4 }
 0x122   :  { %v233_v20 = vmul.f32 %v3909_v2, %v232_v7  ;;  %v165_v10 = vmul.f32 %v3913_v8, %v153_v56  ;;  %v230_v13 = vsel %vm229_vm3, %v3905_v51, %v226_v6  ;;  %vm171_vm6 = vweird.f32 %v3913_v8  ;;  %vm4479_vm0 = vmor %vm257_vm9, %vm258_vm11  ;;  %v3750_v6 = vld [vmem:[#allocation8 + $0x160] sm:$0xf0] }
 0x123   :  { %v253_v12 = vmul.f32 %v4456_v5, %v252_v9  ;;  %v261_v15 = vmul.f32 %v230_v13, %v4408_v27  ;;  %vm4466_vm10 = vmor %vm170_vm5, %vm171_vm6  ;;  %v246_v51 = vmul.f32 %v4451_v61, %v245_v35  ;;  %v3552_v9 = vld [vmem:[#allocation8 + $0x140] sm:$0xf]  ;;  %v3744_v13 = vld [vmem:[#allocation8 + $0x130] sm:$0xf0]  ;;  %vm752_vm3 = vcmask 130048  }
 0x124   :  { %v234_v14 = vmul.f32 0.5, %v233_v20  ;;  %v166_v16 = vmul.f32 %v3913_v8, %v165_v10  ;;  %v3747_v20 = vld [vmem:[#allocation8 + $0x148] sm:$0xf0]  ;;  %vm765_vm4 = vcmask 261120   ;;  %vm2609_vm5 = vcmask 1043456  }
 0x125   :  { %v254_v18 = vmul.f32 0.5, %v253_v12  ;;  %v266_v36 = vmul.f32 %v3896_v23, %v261_v15  ;;  %v250_v58 = vsel %vm4485_vm2, %v4451_v61, %v246_v51  ;;  %v3540_v12 = vld [vmem:[#allocation8 + $0x128] sm:$0xf]  ;;  %v3735_v15 = vld [vmem:[#allocation8 + $0xe8] sm:$0xf0]  ;;  %vm2214_vm6 = vcmask 64512  }
 0x126   :  { %v235_v17 = vsub.f32 1.5, %v234_v14  ;;  %v167_v19 = vmul.f32 0.5, %v166_v16  ;;  %v3528_v14 = vld [vmem:[#allocation8 + $0x110] sm:$0xf]  ;;  %v3741_v16 = vld [vmem:[#allocation8 + $0x118] sm:$0xf0] }
 0x127   :  { %v3915_v21 = vpop.eup %3914  ;;  %v255_v32 = vsub.f32 1.5, %v254_v18  ;;  %v271_v47 = vadd.f32 %v3897_v37, %v266_v36  ;;  %v3516_v18 = vld [vmem:[#allocation8 + $0xf8] sm:$0xf]  ;;  %vm1814_vm7 = vcmask 392192   ;;  %vm1820_vm9 = vcmask 654336  }
 0x128   :  { %v236_v24 = vmul.f32 %v3909_v2, %v235_v17  ;;  %v168_v26 = vsub.f32 1.5, %v167_v19  ;;  %v155_v29 = vmul.f32 %v3915_v21, %v152_v4  ;;  %vm161_vm13 = vweird.f32 %v3915_v21  ;;  %v3738_v19 = vld [vmem:[#allocation8 + $0x100] sm:$0xf0] }
 0x129   :  { %v256_v45 = vmul.f32 %v4456_v5, %v255_v32  ;;  %vm162_vm1 = vmor %vm160_vm12, %vm161_vm13  ;;  %v3529_v17 = vor.u32 %v3741_v16, %v3528_v14  ;;  %v528_v32 = vperm.slane %v525_v30, 1  ;;  %vm1826_vm11 = vcmask 916480  }
 0x12a   :  { %v240_v31 = vsel %vm239_vm8, %v3909_v2, %v236_v24  ;;  %v169_v33 = vmul.f32 %v3913_v8, %v168_v26  ;;  %v156_v34 = vmul.f32 %v3915_v21, %v155_v29  ;;  %v263_v2 = vmul.f32 %v250_v58, %v4410_v28  ;;  %v3492_v24 = vld [vmem:[#allocation8 + $0xc8] sm:$0xf]  ;;  %v3732_v26 = vld [vmem:[#allocation8 + $0xd0] sm:$0xf0] }
 0x12b   :  { %v262_v27 = vmul.f32 %v240_v31, %v4422_v39  ;;  %v260_v53 = vsel %vm4479_vm0, %v4456_v5, %v256_v45  ;;  %v3564_v5 = vld [vmem:[#allocation8 + $0x158] sm:$0xf]  ;;  %v3541_v28 = vor.u32 %v3744_v13, %v3540_v12  ;;  %v3493_v29 = vor.u32 %v3732_v26, %v3492_v24 }
 0x12c   :  { %v173_v41 = vsel %vm4466_vm10, %v3913_v8, %v169_v33  ;;  %v157_v42 = vmul.f32 0.5, %v156_v34  ;;  %v264_v63 = vmul.f32 %v260_v53, %v4420_v38  ;;  %v268_v7 = vmul.f32 %v3896_v23, %v263_v2 }
 0x12d   :  { %v267_v43 = vmul.f32 %v3896_v23, %v262_v27  ;;  %v175_v49 = vmul.f32 %v173_v41, %v4424_v40  ;;  %v3899_v40 = vld [vmem:[#allocation7 + $0x1] ss:$0 sm:$0xff]  ;;  %v3565_v8 = vor.u32 %v3750_v6, %v3564_v5  ;;  %v3553_v38 = vor.u32 %v3747_v20, %v3552_v9 }
 0x12e   :  { %v158_v39 = vsub.f32 1.5, %v157_v42  ;;  %v273_v10 = vadd.f32 %v3897_v37, %v268_v7  ;;  %v527_v33 = vperm.slane %v525_v30, 0  ;;  %vm1817_vm8 = vcmask 523264  }
 0x12f   :  { %v272_v48 = vadd.f32 %v3897_v37, %v267_v43  ;;  %v178_v57 = vmul.f32 %v3898_v50, %v175_v49  ;;  %vm1823_vm10 = vcmask 785408  }
 0x130   :  { %v159_v25 = vmul.f32 %v3915_v21, %v158_v39 }
 0x131   :  { %v275_v54 = vpack.c.bf16 %v272_v48, %v271_v47  ;;  %v181_v1 = vadd.f32 %v3899_v40, %v178_v57  ;;  %v4501_v47 = vld [vmem:[#allocation10] ss:$2 sm:$0x7] }
 0x132   :  { %v163_v55 = vsel %vm162_vm1, %v3915_v21, %v159_v25  ;;  %v3517_v21 = vor.u32 %v3738_v19, %v3516_v18  ;;  %v311_v48 = vperm.slane %v4501_v47, 0  ;;  %v312_v49 = vperm.slane %v4501_v47, 1 }
 0x133   :  { %669 = vmatmul.bf16.vlgmr.msra.gmra.mxu3 %v275_v54  ;;  %688 = vmatmul.bf16.vlgmr.msra.gmra.mxu0 %v275_v54  ;;  %v174_v56 = vmul.f32 %v163_v55, %v4432_v44  ;;  %v269_v44 = vmul.f32 %v3896_v23, %v264_v63  ;;  %v3505_v23 = vor.u32 %v3735_v15, %v3504_v22 }
 0x135   :  { %v177_v59 = vmul.f32 %v3898_v50, %v174_v56  ;;  %v274_v61 = vadd.f32 %v3897_v37, %v269_v44  ;;  %v529_v44 = vperm.slane %v525_v30, 2 }
 0x137   :  { %v180_v0 = vadd.f32 %v3899_v40, %v177_v59  ;;  %v276_v11 = vpack.c.bf16 %v274_v61, %v273_v10 }
 0x139   :  { %v182_v4 = vpack.c.bf16 %v181_v1, %v180_v0 }
 0x13b   :  { %453 = vmatmul.bf16.vlgmr.msra.gmra.mxu1 %v182_v4  ;;  %481 = vmatmul.bf16.vlgmr.msra.gmra.mxu2 %v182_v4 }
 0x13c   :  { %699 = vmatpush.bf16.msra.mxu1 %v3577_v3 }
 0x140   :  { %700 = vmatpush.bf16.msra.mxu1 %v3565_v8 }
 0x143   :  { %674 = vmatmul.bf16.gmra.mxu3 %v276_v11  ;;  %693 = vmatmul.bf16.gmra.mxu0 %v276_v11 }
 0x144   :  { %701 = vmatpush.bf16.msra.mxu1 %v3553_v38 }
 0x148   :  { %702 = vmatpush.bf16.msra.mxu1 %v3541_v28 }
 0x14b   :  { %467 = vmatmul.bf16.vlgmr.msrb.gmra.mxu1 %v182_v4 }
 0x14c   :  { %703 = vmatpush.bf16.msra.mxu1 %v3529_v17 }
 0x150   :  { %704 = vmatpush.bf16.msra.mxu1 %v3517_v21 }
 0x154   :  { %705 = vmatpush.bf16.msra.mxu1 %v3505_v23 }
 0x158   :  { %706 = vmatpush.bf16.msra.mxu1 %v3493_v29 }
 0x15b   :  { %707 = vmatmul.bf16.vlgmr.msra.gmra.mxu1 %v275_v54 }
 0x16b   :  { %712 = vmatmul.bf16.gmra.mxu1 %v276_v11 }
 0x1b0   :  { %v689_v31 = vpop.f32.mrf.mxu0 }
 0x1b1   :  { %v690_v35 = vadd.f32 %v689_v31, %v528_v32 }
 0x1b6   :  { %v670_v34 = vpop.f32.mrf.mxu3 }
 0x1b7   :  { %v671_v27 = vadd.f32 %v670_v34, %v527_v33 }
 0x1b8   :  { %v454_v36 = vpop.f32.mrf.mxu1  ;;  %v691_v41 = vpop.f32.mrf.mxu0 }
 0x1b9   :  { %v718_v37 = vpack.c.bf16 %v690_v35, %v671_v27  ;;  %v692_v43 = vadd.f32 %v691_v41, %v528_v32  ;;  %v455_v51 = vadd.f32 %v454_v36, %v311_v48 }
 0x1bb   :  { %832 = vrot.lane.b32.xlu0 %v718_v37, %s4325_s4  ;;  %840 = vrot.lane.b32.xlu1 %v718_v37, %s4326_s5  ;;  %v872_v58 = vunpack.c.l.b16 %v718_v37 }
 0x1bc   :  { %780 = vrot.lane.b32.xlu2 %v718_v37, %s4327_s17 }
 0x1be   :  { %v672_v42 = vpop.f32.mrf.mxu3 }
 0x1bf   :  { %v673_v45 = vadd.f32 %v672_v42, %v527_v33 }
 0x1c0   :  { %v456_v46 = vpop.f32.mrf.mxu1  ;;  %v694_v53 = vpop.f32.mrf.mxu0 }
 0x1c1   :  { %v720_v39 = vpack.c.bf16 %v692_v43, %v673_v45  ;;  %v695_v56 = vadd.f32 %v694_v53, %v528_v32  ;;  %v457_v5 = vadd.f32 %v456_v46, %v311_v48 }
 0x1c3   :  { %842 = vrot.lane.b32.xlu0 %v720_v39, %s4326_s5  ;;  %808 = vrot.lane.b32.xlu1 %v718_v37, %s4328_s1  ;;  %v873_v57 = vunpack.c.l.b16 %v720_v39 }
 0x1c4   :  { %792 = vrot.lane.b32.xlu2 %v718_v37, %s4322_s15 }
 0x1c5   :  { %v4516_v59 = vpack.c.b16 %v873_v57, %v872_v58 }
 0x1c6   :  { %v675_v52 = vpop.f32.mrf.mxu3 }
 0x1c7   :  { %v676_v55 = vadd.f32 %v675_v52, %v527_v33 }
 0x1c8   :  { %v468_v50 = vpop.f32.mrf.mxu1  ;;  %v696_v63 = vpop.f32.mrf.mxu0 }
 0x1c9   :  { %v469_v25 = vadd.f32 %v468_v50, %v312_v49  ;;  %v722_v40 = vpack.c.bf16 %v695_v56, %v676_v55  ;;  %v697_v1 = vadd.f32 %v696_v63, %v528_v32  ;;  %v482_v56 = vpop.f32.mrf.mxu2 }
 0x1cb   :  { %v4508_v54 = vpack.c.bf16 %v469_v25, %v455_v51  ;;  %812 = vrot.lane.b32.xlu0 %v720_v39, %s4328_s1  ;;  %834 = vrot.lane.b32.xlu1 %v720_v39, %s4325_s4  ;;  %v897_v20 = vunpack.c.l.b16 %v722_v40 }
 0x1cd   :  { %755 = vrot.lane.b32.xlu2 %v4508_v54, %s4325_s4 }
 0x1ce   :  { %v677_v60 = vpop.f32.mrf.mxu3 }
 0x1cf   :  { %v678_v0 = vadd.f32 %v677_v60, %v527_v33 }
 0x1d0   :  { %v470_v62 = vpop.f32.mrf.mxu1 }
 0x1d1   :  { %v724_v2 = vpack.c.bf16 %v697_v1, %v678_v0  ;;  %v471_v4 = vadd.f32 %v470_v62, %v312_v49 }
 0x1d3   :  { %782 = vrot.lane.b32.xlu1 %v720_v39, %s4327_s17  ;;  %784 = vrot.lane.b32.xlu0 %v722_v40, %s4327_s17  ;;  %v4527_v6 = vpack.c.bf16 %v471_v4, %v457_v5  ;;  %v898_v9 = vunpack.c.l.b16 %v724_v2  ;;  %v484_v4 = vpop.f32.mrf.mxu2 }
 0x1d5   :  { %875 = vrot.lane.b32.xlu2 %v4516_v59, %s4327_s17  ;;  %v4536_v38 = vpack.c.b16 %v898_v9, %v897_v20 }
 0x1d8   :  { %v708_v3 = vpop.f32.mrf.mxu1 }
 0x1d9   :  { %v709_v7 = vadd.f32 %v708_v3, %v529_v44 }
 0x1db   :  { %794 = vrot.lane.b32.xlu1 %v720_v39, %s4322_s15  ;;  %844 = vrot.lane.b32.xlu0 %v722_v40, %s4326_s5  ;;  %v719_v61 = vpack.c.bf16 %v709_v7, %v709_v7 }
 0x1dd   :  { %836 = vrot.lane.b32.xlu2 %v722_v40, %s4325_s4 }
 0x1e0   :  { %v710_v8 = vpop.f32.mrf.mxu1 }
 0x1e1   :  { %v711_v11 = vadd.f32 %v710_v8, %v529_v44 }
 0x1e3   :  { %838 = vrot.lane.b32.xlu0 %v724_v2, %s4325_s4  ;;  %759 = vrot.lane.b32.xlu1 %v4508_v54, %s4326_s5  ;;  %v4542_v13 = vpack.c.bf16 %v711_v11, %v711_v11 }
 0x1e5   :  { %816 = vrot.lane.b32.xlu2 %v722_v40, %s4328_s1 }
 0x1e8   :  { %v713_v10 = vpop.f32.mrf.mxu1 }
 0x1e9   :  { %v714_v12 = vadd.f32 %v713_v10, %v529_v44 }
 0x1eb   :  { %796 = vrot.lane.b32.xlu0 %v722_v40, %s4322_s15  ;;  %757 = vrot.lane.b32.xlu1 %v4527_v6, %s4325_s4  ;;  %v723_v28 = vpack.c.bf16 %v714_v12, %v714_v12 }
 0x1ed   :  { %786 = vrot.lane.b32.xlu2 %v724_v2, %s4327_s17 }
 0x1f0   :  { %v715_v14 = vpop.f32.mrf.mxu1 }
 0x1f1   :  { %v716_v16 = vadd.f32 %v715_v14, %v529_v44  ;;  %v313_v44 = vperm.slane %v4501_v47, 2 }
 0x1f3   :  { %856 = vrot.lane.b32.xlu0 %v719_v61, %s4329_s18  ;;  %820 = vrot.lane.b32.xlu1 %v724_v2, %s4328_s1  ;;  %v4549_v17 = vpack.c.bf16 %v716_v16, %v716_v16  ;;  %v485_v8 = vadd.f32 %v484_v4, %v313_v44 }
 0x1f5   :  { %846 = vrot.lane.b32.xlu2 %v724_v2, %s4326_s5  ;;  %v490_v20 = vpack.c.bf16 %v485_v8, %v485_v8 }
 0x1fb   :  { %900 = vrot.lane.b32.xlu0 %v4536_v38, %s4327_s17  ;;  %810 = vrot.lane.b32.xlu1 %v719_v61, %s4328_s1 }
 0x1fd   :  { %798 = vrot.lane.b32.xlu2 %v724_v2, %s4322_s15 }
 0x203   :  { %814 = vrot.lane.b32.xlu0 %v4542_v13, %s4328_s1  ;;  %868 = vrot.lane.b32.xlu1 %v723_v28, %s4330_s19 }
 0x205   :  { %858 = vrot.lane.b32.xlu2 %v4542_v13, %s4329_s18 }
 0x20b   :  { %822 = vrot.lane.b32.xlu1 %v4549_v17, %s4328_s1 }
 0x20d   :  { %818 = vrot.lane.b32.xlu2 %v723_v28, %s4328_s1 }
 0x216   :  { %v781_v18 = vpop.permute.xlu2 %780 }
 0x217   :  { %v788_v46 = vrot.slane %v781_v18, 4 }
 0x219   :  { %v1017_v51 = vunpack.c.l.b16 %v788_v46 }
 0x21e   :  { %v793_v19 = vpop.permute.xlu2 %792 }
 0x21f   :  { %v800_v58 = vrot.slane %v793_v19, 4 }
 0x221   :  { %v1065_v2 = vunpack.c.l.b16 %v800_v58 }
 0x227   :  { %v4554_v21 = vpop.permute.xlu2 %755 }
 0x22d   :  { %v833_v22 = vpop.permute.xlu0 %832  ;;  %v841_v15 = vpop.permute.xlu1 %840 }
 0x22e   :  { %v848_v26 = vrot.slane %v841_v15, 4  ;;  %v921_v42 = vunpack.c.l.b16 %v833_v22 }
 0x22f   :  { %v876_v23 = vpop.permute.xlu2 %875 }
 0x230   :  { %v882_v24 = vsel %vm752_vm3, %v876_v23, 0  ;;  %v852_v31 = vsel %vm765_vm4, %v841_v15, %v848_v26 }
 0x231   :  { %891 = vmatpush.bf16.xpose.msrb.mxu2 %v882_v24  ;;  %v969_v34 = vunpack.c.l.b16 %v852_v31 }
 0x235   :  { %v843_v29 = vpop.permute.xlu0 %842  ;;  %v4557_v30 = vpop.permute.xlu1 %808 }
 0x236   :  { %v849_v32 = vrot.slane %v843_v29, 4 }
 0x237   :  { %v837_v27 = vpop.permute.xlu2 %836 }
 0x238   :  { %v853_v33 = vsel %vm765_vm4, %v843_v29, %v849_v32  ;;  %3578 = vmatmul.msk.bf16.vlgmr.msrb.gmra.mxu2 %vm752_vm3, %v4508_v54  ;;  %v945_v63 = vunpack.c.l.b16 %v837_v27  ;;  %v824_v29 = vrot.slane %v4557_v30, 4 }
 0x239   :  { %v970_v35 = vunpack.c.l.b16 %v853_v33 }
 0x23b   :  { %v4563_v36 = vpack.c.b16 %v970_v35, %v969_v34 }
 0x23d   :  { %v4565_v37 = vpop.permute.xlu0 %812  ;;  %v835_v41 = vpop.permute.xlu1 %834  ;;  %972 = vrot.lane.b32.xlu0 %v4563_v36, %s4327_s17 }
 0x23e   :  { %v922_v43 = vunpack.c.l.b16 %v835_v41  ;;  %v483_v41 = vadd.f32 %v482_v56, %v313_v44 }
 0x23f   :  { %v4573_v39 = vpop.permute.xlu2 %816 }
 0x240   :  { %v4569_v45 = vpack.c.b16 %v922_v43, %v921_v42  ;;  %v4640_v46 = vpack.c.bf16 %v483_v41, %v483_v41 }
 0x242   :  { %924 = vrot.lane.b32.xlu1 %v4569_v45, %s4327_s17 }
 0x245   :  { %v783_v48 = vpop.permute.xlu1 %782  ;;  %v785_v49 = vpop.permute.xlu0 %784 }
 0x246   :  { %v789_v50 = vrot.slane %v783_v48, 4  ;;  %v790_v11 = vrot.slane %v785_v49, 4 }
 0x247   :  { %v787_v57 = vpop.permute.xlu2 %786 }
 0x248   :  { %v1018_v25 = vunpack.c.l.b16 %v789_v50  ;;  %v791_v10 = vrot.slane %v787_v57, 4  ;;  %v1041_v14 = vunpack.c.l.b16 %v790_v11  ;;  %v826_v11 = vrot.slane %v4573_v39, 4 }
 0x24a   :  { %864 = vrot.lane.b32.xlu1 %v719_v61, %s4330_s19  ;;  %v4576_v52 = vpack.c.b16 %v1018_v25, %v1017_v51  ;;  %v1042_v12 = vunpack.c.l.b16 %v791_v10 }
 0x24c   :  { %1020 = vrot.lane.b32.xlu2 %v4576_v52, %s4327_s17  ;;  %v4607_v18 = vpack.c.b16 %v1042_v12, %v1041_v14 }
 0x24d   :  { %v795_v53 = vpop.permute.xlu1 %794  ;;  %v4580_v55 = vpop.permute.xlu0 %844 }
 0x24e   :  { %v801_v40 = vrot.slane %v795_v53, 4  ;;  %v850_v42 = vrot.slane %v4580_v55, 4 }
 0x24f   :  { %v847_v5 = vpop.permute.xlu2 %846 }
 0x250   :  { %v1066_v0 = vunpack.c.l.b16 %v801_v40 }
 0x252   :  { %860 = vrot.lane.b32.xlu1 %v723_v28, %s4329_s18  ;;  %v4594_v7 = vpack.c.b16 %v1066_v0, %v1065_v2 }
 0x254   :  { %728 = vrot.lane.b32.xlu2 %v4508_v54, %s4327_s17 }
 0x255   :  { %v839_v60 = vpop.permute.xlu0 %838  ;;  %v4585_v62 = vpop.permute.xlu1 %759 }
 0x256   :  { %v946_v1 = vunpack.c.l.b16 %v839_v60 }
 0x257   :  { %v799_v47 = vpop.permute.xlu2 %798 }
 0x258   :  { %v4587_v3 = vpack.c.b16 %v946_v1, %v945_v63  ;;  %v803_v25 = vrot.slane %v799_v47, 4 }
 0x25a   :  { %746 = vrot.lane.b32.xlu1 %v4527_v6, %s4328_s1  ;;  %948 = vrot.lane.b32.xlu0 %v4587_v3, %s4327_s17 }
 0x25c   :  { %1068 = vrot.lane.b32.xlu2 %v4594_v7, %s4327_s17 }
 0x25d   :  { %v797_v61 = vpop.permute.xlu0 %796  ;;  %v4598_v9 = vpop.permute.xlu1 %757 }
 0x25e   :  { %v802_v51 = vrot.slane %v797_v61, 4 }
 0x25f   :  { %v859_v19 = vpop.permute.xlu2 %858 }
 0x260   :  { %v1162_v24 = vunpack.c.l.b16 %v859_v19  ;;  %v1089_v53 = vunpack.c.l.b16 %v802_v51 }
 0x262   :  { %748 = vrot.lane.b32.xlu1 %v490_v20, %s4328_s1  ;;  %870 = vrot.lane.b32.xlu0 %v4549_v17, %s4330_s19 }
 0x264   :  { %730 = vrot.lane.b32.xlu2 %v4527_v6, %s4327_s17 }
 0x265   :  { %v857_v28 = vpop.permute.xlu0 %856  ;;  %v4605_v16 = vpop.permute.xlu1 %820 }
 0x266   :  { %v1161_v15 = vunpack.c.l.b16 %v857_v28  ;;  %v827_v10 = vrot.slane %v4605_v16, 4 }
 0x267   :  { %v819_v57 = vpop.permute.xlu2 %818 }
 0x268   :  { %v4617_v31 = vpack.c.b16 %v1162_v24, %v1161_v15  ;;  %v830_v12 = vsel %vm752_vm3, %v826_v11, %v819_v57 }
 0x26a   :  { %866 = vrot.lane.b32.xlu0 %v4542_v13, %s4330_s19  ;;  %1044 = vrot.lane.b32.xlu1 %v4607_v18, %s4327_s17  ;;  %v825_v13 = vrot.slane %v4565_v37, 4  ;;  %v851_v37 = vrot.slane %v847_v5, 4 }
 0x26c   :  { %742 = vrot.lane.b32.xlu2 %v4508_v54, %s4328_s1  ;;  %v855_v43 = vsel %vm765_vm4, %v847_v5, %v851_v37 }
 0x26d   :  { %v901_v22 = vpop.permute.xlu0 %900  ;;  %v811_v26 = vpop.permute.xlu1 %810  ;;  %v994_v48 = vunpack.c.l.b16 %v855_v43 }
 0x26e   :  { %v906_v23 = vsel %vm752_vm3, %v901_v22, 0  ;;  %v828_v32 = vsel %vm752_vm3, %v824_v29, %v811_v26  ;;  %v1137_v22 = vunpack.c.l.b16 %v830_v12 }
 0x26f   :  { %915 = vmatpush.bf16.xpose.msra.mxu2 %v906_v23  ;;  %v1113_v30 = vunpack.c.l.b16 %v828_v32  ;;  %v763_v23 = vrot.slane %v4585_v62, 4 }
 0x271   :  { %v4692_v39 = vsel %vm765_vm4, %v4585_v62, %v763_v23 }
 0x272   :  { %734 = vrot.lane.b32.xlu0 %v4508_v54, %s4322_s15  ;;  %736 = vrot.lane.b32.xlu1 %v4527_v6, %s4322_s15 }
 0x274   :  { %1164 = vrot.lane.b32.xlu2 %v4617_v31, %s4327_s17 }
 0x275   :  { %v815_v33 = vpop.permute.xlu0 %814  ;;  %v869_v40 = vpop.permute.xlu1 %868 }
 0x276   :  { %v829_v34 = vsel %vm752_vm3, %v825_v13, %v815_v33  ;;  %3579 = vmatmul.msk.bf16.vlgmr.msra.gmra.mxu2 %vm752_vm3, %v4527_v6 }
 0x277   :  { %v1114_v35 = vunpack.c.l.b16 %v829_v34 }
 0x279   :  { %v4630_v27 = vpack.c.b16 %v1114_v35, %v1113_v30  ;;  %v1233_v30 = vunpack.c.l.b16 %v869_v40 }
 0x27a   :  { %862 = vrot.lane.b32.xlu0 %v4549_v17, %s4329_s18  ;;  %1487 = vrot.lane.b32.xlu1 %v4569_v45, %s4329_s18  ;;  %v854_v17 = vsel %vm765_vm4, %v4580_v55, %v850_v42  ;;  %v1090_v55 = vunpack.c.l.b16 %v803_v25 }
 0x27b   :  { %v993_v49 = vunpack.c.l.b16 %v854_v17 }
 0x27c   :  { %1116 = vrot.lane.b32.xlu2 %v4630_v27, %s4327_s17  ;;  %v4658_v56 = vpack.c.b16 %v1090_v55, %v1089_v53 }
 0x27d   :  { %v4650_v50 = vpack.c.b16 %v994_v48, %v993_v49  ;;  %v823_v60 = vpop.permute.xlu1 %822 }
 0x27e   :  { %v831_v47 = vsel %vm752_vm3, %v827_v10, %v823_v60 }
 0x27f   :  { %v1138_v14 = vunpack.c.l.b16 %v831_v47 }
 0x281   :  { %v4686_v24 = vpack.c.b16 %v1138_v14, %v1137_v22 }
 0x282   :  { %761 = vrot.lane.b32.xlu0 %v4527_v6, %s4326_s5  ;;  %1563 = vrot.lane.b32.xlu1 %v4576_v52, %s4329_s18 }
 0x284   :  { %744 = vrot.lane.b32.xlu2 %v4640_v46, %s4328_s1 }
 0x28a   :  { %996 = vrot.lane.b32.xlu0 %v4650_v50, %s4327_s17  ;;  %1677 = vrot.lane.b32.xlu1 %v4617_v31, %s4329_s18 }
 0x292   :  { %768 = vrot.lane.b32.xlu0 %v4640_v46, %s4329_s18 }
 0x29a   :  { %1092 = vrot.lane.b32.xlu0 %v4658_v56, %s4327_s17 }
 0x2a2   :  { %774 = vrot.lane.b32.xlu0 %v490_v20, %s4330_s19 }
 0x2a6   :  { %v1021_v58 = vpop.permute.xlu2 %1020 }
 0x2a7   :  { %v1026_v13 = vsel %vm752_vm3, %v1021_v58, 0 }
 0x2aa   :  { %770 = vrot.lane.b32.xlu0 %v490_v20, %s4329_s18 }
 0x2ae   :  { %v4664_v63 = vpop.permute.xlu2 %728 }
 0x2af   :  { %v973_v0 = vpop.permute.xlu0 %972  ;;  %v732_v40 = vrot.slane %v4664_v63, 4 }
 0x2b0   :  { %v978_v4 = vsel %vm752_vm3, %v973_v0, 0 }
 0x2b2   :  { %1506 = vrot.lane.b32.xlu0 %v4587_v3, %s4329_s18 }
 0x2b4   :  { %v925_v1 = vpop.permute.xlu1 %924 }
 0x2b5   :  { %v930_v2 = vsel %vm752_vm3, %v925_v1, 0 }
 0x2b6   :  { %939 = vmatpush.bf16.xpose.msrb.mxu3 %v930_v2  ;;  %v1069_v5 = vpop.permute.xlu2 %1068 }
 0x2b7   :  { %v1074_v61 = vsel %vm752_vm3, %v1069_v5, 0 }
 0x2ba   :  { %1601 = vrot.lane.b32.xlu0 %v4594_v7, %s4329_s18 }
 0x2bb   :  { %v4672_v44 = vpop.f32.mrf.mxu2 }
 0x2bc   :  { %v865_v8 = vpop.permute.xlu1 %864 }
 0x2bd   :  { %3580 = vmatmul.msk.bf16.vlgmr.msrb.gmra.mxu3 %vm752_vm3, %v4554_v21  ;;  %v1209_v48 = vunpack.c.l.b16 %v865_v8 }
 0x2be   :  { %987 = vmatpush.bf16.xpose.msra.mxu3 %v978_v4  ;;  %v4677_v20 = vpop.permute.xlu2 %730 }
 0x2bf   :  { %v5694_v5 = vrot.slane %v4677_v20, 4 }
 0x2c2   :  { %1544 = vrot.lane.b32.xlu0 %v4650_v50, %s4329_s18 }
 0x2c3   :  { %v895_v28 = vpop.f32.mrf.mxu2 }
 0x2c4   :  { %v861_v19 = vpop.permute.xlu1 %860 }
 0x2c5   :  { %v1185_v1 = vunpack.c.l.b16 %v861_v19 }
 0x2c6   :  { %1083 = vmatpush.bf16.xpose.msrb.mxu3 %v1074_v61  ;;  %v743_v15 = vpop.permute.xlu2 %742 }
 0x2c7   :  { %v750_v49 = vrot.slane %v743_v15, 4 }
 0x2ca   :  { %1658 = vrot.lane.b32.xlu0 %v4686_v24, %s4329_s18 }
 0x2cc   :  { %v4694_v16 = vpop.permute.xlu1 %746  ;;  %v949_v26 = vpop.permute.xlu0 %948 }
 0x2cd   :  { %v954_v29 = vsel %vm752_vm3, %v949_v26, 0  ;;  %3582 = vmatmul.msk.bf16.vlgmr.msra.gmra.mxu3 %vm752_vm3, %v4692_v39  ;;  %v1257_v26 = vsel %vm752_vm3, %v4672_v44, -inf }
 0x2ce   :  { %963 = vmatpush.bf16.xpose.msrb.mxu2 %v954_v29  ;;  %v1165_v32 = vpop.permute.xlu2 %1164 }
 0x2cf   :  { %v1170_v33 = vsel %vm752_vm3, %v1165_v32, 0 }
 0x2d0   :  { %1179 = vmatpush.bf16.xpose.msra.mxu3 %v1170_v33 }
 0x2d4   :  { %v4701_v34 = vpop.permute.xlu1 %748  ;;  %v871_v62 = vpop.permute.xlu0 %870 }
 0x2d5   :  { %v1234_v35 = vunpack.c.l.b16 %v871_v62  ;;  %3581 = vmatmul.msk.bf16.vlgmr.msrb.gmra.mxu2 %vm752_vm3, %v4598_v9 }
 0x2d6   :  { %1035 = vmatpush.bf16.xpose.msra.mxu2 %v1026_v13  ;;  %v1117_v37 = vpop.permute.xlu2 %1116 }
 0x2d7   :  { %v4705_v41 = vpack.c.b16 %v1234_v35, %v1233_v30  ;;  %v1122_v42 = vsel %vm752_vm3, %v1117_v37, 0 }
 0x2d8   :  { %1131 = vmatpush.bf16.xpose.msrb.mxu1 %v1122_v42 }
 0x2d9   :  { %1236 = vrot.lane.b32.xlu1 %v4705_v41, %s4327_s17 }
 0x2dc   :  { %v867_v43 = vpop.permute.xlu0 %866  ;;  %v1045_v17 = vpop.permute.xlu1 %1044 }
 0x2dd   :  { %v1210_v51 = vunpack.c.l.b16 %v867_v43  ;;  %v1050_v25 = vsel %vm752_vm3, %v1045_v17, 0 }
 0x2de   :  { %1059 = vmatpush.bf16.xpose.msrb.mxu2 %v1050_v25  ;;  %v745_v53 = vpop.permute.xlu2 %744 }
 0x2df   :  { %v4711_v55 = vpack.c.b16 %v1210_v51, %v1209_v48  ;;  %v4714_v57 = vsel %vm752_vm3, %v750_v49, %v745_v53 }
 0x2e0   :  { %3588 = vmatmul.msk.bf16.vlgmr.msrb.gmra.mxu1 %vm752_vm3, %v4714_v57 }
 0x2e1   :  { %1212 = vrot.lane.b32.xlu2 %v4711_v55, %s4327_s17 }
 0x2e4   :  { %v4721_v58 = vpop.permute.xlu0 %734  ;;  %v4763_v22 = vpop.permute.xlu1 %736 }
 0x2e5   :  { %v5692_v60 = vrot.slane %v4721_v58, 4  ;;  %3584 = vmatmul.msk.bf16.vlgmr.msra.gmra.mxu2 %vm752_vm3, %v732_v40  ;;  %v5693_v15 = vrot.slane %v4763_v22, 4 }
 0x2e7   :  { %3586 = vmatmul.msk.bf16.vlgmr.msrb.gmra.mxu3 %vm752_vm3, %v5692_v60 }
 0x2e9   :  { %772 = vrot.lane.b32.xlu2 %v4640_v46, %s4330_s19 }
 0x2ec   :  { %v863_v0 = vpop.permute.xlu0 %862  ;;  %v1488_v29 = vpop.permute.xlu1 %1487 }
 0x2ed   :  { %v1186_v2 = vunpack.c.l.b16 %v863_v0 }
 0x2ef   :  { %v4732_v4 = vpack.c.b16 %v1186_v2, %v1185_v1 }
 0x2f1   :  { %1188 = vrot.lane.b32.xlu1 %v4732_v4, %s4327_s17  ;;  %1449 = vrot.lane.b32.xlu2 %v4516_v59, %s4329_s18 }
 0x2f4   :  { %v762_v8 = vpop.permute.xlu0 %761  ;;  %v1564_v37 = vpop.permute.xlu1 %1563 }
 0x2f5   :  { %3585 = vmatmul.msk.bf16.vlgmr.msrb.gmra.mxu2 %vm752_vm3, %v5694_v5  ;;  %v764_v11 = vrot.slane %v762_v8, 4 }
 0x2f7   :  { %v4754_v28 = vsel %vm765_vm4, %v762_v8, %v764_v11 }
 0x2f9   :  { %v4742_v61 = vpop.f32.mrf.mxu2  ;;  %1525 = vrot.lane.b32.xlu2 %v4563_v36, %s4329_s18  ;;  %1140 = vrot.lane.b32.xlu1 %v4686_v24, %s4327_s17 }
 0x2fa   :  { %v1260_v23 = vsel %vm752_vm3, %v4742_v61, -inf }
 0x2fc   :  { %v997_v46 = vpop.permute.xlu0 %996  ;;  %v4790_v49 = vpop.permute.xlu1 %1677 }
 0x2fd   :  { %v1002_v10 = vsel %vm752_vm3, %v997_v46, 0 }
 0x2fe   :  { %1011 = vmatpush.bf16.xpose.msrb.mxu0 %v1002_v10 }
 0x301   :  { %v919_v47 = vpop.f32.mrf.mxu2  ;;  %1468 = vrot.lane.b32.xlu2 %v4536_v38, %s4329_s18 }
 0x304   :  { %v4751_v12 = vpop.permute.xlu0 %768 }
 0x305   :  { %3583 = vmatmul.msk.bf16.vlgmr.msrb.gmra.mxu0 %vm752_vm3, %v4754_v28  ;;  %3590 = vmatmul.msk.bf16.vlgmr.msra.gmra.mxu3 %vm752_vm3, %v4751_v12 }
 0x309   :  { %1582 = vrot.lane.b32.xlu2 %v4607_v18, %s4329_s18 }
 0x30c   :  { %v1093_v14 = vpop.permute.xlu0 %1092 }
 0x30d   :  { %v1098_v19 = vsel %vm752_vm3, %v1093_v14, 0 }
 0x30e   :  { %1107 = vmatpush.bf16.xpose.msra.mxu0 %v1098_v19 }
 0x311   :  { %1639 = vrot.lane.b32.xlu2 %v4630_v27, %s4329_s18 }
 0x314   :  { %v4780_v30 = vpop.permute.xlu0 %774 }
 0x315   :  { %3587 = vmatmul.msk.bf16.vlgmr.msra.gmra.mxu0 %vm752_vm3, %v5693_v15 }
 0x31c   :  { %v4786_v17 = vpop.permute.xlu0 %770 }
 0x323   :  { %1261 = vmax.xlane.f32.xlu1 %v1260_v23 }
 0x324   :  { %v1507_v25 = vpop.permute.xlu0 %1506 }
 0x32c   :  { %v4796_v46 = vpop.permute.xlu0 %1601 }
 0x33a   :  { %1258 = vmax.xlane.f32.xlu2 %v1257_v26 }
 0x33b   :  { %v1213_v13 = vpop.permute.xlu2 %1212 }
 0x33c   :  { %v1218_v32 = vsel %vm752_vm3, %v1213_v13, 0 }
 0x33d   :  { %1227 = vmatpush.bf16.xpose.msra.mxu1 %v1218_v32 }
 0x340   :  { %v4776_v33 = vpop.f32.mrf.mxu3 }
 0x341   :  { %v1263_v62 = vsel %vm752_vm3, %v4776_v33, -inf }
 0x342   :  { %1264 = vmax.xlane.f32.xlu1 %v1263_v62 }
 0x343   :  { %v4782_v35 = vpop.permute.xlu2 %772 }
 0x344   :  { %3592 = vmatmul.msk.bf16.vlgmr.msra.gmra.mxu1 %vm752_vm3, %v4782_v35 }
 0x345   :  { %1500 = vmatpush.bf16.msrb.mxu1 %v1488_v29  ;;  %v1545_v29 = vpop.permute.xlu0 %1544 }
 0x348   :  { %v943_v42 = vpop.f32.mrf.mxu3 }
 0x349   :  { %1576 = vmatpush.bf16.msra.mxu1 %v1564_v37  ;;  %v751_v37 = vrot.slane %v4694_v16, 4 }
 0x34b   :  { %v1450_v43 = vpop.permute.xlu2 %1449  ;;  %v1237_v1 = vpop.permute.xlu1 %1236 }
 0x34c   :  { %1462 = vmatpush.bf16.msrb.mxu3 %v1450_v43  ;;  %v1242_v32 = vsel %vm752_vm3, %v1237_v1, 0  ;;  %v4810_v43 = vsel %vm752_vm3, %v751_v37, %v4701_v34 }
 0x350   :  { %v4788_v48 = vpop.f32.mrf.mxu3 }
 0x353   :  { %v1526_v51 = vpop.permute.xlu2 %1525 }
 0x354   :  { %1538 = vmatpush.bf16.msra.mxu3 %v1526_v51 }
 0x358   :  { %v4792_v53 = vpop.f32.mrf.mxu2  ;;  %v991_v0 = vpop.f32.mrf.mxu3 }
 0x35b   :  { %v1469_v47 = vpop.permute.xlu2 %1468 }
 0x35d   :  { %v4794_v2 = vpop.f32.mrf.mxu1 }
 0x360   :  { %v967_v8 = vpop.f32.mrf.mxu2 }
 0x363   :  { %v1189_v10 = vpop.permute.xlu1 %1188 }
 0x364   :  { %v1194_v11 = vsel %vm752_vm3, %v1189_v10, 0  ;;  %v1583_v10 = vpop.permute.xlu2 %1582 }
 0x365   :  { %v1135_v14 = vpop.f32.mrf.mxu1  ;;  %1203 = vmatpush.bf16.xpose.msrb.mxu0 %v1194_v11 }
 0x368   :  { %v4799_v19 = vpop.f32.mrf.mxu2 }
 0x36a   :  { %v4801_v23 = vpop.f32.mrf.mxu3 }
 0x36b   :  { %v1141_v26 = vpop.permute.xlu1 %1140 }
 0x36c   :  { %v1146_v13 = vsel %vm752_vm3, %v1141_v26, 0  ;;  %3591 = vmatmul.msk.bf16.vlgmr.msrb.gmra.mxu0 %vm752_vm3, %v4786_v17  ;;  %v1275_v26 = vsel %vm752_vm3, %v4799_v19, -inf }
 0x36d   :  { %1481 = vmatpush.bf16.msra.mxu0 %v1469_v47  ;;  %1155 = vmatpush.bf16.xpose.msra.mxu2 %v1146_v13 }
 0x370   :  { %v1039_v62 = vpop.f32.mrf.mxu2 }
 0x371   :  { %1557 = vmatpush.bf16.msrb.mxu0 %v1545_v29  ;;  %v4833_v62 = vpop.permute.xlu2 %1639 }
 0x372   :  { %v1087_v42 = vpop.f32.mrf.mxu3 }
 0x374   :  { %3589 = vmatmul.msk.bf16.vlgmr.msra.gmra.mxu2 %vm752_vm3, %v4810_v43 }
 0x375   :  { %1251 = vmatpush.bf16.xpose.msrb.mxu2 %v1242_v32 }
 0x378   :  { %v4814_v51 = vpop.f32.mrf.mxu2 }
 0x379   :  { %v1278_v13 = vsel %vm752_vm3, %v4814_v51, -inf }
 0x37d   :  { %1519 = vmatpush.bf16.msra.mxu2 %v1507_v25  ;;  %v1269_v25 = vsel %vm752_vm3, %v4788_v48, -inf }
 0x380   :  { %v1063_v0 = vpop.f32.mrf.mxu2 }
 0x382   :  { %v4816_v8 = vpop.f32.mrf.mxu0 }
 0x383   :  { %v1272_v1 = vsel %vm752_vm3, %v4816_v8, -inf }
 0x384   :  { %1273 = vmax.xlane.f32.xlu0 %v1272_v1  ;;  %3593 = vmatmul.msk.bf16.vlgmr.msrb.gmra.mxu2 %vm752_vm3, %v4780_v30 }
 0x385   :  { %1595 = vmatpush.bf16.msrb.mxu2 %v1583_v10 }
 0x388   :  { %v4822_v16 = vpop.f32.mrf.mxu3 }
 0x389   :  { %v1293_v32 = vsel %vm752_vm3, %v4822_v16, -inf }
 0x38a   :  { %v1015_v34 = vpop.f32.mrf.mxu0 }
 0x38c   :  { %1270 = vmax.xlane.f32.xlu0 %v1269_v25 }
 0x390   :  { %v1183_v11 = vpop.f32.mrf.mxu3 }
 0x392   :  { %v1109_v47 = vpop.f32.mrf.mxu0 }
 0x393   :  { %v1284_v14 = vsel %vm752_vm3, %v1109_v47, -inf }
 0x394   :  { %1285 = vmax.xlane.f32.xlu1 %v1284_v14  ;;  %1276 = vmax.xlane.f32.xlu0 %v1275_v26  ;;  %v1266_v14 = vsel %vm752_vm3, %v4792_v53, -inf }
 0x396   :  { %v1262_v34 = vpop.xlane.xlu1 %1261 }
 0x397   :  { %v1306_v25 = vsub.f32 %v4742_v61, %v1262_v34 }
 0x399   :  { %v1323_v26 = vmul.f32 1.442695, %v1306_v25  ;;  %v4860_v25 = vpop.permute.xlu0 %1658 }
 0x39a   :  { %v1111_v29 = vpop.f32.mrf.mxu0 }
 0x39c   :  { %1279 = vmax.xlane.f32.xlu1 %v1278_v13  ;;  %v1287_v13 = vsel %vm752_vm3, %v4794_v2, -inf }
 0x3a4   :  { %1294 = vmax.xlane.f32.xlu1 %v1293_v32 }
 0x3ad   :  { %v1259_v37 = vpop.xlane.xlu2 %1258 }
 0x3ae   :  { %v1305_v42 = vsub.f32 %v4672_v44, %v1259_v37  ;;  %v1281_v37 = vsel %vm752_vm3, %v4801_v23, -inf }
 0x3b0   :  { %v1321_v0 = vmul.f32 1.442695, %v1305_v42 }
 0x3b2   :  { %3916 = vpow2.f32 %v1321_v0 }
 0x3b3   :  { %3918 = vpow2.f32 %v1323_v26 }
 0x3b8   :  { %v4836_v1 = vpop.eup %3916 }
 0x3b9   :  { %v1353_v10 = vsel %vm752_vm3, %v4836_v1, 0.0  ;;  %v4849_v32 = vpop.eup %3918 }
 0x3ba   :  { %1354 = vadd.xlane.f32.xlu2 %v1353_v10  ;;  %v1356_v61 = vsel %vm752_vm3, %v4849_v32, 0.0  ;;  %v1265_v10 = vpop.xlane.xlu1 %1264 }
 0x3bb   :  { %v1307_v34 = vsub.f32 %v4776_v33, %v1265_v10 }
 0x3c1   :  { %v4841_v11 = vpop.f32.mrf.mxu1 }
 0x3c2   :  { %1267 = vmax.xlane.f32.xlu2 %v1266_v14  ;;  %v1299_v44 = vsel %vm752_vm3, %v4841_v11, -inf }
 0x3c3   :  { %1300 = vmax.xlane.f32.xlu0 %v1299_v44  ;;  %v1325_v44 = vmul.f32 1.442695, %v1307_v34 }
 0x3c5   :  { %3920 = vpow2.f32 %v1325_v44 }
 0x3c9   :  { %v1231_v29 = vpop.f32.mrf.mxu1 }
 0x3ca   :  { %1288 = vmax.xlane.f32.xlu2 %v1287_v13 }
 0x3d2   :  { %1357 = vadd.xlane.f32.xlu2 %v1356_v61  ;;  %v4866_v61 = vpop.eup %3920 }
 0x3d3   :  { %v1359_v33 = vsel %vm752_vm3, %v4866_v61, 0.0 }
 0x3da   :  { %1282 = vmax.xlane.f32.xlu2 %v1281_v37 }
 0x3e9   :  { %v4855_v42 = vpop.f32.mrf.mxu0 }
 0x3ea   :  { %v1296_v0 = vsel %vm752_vm3, %v4855_v42, -inf }
 0x3eb   :  { %1297 = vmax.xlane.f32.xlu0 %v1296_v0 }
 0x3f1   :  { %v1207_v14 = vpop.f32.mrf.mxu0 }
 0x3f7   :  { %v4862_v26 = vpop.f32.mrf.mxu2  ;;  %v1274_v13 = vpop.xlane.xlu0 %1273 }
 0x3f8   :  { %v1290_v29 = vsel %vm752_vm3, %v4862_v26, -inf  ;;  %v1310_v0 = vsub.f32 %v4816_v8, %v1274_v13 }
 0x3f9   :  { %1291 = vmax.xlane.f32.xlu0 %v1290_v29 }
 0x3fa   :  { %v1331_v14 = vmul.f32 1.442695, %v1310_v0 }
 0x3fc   :  { %3922 = vpow2.f32 %v1331_v14 }
 0x3ff   :  { %v1159_v37 = vpop.f32.mrf.mxu2  ;;  %v1271_v10 = vpop.xlane.xlu0 %1270 }
 0x400   :  { %v1309_v44 = vsub.f32 %v4788_v48, %v1271_v10 }
 0x401   :  { %1360 = vadd.xlane.f32.xlu0 %v1359_v33 }
 0x402   :  { %v1329_v37 = vmul.f32 1.442695, %v1309_v44  ;;  %v4876_v13 = vpop.eup %3922 }
 0x407   :  { %v1286_v34 = vpop.xlane.xlu1 %1285  ;;  %v4872_v15 = vpop.f32.mrf.mxu2 }
 0x408   :  { %v1314_v60 = vsub.f32 %v1109_v47, %v1286_v34  ;;  %v1302_v29 = vsel %vm752_vm3, %v4872_v15, -inf  ;;  %v1277_v8 = vpop.xlane.xlu0 %1276  ;;  %v1368_v47 = vsel %vm752_vm3, %v4876_v13, 0.0 }
 0x409   :  { %1303 = vmax.xlane.f32.xlu1 %v1302_v29  ;;  %v1311_v0 = vsub.f32 %v4799_v19, %v1277_v8 }
 0x40a   :  { %v1339_v5 = vmul.f32 1.442695, %v1314_v60 }
 0x40c   :  { %3924 = vpow2.f32 %v1339_v5  ;;  %v1333_v5 = vmul.f32 1.442695, %v1311_v0  ;;  %v1830_v0 = vunpack.c.l.b16 %v4508_v54 }
 0x40d   :  { %3926 = vpow2.f32 %v1329_v37 }
 0x40f   :  { %v1280_v33 = vpop.xlane.xlu1 %1279  ;;  %v1255_v48 = vpop.f32.mrf.mxu2 }
 0x410   :  { %v1312_v14 = vsub.f32 %v4814_v51, %v1280_v33 }
 0x411   :  { %1369 = vadd.xlane.f32.xlu1 %v1368_v47 }
 0x412   :  { %v4882_v10 = vpop.eup %3924  ;;  %v1335_v34 = vmul.f32 1.442695, %v1312_v14  ;;  %v4899_v14 = vpack.c.b16 %v1830_v0, %v1830_v0 }
 0x413   :  { %v1380_v60 = vsel %vm752_vm3, %v4882_v10, 0.0  ;;  %v4886_v44 = vpop.eup %3926 }
 0x414   :  { %3928 = vpow2.f32 %v1335_v34  ;;  %1381 = vadd.xlane.f32.xlu2 %v1380_v60  ;;  %v1365_v19 = vsel %vm752_vm3, %v4886_v44, 0.0 }
 0x415   :  { %3930 = vpow2.f32 %v1333_v5 }
 0x419   :  { %1366 = vadd.xlane.f32.xlu1 %v1365_v19 }
 0x41a   :  { %v4890_v51 = vpop.eup %3928 }
 0x41b   :  { %v1374_v29 = vsel %vm752_vm3, %v4890_v51, 0.0  ;;  %v4894_v37 = vpop.eup %3930 }
 0x41c   :  { %1375 = vadd.xlane.f32.xlu2 %v1374_v29  ;;  %v1371_v8 = vsel %vm752_vm3, %v4894_v37, 0.0  ;;  %v1926_v29 = vunpack.c.l.b16 %v4692_v39 }
 0x41e   :  { %v4913_v0 = vpack.c.b16 %v1926_v29, %v1926_v29 }
 0x421   :  { %1372 = vadd.xlane.f32.xlu1 %v1371_v8 }
 0x42d   :  { %v1355_v33 = vpop.xlane.xlu2 %1354 }
 0x42e   :  { %3932 = vrcp.f32 %v1355_v33 }
 0x434   :  { %v3933_v48 = vpop.eup %3932  ;;  %1832 = vrot.lane.b32.xlu2 %v4899_v14, %s4327_s17 }
 0x435   :  { %v1417_v47 = vmul.f32 %v3933_v48, %v4836_v1  ;;  %v1268_v34 = vpop.xlane.xlu2 %1267 }
 0x436   :  { %v1308_v60 = vsub.f32 %v4792_v53, %v1268_v34 }
 0x437   :  { %v1433_v5 = vpack.c.bf16 %v1417_v47, %v1417_v47 }
 0x438   :  { %v1327_v19 = vmul.f32 1.442695, %v1308_v60 }
 0x439   :  { %3594 = vmatmul.msk.bf16.vlgmr.msrb.gmra.mxu3 %vm752_vm3, %v1433_v5 }
 0x43a   :  { %3934 = vpow2.f32 %v1327_v19  ;;  %1614 = vmatpush.bf16.msrb.mxu3 %v4796_v46  ;;  %1715 = vrot.lane.b32.xlu1 %v4711_v55, %s4329_s18  ;;  %v1902_v46 = vunpack.c.l.b16 %v4598_v9  ;;  %v1974_v9 = vunpack.c.l.b16 %v732_v40  ;;  %v1301_v19 = vpop.xlane.xlu0 %1300  ;;  %v5709_v40 = vrot.slane %v4677_v20, 4 }
 0x43b   :  { %v2070_v20 = vunpack.c.l.b16 %v4714_v57 }
 0x43c   :  { %v4922_v47 = vpack.c.b16 %v1902_v46, %v1902_v46  ;;  %v1319_v46 = vsub.f32 %v4841_v11, %v1301_v19 }
 0x43d   :  { %v1289_v54 = vpop.xlane.xlu2 %1288 }
 0x43e   :  { %v1315_v8 = vsub.f32 %v4794_v2, %v1289_v54  ;;  %v1295_v2 = vpop.xlane.xlu1 %1294  ;;  %v1349_v63 = vmul.f32 1.442695, %v1319_v46 }
 0x43f   :  { %v1317_v60 = vsub.f32 %v4822_v16, %v1295_v2  ;;  %v4935_v16 = vpack.c.b16 %v1974_v9, %v1974_v9 }
 0x440   :  { %v4911_v33 = vpop.eup %3934  ;;  %v1341_v1 = vmul.f32 1.442695, %v1315_v8 }
 0x441   :  { %v1362_v53 = vsel %vm752_vm3, %v4911_v33, 0.0 }
 0x442   :  { %3936 = vpow2.f32 %v1341_v1  ;;  %1363 = vadd.xlane.f32.xlu0 %v1362_v53  ;;  %1928 = vrot.lane.b32.xlu1 %v4913_v0, %s4327_s17  ;;  %v1345_v1 = vmul.f32 1.442695, %v1317_v60 }
 0x445   :  { %v1358_v48 = vpop.xlane.xlu2 %1357 }
 0x446   :  { %3938 = vrcp.f32 %v1358_v48 }
 0x448   :  { %v4920_v39 = vpop.eup %3936 }
 0x449   :  { %v1383_v34 = vsel %vm752_vm3, %v4920_v39, 0.0 }
 0x44a   :  { %1384 = vadd.xlane.f32.xlu0 %v1383_v34  ;;  %1904 = vrot.lane.b32.xlu1 %v4922_v47, %s4327_s17 }
 0x44c   :  { %v3939_v5 = vpop.eup %3938 }
 0x44d   :  { %v1418_v54 = vmul.f32 %v3939_v5, %v4849_v32  ;;  %v1283_v29 = vpop.xlane.xlu2 %1282  ;;  %v1998_v32 = vunpack.c.l.b16 %v5709_v40 }
 0x44e   :  { %v1313_v8 = vsub.f32 %v4801_v23, %v1283_v29 }
 0x44f   :  { %v1434_v53 = vpack.c.bf16 %v1418_v54, %v1418_v54  ;;  %v4945_v11 = vpack.c.b16 %v1998_v32, %v1998_v32  ;;  %v4957_v54 = vpack.c.b16 %v2070_v20, %v2070_v20  ;;  %v2118_v32 = vunpack.c.l.b16 %v4751_v12 }
 0x450   :  { %v1337_v48 = vmul.f32 1.442695, %v1313_v8  ;;  %v1878_v20 = vunpack.c.l.b16 %v4554_v21 }
 0x451   :  { %3595 = vmatmul.msk.bf16.vlgmr.msra.gmra.mxu0 %vm752_vm3, %v1434_v53 }
 0x452   :  { %3940 = vpow2.f32 %v1337_v48  ;;  %1976 = vrot.lane.b32.xlu1 %v4935_v16, %s4327_s17  ;;  %v4989_v12 = vpack.c.b16 %v1878_v20, %v1878_v20 }
 0x453   :  { %3942 = vpow2.f32 %v1345_v1  ;;  %v5710_v1 = vrot.slane %v4763_v22, 4 }
 0x454   :  { %3944 = vpow2.f32 %v1349_v63 }
 0x455   :  { %v2046_v57 = vunpack.c.l.b16 %v5710_v1  ;;  %v1854_v1 = vunpack.c.l.b16 %v4527_v6 }
 0x457   :  { %v4967_v46 = vpack.c.b16 %v2046_v57, %v2046_v57 }
 0x458   :  { %v4941_v2 = vpop.eup %3940 }
 0x459   :  { %v4943_v23 = vpop.eup %3942  ;;  %v1377_v34 = vsel %vm752_vm3, %v4941_v2, 0.0 }
 0x45a   :  { %1378 = vadd.xlane.f32.xlu0 %v1377_v34  ;;  %2000 = vrot.lane.b32.xlu1 %v4945_v11, %s4327_s17  ;;  %v1389_v60 = vsel %vm752_vm3, %v4943_v23, 0.0  ;;  %v4954_v5 = vpop.eup %3944 }
 0x45b   :  { %v1395_v8 = vsel %vm752_vm3, %v4954_v5, 0.0 }
 0x45d   :  { %1390 = vadd.xlane.f32.xlu2 %v1389_v60 }
 0x45e   :  { %v1298_v9 = vpop.xlane.xlu0 %1297 }
 0x45f   :  { %v1318_v19 = vsub.f32 %v4855_v42, %v1298_v9  ;;  %v4984_v9 = vpack.c.b16 %v2118_v32, %v2118_v32 }
 0x461   :  { %v1347_v29 = vmul.f32 1.442695, %v1318_v19 }
 0x462   :  { %1396 = vadd.xlane.f32.xlu0 %v1395_v8  ;;  %2072 = vrot.lane.b32.xlu1 %v4957_v54, %s4327_s17 }
 0x463   :  { %3946 = vpow2.f32 %v1347_v29 }
 0x469   :  { %v4965_v53 = vpop.eup %3946 }
 0x46a   :  { %v1392_v42 = vsel %vm752_vm3, %v4965_v53, 0.0  ;;  %2048 = vrot.lane.b32.xlu1 %v4967_v46, %s4327_s17 }
 0x46b   :  { %1393 = vadd.xlane.f32.xlu2 %v1392_v42 }
 0x46c   :  { %v1292_v48 = vpop.xlane.xlu0 %1291 }
 0x46d   :  { %v1316_v19 = vsub.f32 %v4862_v26, %v1292_v48  ;;  %v5711_v48 = vrot.slane %v4721_v58, 4 }
 0x46f   :  { %v1343_v29 = vmul.f32 1.442695, %v1316_v19  ;;  %v2094_v19 = vunpack.c.l.b16 %v4810_v43  ;;  %v2142_v43 = vunpack.c.l.b16 %v4786_v17 }
 0x474   :  { %v1361_v63 = vpop.xlane.xlu0 %1360 }
 0x475   :  { %3948 = vrcp.f32 %v1361_v63  ;;  %v2022_v63 = vunpack.c.l.b16 %v5711_v48 }
 0x476   :  { %1620 = vrot.lane.b32.xlu0 %v4658_v56, %s4329_s18 }
 0x47b   :  { %v3949_v40 = vpop.eup %3948 }
 0x47c   :  { %v1419_v22 = vmul.f32 %v3949_v40, %v4866_v61  ;;  %v4977_v34 = vpop.xlane.xlu1 %1303 }
 0x47e   :  { %v1435_v60 = vpack.c.bf16 %v1419_v22, %v1419_v22  ;;  %1734 = vrot.lane.b32.xlu0 %v4705_v41, %s4329_s18 }
 0x480   :  { %3596 = vmatmul.msk.bf16.vlgmr.msrb.gmra.mxu1 %vm752_vm3, %v1435_v60  ;;  %v1950_v60 = vunpack.c.l.b16 %v4754_v28  ;;  %v2166_v28 = vunpack.c.l.b16 %v4782_v35 }
 0x481   :  { %1652 = vmatpush.bf16.msrb.mxu1 %v4833_v62 }
 0x482   :  { %v5022_v20 = vpack.c.b16 %v1950_v60, %v1950_v60 }
 0x483   :  { %2120 = vrot.lane.b32.xlu2 %v4984_v9, %s4327_s17 }
 0x484   :  { %v1370_v61 = vpop.xlane.xlu1 %1369 }
 0x485   :  { %3950 = vrcp.f32 %v1370_v61  ;;  %v5030_v61 = vpack.c.b16 %v2094_v19, %v2094_v19 }
 0x486   :  { %1880 = vrot.lane.b32.xlu0 %v4989_v12, %s4327_s17  ;;  %3952 = vpow2.f32 %v1343_v29 }
 0x48b   :  { %2713 = vrot.lane.b32.xlu2 %v4913_v0, %s4329_s18  ;;  %v3951_v21 = vpop.eup %3950 }
 0x48c   :  { %v1422_v62 = vmul.f32 %v3951_v21, %v4876_v13  ;;  %v1367_v8 = vpop.xlane.xlu1 %1366  ;;  %v4999_v57 = vpop.eup %3952  ;;  %v5006_v13 = vpack.c.b16 %v1854_v1, %v1854_v1 }
 0x48d   :  { %3954 = vrcp.f32 %v1367_v8  ;;  %v1386_v0 = vsel %vm752_vm3, %v4999_v57, 0.0  ;;  %v1382_v21 = vpop.xlane.xlu2 %1381 }
 0x48e   :  { %1696 = vrot.lane.b32.xlu0 %v4732_v4, %s4329_s18  ;;  %v1438_v26 = vpack.c.bf16 %v1422_v62, %v1422_v62 }
 0x490   :  { %3599 = vmatmul.msk.bf16.vlgmr.msrb.gmra.mxu0 %vm752_vm3, %v1438_v26  ;;  %v5044_v26 = vpack.c.b16 %v2142_v43, %v2142_v43 }
 0x493   :  { %2767 = vrot.lane.b32.xlu2 %v4935_v16, %s4329_s18  ;;  %v3955_v42 = vpop.eup %3954  ;;  %v2023_v16 = vpack.c.b16 %v2022_v63, %v2022_v63  ;;  %v1320_v63 = vsub.f32 %v4872_v15, %v4977_v34 }
 0x494   :  { %v1421_v40 = vmul.f32 %v3955_v42, %v4886_v44  ;;  %v1373_v22 = vpop.xlane.xlu1 %1372  ;;  %1387 = vadd.xlane.f32.xlu1 %v1386_v0 }
 0x495   :  { %3956 = vrcp.f32 %v1373_v22  ;;  %v1376_v35 = vpop.xlane.xlu2 %1375 }
 0x496   :  { %1856 = vrot.lane.b32.xlu0 %v5006_v13, %s4327_s17  ;;  %v1437_v6 = vpack.c.bf16 %v1421_v40, %v1421_v40 }
 0x498   :  { %3598 = vmatmul.msk.bf16.vlgmr.msra.gmra.mxu3 %vm752_vm3, %v1437_v6  ;;  %v1351_v6 = vmul.f32 1.442695, %v1320_v63 }
 0x499   :  { %1690 = vmatpush.bf16.msra.mxu3 %v4790_v49  ;;  %v2190_v49 = vunpack.c.l.b16 %v4780_v30 }
 0x49b   :  { %2821 = vrot.lane.b32.xlu2 %v2023_v16, %s4329_s18  ;;  %v3957_v32 = vpop.eup %3956 }
 0x49c   :  { %v1423_v58 = vmul.f32 %v3957_v32, %v4894_v37  ;;  %v5028_v37 = vpack.c.b16 %v2190_v49, %v2190_v49 }
 0x49d   :  { %v1833_v15 = vpop.permute.xlu2 %1832 }
 0x49e   :  { %2024 = vrot.lane.b32.xlu0 %v2023_v16, %s4327_s17  ;;  %v1439_v44 = vpack.c.bf16 %v1423_v58, %v1423_v58 }
 0x4a0   :  { %3600 = vmatmul.msk.bf16.vlgmr.msra.gmra.mxu1 %vm752_vm3, %v1439_v44 }
 0x4a3   :  { %2875 = vrot.lane.b32.xlu2 %v4957_v54, %s4329_s18  ;;  %v5037_v54 = vpack.c.b16 %v2166_v28, %v2166_v28 }
 0x4a6   :  { %1952 = vrot.lane.b32.xlu0 %v5022_v20, %s4327_s17 }
 0x4ac   :  { %v1716_v29 = vpop.permute.xlu1 %1715 }
 0x4ad   :  { %2192 = vrot.lane.b32.xlu1 %v5028_v37, %s4327_s17  ;;  %1728 = vmatpush.bf16.msra.mxu1 %v1716_v29 }
 0x4ae   :  { %2096 = vrot.lane.b32.xlu0 %v5030_v61, %s4327_s17 }
 0x4b5   :  { %v1364_v30 = vpop.xlane.xlu0 %1363 }
 0x4b6   :  { %3958 = vrcp.f32 %v1364_v30  ;;  %2168 = vrot.lane.b32.xlu0 %v5037_v54, %s4327_s17 }
 0x4bc   :  { %v3959_v62 = vpop.eup %3958  ;;  %v5042_v8 = vpop.f32.mrf.mxu3 }
 0x4bd   :  { %5712 = vst [vmem:[#allocation22_spill] sm:$0xff] %v5042_v8  ;;  %v1420_v1 = vmul.f32 %v3959_v62, %v4911_v33  ;;  %v1385_v42 = vpop.xlane.xlu0 %1384 }
 0x4be   :  { %3960 = vrcp.f32 %v1385_v42  ;;  %2144 = vrot.lane.b32.xlu0 %v5044_v26, %s4327_s17 }
 0x4bf   :  { %v1436_v0 = vpack.c.bf16 %v1420_v1, %v1420_v1  ;;  %3962 = vrcp.f32 %v1376_v35 }
 0x4c0   :  { %3964 = vpow2.f32 %v1351_v6 }
 0x4c1   :  { %3597 = vmatmul.msk.bf16.vlgmr.msra.gmra.mxu2 %vm752_vm3, %v1436_v0 }
 0x4c2   :  { %1671 = vmatpush.bf16.msra.mxu2 %v4860_v25  ;;  %v1929_v25 = vpop.permute.xlu1 %1928 }
 0x4c4   :  { %v3961_v17 = vpop.eup %3960  ;;  %v1466_v48 = vpop.f32.mrf.mxu3 }
 0x4c5   :  { %v1427_v40 = vmul.f32 %v3961_v17, %v4920_v39  ;;  %v3963_v22 = vpop.eup %3962 }
 0x4c6   :  { %2604 = vrot.lane.b32.xlu0 %v4899_v14, %s4329_s18  ;;  %v1424_v16 = vmul.f32 %v3963_v22, %v4890_v51  ;;  %v5063_v14 = vpop.eup %3964 }
 0x4c7   :  { %v1443_v33 = vpack.c.bf16 %v1427_v40, %v1427_v40  ;;  %v1398_v29 = vsel %vm752_vm3, %v5063_v14, 0.0 }
 0x4c8   :  { %v1440_v44 = vpack.c.bf16 %v1424_v16, %v1424_v16 }
 0x4c9   :  { %3604 = vmatmul.msk.bf16.vlgmr.msrb.gmra.mxu1 %vm752_vm3, %v1443_v33 }
 0x4ca   :  { %v5070_v28 = vpop.permute.xlu1 %1904 }
 0x4cd   :  { %v1379_v32 = vpop.xlane.xlu0 %1378 }
 0x4ce   :  { %3966 = vrcp.f32 %v1379_v32  ;;  %v5058_v58 = vpop.f32.mrf.mxu0  ;;  %2686 = vrot.lane.b32.xlu0 %v4922_v47, %s4329_s18  ;;  %v1838_v47 = vsel %vm752_vm3, %v1833_v15, 0 }
 0x4cf   :  { %5713 = vst [vmem:[#allocation23_spill] sm:$0xff] %v5058_v58 }
 0x4d0   :  { %v1391_v19 = vpop.xlane.xlu2 %1390 }
 0x4d1   :  { %3601 = vmatmul.msk.bf16.vlgmr.msrb.gmra.mxu2 %vm752_vm3, %v1440_v44 }
 0x4d2   :  { %v1977_v62 = vpop.permute.xlu1 %1976 }
 0x4d3   :  { %v1982_v40 = vsel %vm752_vm3, %v1977_v62, 0 }
 0x4d4   :  { %v3967_v39 = vpop.eup %3966 }
 0x4d5   :  { %v1425_v34 = vmul.f32 %v3967_v39, %v4941_v2  ;;  %v1397_v60 = vpop.xlane.xlu0 %1396 }
 0x4d6   :  { %3968 = vrcp.f32 %v1397_v60  ;;  %v1485_v51 = vpop.f32.mrf.mxu0  ;;  %2794 = vrot.lane.b32.xlu0 %v4945_v11, %s4329_s18 }
 0x4d7   :  { %v1441_v49 = vpack.c.bf16 %v1425_v34, %v1425_v34  ;;  %1399 = vadd.xlane.f32.xlu1 %v1398_v29  ;;  %3970 = vrcp.f32 %v1391_v19 }
 0x4d8   :  { %3972 = vrcp.f32 %v1382_v21 }
 0x4d9   :  { %3602 = vmatmul.msk.bf16.vlgmr.msrb.gmra.mxu3 %vm752_vm3, %v1441_v49 }
 0x4da   :  { %1847 = vmatpush.bf16.xpose.msrb.mxu3 %v1838_v47  ;;  %v5084_v17 = vpop.permute.xlu1 %2000 }
 0x4dc   :  { %v3969_v2 = vpop.eup %3968 }
 0x4dd   :  { %v1431_v30 = vmul.f32 %v3969_v2, %v4954_v5  ;;  %v3971_v11 = vpop.eup %3970  ;;  %v1934_v5 = vsel %vm752_vm3, %v1929_v25, 0 }
 0x4de   :  { %2929 = vrot.lane.b32.xlu0 %v4984_v9, %s4329_s18  ;;  %v3973_v1 = vpop.eup %3972  ;;  %v1429_v42 = vmul.f32 %v3971_v11, %v4943_v23 }
 0x4df   :  { %v1447_v43 = vpack.c.bf16 %v1431_v30, %v1431_v30  ;;  %v1426_v35 = vmul.f32 %v3973_v1, %v4882_v10  ;;  %v1394_v10 = vpop.xlane.xlu2 %1393 }
 0x4e0   :  { %v1445_v0 = vpack.c.bf16 %v1429_v42, %v1429_v42  ;;  %3974 = vrcp.f32 %v1394_v10 }
 0x4e1   :  { %3608 = vmatmul.msk.bf16.vlgmr.msra.gmra.mxu1 %vm752_vm3, %v1447_v43  ;;  %v1442_v9 = vpack.c.bf16 %v1426_v35, %v1426_v35 }
 0x4e2   :  { %v2073_v23 = vpop.permute.xlu1 %2072 }
 0x4e6   :  { %2902 = vrot.lane.b32.xlu0 %v5030_v61, %s4329_s18  ;;  %v3975_v33 = vpop.eup %3974 }
 0x4e7   :  { %v2121_v39 = vpop.permute.xlu2 %2120 }
 0x4e8   :  { %v1621_v21 = vpop.permute.xlu0 %1620  ;;  %v2126_v51 = vsel %vm752_vm3, %v2121_v39, 0 }
 0x4e9   :  { %1633 = vmatpush.bf16.msra.mxu0 %v1621_v21  ;;  %3606 = vmatmul.msk.bf16.vlgmr.msra.gmra.mxu3 %vm752_vm3, %v1445_v0 }
 0x4ea   :  { %1943 = vmatpush.bf16.xpose.msra.mxu3 %v1934_v5  ;;  %v2049_v6 = vpop.permute.xlu1 %2048 }
 0x4ec   :  { %3603 = vmatmul.msk.bf16.vlgmr.msra.gmra.mxu0 %vm752_vm3, %v1442_v9 }
 0x4f0   :  { %v1735_v48 = vpop.permute.xlu0 %1734  ;;  %2659 = vrot.lane.b32.xlu1 %v4989_v12, %s4329_s18  ;;  %v1430_v12 = vmul.f32 %v3975_v33, %v4965_v53 }
 0x4f1   :  { %1747 = vmatpush.bf16.msrb.mxu2 %v1735_v48 }
 0x4f2   :  { %v1446_v32 = vpack.c.bf16 %v1430_v12, %v1430_v12 }
 0x4f8   :  { %v1881_v61 = vpop.permute.xlu0 %1880  ;;  %2632 = vrot.lane.b32.xlu1 %v5006_v13, %s4329_s18  ;;  %v2078_v13 = vsel %vm752_vm3, %v2073_v23, 0 }
 0x4f9   :  { %v1886_v63 = vsel %vm752_vm3, %v1881_v61, 0  ;;  %3610 = vmatmul.msk.bf16.vlgmr.msrb.gmra.mxu3 %vm752_vm3, %v4516_v59 }
 0x4fa   :  { %1895 = vmatpush.bf16.xpose.msrb.mxu1 %v1886_v63 }
 0x4fd   :  { %v5095_v22 = vpop.f32.mrf.mxu1 }
 0x500   :  { %v1697_v16 = vpop.permute.xlu0 %1696  ;;  %2740 = vrot.lane.b32.xlu1 %v5022_v20, %s4329_s18 }
 0x501   :  { %1709 = vmatpush.bf16.msrb.mxu0 %v1697_v16  ;;  %3612 = vmatmul.msk.bf16.vlgmr.msrb.gmra.mxu1 %vm752_vm3, %v4569_v45 }
 0x502   :  { %1991 = vmatpush.bf16.xpose.msra.mxu1 %v1982_v40 }
 0x504   :  { %3607 = vmatmul.msk.bf16.vlgmr.msrb.gmra.mxu0 %vm752_vm3, %v1446_v32 }
 0x505   :  { %v1504_v59 = vpop.f32.mrf.mxu1 }
 0x507   :  { %v1388_v25 = vpop.xlane.xlu1 %1387 }
 0x508   :  { %v1857_v44 = vpop.permute.xlu0 %1856  ;;  %3976 = vrcp.f32 %v1388_v25 }
 0x509   :  { %v1862_v53 = vsel %vm752_vm3, %v1857_v44, 0  ;;  %3614 = vmatmul.msk.bf16.vlgmr.msra.gmra.mxu3 %vm752_vm3, %v4563_v36  ;;  %v1910_v36 = vsel %vm752_vm3, %v5070_v28, 0 }
 0x50a   :  { %2087 = vmatpush.bf16.xpose.msrb.mxu1 %v2078_v13  ;;  %1871 = vmatpush.bf16.xpose.msra.mxu0 %v1862_v53 }
 0x50d   :  { %v5107_v20 = vpop.f32.mrf.mxu0 }
 0x50e   :  { %v3977_v15 = vpop.eup %3976 }
 0x50f   :  { %v1428_v34 = vmul.f32 %v3977_v15, %v4999_v57 }
 0x510   :  { %v2025_v45 = vpop.permute.xlu0 %2024 }
 0x511   :  { %v2030_v60 = vsel %vm752_vm3, %v2025_v45, 0  ;;  %v1444_v49 = vpack.c.bf16 %v1428_v34, %v1428_v34  ;;  %3616 = vmatmul.msk.bf16.vlgmr.msra.gmra.mxu1 %vm752_vm3, %v4576_v52  ;;  %v2054_v52 = vsel %vm752_vm3, %v2049_v6, 0 }
 0x512   :  { %2039 = vmatpush.bf16.xpose.msrb.mxu3 %v2030_v60 }
 0x513   :  { %3605 = vmatmul.msk.bf16.vlgmr.msra.gmra.mxu2 %vm752_vm3, %v1444_v49 }
 0x514   :  { %3611 = vmatmul.msk.bf16.vlgmr.msra.gmra.mxu0 %vm752_vm3, %v4536_v38  ;;  %1919 = vmatpush.bf16.xpose.msra.mxu2 %v1910_v36 }
 0x515   :  { %v1561_v57 = vpop.f32.mrf.mxu0 }
 0x518   :  { %v1953_v19 = vpop.permute.xlu0 %1952 }
 0x519   :  { %v1958_v29 = vsel %vm752_vm3, %v1953_v19, 0  ;;  %3618 = vmatmul.msk.bf16.vlgmr.msrb.gmra.mxu3 %vm752_vm3, %v4594_v7 }
 0x51a   :  { %2135 = vmatpush.bf16.xpose.msra.mxu3 %v2126_v51  ;;  %1967 = vmatpush.bf16.xpose.msrb.mxu0 %v1958_v29 }
 0x51b   :  { %v5123_v47 = vpop.f32.mrf.mxu3 }
 0x51d   :  { %v5127_v2 = vpop.f32.mrf.mxu1 }
 0x51f   :  { %v2193_v35 = vpop.permute.xlu1 %2192 }
 0x520   :  { %v2097_v38 = vpop.permute.xlu0 %2096 }
 0x521   :  { %3620 = vmatmul.msk.bf16.vlgmr.msrb.gmra.mxu1 %vm752_vm3, %v4630_v27  ;;  %v2714_v27 = vpop.permute.xlu2 %2713 }
 0x522   :  { %2063 = vmatpush.bf16.xpose.msra.mxu0 %v2054_v52 }
 0x523   :  { %v1542_v30 = vpop.f32.mrf.mxu3 }
 0x524   :  { %3615 = vmatmul.msk.bf16.vlgmr.msrb.gmra.mxu0 %vm752_vm3, %v4650_v50 }
 0x525   :  { %v1580_v7 = vpop.f32.mrf.mxu1 }
 0x528   :  { %v2169_v43 = vpop.permute.xlu0 %2168 }
 0x529   :  { %3622 = vmatmul.msk.bf16.vlgmr.msra.gmra.mxu3 %vm752_vm3, %v4617_v31  ;;  %v2174_v11 = vsel %vm752_vm3, %v2169_v43, 0  ;;  %v2719_v31 = vsel %vm2609_vm5, %v2714_v27, 0  ;;  %v2768_v6 = vpop.permute.xlu2 %2767 }
 0x52a   :  { %2183 = vmatpush.bf16.xpose.msra.mxu1 %v2174_v11  ;;  %v2773_v32 = vsel %vm2609_vm5, %v2768_v6, 0 }
 0x530   :  { %v2145_v62 = vpop.permute.xlu0 %2144 }
 0x531   :  { %v2150_v1 = vsel %vm752_vm3, %v2145_v62, 0  ;;  %3624 = vmatmul.msk.bf16.vlgmr.msra.gmra.mxu1 %vm752_vm3, %v4711_v55 }
 0x532   :  { %2159 = vmatpush.bf16.xpose.msrb.mxu0 %v2150_v1 }
 0x534   :  { %3619 = vmatmul.msk.bf16.vlgmr.msra.gmra.mxu0 %vm752_vm3, %v4658_v56 }
 0x538   :  { %v2605_v50 = vpop.permute.xlu0 %2604 }
 0x539   :  { %v2611_v42 = vsel %vm2609_vm5, %v2605_v50, 0 }
 0x53a   :  { %2620 = vmatpush.bf16.msrb.mxu3 %v2611_v42 }
 0x53e   :  { %2728 = vmatpush.bf16.msra.mxu3 %v2719_v31 }
 0x540   :  { %v2687_v29 = vpop.permute.xlu0 %2686 }
 0x541   :  { %v2692_v52 = vsel %vm2609_vm5, %v2687_v29, 0 }
 0x544   :  { %v5143_v0 = vpop.f32.mrf.mxu2  ;;  %3623 = vmatmul.msk.bf16.vlgmr.msrb.gmra.mxu0 %vm752_vm3, %v4732_v4  ;;  %v2006_v4 = vsel %vm752_vm3, %v5084_v17, 0  ;;  %v2102_v17 = vsel %vm752_vm3, %v2097_v38, 0 }
 0x546   :  { %v5149_v21 = vpop.f32.mrf.mxu1 }
 0x548   :  { %v2795_v7 = vpop.permute.xlu0 %2794 }
 0x549   :  { %v2800_v43 = vsel %vm2609_vm5, %v2795_v7, 0 }
 0x54a   :  { %v1400_v56 = vpop.xlane.xlu1 %1399 }
 0x54b   :  { %3978 = vrcp.f32 %v1400_v56 }
 0x54c   :  { %v1523_v5 = vpop.f32.mrf.mxu2 }
 0x54e   :  { %v1656_v9 = vpop.f32.mrf.mxu1 }
 0x551   :  { %v3979_v48 = vpop.eup %3978 }
 0x552   :  { %v1432_v10 = vmul.f32 %v3979_v48, %v5063_v14 }
 0x554   :  { %v5152_v23 = vpop.f32.mrf.mxu2  ;;  %v1448_v61 = vpack.c.bf16 %v1432_v10, %v1432_v10 }
 0x556   :  { %3609 = vmatmul.msk.bf16.vlgmr.msrb.gmra.mxu2 %vm752_vm3, %v1448_v61 }
 0x557   :  { %2015 = vmatpush.bf16.xpose.msrb.mxu2 %v2006_v4 }
 0x55c   :  { %v1599_v40 = vpop.f32.mrf.mxu2  ;;  %v5159_v33 = vpop.f32.mrf.mxu3 }
 0x55e   :  { %v5161_v12 = vpop.f32.mrf.mxu1 }
 0x55f   :  { %5714 = vst [vmem:[#allocation24_spill] sm:$0xff] %v5161_v12 }
 0x562   :  { %v2660_v16 = vpop.permute.xlu1 %2659 }
 0x563   :  { %v2665_v14 = vsel %vm2609_vm5, %v2660_v16, 0 }
 0x564   :  { %v1618_v13 = vpop.f32.mrf.mxu3  ;;  %2674 = vmatpush.bf16.msrb.mxu1 %v2665_v14 }
 0x566   :  { %v1732_v59 = vpop.f32.mrf.mxu1  ;;  %3613 = vmatmul.msk.bf16.vlgmr.msra.gmra.mxu2 %vm752_vm3, %v4587_v3  ;;  %v2198_v3 = vsel %vm752_vm3, %v2193_v35, 0 }
 0x567   :  { %2111 = vmatpush.bf16.xpose.msra.mxu2 %v2102_v17 }
 0x568   :  { %2782 = vmatpush.bf16.msra.mxu1 %v2773_v32 }
 0x569   :  { %v5168_v25 = vpop.f32.mrf.mxu0 }
 0x56a   :  { %v2633_v53 = vpop.permute.xlu1 %2632 }
 0x56b   :  { %v2638_v15 = vsel %vm2609_vm5, %v2633_v53, 0 }
 0x56c   :  { %v5173_v39 = vpop.f32.mrf.mxu3  ;;  %2647 = vmatpush.bf16.msra.mxu0 %v2638_v15 }
 0x56d   :  { %5715 = vst [vmem:[#allocation25_spill] sm:$0xff] %v5173_v39 }
 0x571   :  { %v1637_v34 = vpop.f32.mrf.mxu0 }
 0x572   :  { %v2741_v45 = vpop.permute.xlu1 %2740 }
 0x573   :  { %v2746_v60 = vsel %vm2609_vm5, %v2741_v45, 0 }
 0x574   :  { %v1694_v51 = vpop.f32.mrf.mxu3  ;;  %2755 = vmatpush.bf16.msrb.mxu0 %v2746_v60 }
 0x576   :  { %3617 = vmatmul.msk.bf16.vlgmr.msrb.gmra.mxu2 %vm752_vm3, %v4607_v18 }
 0x577   :  { %2207 = vmatpush.bf16.xpose.msrb.mxu2 %v2198_v3 }
 0x57c   :  { %v5179_v49 = vpop.f32.mrf.mxu3 }
 0x57d   :  { %v2215_v36 = vsel %vm2214_vm6, %v5179_v49, -inf }
 0x57e   :  { %2216 = vmax.xlane.f32.xlu1 %v2215_v36  ;;  %v5195_v11 = vpop.f32.mrf.mxu1 }
 0x57f   :  { %v2227_v1 = vsel %vm2214_vm6, %v5195_v11, -inf }
 0x581   :  { %v5183_v57 = vpop.f32.mrf.mxu0 }
 0x582   :  { %5716 = vst [vmem:[#allocation26_spill] sm:$0xff] %v5183_v57 }
 0x584   :  { %v5207_v50 = vpop.f32.mrf.mxu3 }
 0x585   :  { %v2218_v35 = vsel %vm2214_vm6, %v5207_v50, -inf }
 0x586   :  { %3621 = vmatmul.msk.bf16.vlgmr.msra.gmra.mxu2 %vm752_vm3, %v4686_v24  ;;  %v5215_v56 = vpop.f32.mrf.mxu1 }
 0x587   :  { %2701 = vmatpush.bf16.msra.mxu2 %v2692_v52  ;;  %v2230_v48 = vsel %vm2214_vm6, %v5215_v56, -inf }
 0x589   :  { %v1713_v18 = vpop.f32.mrf.mxu0 }
 0x58c   :  { %v5217_v5 = vpop.f32.mrf.mxu3 }
 0x58d   :  { %v2239_v10 = vsel %vm2214_vm6, %v5217_v5, -inf }
 0x58e   :  { %v5227_v4 = vpop.f32.mrf.mxu1 }
 0x58f   :  { %v2251_v6 = vsel %vm2214_vm6, %v5227_v4, -inf }
 0x591   :  { %v5190_v38 = vpop.f32.mrf.mxu0 }
 0x592   :  { %v2221_v30 = vsel %vm2214_vm6, %v5190_v38, -inf }
 0x593   :  { %2222 = vmax.xlane.f32.xlu0 %v2221_v30 }
 0x594   :  { %v5235_v14 = vpop.f32.mrf.mxu3 }
 0x595   :  { %v2242_v59 = vsel %vm2214_vm6, %v5235_v14, -inf }
 0x596   :  { %v5197_v62 = vpop.f32.mrf.mxu2  ;;  %3625 = vmatmul.msk.bf16.vlgmr.msrb.gmra.mxu2 %vm752_vm3, %v4705_v41  ;;  %v5243_v17 = vpop.f32.mrf.mxu1 }
 0x597   :  { %2809 = vmatpush.bf16.msrb.mxu2 %v2800_v43  ;;  %v2254_v53 = vsel %vm2214_vm6, %v5243_v17, -inf }
 0x599   :  { %v5201_v24 = vpop.f32.mrf.mxu0 }
 0x59a   :  { %v2224_v27 = vsel %vm2214_vm6, %v5201_v24, -inf }
 0x59b   :  { %2228 = vmax.xlane.f32.xlu0 %v2227_v1  ;;  %2225 = vmax.xlane.f32.xlu2 %v2224_v27  ;;  %v5273_v27 = vpop.permute.xlu0 %2929 }
 0x59c   :  { %v5259_v29 = vpop.f32.mrf.mxu3 }
 0x59d   :  { %v2263_v30 = vsel %vm2214_vm6, %v5259_v29, -inf }
 0x59e   :  { %v1675_v42 = vpop.f32.mrf.mxu2  ;;  %v5255_v3 = vpop.f32.mrf.mxu1 }
 0x5a1   :  { %v5209_v31 = vpop.f32.mrf.mxu0 }
 0x5a2   :  { %v2245_v41 = vsel %vm2214_vm6, %v5209_v31, -inf }
 0x5a3   :  { %2219 = vmax.xlane.f32.xlu2 %v2218_v35  ;;  %2246 = vmax.xlane.f32.xlu1 %v2245_v41  ;;  %v2275_v35 = vsel %vm2214_vm6, %v5255_v3, -inf }
 0x5a4   :  { %v5269_v43 = vpop.f32.mrf.mxu3 }
 0x5a5   :  { %v2266_v42 = vsel %vm2214_vm6, %v5269_v43, -inf }
 0x5a6   :  { %v5267_v7 = vpop.f32.mrf.mxu1 }
 0x5a9   :  { %v5219_v9 = vpop.f32.mrf.mxu0 }
 0x5aa   :  { %v2248_v61 = vsel %vm2214_vm6, %v5219_v9, -inf }
 0x5ab   :  { %2231 = vmax.xlane.f32.xlu2 %v2230_v48  ;;  %2240 = vmax.xlane.f32.xlu1 %v2239_v10  ;;  %v5281_v48 = vpop.permute.xlu2 %2821 }
 0x5ac   :  { %2249 = vmax.xlane.f32.xlu0 %v2248_v61 }
 0x5ae   :  { %v5283_v10 = vpop.f32.mrf.mxu1 }
 0x5b1   :  { %v5229_v40 = vpop.f32.mrf.mxu0 }
 0x5b2   :  { %v2269_v16 = vsel %vm2214_vm6, %v5229_v40, -inf }
 0x5b3   :  { %2252 = vmax.xlane.f32.xlu1 %v2251_v6  ;;  %v5287_v6 = vpop.f32.mrf.mxu3 }
 0x5b4   :  { %2270 = vmax.xlane.f32.xlu0 %v2269_v16 }
 0x5b9   :  { %v5237_v13 = vpop.f32.mrf.mxu0 }
 0x5ba   :  { %v2272_v32 = vsel %vm2214_vm6, %v5237_v13, -inf }
 0x5bb   :  { %2273 = vmax.xlane.f32.xlu2 %v2272_v32  ;;  %v2278_v32 = vsel %vm2214_vm6, %v5267_v7, -inf }
 0x5bc   :  { %2243 = vmax.xlane.f32.xlu0 %v2242_v59 }
 0x5c1   :  { %v5247_v15 = vpop.f32.mrf.mxu0 }
 0x5c2   :  { %v2293_v34 = vsel %vm2214_vm6, %v5247_v15, -inf }
 0x5c4   :  { %2255 = vmax.xlane.f32.xlu0 %v2254_v53  ;;  %v2287_v53 = vsel %vm2214_vm6, %v5287_v6, -inf }
 0x5c9   :  { %v5285_v61 = vpop.f32.mrf.mxu0 }
 0x5ca   :  { %v2296_v59 = vsel %vm2214_vm6, %v5285_v61, -inf }
 0x5cc   :  { %2294 = vmax.xlane.f32.xlu0 %v2293_v34  ;;  %v5297_v34 = vpop.permute.xlu0 %2902 }
 0x5d9   :  { %v5251_v45 = vpop.f32.mrf.mxu2 }
 0x5da   :  { %5717 = vst [vmem:[#allocation27_spill] sm:$0xff] %v5251_v45 }
 0x5e1   :  { %v1751_v60 = vpop.f32.mrf.mxu2 }
 0x5e2   :  { %v5299_v60 = vpop.permute.xlu2 %2875 }
 0x5e9   :  { %v5253_v51 = vpop.f32.mrf.mxu2 }
 0x5ea   :  { %v2233_v36 = vsel %vm2214_vm6, %v5253_v51, -inf }
 0x5eb   :  { %2234 = vmax.xlane.f32.xlu2 %v2233_v36  ;;  %v5301_v36 = vpop.f32.mrf.mxu1 }
 0x5f1   :  { %v5261_v52 = vpop.f32.mrf.mxu2 }
 0x5f2   :  { %v2236_v18 = vsel %vm2214_vm6, %v5261_v52, -inf }
 0x5f3   :  { %2237 = vmax.xlane.f32.xlu1 %v2236_v18  ;;  %2264 = vmax.xlane.f32.xlu2 %v2263_v30  ;;  %v2299_v30 = vsel %vm2214_vm6, %v5283_v10, -inf }
 0x5f9   :  { %v5271_v1 = vpop.f32.mrf.mxu2 }
 0x5fa   :  { %v2257_v41 = vsel %vm2214_vm6, %v5271_v1, -inf }
 0x5fb   :  { %2267 = vmax.xlane.f32.xlu1 %v2266_v42  ;;  %2276 = vmax.xlane.f32.xlu2 %v2275_v35  ;;  %v2302_v35 = vsel %vm2214_vm6, %v5301_v36, -inf }
 0x5fc   :  { %2258 = vmax.xlane.f32.xlu0 %v2257_v41 }
 0x601   :  { %v5289_v16 = vpop.f32.mrf.mxu2 }
 0x602   :  { %v2260_v42 = vsel %vm2214_vm6, %v5289_v16, -inf }
 0x603   :  { %2279 = vmax.xlane.f32.xlu1 %v2278_v32  ;;  %2297 = vmax.xlane.f32.xlu2 %v2296_v59  ;;  %v2217_v32 = vpop.xlane.xlu1 %2216 }
 0x604   :  { %2288 = vmax.xlane.f32.xlu0 %v2287_v53  ;;  %v5311_v53 = vpop.f32.mrf.mxu3 }
 0x606   :  { %v2223_v41 = vpop.xlane.xlu0 %2222 }
 0x607   :  { %v2313_v19 = vsub.f32 %v5190_v38, %v2223_v41 }
 0x609   :  { %v5303_v18 = vpop.f32.mrf.mxu2 }
 0x60a   :  { %v2281_v28 = vsel %vm2214_vm6, %v5303_v18, -inf }
 0x60b   :  { %2300 = vmax.xlane.f32.xlu1 %v2299_v30  ;;  %2261 = vmax.xlane.f32.xlu2 %v2260_v42  ;;  %v2290_v42 = vsel %vm2214_vm6, %v5311_v53, -inf }
 0x60c   :  { %2303 = vmax.xlane.f32.xlu0 %v2302_v35  ;;  %v2347_v35 = vmul.f32 1.442695, %v2313_v19 }
 0x60e   :  { %v2226_v59 = vpop.xlane.xlu2 %2225  ;;  %v2229_v8 = vpop.xlane.xlu0 %2228  ;;  %3980 = vpow2.f32 %v2347_v35 }
 0x60f   :  { %v2314_v58 = vsub.f32 %v5201_v24, %v2226_v59  ;;  %v2311_v24 = vsub.f32 %v5179_v49, %v2217_v32 }
 0x611   :  { %v5314_v63 = vpop.f32.mrf.mxu2  ;;  %v2343_v49 = vmul.f32 1.442695, %v2311_v24 }
 0x612   :  { %v2284_v30 = vsel %vm2214_vm6, %v5314_v63, -inf }
 0x613   :  { %2282 = vmax.xlane.f32.xlu1 %v2281_v28  ;;  %2291 = vmax.xlane.f32.xlu2 %v2290_v42 }
 0x614   :  { %2285 = vmax.xlane.f32.xlu0 %v2284_v30  ;;  %v2349_v30 = vmul.f32 1.442695, %v2314_v58  ;;  %v5329_v45 = vpop.eup %3980 }
 0x616   :  { %v2247_v44 = vpop.xlane.xlu1 %2246  ;;  %v2220_v55 = vpop.xlane.xlu2 %2219 }
 0x617   :  { %v2321_v38 = vsub.f32 %v5209_v31, %v2247_v44  ;;  %v2312_v57 = vsub.f32 %v5207_v50, %v2220_v55  ;;  %v2413_v50 = vsel %vm2214_vm6, %v5329_v45, 0.0 }
 0x619   :  { %v2363_v41 = vmul.f32 1.442695, %v2321_v38  ;;  %v5324_v39 = vpop.f32.mrf.mxu2  ;;  %v2345_v19 = vmul.f32 1.442695, %v2312_v57 }
 0x61a   :  { %v2305_v28 = vsel %vm2214_vm6, %v5324_v39, -inf }
 0x61b   :  { %3982 = vpow2.f32 %v2363_v41  ;;  %2306 = vmax.xlane.f32.xlu2 %v2305_v28 }
 0x61c   :  { %3984 = vpow2.f32 %v2349_v30 }
 0x61d   :  { %3986 = vpow2.f32 %v2345_v19  ;;  %v2315_v19 = vsub.f32 %v5195_v11, %v2229_v8 }
 0x61e   :  { %v2232_v31 = vpop.xlane.xlu2 %2231  ;;  %v2241_v24 = vpop.xlane.xlu1 %2240 }
 0x61f   :  { %v2250_v42 = vpop.xlane.xlu0 %2249  ;;  %v2316_v58 = vsub.f32 %v5215_v56, %v2232_v31 }
 0x620   :  { %v2322_v44 = vsub.f32 %v5219_v9, %v2250_v42 }
 0x621   :  { %v5332_v35 = vpop.eup %3982  ;;  %v5335_v38 = vpop.f32.mrf.mxu2  ;;  %v2353_v9 = vmul.f32 1.442695, %v2316_v58 }
 0x622   :  { %v2365_v59 = vmul.f32 1.442695, %v2322_v44  ;;  %v2437_v55 = vsel %vm2214_vm6, %v5332_v35, 0.0  ;;  %v2308_v57 = vsel %vm2214_vm6, %v5335_v38, -inf  ;;  %v5344_v41 = vpop.eup %3984 }
 0x623   :  { %2438 = vadd.xlane.f32.xlu0 %v2437_v55  ;;  %2309 = vmax.xlane.f32.xlu1 %v2308_v57  ;;  %v5347_v30 = vpop.eup %3986  ;;  %v2416_v31 = vsel %vm2214_vm6, %v5344_v41, 0.0 }
 0x624   :  { %3988 = vpow2.f32 %v2365_v59  ;;  %2414 = vadd.xlane.f32.xlu2 %v2413_v50  ;;  %v2351_v59 = vmul.f32 1.442695, %v2315_v19 }
 0x625   :  { %3990 = vpow2.f32 %v2343_v49  ;;  %v2319_v49 = vsub.f32 %v5217_v5, %v2241_v24 }
 0x626   :  { %3992 = vpow2.f32 %v2353_v9 }
 0x627   :  { %v2271_v32 = vpop.xlane.xlu0 %2270 }
 0x628   :  { %v2329_v28 = vsub.f32 %v5229_v40, %v2271_v32  ;;  %v2410_v40 = vsel %vm2214_vm6, %v5347_v30, 0.0 }
 0x62a   :  { %v5349_v56 = vpop.eup %3988  ;;  %v2379_v42 = vmul.f32 1.442695, %v2329_v28 }
 0x62b   :  { %v2440_v44 = vsel %vm2214_vm6, %v5349_v56, 0.0  ;;  %2411 = vadd.xlane.f32.xlu1 %v2410_v40  ;;  %v5358_v58 = vpop.eup %3990 }
 0x62c   :  { %3994 = vpow2.f32 %v2379_v42  ;;  %2441 = vadd.xlane.f32.xlu0 %v2440_v44  ;;  %2417 = vadd.xlane.f32.xlu2 %v2416_v31  ;;  %v5361_v57 = vpop.eup %3992  ;;  %v2407_v19 = vsel %vm2214_vm6, %v5358_v58, 0.0  ;;  %v2359_v42 = vmul.f32 1.442695, %v2319_v49  ;;  %v2253_v44 = vpop.xlane.xlu1 %2252 }
 0x62d   :  { %3996 = vpow2.f32 %v2351_v59  ;;  %v2323_v24 = vsub.f32 %v5227_v4, %v2253_v44 }
 0x62e   :  { %v2274_v11 = vpop.xlane.xlu2 %2273 }
 0x62f   :  { %v2244_v55 = vpop.xlane.xlu0 %2243  ;;  %v2330_v32 = vsub.f32 %v5237_v13, %v2274_v11  ;;  %v2367_v11 = vmul.f32 1.442695, %v2323_v24 }
 0x630   :  { %v2320_v8 = vsub.f32 %v5235_v14, %v2244_v55  ;;  %v2422_v14 = vsel %vm2214_vm6, %v5361_v57, 0.0 }
 0x631   :  { %v2381_v31 = vmul.f32 1.442695, %v2330_v32 }
 0x632   :  { %v5363_v50 = vpop.eup %3994  ;;  %v2361_v9 = vmul.f32 1.442695, %v2320_v8 }
 0x633   :  { %v2461_v28 = vsel %vm2214_vm6, %v5363_v50, 0.0  ;;  %2423 = vadd.xlane.f32.xlu1 %v2422_v14  ;;  %v5373_v5 = vpop.eup %3996 }
 0x634   :  { %3998 = vpow2.f32 %v2361_v9  ;;  %2462 = vadd.xlane.f32.xlu0 %v2461_v28  ;;  %2408 = vadd.xlane.f32.xlu2 %v2407_v19  ;;  %v2419_v55 = vsel %vm2214_vm6, %v5373_v5, 0.0 }
 0x635   :  { %4000 = vpow2.f32 %v2359_v42 }
 0x636   :  { %4002 = vpow2.f32 %v2381_v31 }
 0x637   :  { %v2256_v40 = vpop.xlane.xlu0 %2255  ;;  %4004 = vpow2.f32 %v2367_v11 }
 0x638   :  { %v2324_v59 = vsub.f32 %v5243_v17, %v2256_v40 }
 0x63a   :  { %v5375_v13 = vpop.eup %3998  ;;  %v2369_v49 = vmul.f32 1.442695, %v2324_v59 }
 0x63b   :  { %v2434_v8 = vsel %vm2214_vm6, %v5375_v13, 0.0  ;;  %v5383_v9 = vpop.eup %4000 }
 0x63c   :  { %2420 = vadd.xlane.f32.xlu2 %v2419_v55  ;;  %2435 = vadd.xlane.f32.xlu1 %v2434_v8  ;;  %v5385_v32 = vpop.eup %4002  ;;  %4006 = vpow2.f32 %v2369_v49  ;;  %v2431_v4 = vsel %vm2214_vm6, %v5383_v9, 0.0 }
 0x63d   :  { %v2464_v17 = vsel %vm2214_vm6, %v5385_v32, 0.0  ;;  %v5391_v28 = vpop.eup %4004 }
 0x63e   :  { %v2443_v14 = vsel %vm2214_vm6, %v5391_v28, 0.0 }
 0x63f   :  { %v5400_v55 = vpop.xlane.xlu0 %2294 }
 0x642   :  { %v5393_v19 = vpop.eup %4006 }
 0x643   :  { %v2446_v42 = vsel %vm2214_vm6, %v5393_v19, 0.0 }
 0x644   :  { %2432 = vadd.xlane.f32.xlu2 %v2431_v4  ;;  %2465 = vadd.xlane.f32.xlu1 %v2464_v17 }
 0x64c   :  { %2444 = vadd.xlane.f32.xlu2 %v2443_v14  ;;  %2447 = vadd.xlane.f32.xlu1 %v2446_v42 }
 0x65e   :  { %v2235_v44 = vpop.xlane.xlu2 %2234 }
 0x65f   :  { %v2317_v31 = vsub.f32 %v5253_v51, %v2235_v44 }
 0x661   :  { %v2355_v40 = vmul.f32 1.442695, %v2317_v31 }
 0x663   :  { %4008 = vpow2.f32 %v2355_v40 }
 0x666   :  { %v2238_v24 = vpop.xlane.xlu1 %2237  ;;  %v2265_v59 = vpop.xlane.xlu2 %2264 }
 0x667   :  { %v2318_v8 = vsub.f32 %v5261_v52, %v2238_v24  ;;  %v2327_v11 = vsub.f32 %v5259_v29, %v2265_v59 }
 0x669   :  { %v5404_v49 = vpop.eup %4008  ;;  %v2357_v4 = vmul.f32 1.442695, %v2318_v8  ;;  %v2375_v17 = vmul.f32 1.442695, %v2327_v11 }
 0x66a   :  { %v2425_v14 = vsel %vm2214_vm6, %v5404_v49, 0.0 }
 0x66b   :  { %4010 = vpow2.f32 %v2357_v4  ;;  %2426 = vadd.xlane.f32.xlu2 %v2425_v14 }
 0x66c   :  { %4012 = vpow2.f32 %v2375_v17 }
 0x66e   :  { %v2268_v51 = vpop.xlane.xlu1 %2267  ;;  %v2277_v42 = vpop.xlane.xlu2 %2276 }
 0x66f   :  { %v2328_v44 = vsub.f32 %v5269_v43, %v2268_v51  ;;  %v2259_v31 = vpop.xlane.xlu0 %2258  ;;  %v2331_v40 = vsub.f32 %v5255_v3, %v2277_v42 }
 0x670   :  { %v2325_v8 = vsub.f32 %v5271_v1, %v2259_v31 }
 0x671   :  { %v5410_v52 = vpop.eup %4010  ;;  %v2377_v29 = vmul.f32 1.442695, %v2328_v44  ;;  %v2383_v24 = vmul.f32 1.442695, %v2331_v40 }
 0x672   :  { %v5412_v59 = vpop.eup %4012  ;;  %v2428_v11 = vsel %vm2214_vm6, %v5410_v52, 0.0  ;;  %v2371_v43 = vmul.f32 1.442695, %v2325_v8 }
 0x673   :  { %4014 = vpow2.f32 %v2377_v29  ;;  %2429 = vadd.xlane.f32.xlu1 %v2428_v11  ;;  %v2455_v4 = vsel %vm2214_vm6, %v5412_v59, 0.0 }
 0x674   :  { %2456 = vadd.xlane.f32.xlu2 %v2455_v4  ;;  %4016 = vpow2.f32 %v2383_v24 }
 0x675   :  { %4018 = vpow2.f32 %v2371_v43 }
 0x676   :  { %v2280_v3 = vpop.xlane.xlu1 %2279  ;;  %v5419_v17 = vpop.xlane.xlu2 %2297 }
 0x677   :  { %v2332_v14 = vsub.f32 %v5267_v7, %v2280_v3  ;;  %v2289_v51 = vpop.xlane.xlu0 %2288 }
 0x678   :  { %v2335_v42 = vsub.f32 %v5287_v6, %v2289_v51 }
 0x679   :  { %v5423_v1 = vpop.eup %4014  ;;  %v2385_v44 = vmul.f32 1.442695, %v2332_v14 }
 0x67a   :  { %v2391_v31 = vmul.f32 1.442695, %v2335_v42  ;;  %v2458_v40 = vsel %vm2214_vm6, %v5423_v1, 0.0  ;;  %v5427_v29 = vpop.eup %4016 }
 0x67b   :  { %4020 = vpow2.f32 %v2385_v44  ;;  %2459 = vadd.xlane.f32.xlu0 %v2458_v40  ;;  %v2467_v24 = vsel %vm2214_vm6, %v5427_v29, 0.0  ;;  %v5432_v4 = vpop.eup %4018 }
 0x67c   :  { %4022 = vpow2.f32 %v2391_v31  ;;  %2468 = vadd.xlane.f32.xlu1 %v2467_v24 }
 0x67e   :  { %v2301_v7 = vpop.xlane.xlu1 %2300  ;;  %v2262_v8 = vpop.xlane.xlu2 %2261 }
 0x67f   :  { %v2304_v6 = vpop.xlane.xlu0 %2303  ;;  %v2326_v11 = vsub.f32 %v5289_v16, %v2262_v8  ;;  %v2449_v16 = vsel %vm2214_vm6, %v5432_v4, 0.0  ;;  %v2339_v12 = vsub.f32 %v5283_v10, %v2301_v7 }
 0x680   :  { %v2340_v43 = vsub.f32 %v5301_v36, %v2304_v6 }
 0x681   :  { %v5435_v3 = vpop.eup %4020  ;;  %v2373_v14 = vmul.f32 1.442695, %v2326_v11 }
 0x682   :  { %v5437_v51 = vpop.eup %4022  ;;  %v2401_v42 = vmul.f32 1.442695, %v2340_v43  ;;  %v2470_v44 = vsel %vm2214_vm6, %v5435_v3, 0.0 }
 0x683   :  { %2471 = vadd.xlane.f32.xlu0 %v2470_v44  ;;  %v2479_v31 = vsel %vm2214_vm6, %v5437_v51, 0.0 }
 0x684   :  { %4024 = vpow2.f32 %v2401_v42  ;;  %2480 = vadd.xlane.f32.xlu2 %v2479_v31  ;;  %2450 = vadd.xlane.f32.xlu1 %v2449_v16 }
 0x685   :  { %4026 = vpow2.f32 %v2373_v14 }
 0x686   :  { %v2283_v36 = vpop.xlane.xlu1 %2282  ;;  %v2292_v40 = vpop.xlane.xlu2 %2291 }
 0x687   :  { %v2333_v24 = vsub.f32 %v5303_v18, %v2283_v36  ;;  %v2336_v8 = vsub.f32 %v5311_v53, %v2292_v40  ;;  %v2286_v6 = vpop.xlane.xlu0 %2285  ;;  %v2399_v53 = vmul.f32 1.442695, %v2339_v12 }
 0x688   :  { %v2334_v31 = vsub.f32 %v5314_v63, %v2286_v6 }
 0x689   :  { %v2387_v11 = vmul.f32 1.442695, %v2333_v24  ;;  %v2393_v43 = vmul.f32 1.442695, %v2336_v8 }
 0x68a   :  { %v5447_v44 = vpop.eup %4024  ;;  %v2389_v36 = vmul.f32 1.442695, %v2334_v31 }
 0x68b   :  { %5718 = vst [vmem:[#allocation28_spill] sm:$0xff] %v5447_v44  ;;  %v5450_v42 = vpop.eup %4026  ;;  %4028 = vpow2.f32 %v2387_v11  ;;  %v2494_v14 = vsel %vm2214_vm6, %v5447_v44, 0.0 }
 0x68c   :  { %2495 = vadd.xlane.f32.xlu2 %v2494_v14  ;;  %v2452_v18 = vsel %vm2214_vm6, %v5450_v42, 0.0  ;;  %4030 = vpow2.f32 %v2393_v43 }
 0x68d   :  { %2453 = vadd.xlane.f32.xlu1 %v2452_v18  ;;  %4032 = vpow2.f32 %v2399_v53 }
 0x68e   :  { %v2307_v16 = vpop.xlane.xlu2 %2306  ;;  %4034 = vpow2.f32 %v2389_v36 }
 0x68f   :  { %v2341_v10 = vsub.f32 %v5324_v39, %v2307_v16 }
 0x691   :  { %v5457_v40 = vpop.eup %4028  ;;  %v2403_v8 = vmul.f32 1.442695, %v2341_v10 }
 0x692   :  { %5719 = vst [vmem:[#allocation29_spill] sm:$0xff] %v5457_v40  ;;  %v2473_v63 = vsel %vm2214_vm6, %v5457_v40, 0.0  ;;  %v5462_v7 = vpop.eup %4030 }
 0x693   :  { %5720 = vst [vmem:[#allocation30_spill] sm:$0xff] %v5462_v7  ;;  %v2482_v24 = vsel %vm2214_vm6, %v5462_v7, 0.0  ;;  %v5468_v11 = vpop.eup %4032  ;;  %4036 = vpow2.f32 %v2403_v8 }
 0x694   :  { %2483 = vadd.xlane.f32.xlu0 %v2482_v24  ;;  %5721 = vst [vmem:[#allocation31_spill] sm:$0xff] %v5468_v11  ;;  %v5470_v43 = vpop.eup %4034  ;;  %v2491_v14 = vsel %vm2214_vm6, %v5468_v11, 0.0 }
 0x695   :  { %2474 = vadd.xlane.f32.xlu1 %v2473_v63  ;;  %5722 = vst [vmem:[#allocation32_spill] sm:$0xff] %v5470_v43  ;;  %v2476_v31 = vsel %vm2214_vm6, %v5470_v43, 0.0 }
 0x696   :  { %v5466_v12 = vpop.xlane.xlu1 %2309  ;;  %v2439_v39 = vpop.xlane.xlu0 %2438 }
 0x697   :  { %v2415_v6 = vpop.xlane.xlu2 %2414 }
 0x698   :  { %4038 = vrcp.f32 %v2415_v6 }
 0x699   :  { %v5476_v16 = vpop.eup %4036 }
 0x69a   :  { %5723 = vst [vmem:[#allocation33_spill] sm:$0xff] %v5476_v16  ;;  %v2497_v24 = vsel %vm2214_vm6, %v5476_v16, 0.0 }
 0x69c   :  { %2492 = vadd.xlane.f32.xlu0 %v2491_v14 }
 0x69d   :  { %2477 = vadd.xlane.f32.xlu1 %v2476_v31 }
 0x69e   :  { %v2412_v53 = vpop.xlane.xlu1 %2411  ;;  %v4039_v36 = vpop.eup %4038 }
 0x69f   :  { %v2418_v18 = vpop.xlane.xlu2 %2417  ;;  %v2537_v10 = vmul.f32 %v4039_v36, %v5329_v45  ;;  %v2442_v63 = vpop.xlane.xlu0 %2441 }
 0x6a0   :  { %4040 = vrcp.f32 %v2418_v18 }
 0x6a1   :  { %4042 = vrcp.f32 %v2412_v53  ;;  %v2569_v14 = vpack.c.bf16 %v2537_v10, %v2537_v10 }
 0x6a2   :  { %4044 = vrcp.f32 %v2442_v63 }
 0x6a3   :  { %v2629_v45 = vunpack.c.l.b16 %v2569_v14 }
 0x6a4   :  { %2848 = vrot.lane.b32.xlu2 %v4967_v46, %s4329_s18  ;;  %2498 = vadd.xlane.f32.xlu0 %v2497_v24 }
 0x6a6   :  { %v4041_v6 = vpop.eup %4040  ;;  %v2424_v31 = vpop.xlane.xlu1 %2423 }
 0x6a7   :  { %v2409_v8 = vpop.xlane.xlu2 %2408  ;;  %v2538_v44 = vmul.f32 %v4041_v6, %v5344_v41  ;;  %4046 = vrcp.f32 %v2424_v31  ;;  %v4043_v18 = vpop.eup %4042 }
 0x6a8   :  { %4048 = vrcp.f32 %v2409_v8  ;;  %v2536_v36 = vmul.f32 %v4043_v18, %v5347_v30  ;;  %v4045_v11 = vpop.eup %4044 }
 0x6a9   :  { %v2570_v53 = vpack.c.bf16 %v2538_v44, %v2538_v44  ;;  %4050 = vrcp.f32 %v2439_v39  ;;  %v2546_v44 = vmul.f32 %v4045_v11, %v5349_v56  ;;  %v2827_v56 = vsel %vm2609_vm5, %v5281_v48, 0 }
 0x6aa   :  { %v2568_v63 = vpack.c.bf16 %v2536_v36, %v2536_v36  ;;  %v2881_v48 = vsel %vm2609_vm5, %v5299_v60, 0 }
 0x6ab   :  { %v2630_v46 = vunpack.c.l.b16 %v2570_v53  ;;  %v2578_v18 = vpack.c.bf16 %v2546_v44, %v2546_v44 }
 0x6ac   :  { %v2602_v6 = vunpack.c.l.b16 %v2568_v63 }
 0x6ad   :  { %v4047_v43 = vpop.eup %4046  ;;  %v2631_v16 = vpack.c.b16 %v2630_v46, %v2629_v45 }
 0x6ae   :  { %v4049_v40 = vpop.eup %4048  ;;  %v2540_v39 = vmul.f32 %v4047_v43, %v5361_v57 }
 0x6af   :  { %v2421_v24 = vpop.xlane.xlu2 %2420  ;;  %v2436_v7 = vpop.xlane.xlu1 %2435  ;;  %v2535_v10 = vmul.f32 %v4049_v40, %v5358_v58  ;;  %3627 = vmatmul.msk.bf16.vlgmr.msra.gmra.mxu0 %vm2214_vm6, %v2631_v16  ;;  %v2337_v16 = vsub.f32 %v5247_v15, %v5400_v55 }
 0x6b0   :  { %4052 = vrcp.f32 %v2421_v24  ;;  %v4051_v41 = vpop.eup %4050  ;;  %v2572_v53 = vpack.c.bf16 %v2540_v39, %v2540_v39 }
 0x6b1   :  { %4054 = vrcp.f32 %v2436_v7  ;;  %v2567_v30 = vpack.c.bf16 %v2535_v10, %v2535_v10  ;;  %v2545_v8 = vmul.f32 %v4051_v41, %v5332_v35  ;;  %v2395_v39 = vmul.f32 1.442695, %v2337_v16 }
 0x6b2   :  { %v2657_v11 = vunpack.c.l.b16 %v2572_v53 }
 0x6b3   :  { %v2601_v31 = vunpack.c.l.b16 %v2567_v30  ;;  %v2577_v35 = vpack.c.bf16 %v2545_v8, %v2545_v8 }
 0x6b5   :  { %v2603_v45 = vpack.c.b16 %v2602_v6, %v2601_v31  ;;  %v2737_v46 = vunpack.c.l.b16 %v2577_v35 }
 0x6b6   :  { %v4053_v14 = vpop.eup %4052  ;;  %2983 = vrot.lane.b32.xlu1 %v5037_v54, %s4329_s18 }
 0x6b7   :  { %v2539_v36 = vmul.f32 %v4053_v14, %v5373_v5  ;;  %v2433_v58 = vpop.xlane.xlu2 %2432  ;;  %v4055_v40 = vpop.eup %4054  ;;  %3626 = vmatmul.msk.bf16.vlgmr.msrb.gmra.mxu3 %vm2214_vm6, %v2603_v45  ;;  %v2738_v5 = vunpack.c.l.b16 %v2578_v18  ;;  %v2935_v14 = vsel %vm2609_vm5, %v5273_v27, 0  ;;  %v2342_v27 = vsub.f32 %v5335_v38, %v5466_v12 }
 0x6b8   :  { %v5493_v7 = vpop.xlane.xlu1 %2465  ;;  %4056 = vrcp.f32 %v2433_v58  ;;  %2836 = vmatpush.bf16.msrb.mxu3 %v2827_v56  ;;  %3010 = vrot.lane.b32.xlu0 %v5028_v37, %s4329_s18  ;;  %v2544_v54 = vmul.f32 %v4055_v40, %v5375_v13  ;;  %v5725_v40 = vpack.i.bf16 %v5168_v25, %v5159_v33  ;;  %v5726_v33 = vpack.i.bf16 %v5107_v20, %v5123_v47  ;;  %v2463_v25 = vpop.xlane.xlu0 %2462 }
 0x6b9   :  { %v2571_v57 = vpack.c.bf16 %v2539_v36, %v2539_v36  ;;  %v2739_v10 = vpack.c.b16 %v2738_v5, %v2737_v46  ;;  %v2405_v56 = vmul.f32 1.442695, %v2342_v27 }
 0x6ba   :  { %v2576_v41 = vpack.c.bf16 %v2544_v54, %v2544_v54 }
 0x6bb   :  { %v2656_v43 = vunpack.c.l.b16 %v2571_v57 }
 0x6bc   :  { %v2711_v15 = vunpack.c.l.b16 %v2576_v41 }
 0x6bd   :  { %v2658_v24 = vpack.c.b16 %v2657_v11, %v2656_v43  ;;  %v3811_v43 = vpack.i.bf16 %v5197_v62, %v5149_v21  ;;  %v2908_v21 = vsel %vm2609_vm5, %v5297_v34, 0 }
 0x6be   :  { %v4057_v63 = vpop.eup %4056 }
 0x6bf   :  { %v2543_v44 = vmul.f32 %v4057_v63, %v5383_v9  ;;  %3628 = vmatmul.msk.bf16.vlgmr.msrb.gmra.mxu1 %vm2214_vm6, %v2658_v24  ;;  %v2445_v37 = vpop.xlane.xlu2 %2444  ;;  %3631 = vmatmul.msk.bf16.vlgmr.msrb.gmra.mxu0 %vm2214_vm6, %v2739_v10 }
 0x6c0   :  { %v2448_v30 = vpop.xlane.xlu1 %2447  ;;  %2890 = vmatpush.bf16.msrb.mxu1 %v2881_v48  ;;  %4058 = vrcp.f32 %v2445_v37  ;;  %2956 = vrot.lane.b32.xlu0 %v5044_v26, %s4329_s18  ;;  %v5724_v26 = vpack.i.bf16 %v5143_v0, %v5095_v22  ;;  %v2338_v22 = vsub.f32 %v5285_v61, %v5419_v17 }
 0x6c1   :  { %v2575_v13 = vpack.c.bf16 %v2543_v44, %v2543_v44  ;;  %4060 = vrcp.f32 %v2448_v30 }
 0x6c2   :  { %4062 = vpow2.f32 %v2395_v39  ;;  %v2397_v0 = vmul.f32 1.442695, %v2338_v22 }
 0x6c3   :  { %v2710_v60 = vunpack.c.l.b16 %v2575_v13  ;;  %4064 = vpow2.f32 %v2405_v56 }
 0x6c4   :  { %4066 = vpow2.f32 %v2397_v0 }
 0x6c5   :  { %v2712_v55 = vpack.c.b16 %v2711_v15, %v2710_v60 }
 0x6c6   :  { %v4059_v8 = vpop.eup %4058 }
 0x6c7   :  { %v4061_v9 = vpop.eup %4060  ;;  %v2547_v6 = vmul.f32 %v4059_v8, %v5391_v28  ;;  %3630 = vmatmul.msk.bf16.vlgmr.msra.gmra.mxu3 %vm2214_vm6, %v2712_v55 }
 0x6c8   :  { %v2548_v31 = vmul.f32 %v4061_v9, %v5393_v19  ;;  %v5515_v53 = vpop.eup %4062  ;;  %2944 = vmatpush.bf16.msra.mxu3 %v2935_v14  ;;  %3792 = vrot.lane.b32.xlu0 %v5724_v26, %s4328_s1 }
 0x6c9   :  { %v2579_v18 = vpack.c.bf16 %v2547_v6, %v2547_v6  ;;  %v2485_v28 = vsel %vm2214_vm6, %v5515_v53, 0.0  ;;  %v5532_v35 = vpop.eup %4064 }
 0x6ca   :  { %v2580_v45 = vpack.c.bf16 %v2548_v31, %v2548_v31  ;;  %v2500_v38 = vsel %vm2214_vm6, %v5532_v35, 0.0  ;;  %v5536_v12 = vpop.eup %4066 }
 0x6cb   :  { %v2764_v36 = vunpack.c.l.b16 %v2579_v18  ;;  %v2488_v5 = vsel %vm2214_vm6, %v5536_v12, 0.0 }
 0x6cc   :  { %v2765_v58 = vunpack.c.l.b16 %v2580_v45 }
 0x6cd   :  { %2486 = vadd.xlane.f32.xlu2 %v2485_v28 }
 0x6ce   :  { %v2766_v19 = vpack.c.b16 %v2765_v58, %v2764_v36 }
 0x6d0   :  { %3632 = vmatmul.msk.bf16.vlgmr.msra.gmra.mxu1 %vm2214_vm6, %v2766_v19  ;;  %3807 = vrot.lane.b32.xlu0 %v5725_v40, %s4322_s15 }
 0x6de   :  { %v2427_v57 = vpop.xlane.xlu2 %2426 }
 0x6df   :  { %4068 = vrcp.f32 %v2427_v57 }
 0x6e0   :  { %2501 = vadd.xlane.f32.xlu1 %v2500_v38 }
 0x6e5   :  { %3797 = vrot.lane.b32.xlu2 %v5726_v33, %s4326_s5  ;;  %v4069_v17 = vpop.eup %4068 }
 0x6e6   :  { %v2430_v61 = vpop.xlane.xlu1 %2429  ;;  %v2541_v54 = vmul.f32 %v4069_v17, %v5404_v49 }
 0x6e7   :  { %4070 = vrcp.f32 %v2430_v61  ;;  %v2457_v11 = vpop.xlane.xlu2 %2456 }
 0x6e8   :  { %2489 = vadd.xlane.f32.xlu1 %v2488_v5  ;;  %4072 = vrcp.f32 %v2457_v11  ;;  %v2573_v20 = vpack.c.bf16 %v2541_v54, %v2541_v54 }
 0x6ea   :  { %v2683_v10 = vunpack.c.l.b16 %v2573_v20 }
 0x6ed   :  { %v4071_v16 = vpop.eup %4070  ;;  %3812 = vrot.lane.b32.xlu2 %v3811_v43, %s4325_s4 }
 0x6ee   :  { %v2542_v47 = vmul.f32 %v4071_v16, %v5410_v52  ;;  %v2460_v46 = vpop.xlane.xlu0 %2459  ;;  %v4073_v24 = vpop.eup %4072 }
 0x6ef   :  { %4074 = vrcp.f32 %v2460_v46  ;;  %v2469_v48 = vpop.xlane.xlu1 %2468  ;;  %v2551_v44 = vmul.f32 %v4073_v24, %v5412_v59 }
 0x6f0   :  { %v2574_v63 = vpack.c.bf16 %v2542_v47, %v2542_v47  ;;  %4076 = vrcp.f32 %v2469_v48  ;;  %v5728_v47 = vld [vmem:[#allocation30_spill] sm:$0xff]  ;;  %v5729_v48 = vld [vmem:[#allocation29_spill] sm:$0xff] }
 0x6f1   :  { %4078 = vrcp.f32 %v5493_v7  ;;  %v2583_v62 = vpack.c.bf16 %v2551_v44, %v2551_v44 }
 0x6f2   :  { %v2684_v41 = vunpack.c.l.b16 %v2574_v63  ;;  %4080 = vrcp.f32 %v2463_v25 }
 0x6f3   :  { %v2818_v60 = vunpack.c.l.b16 %v2583_v62 }
 0x6f4   :  { %v2685_v49 = vpack.c.b16 %v2684_v41, %v2683_v10 }
 0x6f5   :  { %v4075_v37 = vpop.eup %4074 }
 0x6f6   :  { %v2552_v52 = vmul.f32 %v4075_v37, %v5423_v1  ;;  %v2472_v39 = vpop.xlane.xlu0 %2471  ;;  %3629 = vmatmul.msk.bf16.vlgmr.msra.gmra.mxu2 %vm2214_vm6, %v2685_v49  ;;  %v4077_v30 = vpop.eup %4076 }
 0x6f7   :  { %4082 = vrcp.f32 %v2472_v39  ;;  %2917 = vmatpush.bf16.msra.mxu2 %v2908_v21  ;;  %v2481_v13 = vpop.xlane.xlu2 %2480  ;;  %v2451_v59 = vpop.xlane.xlu1 %2450  ;;  %v2555_v7 = vmul.f32 %v4077_v30, %v5427_v29  ;;  %v5727_v29 = vpack.i.bf16 %v5152_v23, %v5127_v2  ;;  %v5730_v21 = vld [vmem:[#allocation32_spill] sm:$0xff] }
 0x6f8   :  { %v2584_v15 = vpack.c.bf16 %v2552_v52, %v2552_v52  ;;  %v4079_v8 = vpop.eup %4078  ;;  %4084 = vrcp.f32 %v2451_v59 }
 0x6f9   :  { %v4081_v34 = vpop.eup %4080  ;;  %v2554_v1 = vmul.f32 %v4079_v8, %v5385_v32  ;;  %v2587_v31 = vpack.c.bf16 %v2555_v7, %v2555_v7  ;;  %v5732_v7 = vld [vmem:[#allocation28_spill] sm:$0xff] }
 0x6fa   :  { %v2819_v55 = vunpack.c.l.b16 %v2584_v15  ;;  %v2553_v45 = vmul.f32 %v4081_v34, %v5363_v50 }
 0x6fb   :  { %v2586_v28 = vpack.c.bf16 %v2554_v1, %v2554_v1  ;;  %v2872_v19 = vunpack.c.l.b16 %v2587_v31 }
 0x6fc   :  { %v2820_v9 = vpack.c.b16 %v2819_v55, %v2818_v60  ;;  %v2585_v27 = vpack.c.bf16 %v2553_v45, %v2553_v45  ;;  %v5731_v60 = vld [vmem:[#allocation31_spill] sm:$0xff] }
 0x6fd   :  { %v4083_v6 = vpop.eup %4082  ;;  %v2846_v56 = vunpack.c.l.b16 %v2586_v28 }
 0x6fe   :  { %v2556_v14 = vmul.f32 %v4083_v6, %v5435_v3  ;;  %3634 = vmatmul.msk.bf16.vlgmr.msrb.gmra.mxu3 %vm2214_vm6, %v2820_v9  ;;  %v4085_v58 = vpop.eup %4084  ;;  %v2845_v0 = vunpack.c.l.b16 %v2585_v27 }
 0x6ff   :  { %v2496_v18 = vpop.xlane.xlu2 %2495  ;;  %v2549_v3 = vmul.f32 %v4085_v58, %v5432_v4 }
 0x700   :  { %v2588_v26 = vpack.c.bf16 %v2556_v14, %v2556_v14  ;;  %v2454_v36 = vpop.xlane.xlu1 %2453  ;;  %v2847_v61 = vpack.c.b16 %v2846_v56, %v2845_v0 }
 0x701   :  { %4086 = vrcp.f32 %v2454_v36  ;;  %3802 = vrot.lane.b32.xlu1 %v5727_v29, %s4330_s19  ;;  %v2581_v57 = vpack.c.bf16 %v2549_v3, %v2549_v3 }
 0x702   :  { %v2873_v32 = vunpack.c.l.b16 %v2588_v26  ;;  %4088 = vrcp.f32 %v2481_v13 }
 0x703   :  { %v2791_v4 = vunpack.c.l.b16 %v2581_v57 }
 0x704   :  { %v2874_v40 = vpack.c.b16 %v2873_v32, %v2872_v19 }
 0x706   :  { %3636 = vmatmul.msk.bf16.vlgmr.msrb.gmra.mxu1 %vm2214_vm6, %v2874_v40 }
 0x707   :  { %v4087_v50 = vpop.eup %4086  ;;  %v2849_v22 = vpop.permute.xlu2 %2848 }
 0x708   :  { %v2550_v38 = vmul.f32 %v4087_v50, %v5450_v42  ;;  %v2475_v33 = vpop.xlane.xlu1 %2474  ;;  %v2484_v2 = vpop.xlane.xlu0 %2483  ;;  %v2854_v23 = vsel %vm2609_vm5, %v2849_v22, 0 }
 0x709   :  { %2863 = vmatpush.bf16.msra.mxu0 %v2854_v23  ;;  %v4089_v25 = vpop.eup %4088  ;;  %4090 = vrcp.f32 %v2484_v2  ;;  %v5733_v23 = vld [vmem:[#allocation33_spill] sm:$0xff] }
 0x70a   :  { %v2582_v17 = vpack.c.bf16 %v2550_v38, %v2550_v38  ;;  %4092 = vrcp.f32 %v2475_v33  ;;  %v2559_v11 = vmul.f32 %v4089_v25, %v5437_v51 }
 0x70c   :  { %v2792_v5 = vunpack.c.l.b16 %v2582_v17  ;;  %3635 = vmatmul.msk.bf16.vlgmr.msra.gmra.mxu0 %vm2214_vm6, %v2847_v61  ;;  %v2591_v20 = vpack.c.bf16 %v2559_v11, %v2559_v11 }
 0x70e   :  { %v2793_v54 = vpack.c.b16 %v2792_v5, %v2791_v4  ;;  %v2926_v41 = vunpack.c.l.b16 %v2591_v20 }
 0x70f   :  { %v4091_v43 = vpop.eup %4090 }
 0x710   :  { %v2478_v16 = vpop.xlane.xlu1 %2477  ;;  %3633 = vmatmul.msk.bf16.vlgmr.msrb.gmra.mxu2 %vm2214_vm6, %v2793_v54  ;;  %v4093_v42 = vpop.eup %4092  ;;  %v2560_v46 = vmul.f32 %v4091_v43, %v5728_v47  ;;  %v5734_v54 = vld [vmem:[#allocation24_spill] sm:$0xff]  ;;  %v5735_v43 = vld [vmem:[#allocation27_spill] sm:$0xff] }
 0x711   :  { %4094 = vrcp.f32 %v2478_v16  ;;  %v2493_v63 = vpop.xlane.xlu0 %2492  ;;  %v2557_v10 = vmul.f32 %v4093_v42, %v5729_v48  ;;  %v3841_v16 = vpack.i.bf16 %v5735_v43, %v5734_v54  ;;  %v3766_v54 = vld [vmem:[#allocation11 + $0x60] sm:$0xff] }
 0x712   :  { %v2592_v24 = vpack.c.bf16 %v2560_v46, %v2560_v46  ;;  %4096 = vrcp.f32 %v2493_v63 }
 0x713   :  { %4098 = vrcp.f32 %v2496_v18  ;;  %v2589_v51 = vpack.c.bf16 %v2557_v10, %v2557_v10 }
 0x714   :  { %v2927_v44 = vunpack.c.l.b16 %v2592_v24 }
 0x715   :  { %v2899_v30 = vunpack.c.l.b16 %v2589_v51 }
 0x716   :  { %v2928_v37 = vpack.c.b16 %v2927_v44, %v2926_v41 }
 0x717   :  { %v4095_v49 = vpop.eup %4094 }
 0x718   :  { %v2558_v62 = vmul.f32 %v4095_v49, %v5730_v21  ;;  %3638 = vmatmul.msk.bf16.vlgmr.msra.gmra.mxu3 %vm2214_vm6, %v2928_v37  ;;  %v4097_v39 = vpop.eup %4096 }
 0x719   :  { %v4099_v15 = vpop.eup %4098  ;;  %v2563_v55 = vmul.f32 %v4097_v39, %v5731_v60  ;;  %v2499_v9 = vpop.xlane.xlu0 %2498 }
 0x71a   :  { %v2590_v52 = vpack.c.bf16 %v2558_v62, %v2558_v62  ;;  %v2564_v8 = vmul.f32 %v4099_v15, %v5732_v7  ;;  %4100 = vrcp.f32 %v2499_v9  ;;  %v5737_v7 = vld [vmem:[#allocation25_spill] sm:$0xff] }
 0x71b   :  { %v2595_v34 = vpack.c.bf16 %v2563_v55, %v2563_v55  ;;  %v5736_v55 = vld [vmem:[#allocation26_spill] sm:$0xff] }
 0x71c   :  { %v2900_v13 = vunpack.c.l.b16 %v2590_v52  ;;  %v2596_v6 = vpack.c.bf16 %v2564_v8, %v2564_v8  ;;  %v5738_v8 = vpack.i.bf16 %v5736_v55, %v5737_v7 }
 0x71d   :  { %v2980_v1 = vunpack.c.l.b16 %v2595_v34 }
 0x71e   :  { %v2901_v59 = vpack.c.b16 %v2900_v13, %v2899_v30  ;;  %v2981_v14 = vunpack.c.l.b16 %v2596_v6 }
 0x720   :  { %3637 = vmatmul.msk.bf16.vlgmr.msra.gmra.mxu2 %vm2214_vm6, %v2901_v59  ;;  %v2982_v45 = vpack.c.b16 %v2981_v14, %v2980_v1  ;;  %v4101_v57 = vpop.eup %4100 }
 0x721   :  { %v2565_v25 = vmul.f32 %v4101_v57, %v5733_v23  ;;  %v3757_v57 = vld [vmem:[#allocation11 + $0x18] sm:$0xff]  ;;  %v3768_v23 = vld [vmem:[#allocation11 + $0x70] sm:$0xff] }
 0x723   :  { %v2597_v17 = vpack.c.bf16 %v2565_v25, %v2565_v25  ;;  %v3755_v25 = vld [vmem:[#allocation11 + $0x8] sm:$0xff] }
 0x725   :  { %v3007_v20 = vunpack.c.l.b16 %v2597_v17  ;;  %v3767_v17 = vld [vmem:[#allocation11 + $0x68] sm:$0xff] }
 0x728   :  { %v2984_v31 = vpop.permute.xlu1 %2983 }
 0x729   :  { %v2989_v18 = vsel %vm2609_vm5, %v2984_v31, 0 }
 0x72a   :  { %2998 = vmatpush.bf16.msra.mxu1 %v2989_v18  ;;  %v3011_v26 = vpop.permute.xlu0 %3010 }
 0x72b   :  { %v3016_v36 = vsel %vm2609_vm5, %v3011_v26, 0 }
 0x72c   :  { %3025 = vmatpush.bf16.msrb.mxu2 %v3016_v36  ;;  %v5598_v37 = vpop.f32.mrf.mxu0 }
 0x72d   :  { %3640 = vmatmul.msk.bf16.vlgmr.msra.gmra.mxu1 %vm2214_vm6, %v2982_v45 }
 0x732   :  { %v2957_v58 = vpop.permute.xlu0 %2956 }
 0x733   :  { %v2962_v29 = vsel %vm2609_vm5, %v2957_v58, 0 }
 0x734   :  { %2971 = vmatpush.bf16.msrb.mxu0 %v2962_v29  ;;  %v5600_v52 = vpop.f32.mrf.mxu0 }
 0x73a   :  { %v5582_v28 = vpop.f32.mrf.mxu3 }
 0x73c   :  { %v2676_v19 = vpop.f32.mrf.mxu1  ;;  %v2757_v59 = vpop.f32.mrf.mxu0 }
 0x740   :  { %v2487_v50 = vpop.xlane.xlu2 %2486 }
 0x742   :  { %v5584_v32 = vpop.f32.mrf.mxu3 }
 0x744   :  { %v2678_v27 = vpop.f32.mrf.mxu1  ;;  %v2759_v34 = vpop.f32.mrf.mxu0 }
 0x745   :  { %v3816_v40 = vpack.i.bf16 %v2678_v27, %v2676_v19  ;;  %v3846_v9 = vpack.i.bf16 %v2759_v34, %v2757_v59 }
 0x747   :  { %3817 = vrot.lane.b32.xlu0 %v3816_v40, %s4328_s1 }
 0x74a   :  { %v2730_v3 = vpop.f32.mrf.mxu3 }
 0x74d   :  { %v2784_v56 = vpop.f32.mrf.mxu1 }
 0x752   :  { %v2732_v0 = vpop.f32.mrf.mxu3 }
 0x753   :  { %v2502_v22 = vpop.xlane.xlu1 %2501  ;;  %v3821_v38 = vpack.i.bf16 %v2732_v0, %v2730_v3  ;;  %v3758_v0 = vld [vmem:[#allocation11 + $0x20] sm:$0xff] }
 0x754   :  { %4102 = vrcp.f32 %v2502_v22  ;;  %v3759_v22 = vld [vmem:[#allocation11 + $0x28] sm:$0xff] }
 0x755   :  { %v2786_v33 = vpop.f32.mrf.mxu1  ;;  %4104 = vrcp.f32 %v2487_v50  ;;  %3822 = vrot.lane.b32.xlu2 %v3821_v38, %s4326_s5  ;;  %v3760_v50 = vld [vmem:[#allocation11 + $0x30] sm:$0xff]  ;;  %v3769_v38 = vld [vmem:[#allocation11 + $0x78] sm:$0xff] }
 0x756   :  { %v3826_v2 = vpack.i.bf16 %v2786_v33, %v2784_v56  ;;  %v3761_v56 = vld [vmem:[#allocation11 + $0x38] sm:$0xff]  ;;  %v3793_v33 = vpop.permute.xlu0 %3792  ;;  %3321 = vmatpush.bf16.msra.mxu0 %v3769_v38 }
 0x757   :  { %3240 = vmatpush.bf16.msrb.mxu3 %v3761_v56 }
 0x758   :  { %3827 = vrot.lane.b32.xlu0 %v3826_v2, %s4330_s19  ;;  %v3756_v2 = vld [vmem:[#allocation11 + $0x10] sm:$0xff] }
 0x75a   :  { %v4103_v61 = vpop.eup %4102  ;;  %3322 = vmatpush.bf16.msra.mxu0 %v3768_v23 }
 0x75b   :  { %v2566_v4 = vmul.f32 %v4103_v61, %v5532_v35  ;;  %v2490_v5 = vpop.xlane.xlu1 %2489  ;;  %v4105_v11 = vpop.eup %4104  ;;  %3241 = vmatpush.bf16.msrb.mxu3 %v3760_v50 }
 0x75c   :  { %4106 = vrcp.f32 %v2490_v5  ;;  %v2561_v47 = vmul.f32 %v4105_v11, %v5515_v53  ;;  %v3754_v11 = vld [vmem:[#allocation11] sm:$0xff] }
 0x75d   :  { %v2598_v42 = vpack.c.bf16 %v2566_v4, %v2566_v4 }
 0x75e   :  { %v2593_v48 = vpack.c.bf16 %v2561_v47, %v2561_v47  ;;  %3323 = vmatpush.bf16.msra.mxu0 %v3767_v17  ;;  %v3808_v5 = vpop.permute.xlu0 %3807 }
 0x75f   :  { %v3008_v46 = vunpack.c.l.b16 %v2598_v42  ;;  %3242 = vmatpush.bf16.msrb.mxu3 %v3759_v22  ;;  %v3765_v42 = vld [vmem:[#allocation11 + $0x58] sm:$0xff]  ;;  %v3810_v34 = vunpack.i.h.bf16 %v3808_v5 }
 0x760   :  { %3842 = vrot.lane.b32.xlu0 %v3841_v16, %s4327_s17  ;;  %v2953_v41 = vunpack.c.l.b16 %v2593_v48 }
 0x761   :  { %v3009_v24 = vpack.c.b16 %v3008_v46, %v3007_v20  ;;  %v3764_v46 = vld [vmem:[#allocation11 + $0x50] sm:$0xff] }
 0x762   :  { %v4107_v63 = vpop.eup %4106  ;;  %3324 = vmatpush.bf16.msra.mxu0 %v3766_v54 }
 0x763   :  { %v2562_v10 = vmul.f32 %v4107_v63, %v5536_v12  ;;  %3641 = vmatmul.msk.bf16.vlgmr.msrb.gmra.mxu2 %vm2214_vm6, %v3009_v24  ;;  %3243 = vmatpush.bf16.msrb.mxu3 %v3758_v0  ;;  %v3798_v63 = vpop.permute.xlu2 %3797 }
 0x765   :  { %v2594_v35 = vpack.c.bf16 %v2562_v10, %v2562_v10  ;;  %v3763_v10 = vld [vmem:[#allocation11 + $0x48] sm:$0xff] }
 0x766   :  { %3325 = vmatpush.bf16.msra.mxu0 %v3765_v42 }
 0x767   :  { %v2954_v44 = vunpack.c.l.b16 %v2594_v35  ;;  %3244 = vmatpush.bf16.msrb.mxu3 %v3757_v57 }
 0x769   :  { %v2955_v49 = vpack.c.b16 %v2954_v44, %v2953_v41  ;;  %v3762_v41 = vld [vmem:[#allocation11 + $0x40] sm:$0xff]  ;;  %v3795_v44 = vunpack.i.h.bf16 %v3793_v33 }
 0x76a   :  { %3326 = vmatpush.bf16.msra.mxu0 %v3764_v46 }
 0x76b   :  { %3639 = vmatmul.msk.bf16.vlgmr.msrb.gmra.mxu0 %vm2214_vm6, %v2955_v49  ;;  %3245 = vmatpush.bf16.msrb.mxu3 %v3756_v2  ;;  %v3794_v49 = vunpack.i.l.bf16 %v3793_v33  ;;  %v3813_v59 = vpop.permute.xlu2 %3812 }
 0x76e   :  { %3327 = vmatpush.bf16.msra.mxu0 %v3763_v10 }
 0x76f   :  { %3246 = vmatpush.bf16.msrb.mxu3 %v3755_v25 }
 0x772   :  { %3328 = vmatpush.bf16.msra.mxu0 %v3762_v41 }
 0x773   :  { %3247 = vmatpush.bf16.msrb.mxu3 %v3754_v11  ;;  %v3803_v48 = vpop.permute.xlu1 %3802 }
 0x779   :  { %v2703_v51 = vpop.f32.mrf.mxu2 }
 0x781   :  { %v2705_v53 = vpop.f32.mrf.mxu2  ;;  %v2838_v21 = vpop.f32.mrf.mxu3 }
 0x782   :  { %v3851_v62 = vpack.i.bf16 %v2705_v53, %v2703_v51  ;;  %v3800_v51 = vunpack.i.h.bf16 %v3798_v63  ;;  %v3799_v53 = vunpack.i.l.bf16 %v3798_v63 }
 0x783   :  { %v2892_v39 = vpop.f32.mrf.mxu1 }
 0x784   :  { %3852 = vrot.lane.b32.xlu2 %v3851_v62, %s4328_s1  ;;  %v3804_v62 = vunpack.i.l.bf16 %v3803_v48 }
 0x789   :  { %v2840_v12 = vpop.f32.mrf.mxu3  ;;  %v2865_v29 = vpop.f32.mrf.mxu0 }
 0x78a   :  { %v3831_v30 = vpack.i.bf16 %v2840_v12, %v2838_v21  ;;  %v3805_v21 = vunpack.i.h.bf16 %v3803_v48  ;;  %v5739_v12 = vld [vmem:[#allocation23_spill] sm:$0xff] }
 0x78b   :  { %v2894_v13 = vpop.f32.mrf.mxu1 }
 0x78c   :  { %v3856_v15 = vpack.i.bf16 %v2894_v13, %v2892_v39  ;;  %3832 = vrot.lane.b32.xlu1 %v3831_v30, %s4322_s15  ;;  %v1810_v30 = vsel %vm752_vm3, %v5739_v12, %v3795_v44  ;;  %v5740_v13 = vld [vmem:[#allocation22_spill] sm:$0xff] }
 0x78e   :  { %3857 = vrot.lane.b32.xlu0 %v3856_v15, %s4325_s4  ;;  %v1809_v15 = vsel %vm752_vm3, %v5740_v13, %v3794_v49 }
 0x78f   :  { %v1812_v55 = vsel %vm765_vm4, %v1809_v15, %v3799_v53 }
 0x790   :  { %v1815_v7 = vsel %vm1814_vm7, %v1812_v55, %v3804_v62 }
 0x791   :  { %v2867_v40 = vpop.f32.mrf.mxu0 }
 0x792   :  { %v3876_v3 = vpack.i.bf16 %v2867_v40, %v2865_v29 }
 0x793   :  { %v2811_v60 = vpop.f32.mrf.mxu2 }
 0x794   :  { %3837 = vrot.lane.b32.xlu1 %v5738_v8, %s4329_s18 }
 0x79b   :  { %v2813_v6 = vpop.f32.mrf.mxu2  ;;  %v2946_v1 = vpop.f32.mrf.mxu3 }
 0x79c   :  { %3847 = vrot.lane.b32.xlu1 %v3846_v9, %s4326_s5  ;;  %v3866_v58 = vpack.i.bf16 %v2813_v6, %v2811_v60  ;;  %v1813_v60 = vsel %vm765_vm4, %v1810_v30, %v3800_v51  ;;  %v3809_v9 = vunpack.i.l.bf16 %v3808_v5 }
 0x79d   :  { %v1816_v8 = vsel %vm1814_vm7, %v1813_v60, %v3805_v21 }
 0x79e   :  { %v1818_v6 = vsel %vm1817_vm8, %v1815_v7, %v3809_v9 }
 0x7a3   :  { %v2919_v31 = vpop.f32.mrf.mxu2  ;;  %v2948_v14 = vpop.f32.mrf.mxu3 }
 0x7a4   :  { %v3861_v18 = vpack.i.bf16 %v2948_v14, %v2946_v1  ;;  %v1819_v1 = vsel %vm1817_vm8, %v1816_v8, %v3810_v34  ;;  %v3815_v14 = vunpack.i.h.bf16 %v3813_v59 }
 0x7a6   :  { %3862 = vrot.lane.b32.xlu0 %v3861_v18, %s4329_s18  ;;  %v3814_v18 = vunpack.i.l.bf16 %v3813_v59  ;;  %v1822_v40 = vsel %vm1820_vm9, %v1819_v1, %v3815_v14 }
 0x7aa   :  { %v3000_v45 = vpop.f32.mrf.mxu1 }
 0x7ab   :  { %v2921_v26 = vpop.f32.mrf.mxu2 }
 0x7ac   :  { %v3881_v36 = vpack.i.bf16 %v2921_v26, %v2919_v31 }
 0x7ae   :  { %3882 = vrot.lane.b32.xlu1 %v3881_v36, %s4325_s4  ;;  %3867 = vrot.lane.b32.xlu0 %v3866_v58, %s4330_s19 }
 0x7af   :  { %v3823_v58 = vpop.permute.xlu2 %3822 }
 0x7b0   :  { %v3824_v5 = vunpack.i.l.bf16 %v3823_v58 }
 0x7b2   :  { %v3002_v19 = vpop.f32.mrf.mxu1 }
 0x7b3   :  { %v3871_v27 = vpack.i.bf16 %v3002_v19, %v3000_v45 }
 0x7b5   :  { %3872 = vrot.lane.b32.xlu2 %v3871_v27, %s4327_s17  ;;  %v1821_v27 = vsel %vm1820_vm9, %v1818_v6, %v3814_v18 }
 0x7b9   :  { %v3818_v24 = vpop.permute.xlu0 %3817 }
 0x7ba   :  { %v3820_v57 = vunpack.i.h.bf16 %v3818_v24  ;;  %v3819_v38 = vunpack.i.l.bf16 %v3818_v24 }
 0x7bc   :  { %v3145_v23 = vsel %vm752_vm3, %v5584_v32, %v3820_v57  ;;  %v3144_v25 = vsel %vm752_vm3, %v5582_v28, %v3819_v38 }
 0x7bd   :  { %3877 = vrot.lane.b32.xlu2 %v3876_v3, %s4322_s15 }
 0x7ca   :  { %v3828_v35 = vpop.permute.xlu0 %3827 }
 0x7cb   :  { %v3829_v17 = vunpack.i.l.bf16 %v3828_v35 }
 0x7d2   :  { %v3843_v31 = vpop.permute.xlu0 %3842 }
 0x7d3   :  { %v3845_v29 = vunpack.i.h.bf16 %v3843_v31  ;;  %v3844_v19 = vunpack.i.l.bf16 %v3843_v31 }
 0x7de   :  { %v3853_v33 = vpop.permute.xlu2 %3852 }
 0x7df   :  { %v3855_v13 = vunpack.i.h.bf16 %v3853_v33  ;;  %v3854_v15 = vunpack.i.l.bf16 %v3853_v33 }
 0x7e1   :  { %v3147_v34 = vsel %vm752_vm3, %v5600_v52, %v3855_v13  ;;  %v3146_v9 = vsel %vm752_vm3, %v5598_v37, %v3854_v15 }
 0x7e6   :  { %v3027_v61 = vpop.f32.mrf.mxu2 }
 0x7e8   :  { %v2973_v4 = vpop.f32.mrf.mxu0 }
 0x7ee   :  { %v3029_v43 = vpop.f32.mrf.mxu2 }
 0x7ef   :  { %v3891_v16 = vpack.i.bf16 %v3029_v43, %v3027_v61  ;;  %v3830_v61 = vunpack.i.h.bf16 %v3828_v35  ;;  %v3148_v43 = vsel %vm765_vm4, %v3144_v25, %v3824_v5  ;;  %v3901_v5 = vld [vmem:[%s5689_s6 + $0x1] ss:$0 sm:$0xff] }
 0x7f0   :  { %v2975_v20 = vpop.f32.mrf.mxu0  ;;  %v3152_v42 = vsel %vm1814_vm7, %v3148_v43, %v3829_v17 }
 0x7f1   :  { %v3886_v47 = vpack.i.bf16 %v2975_v20, %v2973_v4  ;;  %3892 = vrot.lane.b32.xlu2 %v3891_v16, %s4327_s17  ;;  %v3825_v4 = vunpack.i.h.bf16 %v3823_v58 }
 0x7f3   :  { %3887 = vrot.lane.b32.xlu0 %v3886_v47, %s4329_s18  ;;  %v3149_v16 = vsel %vm765_vm4, %v3145_v23, %v3825_v4  ;;  %v3900_v23 = vld [vmem:[%s5689_s6] ss:$0 sm:$0xff]  ;;  %s3365_s6 = sshll.u32 %s5691_s8, 4  ;;  %s3366_s6 = int_to_ptr.hbm [resolvable:$true] %s3365_s6 }
 0x7f4   :  { %v3153_v20 = vsel %vm1814_vm7, %v3149_v16, %v3830_v61 }
 0x7fe   :  { %v3833_v39 = vpop.permute.xlu1 %3832 }
 0x7ff   :  { %v3835_v11 = vunpack.i.h.bf16 %v3833_v39  ;;  %v3834_v54 = vunpack.i.l.bf16 %v3833_v39 }
 0x800   :  { %v3858_v2 = vpop.permute.xlu0 %3857 }
 0x801   :  { %v3860_v47 = vunpack.i.h.bf16 %v3858_v2  ;;  %v3859_v46 = vunpack.i.l.bf16 %v3858_v2  ;;  %v3156_v32 = vsel %vm1817_vm8, %v3152_v42, %v3834_v54  ;;  %v3157_v28 = vsel %vm1817_vm8, %v3153_v20, %v3835_v11 }
 0x803   :  { %v3160_v35 = vsel %vm1820_vm9, %v3156_v32, %v3859_v46  ;;  %v3161_v41 = vsel %vm1820_vm9, %v3157_v28, %v3860_v47 }
 0x806   :  { %v3838_v45 = vpop.permute.xlu1 %3837 }
 0x807   :  { %v3840_v26 = vunpack.i.h.bf16 %v3838_v45  ;;  %v3839_v36 = vunpack.i.l.bf16 %v3838_v45 }
 0x809   :  { %v1824_v3 = vsel %vm1823_vm10, %v1821_v27, %v3839_v36  ;;  %v1825_v56 = vsel %vm1823_vm10, %v1822_v40, %v3840_v26 }
 0x80a   :  { %v1827_v50 = vsel %vm1826_vm11, %v1824_v3, %v3844_v19  ;;  %v1828_v22 = vsel %vm1826_vm11, %v1825_v56, %v3845_v29 }
 0x80b   :  { %v1829_v0 = vpack.c.bf16 %v1828_v22, %v1827_v50 }
 0x80d   :  { %3248 = vmatmul.bf16.vlgmr.msrb.gmra.mxu3 %v1829_v0 }
 0x80e   :  { %v3848_v12 = vpop.permute.xlu1 %3847 }
 0x80f   :  { %v3873_v24 = vpop.permute.xlu2 %3872  ;;  %v3850_v59 = vunpack.i.h.bf16 %v3848_v12  ;;  %v3849_v60 = vunpack.i.l.bf16 %v3848_v12 }
 0x810   :  { %v3875_v44 = vunpack.i.h.bf16 %v3873_v24  ;;  %v3874_v49 = vunpack.i.l.bf16 %v3873_v24 }
 0x811   :  { %v3150_v6 = vsel %vm765_vm4, %v3146_v9, %v3849_v60  ;;  %v3151_v1 = vsel %vm765_vm4, %v3147_v34, %v3850_v59 }
 0x817   :  { %v3878_v55 = vpop.permute.xlu2 %3877 }
 0x818   :  { %v3863_v63 = vpop.permute.xlu0 %3862  ;;  %v3880_v18 = vunpack.i.h.bf16 %v3878_v55  ;;  %v3879_v45 = vunpack.i.l.bf16 %v3878_v55 }
 0x819   :  { %v3865_v48 = vunpack.i.h.bf16 %v3863_v63  ;;  %v3864_v10 = vunpack.i.l.bf16 %v3863_v63 }
 0x81b   :  { %v3164_v51 = vsel %vm1823_vm10, %v3160_v35, %v3864_v10  ;;  %v3165_v53 = vsel %vm1823_vm10, %v3161_v41, %v3865_v48 }
 0x81c   :  { %v3168_v21 = vsel %vm1826_vm11, %v3164_v51, %v3874_v49  ;;  %v3169_v62 = vsel %vm1826_vm11, %v3165_v53, %v3875_v44 }
 0x81d   :  { %v3172_v39 = vpack.c.bf16 %v3169_v62, %v3168_v21 }
 0x81f   :  { %3329 = vmatmul.bf16.vlgmr.msra.gmra.mxu0 %v3172_v39 }
 0x820   :  { %v3868_v30 = vpop.permute.xlu0 %3867  ;;  %v3883_v26 = vpop.permute.xlu1 %3882 }
 0x821   :  { %v3870_v7 = vunpack.i.h.bf16 %v3868_v30  ;;  %v3869_v8 = vunpack.i.l.bf16 %v3868_v30  ;;  %v3885_v52 = vunpack.i.h.bf16 %v3883_v26  ;;  %v3884_v19 = vunpack.i.l.bf16 %v3883_v26 }
 0x823   :  { %v3154_v31 = vsel %vm1814_vm7, %v3150_v6, %v3869_v8  ;;  %v3155_v14 = vsel %vm1814_vm7, %v3151_v1, %v3870_v7 }
 0x824   :  { %v3158_v36 = vsel %vm1817_vm8, %v3154_v31, %v3879_v45  ;;  %v3159_v58 = vsel %vm1817_vm8, %v3155_v14, %v3880_v18 }
 0x825   :  { %v3162_v50 = vsel %vm1820_vm9, %v3158_v36, %v3884_v19  ;;  %v3163_v22 = vsel %vm1820_vm9, %v3159_v58, %v3885_v52 }
 0x84b   :  { %v3893_v29 = vpop.permute.xlu2 %3892 }
 0x84c   :  { %v3895_v3 = vunpack.i.h.bf16 %v3893_v29  ;;  %v3894_v56 = vunpack.i.l.bf16 %v3893_v29 }
 0x865   :  { %v3888_v27 = vpop.permute.xlu0 %3887 }
 0x866   :  { %v3890_v37 = vunpack.i.h.bf16 %v3888_v27  ;;  %v3889_v40 = vunpack.i.l.bf16 %v3888_v27 }
 0x868   :  { %v3166_v0 = vsel %vm1823_vm10, %v3162_v50, %v3889_v40  ;;  %v3167_v57 = vsel %vm1823_vm10, %v3163_v22, %v3890_v37 }
 0x869   :  { %v3170_v38 = vsel %vm1826_vm11, %v3166_v0, %v3894_v56  ;;  %v3171_v33 = vsel %vm1826_vm11, %v3167_v57, %v3895_v3 }
 0x86a   :  { %v3173_v2 = vpack.c.bf16 %v3171_v33, %v3170_v38 }
 0x86c   :  { %3334 = vmatmul.bf16.gmra.mxu0 %v3173_v2 }
 0x890   :  { %v3249_v25 = vpop.f32.mrf.mxu3 }
 0x891   :  { %v3250_v61 = vadd.f32 %v3900_v23, %v3249_v25 }
 0x893   :  { %3340 = vst [vmem:[#allocation13] sm:$0xff] %v3250_v61 }
 0x898   :  { %v3251_v17 = vpop.f32.mrf.mxu3 }
 0x899   :  { %v3252_v4 = vadd.f32 %v3900_v23, %v3251_v17 }
 0x89b   :  { %3341 = vst [vmem:[#allocation13 + $0x8] sm:$0xff] %v3252_v4 }
 0x89c   :  { %3358 = dma.vmem_to_hbm [thread:$0]  %s3351_s22, 256, %s3353_s25, [#allocation4], %s4313_s13, %s4313_s13, %s4314_s14   ;;  %v3330_v11 = vpop.f32.mrf.mxu0 }
 0x89d   :  { %v3331_v54 = vadd.f32 %v3901_v5, %v3330_v11 }
 0x89f   :  { %3342 = vst [vmem:[#allocation14] sm:$0xff] %v3331_v54 }
 0x8a4   :  { %v3332_v43 = vpop.f32.mrf.mxu0 }
 0x8a5   :  { %v3333_v16 = vadd.f32 %v3901_v5, %v3332_v43 }
 0x8a7   :  { %3343 = vst [vmem:[#allocation14 + $0x8] sm:$0xff] %v3333_v16 }
 0x8e9   :  { %v3335_v42 = vpop.f32.mrf.mxu0 }
 0x8ea   :  { %v3336_v20 = vadd.f32 %v3901_v5, %v3335_v42 }
 0x8ec   :  { %3344 = vst [vmem:[#allocation14 + $0x10] sm:$0xff] %v3336_v20 }
 0x8f1   :  { %v3337_v47 = vpop.f32.mrf.mxu0 }
 0x8f2   :  { %v3338_v46 = vadd.f32 %v3901_v5, %v3337_v47 }
 0x8f4   :  { %3345 = vst [vmem:[#allocation14 + $0x18] sm:$0xff] %v3338_v46 }
 0x8f5   :  { %3371 = dma.vmem_to_hbm [thread:$0]  %s3364_s28, 512, %s3366_s6, [#allocation15], %s4313_s13, %s4313_s13, %s4314_s14  }
 0x8f6   :  { %4308 = dma.done.wait [#allocation4], 256  }
 0x8f7   :  { %4309 = vsyncadd [#allocation4], 4294967040 }
 0x8f8   :  { %4310 = dma.done.wait [#allocation15], 512  }
 0x8f9   :  { %4311 = vsyncadd [#allocation15], 4294966784 }
 0x8fa   :  { %3380 = vsyncpa [#allocation3], 1 }
 0x8fb   :  { %3381 = vsyncpa [#allocation6], 1 }
 0x8fc   :  { %3382 = vsyncpa [#allocation9], 1 }
 0x8fd   :  { %3383 = vsyncpa [#allocation12], 1 }
 0x8fe   :  { %3384 = vsyncpa [#allocation4], 1 }
 0x8ff   :  { %3385 = vsyncpa [#allocation15], 1 }

</bundles_post_ra>
